<compile_context>
chip_gen: v7x
topology: tpu7x:2x2x1
jax: 0.10.0
libtpu: 0.0.40
codegen_flags: <defaults>
</compile_context>

<pallas_src>
import numpy as np
import jax
import jax.numpy as jnp
from jax import lax
from jax.experimental import pallas as pl
from jax.experimental.pallas import tpu as pltpu

VMEM = pltpu.MemorySpace.VMEM
BN_EPS = 1e-5
BF16 = jnp.bfloat16

# ----------------------------- static geometry ------------------------------
C1 = 32            # conv1 out channels
C2 = 64            # conv2 out channels
K1 = 9             # 3x3 taps
BLK1 = 200         # 14*14=196 pooled-layer-1 positions, padded to 200 (mult. of 8)
ROWS1 = 4 * BLK1   # 800 conv1-output rows per image, grouped by 2x2 pool-window slot
ROWS2 = 42         # 6*7 "width-wrapped" rows per conv2 output-parity class (col 6 = garbage)
HP2 = 6            # pooled layer-2 spatial extent
FEAT = HP2 * HP2 * C2   # 2304 flattened features

# Parity-major enumeration of the 14x14 pooled-layer-1 grid:
# local row = a*98 + b*49 + i*7 + j  <->  (ho1, wo1) = (2i+a, 2j+b)
_a, _b, _i, _j = np.meshgrid(np.arange(2), np.arange(2), np.arange(7), np.arange(7),
                             indexing="ij")
_HO1 = (2 * _i + _a).reshape(-1)          # [196]
_WO1 = (2 * _j + _b).reshape(-1)          # [196]
# valid rows of the conv2-pooled [42, 64] block (drop the wrapped v==6 column)
_VALID2 = np.array([u * 7 + v for u in range(6) for v in range(6)], np.int32)


# ------------------------------- Pallas kernels ------------------------------

def conv_stack_kernel(p1_ref, w1_ref, b1_ref, w2_ref, b2_ref, o_ref, act1_ref):
    """Per grid step: NB images of conv1(+BN)+ReLU+pool, conv2(+BN)+ReLU+pool, all in VMEM."""
    nb = p1_ref.shape[0]
    for n in range(nb):                                   # static, small unroll
        # ---- layer 1: one matmul over pool-window-grouped im2col rows ----
        c1 = jnp.dot(p1_ref[n], w1_ref[...], preferred_element_type=jnp.float32)   # [800, 32]
        c1 = jnp.maximum(c1 + b1_ref[...], 0.0)
        # 2x2 maxpool == elementwise max of the 4 contiguous 200-row blocks
        pool1 = jnp.maximum(jnp.maximum(c1[0 * BLK1:1 * BLK1], c1[1 * BLK1:2 * BLK1]),
                            jnp.maximum(c1[2 * BLK1:3 * BLK1], c1[3 * BLK1:4 * BLK1]))  # [200, 32]
        # rows in parity-major (a, b, i, j) order; rows 196..199 are zero padding
        act1_ref[...] = pool1.astype(BF16)                 # bf16 scratch (matmul operand dtype)

        # ---- layer 2: 3x3 valid conv per output-parity class, 9 contiguous-slice matmuls ----
        pooled2 = None
        for p in range(2):          # h2 parity
            for q in range(2):      # w2 parity
                acc = jnp.zeros((ROWS2, C2), jnp.float32)
                for ki in range(3):
                    for kj in range(3):
                        ap, al = (p + ki) % 2, (p + ki) // 2
                        bp, bl = (q + kj) % 2, (q + kj) // 2
                        off = ap * 98 + bp * 49 + al * 7 + bl
                        win = act1_ref[pl.ds(off, ROWS2), :]                  # [42, 32] bf16
                        wt = w2_ref[pl.ds((ki * 3 + kj) * C1, C1), :]         # [32, 64] bf16
                        acc = acc + jnp.dot(win, wt, preferred_element_type=jnp.float32)
                cls = jnp.maximum(acc + b2_ref[...], 0.0)                     # [42, 64]
                # the 4 parity classes at local (u, v) are exactly the 4 members of
                # pool window (u, v)  ->  2x2 maxpool is a 4-way elementwise max
                pooled2 = cls if pooled2 is None else jnp.maximum(pooled2, cls)
        # rows u*7+v; the v==6 column is width-wrap garbage and is dropped in the glue
        o_ref[n] = pooled2.astype(BF16)


def mlp_kernel(x_ref, w1_ref, b1_ref, w2_ref, b2_ref, w3_ref, b3_ref, o_ref):
    h1 = jnp.dot(x_ref[...], w1_ref[...], preferred_element_type=jnp.float32) + b1_ref[...]
    # TODO(synk): nn.Dropout(0.25) is identity in eval mode; training-mode masking not implemented.
    h2 = jnp.dot(h1.astype(BF16), w2_ref[...], preferred_element_type=jnp.float32) + b2_ref[...]
    o_ref[...] = jnp.dot(h2.astype(BF16), w3_ref[...], preferred_element_type=jnp.float32) + b3_ref[...]


# ----------------------------- pallas_call wrappers --------------------------

def _pick_block_batch(n):
    for nb in (4, 2, 1):
        if n % nb == 0:
            return nb
    return 1


def conv_stack(p1, w1, b1, w2, b2):
    n = p1.shape[0]
    nb = _pick_block_batch(n)
    return pl.pallas_call(
        conv_stack_kernel,
        out_shape=jax.ShapeDtypeStruct((n, ROWS2, C2), BF16),
        grid_spec=pltpu.PrefetchScalarGridSpec(
            num_scalar_prefetch=0,
            grid=(n // nb,),
            in_specs=[
                pl.BlockSpec((nb, ROWS1, K1), lambda i: (i, 0, 0)),  # per-step image patches
                pl.BlockSpec((K1, C1), lambda i: (0, 0)),            # conv1 weight (resident)
                pl.BlockSpec((1, C1), lambda i: (0, 0)),
                pl.BlockSpec((K1 * C1, C2), lambda i: (0, 0)),       # conv2 weight (resident)
                pl.BlockSpec((1, C2), lambda i: (0, 0)),
            ],
            out_specs=pl.BlockSpec((nb, ROWS2, C2), lambda i: (i, 0, 0)),
            scratch_shapes=[pltpu.VMEM((BLK1, C1), BF16)],           # layer-1 activation (bf16)
        ),
        compiler_params=pltpu.CompilerParams(dimension_semantics=("parallel",)),
    )(p1, w1, b1, w2, b2)


def mlp(x, w1, b1, w2, b2, w3, b3):
    n = x.shape[0]
    return pl.pallas_call(
        mlp_kernel,
        out_shape=jax.ShapeDtypeStruct((n, w3.shape[1]), jnp.float32),
        in_specs=[pl.BlockSpec(memory_space=VMEM) for _ in range(7)],
        out_specs=pl.BlockSpec(memory_space=VMEM),
    )(x, w1, b1, w2, b2, w3, b3)


# --------------------------------- glue (JAX) ---------------------------------

def fold_bn_into_conv(w_oihw, b, gamma, beta, mean, var):
    """Inference BatchNorm folded into the conv weight/bias."""
    s = gamma * lax.rsqrt(var + BN_EPS)
    return w_oihw * s[:, None, None, None], b * s + beta - mean * s


def build_layer1_patches(x_nhw):
    """[N,28,28] -> [N,800,9] bf16 im2col rows, grouped by 2x2 pool-window slot and
    ordered parity-major inside each group (+4 zero pad rows per group)."""
    n = x_nhw.shape[0]
    xpad = jnp.pad(x_nhw, ((0, 0), (1, 1), (1, 1)))
    cols = [xpad[:, ki:ki + 28, kj:kj + 28] for ki in range(3) for kj in range(3)]
    pat = jnp.stack(cols, axis=-1)                                   # [N, 28, 28, 9]
    zpad = jnp.zeros((n, BLK1 - 196, K1), pat.dtype)
    blocks = []
    for ph in range(2):
        for pw in range(2):
            blk = pat[:, 2 * _HO1 + ph, 2 * _WO1 + pw, :]            # [N, 196, 9]
            blocks.append(jnp.concatenate([blk, zpad], axis=1))      # [N, 200, 9]
    return jnp.concatenate(blocks, axis=1).astype(BF16)              # [N, 800, 9]


def fashion_cnn_forward(x_nchw, P):
    x = x_nchw[:, 0, :, :].astype(jnp.float32)                       # [N, 28, 28]
    n = x.shape[0]

    # fold BN into conv weights/bias; flatten weights for the kernels (bf16 operands)
    w1f, b1f = fold_bn_into_conv(P["conv1_w"], P["conv1_b"],
                                 P["bn1_gamma"], P["bn1_beta"], P["bn1_mean"], P["bn1_var"])
    w2f, b2f = fold_bn_into_conv(P["conv2_w"], P["conv2_b"],
                                 P["bn2_gamma"], P["bn2_beta"], P["bn2_mean"], P["bn2_var"])
    w1m = jnp.transpose(w1f, (2, 3, 1, 0)).reshape(K1, C1).astype(BF16)        # (tap, cout)
    w2m = jnp.transpose(w2f, (2, 3, 1, 0)).reshape(K1 * C1, C2).astype(BF16)   # (tap*32+cin, cout)

    # --- fused conv stack (one kernel, batch-blocked grid, activations stay in VMEM) ---
    p1 = build_layer1_patches(x)
    pooled2 = conv_stack(p1, w1m, b1f[None, :], w2m, b2f[None, :])             # [N, 42, 64] bf16

    # drop the width-wrap garbage column -> [N, 36, 64] -> flatten in (u, v, c) order
    feats = pooled2[:, _VALID2, :].reshape(n, FEAT)                            # [N, 2304] bf16

    # permute fc1 weight rows once so (u, v, c) flatten order matches torch's (c, u, v)
    w1p = (P["fc1_w"].reshape(600, C2, HP2, HP2)
           .transpose(0, 2, 3, 1).reshape(600, FEAT).T).astype(BF16)           # [2304, 600]

    return mlp(feats,
               w1p, P["fc1_b"][None, :],
               P["fc2_w"].T.astype(BF16), P["fc2_b"][None, :],
               P["fc3_w"].T.astype(BF16), P["fc3_b"][None, :])


# ------------------------- pure-JAX reference (check) -------------------------

def reference_forward(x_nchw, P):
    x = jnp.transpose(x_nchw, (0, 2, 3, 1)).astype(jnp.float32)
    dn = ("NHWC", "OIHW", "NHWC")

    def bn(y, g, b, m, v):
        s = g / jnp.sqrt(v + BN_EPS)
        return y * s[None, None, None, :] + (b - m * s)[None, None, None, :]

    y = lax.conv_general_dilated(x, P["conv1_w"], (1, 1), ((1, 1), (1, 1)),
                                 dimension_numbers=dn) + P["conv1_b"][None, None, None, :]
    y = jnp.maximum(bn(y, P["bn1_gamma"], P["bn1_beta"], P["bn1_mean"], P["bn1_var"]), 0.0)
    y = lax.reduce_window(y, -jnp.inf, lax.max, (1, 2, 2, 1), (1, 2, 2, 1), "VALID")

    y = lax.conv_general_dilated(y, P["conv2_w"], (1, 1), ((0, 0), (0, 0)),
                                 dimension_numbers=dn) + P["conv2_b"][None, None, None, :]
    y = jnp.maximum(bn(y, P["bn2_gamma"], P["bn2_beta"], P["bn2_mean"], P["bn2_var"]), 0.0)
    y = lax.reduce_window(y, -jnp.inf, lax.max, (1, 2, 2, 1), (1, 2, 2, 1), "VALID")

    flat = jnp.transpose(y, (0, 3, 1, 2)).reshape(y.shape[0], -1)
    h = flat @ P["fc1_w"].T + P["fc1_b"]
    h = h @ P["fc2_w"].T + P["fc2_b"]
    return h @ P["fc3_w"].T + P["fc3_b"]


# ------------------------------------ main ------------------------------------

def init_params(key):
    ks = jax.random.split(key, 20)
    f32 = jnp.float32
    return {
        "conv1_w": 0.2 * jax.random.normal(ks[0], (32, 1, 3, 3), f32),
        "conv1_b": 0.05 * jax.random.normal(ks[1], (32,), f32),
        "bn1_gamma": 1.0 + 0.1 * jax.random.normal(ks[2], (32,), f32),
        "bn1_beta": 0.05 * jax.random.normal(ks[3], (32,), f32),
        "bn1_mean": 0.05 * jax.random.normal(ks[4], (32,), f32),
        "bn1_var": 0.5 + jax.random.uniform(ks[5], (32,), f32),
        "conv2_w": (1.0 / np.sqrt(32 * 9)) * jax.random.normal(ks[6], (64, 32, 3, 3), f32),
        "conv2_b": 0.05 * jax.random.normal(ks[7], (64,), f32),
        "bn2_gamma": 1.0 + 0.1 * jax.random.normal(ks[8], (64,), f32),
        "bn2_beta": 0.05 * jax.random.normal(ks[9], (64,), f32),
        "bn2_mean": 0.05 * jax.random.normal(ks[10], (64,), f32),
        "bn2_var": 0.5 + jax.random.uniform(ks[11], (64,), f32),
        "fc1_w": (1.0 / np.sqrt(2304)) * jax.random.normal(ks[12], (600, 2304), f32),
        "fc1_b": 0.05 * jax.random.normal(ks[13], (600,), f32),
        "fc2_w": (1.0 / np.sqrt(600)) * jax.random.normal(ks[14], (120, 600), f32),
        "fc2_b": 0.05 * jax.random.normal(ks[15], (120,), f32),
        "fc3_w": (1.0 / np.sqrt(120)) * jax.random.normal(ks[16], (10, 120), f32),
        "fc3_b": 0.05 * jax.random.normal(ks[17], (10,), f32),
    }


if __name__ == "__main__":
    key = jax.random.PRNGKey(0)
    pkey, xkey = jax.random.split(key)
    params = init_params(pkey)

    # FashionMNIST-style input: batch=2, 1 channel, 28x28 (required by fc1 = 64*6*6).
    x = jax.random.normal(xkey, (2, 1, 28, 28), jnp.float32)

    out = jax.jit(fashion_cnn_forward)(x, params)
    out = jax.block_until_ready(out)
    assert out.shape == (2, 10) and out.dtype == jnp.float32

    ref = jax.block_until_ready(reference_forward(x, params))
    np.testing.assert_allclose(np.asarray(out), np.asarray(ref), rtol=2e-2, atol=2e-2)

    print("KERNEL_OK")
</pallas_src>

<mosaic_0001>
module attributes {stable_mosaic.version = 11 : i64} {
  func.func @conv_stack_kernel(%arg0: i32, %arg1: memref<2x800x9xbf16, #tpu.memory_space<vmem>>, %arg2: memref<9x32xbf16, #tpu.memory_space<vmem>>, %arg3: memref<1x32xf32, #tpu.memory_space<vmem>>, %arg4: memref<288x64xbf16, #tpu.memory_space<vmem>>, %arg5: memref<1x64xf32, #tpu.memory_space<vmem>>, %arg6: memref<2x42x64xbf16, #tpu.memory_space<vmem>>, %arg7: memref<200x32xbf16, #tpu.memory_space<vmem>>) attributes {dimension_semantics = [#tpu.dimension_semantics<parallel>], iteration_bounds = array<i64: 1>, scalar_prefetch = 0 : i64, scratch_operands = 1 : i64, tpu.core_type = #tpu.core_type<tc>, window_params = [{transform_indices = @transform_0, window_bounds = array<i64: 2, 800, 9>}, {pipeline_mode = #tpu.pipeline_mode<synchronous>, transform_indices = @transform_1, window_bounds = array<i64: 9, 32>}, {pipeline_mode = #tpu.pipeline_mode<synchronous>, transform_indices = @transform_2, window_bounds = array<i64: 1, 32>}, {pipeline_mode = #tpu.pipeline_mode<synchronous>, transform_indices = @transform_3, window_bounds = array<i64: 288, 64>}, {pipeline_mode = #tpu.pipeline_mode<synchronous>, transform_indices = @transform_4, window_bounds = array<i64: 1, 64>}, {transform_indices = @transform_5, window_bounds = array<i64: 2, 42, 64>}]} {
    %c0 = arith.constant 0 : index
    %c0_0 = arith.constant 0 : index
    %c0_1 = arith.constant 0 : index
    %0 = vector.load %arg1[%c0, %c0_0, %c0_1] : memref<2x800x9xbf16, #tpu.memory_space<vmem>>, vector<1x800x9xbf16>
    %1 = vector.shape_cast %0 : vector<1x800x9xbf16> to vector<800x9xbf16>
    %c0_2 = arith.constant 0 : index
    %c0_3 = arith.constant 0 : index
    %2 = vector.load %arg2[%c0_2, %c0_3] : memref<9x32xbf16, #tpu.memory_space<vmem>>, vector<9x32xbf16>
    %cst = arith.constant dense<0.000000e+00> : vector<800x32xf32>
    %3 = tpu.matmul %1, %2, %cst {dimension_numbers = #tpu.dot_dimension_numbers<[1], [0], [0], [1], [0, 0, 1, 1], [], []>} : vector<800x9xbf16>, vector<9x32xbf16>, vector<800x32xf32> -> vector<800x32xf32>
    %c0_4 = arith.constant 0 : index
    %c0_5 = arith.constant 0 : index
    %4 = vector.load %arg3[%c0_4, %c0_5] : memref<1x32xf32, #tpu.memory_space<vmem>>, vector<1x32xf32>
    %5 = vector.broadcast %4 : vector<1x32xf32> to vector<800x32xf32>
    %6 = arith.addf %3, %5 : vector<800x32xf32>
    %cst_6 = arith.constant 0.000000e+00 : f32
    %7 = vector.broadcast %cst_6 : f32 to vector<800x32xf32>
    %8 = arith.maximumf %6, %7 : vector<800x32xf32>
    %9 = vector.extract_strided_slice %8 {offsets = [0, 0], sizes = [200, 32], strides = [1, 1]} : vector<800x32xf32> to vector<200x32xf32>
    %10 = vector.extract_strided_slice %8 {offsets = [200, 0], sizes = [200, 32], strides = [1, 1]} : vector<800x32xf32> to vector<200x32xf32>
    %11 = arith.maximumf %9, %10 : vector<200x32xf32>
    %12 = vector.extract_strided_slice %8 {offsets = [400, 0], sizes = [200, 32], strides = [1, 1]} : vector<800x32xf32> to vector<200x32xf32>
    %13 = vector.extract_strided_slice %8 {offsets = [600, 0], sizes = [200, 32], strides = [1, 1]} : vector<800x32xf32> to vector<200x32xf32>
    %14 = arith.maximumf %12, %13 : vector<200x32xf32>
    %15 = arith.maximumf %11, %14 : vector<200x32xf32>
    %16 = arith.truncf %15 : vector<200x32xf32> to vector<200x32xbf16>
    %c0_7 = arith.constant 0 : index
    %c0_8 = arith.constant 0 : index
    %17 = vector.load %arg7[%c0_7, %c0_8] : memref<200x32xbf16, #tpu.memory_space<vmem>>, vector<200x32xbf16>
    tpu.vector_store %arg7[%c0_7, %c0_8], %16 {strides = array<i32>} : memref<200x32xbf16, #tpu.memory_space<vmem>>, vector<200x32xbf16>,
    %cst_9 = arith.constant 0.000000e+00 : f32
    %18 = vector.broadcast %cst_9 : f32 to vector<42x64xf32>
    %c0_10 = arith.constant 0 : index
    %c0_11 = arith.constant 0 : index
    %19 = vector.load %arg7[%c0_10, %c0_11] : memref<200x32xbf16, #tpu.memory_space<vmem>>, vector<42x32xbf16>
    %c0_12 = arith.constant 0 : index
    %c0_13 = arith.constant 0 : index
    %20 = vector.load %arg4[%c0_12, %c0_13] : memref<288x64xbf16, #tpu.memory_space<vmem>>, vector<32x64xbf16>
    %cst_14 = arith.constant dense<0.000000e+00> : vector<42x64xf32>
    %21 = tpu.matmul %19, %20, %cst_14 {dimension_numbers = #tpu.dot_dimension_numbers<[1], [0], [0], [1], [0, 0, 1, 1], [], []>} : vector<42x32xbf16>, vector<32x64xbf16>, vector<42x64xf32> -> vector<42x64xf32>
    %22 = arith.addf %18, %21 : vector<42x64xf32>
    %c49 = arith.constant 49 : index
    %c0_15 = arith.constant 0 : index
    %23 = vector.load %arg7[%c49, %c0_15] : memref<200x32xbf16, #tpu.memory_space<vmem>>, vector<42x32xbf16>
    %c32 = arith.constant 32 : index
    %c0_16 = arith.constant 0 : index
    %24 = vector.load %arg4[%c32, %c0_16] : memref<288x64xbf16, #tpu.memory_space<vmem>>, vector<32x64xbf16>
    %cst_17 = arith.constant dense<0.000000e+00> : vector<42x64xf32>
    %25 = tpu.matmul %23, %24, %cst_17 {dimension_numbers = #tpu.dot_dimension_numbers<[1], [0], [0], [1], [0, 0, 1, 1], [], []>} : vector<42x32xbf16>, vector<32x64xbf16>, vector<42x64xf32> -> vector<42x64xf32>
    %26 = arith.addf %22, %25 : vector<42x64xf32>
    %c1 = arith.constant 1 : index
    %c0_18 = arith.constant 0 : index
    %27 = vector.load %arg7[%c1, %c0_18] : memref<200x32xbf16, #tpu.memory_space<vmem>>, vector<42x32xbf16>
    %c64 = arith.constant 64 : index
    %c0_19 = arith.constant 0 : index
    %28 = vector.load %arg4[%c64, %c0_19] : memref<288x64xbf16, #tpu.memory_space<vmem>>, vector<32x64xbf16>
    %cst_20 = arith.constant dense<0.000000e+00> : vector<42x64xf32>
    %29 = tpu.matmul %27, %28, %cst_20 {dimension_numbers = #tpu.dot_dimension_numbers<[1], [0], [0], [1], [0, 0, 1, 1], [], []>} : vector<42x32xbf16>, vector<32x64xbf16>, vector<42x64xf32> -> vector<42x64xf32>
    %30 = arith.addf %26, %29 : vector<42x64xf32>
    %c98 = arith.constant 98 : index
    %c0_21 = arith.constant 0 : index
    %31 = vector.load %arg7[%c98, %c0_21] : memref<200x32xbf16, #tpu.memory_space<vmem>>, vector<42x32xbf16>
    %c96 = arith.constant 96 : index
    %c0_22 = arith.constant 0 : index
    %32 = vector.load %arg4[%c96, %c0_22] : memref<288x64xbf16, #tpu.memory_space<vmem>>, vector<32x64xbf16>
    %cst_23 = arith.constant dense<0.000000e+00> : vector<42x64xf32>
    %33 = tpu.matmul %31, %32, %cst_23 {dimension_numbers = #tpu.dot_dimension_numbers<[1], [0], [0], [1], [0, 0, 1, 1], [], []>} : vector<42x32xbf16>, vector<32x64xbf16>, vector<42x64xf32> -> vector<42x64xf32>
    %34 = arith.addf %30, %33 : vector<42x64xf32>
    %c147 = arith.constant 147 : index
    %c0_24 = arith.constant 0 : index
    %35 = vector.load %arg7[%c147, %c0_24] : memref<200x32xbf16, #tpu.memory_space<vmem>>, vector<42x32xbf16>
    %c128 = arith.constant 128 : index
    %c0_25 = arith.constant 0 : index
    %36 = vector.load %arg4[%c128, %c0_25] : memref<288x64xbf16, #tpu.memory_space<vmem>>, vector<32x64xbf16>
    %cst_26 = arith.constant dense<0.000000e+00> : vector<42x64xf32>
    %37 = tpu.matmul %35, %36, %cst_26 {dimension_numbers = #tpu.dot_dimension_numbers<[1], [0], [0], [1], [0, 0, 1, 1], [], []>} : vector<42x32xbf16>, vector<32x64xbf16>, vector<42x64xf32> -> vector<42x64xf32>
    %38 = arith.addf %34, %37 : vector<42x64xf32>
    %c99 = arith.constant 99 : index
    %c0_27 = arith.constant 0 : index
    %39 = vector.load %arg7[%c99, %c0_27] : memref<200x32xbf16, #tpu.memory_space<vmem>>, vector<42x32xbf16>
    %c160 = arith.constant 160 : index
    %c0_28 = arith.constant 0 : index
    %40 = vector.load %arg4[%c160, %c0_28] : memref<288x64xbf16, #tpu.memory_space<vmem>>, vector<32x64xbf16>
    %cst_29 = arith.constant dense<0.000000e+00> : vector<42x64xf32>
    %41 = tpu.matmul %39, %40, %cst_29 {dimension_numbers = #tpu.dot_dimension_numbers<[1], [0], [0], [1], [0, 0, 1, 1], [], []>} : vector<42x32xbf16>, vector<32x64xbf16>, vector<42x64xf32> -> vector<42x64xf32>
    %42 = arith.addf %38, %41 : vector<42x64xf32>
    %c7 = arith.constant 7 : index
    %c0_30 = arith.constant 0 : index
    %43 = vector.load %arg7[%c7, %c0_30] : memref<200x32xbf16, #tpu.memory_space<vmem>>, vector<42x32xbf16>
    %c192 = arith.constant 192 : index
    %c0_31 = arith.constant 0 : index
    %44 = vector.load %arg4[%c192, %c0_31] : memref<288x64xbf16, #tpu.memory_space<vmem>>, vector<32x64xbf16>
    %cst_32 = arith.constant dense<0.000000e+00> : vector<42x64xf32>
    %45 = tpu.matmul %43, %44, %cst_32 {dimension_numbers = #tpu.dot_dimension_numbers<[1], [0], [0], [1], [0, 0, 1, 1], [], []>} : vector<42x32xbf16>, vector<32x64xbf16>, vector<42x64xf32> -> vector<42x64xf32>
    %46 = arith.addf %42, %45 : vector<42x64xf32>
    %c56 = arith.constant 56 : index
    %c0_33 = arith.constant 0 : index
    %47 = vector.load %arg7[%c56, %c0_33] : memref<200x32xbf16, #tpu.memory_space<vmem>>, vector<42x32xbf16>
    %c224 = arith.constant 224 : index
    %c0_34 = arith.constant 0 : index
    %48 = vector.load %arg4[%c224, %c0_34] : memref<288x64xbf16, #tpu.memory_space<vmem>>, vector<32x64xbf16>
    %cst_35 = arith.constant dense<0.000000e+00> : vector<42x64xf32>
    %49 = tpu.matmul %47, %48, %cst_35 {dimension_numbers = #tpu.dot_dimension_numbers<[1], [0], [0], [1], [0, 0, 1, 1], [], []>} : vector<42x32xbf16>, vector<32x64xbf16>, vector<42x64xf32> -> vector<42x64xf32>
    %50 = arith.addf %46, %49 : vector<42x64xf32>
    %c8 = arith.constant 8 : index
    %c0_36 = arith.constant 0 : index
    %51 = vector.load %arg7[%c8, %c0_36] : memref<200x32xbf16, #tpu.memory_space<vmem>>, vector<42x32xbf16>
    %c256 = arith.constant 256 : index
    %c0_37 = arith.constant 0 : index
    %52 = vector.load %arg4[%c256, %c0_37] : memref<288x64xbf16, #tpu.memory_space<vmem>>, vector<32x64xbf16>
    %cst_38 = arith.constant dense<0.000000e+00> : vector<42x64xf32>
    %53 = tpu.matmul %51, %52, %cst_38 {dimension_numbers = #tpu.dot_dimension_numbers<[1], [0], [0], [1], [0, 0, 1, 1], [], []>} : vector<42x32xbf16>, vector<32x64xbf16>, vector<42x64xf32> -> vector<42x64xf32>
    %54 = arith.addf %50, %53 : vector<42x64xf32>
    %c0_39 = arith.constant 0 : index
    %c0_40 = arith.constant 0 : index
    %55 = vector.load %arg5[%c0_39, %c0_40] : memref<1x64xf32, #tpu.memory_space<vmem>>, vector<1x64xf32>
    %56 = vector.broadcast %55 : vector<1x64xf32> to vector<42x64xf32>
    %57 = arith.addf %54, %56 : vector<42x64xf32>
    %cst_41 = arith.constant 0.000000e+00 : f32
    %58 = vector.broadcast %cst_41 : f32 to vector<42x64xf32>
    %59 = arith.maximumf %57, %58 : vector<42x64xf32>
    %cst_42 = arith.constant 0.000000e+00 : f32
    %60 = vector.broadcast %cst_42 : f32 to vector<42x64xf32>
    %c49_43 = arith.constant 49 : index
    %c0_44 = arith.constant 0 : index
    %61 = vector.load %arg7[%c49_43, %c0_44] : memref<200x32xbf16, #tpu.memory_space<vmem>>, vector<42x32xbf16>
    %c0_45 = arith.constant 0 : index
    %c0_46 = arith.constant 0 : index
    %62 = vector.load %arg4[%c0_45, %c0_46] : memref<288x64xbf16, #tpu.memory_space<vmem>>, vector<32x64xbf16>
    %cst_47 = arith.constant dense<0.000000e+00> : vector<42x64xf32>
    %63 = tpu.matmul %61, %62, %cst_47 {dimension_numbers = #tpu.dot_dimension_numbers<[1], [0], [0], [1], [0, 0, 1, 1], [], []>} : vector<42x32xbf16>, vector<32x64xbf16>, vector<42x64xf32> -> vector<42x64xf32>
    %64 = arith.addf %60, %63 : vector<42x64xf32>
    %c1_48 = arith.constant 1 : index
    %c0_49 = arith.constant 0 : index
    %65 = vector.load %arg7[%c1_48, %c0_49] : memref<200x32xbf16, #tpu.memory_space<vmem>>, vector<42x32xbf16>
    %c32_50 = arith.constant 32 : index
    %c0_51 = arith.constant 0 : index
    %66 = vector.load %arg4[%c32_50, %c0_51] : memref<288x64xbf16, #tpu.memory_space<vmem>>, vector<32x64xbf16>
    %cst_52 = arith.constant dense<0.000000e+00> : vector<42x64xf32>
    %67 = tpu.matmul %65, %66, %cst_52 {dimension_numbers = #tpu.dot_dimension_numbers<[1], [0], [0], [1], [0, 0, 1, 1], [], []>} : vector<42x32xbf16>, vector<32x64xbf16>, vector<42x64xf32> -> vector<42x64xf32>
    %68 = arith.addf %64, %67 : vector<42x64xf32>
    %c50 = arith.constant 50 : index
    %c0_53 = arith.constant 0 : index
    %69 = vector.load %arg7[%c50, %c0_53] : memref<200x32xbf16, #tpu.memory_space<vmem>>, vector<42x32xbf16>
    %c64_54 = arith.constant 64 : index
    %c0_55 = arith.constant 0 : index
    %70 = vector.load %arg4[%c64_54, %c0_55] : memref<288x64xbf16, #tpu.memory_space<vmem>>, vector<32x64xbf16>
    %cst_56 = arith.constant dense<0.000000e+00> : vector<42x64xf32>
    %71 = tpu.matmul %69, %70, %cst_56 {dimension_numbers = #tpu.dot_dimension_numbers<[1], [0], [0], [1], [0, 0, 1, 1], [], []>} : vector<42x32xbf16>, vector<32x64xbf16>, vector<42x64xf32> -> vector<42x64xf32>
    %72 = arith.addf %68, %71 : vector<42x64xf32>
    %c147_57 = arith.constant 147 : index
    %c0_58 = arith.constant 0 : index
    %73 = vector.load %arg7[%c147_57, %c0_58] : memref<200x32xbf16, #tpu.memory_space<vmem>>, vector<42x32xbf16>
    %c96_59 = arith.constant 96 : index
    %c0_60 = arith.constant 0 : index
    %74 = vector.load %arg4[%c96_59, %c0_60] : memref<288x64xbf16, #tpu.memory_space<vmem>>, vector<32x64xbf16>
    %cst_61 = arith.constant dense<0.000000e+00> : vector<42x64xf32>
    %75 = tpu.matmul %73, %74, %cst_61 {dimension_numbers = #tpu.dot_dimension_numbers<[1], [0], [0], [1], [0, 0, 1, 1], [], []>} : vector<42x32xbf16>, vector<32x64xbf16>, vector<42x64xf32> -> vector<42x64xf32>
    %76 = arith.addf %72, %75 : vector<42x64xf32>
    %c99_62 = arith.constant 99 : index
    %c0_63 = arith.constant 0 : index
    %77 = vector.load %arg7[%c99_62, %c0_63] : memref<200x32xbf16, #tpu.memory_space<vmem>>, vector<42x32xbf16>
    %c128_64 = arith.constant 128 : index
    %c0_65 = arith.constant 0 : index
    %78 = vector.load %arg4[%c128_64, %c0_65] : memref<288x64xbf16, #tpu.memory_space<vmem>>, vector<32x64xbf16>
    %cst_66 = arith.constant dense<0.000000e+00> : vector<42x64xf32>
    %79 = tpu.matmul %77, %78, %cst_66 {dimension_numbers = #tpu.dot_dimension_numbers<[1], [0], [0], [1], [0, 0, 1, 1], [], []>} : vector<42x32xbf16>, vector<32x64xbf16>, vector<42x64xf32> -> vector<42x64xf32>
    %80 = arith.addf %76, %79 : vector<42x64xf32>
    %c148 = arith.constant 148 : index
    %c0_67 = arith.constant 0 : index
    %81 = vector.load %arg7[%c148, %c0_67] : memref<200x32xbf16, #tpu.memory_space<vmem>>, vector<42x32xbf16>
    %c160_68 = arith.constant 160 : index
    %c0_69 = arith.constant 0 : index
    %82 = vector.load %arg4[%c160_68, %c0_69] : memref<288x64xbf16, #tpu.memory_space<vmem>>, vector<32x64xbf16>
    %cst_70 = arith.constant dense<0.000000e+00> : vector<42x64xf32>
    %83 = tpu.matmul %81, %82, %cst_70 {dimension_numbers = #tpu.dot_dimension_numbers<[1], [0], [0], [1], [0, 0, 1, 1], [], []>} : vector<42x32xbf16>, vector<32x64xbf16>, vector<42x64xf32> -> vector<42x64xf32>
    %84 = arith.addf %80, %83 : vector<42x64xf32>
    %c56_71 = arith.constant 56 : index
    %c0_72 = arith.constant 0 : index
    %85 = vector.load %arg7[%c56_71, %c0_72] : memref<200x32xbf16, #tpu.memory_space<vmem>>, vector<42x32xbf16>
    %c192_73 = arith.constant 192 : index
    %c0_74 = arith.constant 0 : index
    %86 = vector.load %arg4[%c192_73, %c0_74] : memref<288x64xbf16, #tpu.memory_space<vmem>>, vector<32x64xbf16>
    %cst_75 = arith.constant dense<0.000000e+00> : vector<42x64xf32>
    %87 = tpu.matmul %85, %86, %cst_75 {dimension_numbers = #tpu.dot_dimension_numbers<[1], [0], [0], [1], [0, 0, 1, 1], [], []>} : vector<42x32xbf16>, vector<32x64xbf16>, vector<42x64xf32> -> vector<42x64xf32>
    %88 = arith.addf %84, %87 : vector<42x64xf32>
    %c8_76 = arith.constant 8 : index
    %c0_77 = arith.constant 0 : index
    %89 = vector.load %arg7[%c8_76, %c0_77] : memref<200x32xbf16, #tpu.memory_space<vmem>>, vector<42x32xbf16>
    %c224_78 = arith.constant 224 : index
    %c0_79 = arith.constant 0 : index
    %90 = vector.load %arg4[%c224_78, %c0_79] : memref<288x64xbf16, #tpu.memory_space<vmem>>, vector<32x64xbf16>
    %cst_80 = arith.constant dense<0.000000e+00> : vector<42x64xf32>
    %91 = tpu.matmul %89, %90, %cst_80 {dimension_numbers = #tpu.dot_dimension_numbers<[1], [0], [0], [1], [0, 0, 1, 1], [], []>} : vector<42x32xbf16>, vector<32x64xbf16>, vector<42x64xf32> -> vector<42x64xf32>
    %92 = arith.addf %88, %91 : vector<42x64xf32>
    %c57 = arith.constant 57 : index
    %c0_81 = arith.constant 0 : index
    %93 = vector.load %arg7[%c57, %c0_81] : memref<200x32xbf16, #tpu.memory_space<vmem>>, vector<42x32xbf16>
    %c256_82 = arith.constant 256 : index
    %c0_83 = arith.constant 0 : index
    %94 = vector.load %arg4[%c256_82, %c0_83] : memref<288x64xbf16, #tpu.memory_space<vmem>>, vector<32x64xbf16>
    %cst_84 = arith.constant dense<0.000000e+00> : vector<42x64xf32>
    %95 = tpu.matmul %93, %94, %cst_84 {dimension_numbers = #tpu.dot_dimension_numbers<[1], [0], [0], [1], [0, 0, 1, 1], [], []>} : vector<42x32xbf16>, vector<32x64xbf16>, vector<42x64xf32> -> vector<42x64xf32>
    %96 = arith.addf %92, %95 : vector<42x64xf32>
    %c0_85 = arith.constant 0 : index
    %c0_86 = arith.constant 0 : index
    %97 = vector.load %arg5[%c0_85, %c0_86] : memref<1x64xf32, #tpu.memory_space<vmem>>, vector<1x64xf32>
    %98 = vector.broadcast %97 : vector<1x64xf32> to vector<42x64xf32>
    %99 = arith.addf %96, %98 : vector<42x64xf32>
    %cst_87 = arith.constant 0.000000e+00 : f32
    %100 = vector.broadcast %cst_87 : f32 to vector<42x64xf32>
    %101 = arith.maximumf %99, %100 : vector<42x64xf32>
    %102 = arith.maximumf %59, %101 : vector<42x64xf32>
    %cst_88 = arith.constant 0.000000e+00 : f32
    %103 = vector.broadcast %cst_88 : f32 to vector<42x64xf32>
    %c98_89 = arith.constant 98 : index
    %c0_90 = arith.constant 0 : index
    %104 = vector.load %arg7[%c98_89, %c0_90] : memref<200x32xbf16, #tpu.memory_space<vmem>>, vector<42x32xbf16>
    %c0_91 = arith.constant 0 : index
    %c0_92 = arith.constant 0 : index
    %105 = vector.load %arg4[%c0_91, %c0_92] : memref<288x64xbf16, #tpu.memory_space<vmem>>, vector<32x64xbf16>
    %cst_93 = arith.constant dense<0.000000e+00> : vector<42x64xf32>
    %106 = tpu.matmul %104, %105, %cst_93 {dimension_numbers = #tpu.dot_dimension_numbers<[1], [0], [0], [1], [0, 0, 1, 1], [], []>} : vector<42x32xbf16>, vector<32x64xbf16>, vector<42x64xf32> -> vector<42x64xf32>
    %107 = arith.addf %103, %106 : vector<42x64xf32>
    %c147_94 = arith.constant 147 : index
    %c0_95 = arith.constant 0 : index
    %108 = vector.load %arg7[%c147_94, %c0_95] : memref<200x32xbf16, #tpu.memory_space<vmem>>, vector<42x32xbf16>
    %c32_96 = arith.constant 32 : index
    %c0_97 = arith.constant 0 : index
    %109 = vector.load %arg4[%c32_96, %c0_97] : memref<288x64xbf16, #tpu.memory_space<vmem>>, vector<32x64xbf16>
    %cst_98 = arith.constant dense<0.000000e+00> : vector<42x64xf32>
    %110 = tpu.matmul %108, %109, %cst_98 {dimension_numbers = #tpu.dot_dimension_numbers<[1], [0], [0], [1], [0, 0, 1, 1], [], []>} : vector<42x32xbf16>, vector<32x64xbf16>, vector<42x64xf32> -> vector<42x64xf32>
    %111 = arith.addf %107, %110 : vector<42x64xf32>
    %c99_99 = arith.constant 99 : index
    %c0_100 = arith.constant 0 : index
    %112 = vector.load %arg7[%c99_99, %c0_100] : memref<200x32xbf16, #tpu.memory_space<vmem>>, vector<42x32xbf16>
    %c64_101 = arith.constant 64 : index
    %c0_102 = arith.constant 0 : index
    %113 = vector.load %arg4[%c64_101, %c0_102] : memref<288x64xbf16, #tpu.memory_space<vmem>>, vector<32x64xbf16>
    %cst_103 = arith.constant dense<0.000000e+00> : vector<42x64xf32>
    %114 = tpu.matmul %112, %113, %cst_103 {dimension_numbers = #tpu.dot_dimension_numbers<[1], [0], [0], [1], [0, 0, 1, 1], [], []>} : vector<42x32xbf16>, vector<32x64xbf16>, vector<42x64xf32> -> vector<42x64xf32>
    %115 = arith.addf %111, %114 : vector<42x64xf32>
    %c7_104 = arith.constant 7 : index
    %c0_105 = arith.constant 0 : index
    %116 = vector.load %arg7[%c7_104, %c0_105] : memref<200x32xbf16, #tpu.memory_space<vmem>>, vector<42x32xbf16>
    %c96_106 = arith.constant 96 : index
    %c0_107 = arith.constant 0 : index
    %117 = vector.load %arg4[%c96_106, %c0_107] : memref<288x64xbf16, #tpu.memory_space<vmem>>, vector<32x64xbf16>
    %cst_108 = arith.constant dense<0.000000e+00> : vector<42x64xf32>
    %118 = tpu.matmul %116, %117, %cst_108 {dimension_numbers = #tpu.dot_dimension_numbers<[1], [0], [0], [1], [0, 0, 1, 1], [], []>} : vector<42x32xbf16>, vector<32x64xbf16>, vector<42x64xf32> -> vector<42x64xf32>
    %119 = arith.addf %115, %118 : vector<42x64xf32>
    %c56_109 = arith.constant 56 : index
    %c0_110 = arith.constant 0 : index
    %120 = vector.load %arg7[%c56_109, %c0_110] : memref<200x32xbf16, #tpu.memory_space<vmem>>, vector<42x32xbf16>
    %c128_111 = arith.constant 128 : index
    %c0_112 = arith.constant 0 : index
    %121 = vector.load %arg4[%c128_111, %c0_112] : memref<288x64xbf16, #tpu.memory_space<vmem>>, vector<32x64xbf16>
    %cst_113 = arith.constant dense<0.000000e+00> : vector<42x64xf32>
    %122 = tpu.matmul %120, %121, %cst_113 {dimension_numbers = #tpu.dot_dimension_numbers<[1], [0], [0], [1], [0, 0, 1, 1], [], []>} : vector<42x32xbf16>, vector<32x64xbf16>, vector<42x64xf32> -> vector<42x64xf32>
    %123 = arith.addf %119, %122 : vector<42x64xf32>
    %c8_114 = arith.constant 8 : index
    %c0_115 = arith.constant 0 : index
    %124 = vector.load %arg7[%c8_114, %c0_115] : memref<200x32xbf16, #tpu.memory_space<vmem>>, vector<42x32xbf16>
    %c160_116 = arith.constant 160 : index
    %c0_117 = arith.constant 0 : index
    %125 = vector.load %arg4[%c160_116, %c0_117] : memref<288x64xbf16, #tpu.memory_space<vmem>>, vector<32x64xbf16>
    %cst_118 = arith.constant dense<0.000000e+00> : vector<42x64xf32>
    %126 = tpu.matmul %124, %125, %cst_118 {dimension_numbers = #tpu.dot_dimension_numbers<[1], [0], [0], [1], [0, 0, 1, 1], [], []>} : vector<42x32xbf16>, vector<32x64xbf16>, vector<42x64xf32> -> vector<42x64xf32>
    %127 = arith.addf %123, %126 : vector<42x64xf32>
    %c105 = arith.constant 105 : index
    %c0_119 = arith.constant 0 : index
    %128 = vector.load %arg7[%c105, %c0_119] : memref<200x32xbf16, #tpu.memory_space<vmem>>, vector<42x32xbf16>
    %c192_120 = arith.constant 192 : index
    %c0_121 = arith.constant 0 : index
    %129 = vector.load %arg4[%c192_120, %c0_121] : memref<288x64xbf16, #tpu.memory_space<vmem>>, vector<32x64xbf16>
    %cst_122 = arith.constant dense<0.000000e+00> : vector<42x64xf32>
    %130 = tpu.matmul %128, %129, %cst_122 {dimension_numbers = #tpu.dot_dimension_numbers<[1], [0], [0], [1], [0, 0, 1, 1], [], []>} : vector<42x32xbf16>, vector<32x64xbf16>, vector<42x64xf32> -> vector<42x64xf32>
    %131 = arith.addf %127, %130 : vector<42x64xf32>
    %c154 = arith.constant 154 : index
    %c0_123 = arith.constant 0 : index
    %132 = vector.load %arg7[%c154, %c0_123] : memref<200x32xbf16, #tpu.memory_space<vmem>>, vector<42x32xbf16>
    %c224_124 = arith.constant 224 : index
    %c0_125 = arith.constant 0 : index
    %133 = vector.load %arg4[%c224_124, %c0_125] : memref<288x64xbf16, #tpu.memory_space<vmem>>, vector<32x64xbf16>
    %cst_126 = arith.constant dense<0.000000e+00> : vector<42x64xf32>
    %134 = tpu.matmul %132, %133, %cst_126 {dimension_numbers = #tpu.dot_dimension_numbers<[1], [0], [0], [1], [0, 0, 1, 1], [], []>} : vector<42x32xbf16>, vector<32x64xbf16>, vector<42x64xf32> -> vector<42x64xf32>
    %135 = arith.addf %131, %134 : vector<42x64xf32>
    %c106 = arith.constant 106 : index
    %c0_127 = arith.constant 0 : index
    %136 = vector.load %arg7[%c106, %c0_127] : memref<200x32xbf16, #tpu.memory_space<vmem>>, vector<42x32xbf16>
    %c256_128 = arith.constant 256 : index
    %c0_129 = arith.constant 0 : index
    %137 = vector.load %arg4[%c256_128, %c0_129] : memref<288x64xbf16, #tpu.memory_space<vmem>>, vector<32x64xbf16>
    %cst_130 = arith.constant dense<0.000000e+00> : vector<42x64xf32>
    %138 = tpu.matmul %136, %137, %cst_130 {dimension_numbers = #tpu.dot_dimension_numbers<[1], [0], [0], [1], [0, 0, 1, 1], [], []>} : vector<42x32xbf16>, vector<32x64xbf16>, vector<42x64xf32> -> vector<42x64xf32>
    %139 = arith.addf %135, %138 : vector<42x64xf32>
    %c0_131 = arith.constant 0 : index
    %c0_132 = arith.constant 0 : index
    %140 = vector.load %arg5[%c0_131, %c0_132] : memref<1x64xf32, #tpu.memory_space<vmem>>, vector<1x64xf32>
    %141 = vector.broadcast %140 : vector<1x64xf32> to vector<42x64xf32>
    %142 = arith.addf %139, %141 : vector<42x64xf32>
    %cst_133 = arith.constant 0.000000e+00 : f32
    %143 = vector.broadcast %cst_133 : f32 to vector<42x64xf32>
    %144 = arith.maximumf %142, %143 : vector<42x64xf32>
    %145 = arith.maximumf %102, %144 : vector<42x64xf32>
    %cst_134 = arith.constant 0.000000e+00 : f32
    %146 = vector.broadcast %cst_134 : f32 to vector<42x64xf32>
    %c147_135 = arith.constant 147 : index
    %c0_136 = arith.constant 0 : index
    %147 = vector.load %arg7[%c147_135, %c0_136] : memref<200x32xbf16, #tpu.memory_space<vmem>>, vector<42x32xbf16>
    %c0_137 = arith.constant 0 : index
    %c0_138 = arith.constant 0 : index
    %148 = vector.load %arg4[%c0_137, %c0_138] : memref<288x64xbf16, #tpu.memory_space<vmem>>, vector<32x64xbf16>
    %cst_139 = arith.constant dense<0.000000e+00> : vector<42x64xf32>
    %149 = tpu.matmul %147, %148, %cst_139 {dimension_numbers = #tpu.dot_dimension_numbers<[1], [0], [0], [1], [0, 0, 1, 1], [], []>} : vector<42x32xbf16>, vector<32x64xbf16>, vector<42x64xf32> -> vector<42x64xf32>
    %150 = arith.addf %146, %149 : vector<42x64xf32>
    %c99_140 = arith.constant 99 : index
    %c0_141 = arith.constant 0 : index
    %151 = vector.load %arg7[%c99_140, %c0_141] : memref<200x32xbf16, #tpu.memory_space<vmem>>, vector<42x32xbf16>
    %c32_142 = arith.constant 32 : index
    %c0_143 = arith.constant 0 : index
    %152 = vector.load %arg4[%c32_142, %c0_143] : memref<288x64xbf16, #tpu.memory_space<vmem>>, vector<32x64xbf16>
    %cst_144 = arith.constant dense<0.000000e+00> : vector<42x64xf32>
    %153 = tpu.matmul %151, %152, %cst_144 {dimension_numbers = #tpu.dot_dimension_numbers<[1], [0], [0], [1], [0, 0, 1, 1], [], []>} : vector<42x32xbf16>, vector<32x64xbf16>, vector<42x64xf32> -> vector<42x64xf32>
    %154 = arith.addf %150, %153 : vector<42x64xf32>
    %c148_145 = arith.constant 148 : index
    %c0_146 = arith.constant 0 : index
    %155 = vector.load %arg7[%c148_145, %c0_146] : memref<200x32xbf16, #tpu.memory_space<vmem>>, vector<42x32xbf16>
    %c64_147 = arith.constant 64 : index
    %c0_148 = arith.constant 0 : index
    %156 = vector.load %arg4[%c64_147, %c0_148] : memref<288x64xbf16, #tpu.memory_space<vmem>>, vector<32x64xbf16>
    %cst_149 = arith.constant dense<0.000000e+00> : vector<42x64xf32>
    %157 = tpu.matmul %155, %156, %cst_149 {dimension_numbers = #tpu.dot_dimension_numbers<[1], [0], [0], [1], [0, 0, 1, 1], [], []>} : vector<42x32xbf16>, vector<32x64xbf16>, vector<42x64xf32> -> vector<42x64xf32>
    %158 = arith.addf %154, %157 : vector<42x64xf32>
    %c56_150 = arith.constant 56 : index
    %c0_151 = arith.constant 0 : index
    %159 = vector.load %arg7[%c56_150, %c0_151] : memref<200x32xbf16, #tpu.memory_space<vmem>>, vector<42x32xbf16>
    %c96_152 = arith.constant 96 : index
    %c0_153 = arith.constant 0 : index
    %160 = vector.load %arg4[%c96_152, %c0_153] : memref<288x64xbf16, #tpu.memory_space<vmem>>, vector<32x64xbf16>
    %cst_154 = arith.constant dense<0.000000e+00> : vector<42x64xf32>
    %161 = tpu.matmul %159, %160, %cst_154 {dimension_numbers = #tpu.dot_dimension_numbers<[1], [0], [0], [1], [0, 0, 1, 1], [], []>} : vector<42x32xbf16>, vector<32x64xbf16>, vector<42x64xf32> -> vector<42x64xf32>
    %162 = arith.addf %158, %161 : vector<42x64xf32>
    %c8_155 = arith.constant 8 : index
    %c0_156 = arith.constant 0 : index
    %163 = vector.load %arg7[%c8_155, %c0_156] : memref<200x32xbf16, #tpu.memory_space<vmem>>, vector<42x32xbf16>
    %c128_157 = arith.constant 128 : index
    %c0_158 = arith.constant 0 : index
    %164 = vector.load %arg4[%c128_157, %c0_158] : memref<288x64xbf16, #tpu.memory_space<vmem>>, vector<32x64xbf16>
    %cst_159 = arith.constant dense<0.000000e+00> : vector<42x64xf32>
    %165 = tpu.matmul %163, %164, %cst_159 {dimension_numbers = #tpu.dot_dimension_numbers<[1], [0], [0], [1], [0, 0, 1, 1], [], []>} : vector<42x32xbf16>, vector<32x64xbf16>, vector<42x64xf32> -> vector<42x64xf32>
    %166 = arith.addf %162, %165 : vector<42x64xf32>
    %c57_160 = arith.constant 57 : index
    %c0_161 = arith.constant 0 : index
    %167 = vector.load %arg7[%c57_160, %c0_161] : memref<200x32xbf16, #tpu.memory_space<vmem>>, vector<42x32xbf16>
    %c160_162 = arith.constant 160 : index
    %c0_163 = arith.constant 0 : index
    %168 = vector.load %arg4[%c160_162, %c0_163] : memref<288x64xbf16, #tpu.memory_space<vmem>>, vector<32x64xbf16>
    %cst_164 = arith.constant dense<0.000000e+00> : vector<42x64xf32>
    %169 = tpu.matmul %167, %168, %cst_164 {dimension_numbers = #tpu.dot_dimension_numbers<[1], [0], [0], [1], [0, 0, 1, 1], [], []>} : vector<42x32xbf16>, vector<32x64xbf16>, vector<42x64xf32> -> vector<42x64xf32>
    %170 = arith.addf %166, %169 : vector<42x64xf32>
    %c154_165 = arith.constant 154 : index
    %c0_166 = arith.constant 0 : index
    %171 = vector.load %arg7[%c154_165, %c0_166] : memref<200x32xbf16, #tpu.memory_space<vmem>>, vector<42x32xbf16>
    %c192_167 = arith.constant 192 : index
    %c0_168 = arith.constant 0 : index
    %172 = vector.load %arg4[%c192_167, %c0_168] : memref<288x64xbf16, #tpu.memory_space<vmem>>, vector<32x64xbf16>
    %cst_169 = arith.constant dense<0.000000e+00> : vector<42x64xf32>
    %173 = tpu.matmul %171, %172, %cst_169 {dimension_numbers = #tpu.dot_dimension_numbers<[1], [0], [0], [1], [0, 0, 1, 1], [], []>} : vector<42x32xbf16>, vector<32x64xbf16>, vector<42x64xf32> -> vector<42x64xf32>
    %174 = arith.addf %170, %173 : vector<42x64xf32>
    %c106_170 = arith.constant 106 : index
    %c0_171 = arith.constant 0 : index
    %175 = vector.load %arg7[%c106_170, %c0_171] : memref<200x32xbf16, #tpu.memory_space<vmem>>, vector<42x32xbf16>
    %c224_172 = arith.constant 224 : index
    %c0_173 = arith.constant 0 : index
    %176 = vector.load %arg4[%c224_172, %c0_173] : memref<288x64xbf16, #tpu.memory_space<vmem>>, vector<32x64xbf16>
    %cst_174 = arith.constant dense<0.000000e+00> : vector<42x64xf32>
    %177 = tpu.matmul %175, %176, %cst_174 {dimension_numbers = #tpu.dot_dimension_numbers<[1], [0], [0], [1], [0, 0, 1, 1], [], []>} : vector<42x32xbf16>, vector<32x64xbf16>, vector<42x64xf32> -> vector<42x64xf32>
    %178 = arith.addf %174, %177 : vector<42x64xf32>
    %c155 = arith.constant 155 : index
    %c0_175 = arith.constant 0 : index
    %179 = vector.load %arg7[%c155, %c0_175] : memref<200x32xbf16, #tpu.memory_space<vmem>>, vector<42x32xbf16>
    %c256_176 = arith.constant 256 : index
    %c0_177 = arith.constant 0 : index
    %180 = vector.load %arg4[%c256_176, %c0_177] : memref<288x64xbf16, #tpu.memory_space<vmem>>, vector<32x64xbf16>
    %cst_178 = arith.constant dense<0.000000e+00> : vector<42x64xf32>
    %181 = tpu.matmul %179, %180, %cst_178 {dimension_numbers = #tpu.dot_dimension_numbers<[1], [0], [0], [1], [0, 0, 1, 1], [], []>} : vector<42x32xbf16>, vector<32x64xbf16>, vector<42x64xf32> -> vector<42x64xf32>
    %182 = arith.addf %178, %181 : vector<42x64xf32>
    %c0_179 = arith.constant 0 : index
    %c0_180 = arith.constant 0 : index
    %183 = vector.load %arg5[%c0_179, %c0_180] : memref<1x64xf32, #tpu.memory_space<vmem>>, vector<1x64xf32>
    %184 = vector.broadcast %183 : vector<1x64xf32> to vector<42x64xf32>
    %185 = arith.addf %182, %184 : vector<42x64xf32>
    %cst_181 = arith.constant 0.000000e+00 : f32
    %186 = vector.broadcast %cst_181 : f32 to vector<42x64xf32>
    %187 = arith.maximumf %185, %186 : vector<42x64xf32>
    %188 = arith.maximumf %145, %187 : vector<42x64xf32>
    %189 = arith.truncf %188 : vector<42x64xf32> to vector<42x64xbf16>
    %c0_182 = arith.constant 0 : index
    %c0_183 = arith.constant 0 : index
    %c0_184 = arith.constant 0 : index
    %190 = vector.load %arg6[%c0_182, %c0_183, %c0_184] : memref<2x42x64xbf16, #tpu.memory_space<vmem>>, vector<1x42x64xbf16>
    %191 = vector.shape_cast %190 : vector<1x42x64xbf16> to vector<42x64xbf16>
    %192 = vector.shape_cast %189 : vector<42x64xbf16> to vector<1x42x64xbf16>
    tpu.vector_store %arg6[%c0_182, %c0_183, %c0_184], %192 {strides = array<i32>} : memref<2x42x64xbf16, #tpu.memory_space<vmem>>, vector<1x42x64xbf16>,
    %c1_185 = arith.constant 1 : index
    %c0_186 = arith.constant 0 : index
    %c0_187 = arith.constant 0 : index
    %193 = vector.load %arg1[%c1_185, %c0_186, %c0_187] : memref<2x800x9xbf16, #tpu.memory_space<vmem>>, vector<1x800x9xbf16>
    %194 = vector.shape_cast %193 : vector<1x800x9xbf16> to vector<800x9xbf16>
    %c0_188 = arith.constant 0 : index
    %c0_189 = arith.constant 0 : index
    %195 = vector.load %arg2[%c0_188, %c0_189] : memref<9x32xbf16, #tpu.memory_space<vmem>>, vector<9x32xbf16>
    %cst_190 = arith.constant dense<0.000000e+00> : vector<800x32xf32>
    %196 = tpu.matmul %194, %195, %cst_190 {dimension_numbers = #tpu.dot_dimension_numbers<[1], [0], [0], [1], [0, 0, 1, 1], [], []>} : vector<800x9xbf16>, vector<9x32xbf16>, vector<800x32xf32> -> vector<800x32xf32>
    %c0_191 = arith.constant 0 : index
    %c0_192 = arith.constant 0 : index
    %197 = vector.load %arg3[%c0_191, %c0_192] : memref<1x32xf32, #tpu.memory_space<vmem>>, vector<1x32xf32>
    %198 = vector.broadcast %197 : vector<1x32xf32> to vector<800x32xf32>
    %199 = arith.addf %196, %198 : vector<800x32xf32>
    %cst_193 = arith.constant 0.000000e+00 : f32
    %200 = vector.broadcast %cst_193 : f32 to vector<800x32xf32>
    %201 = arith.maximumf %199, %200 : vector<800x32xf32>
    %202 = vector.extract_strided_slice %201 {offsets = [0, 0], sizes = [200, 32], strides = [1, 1]} : vector<800x32xf32> to vector<200x32xf32>
    %203 = vector.extract_strided_slice %201 {offsets = [200, 0], sizes = [200, 32], strides = [1, 1]} : vector<800x32xf32> to vector<200x32xf32>
    %204 = arith.maximumf %202, %203 : vector<200x32xf32>
    %205 = vector.extract_strided_slice %201 {offsets = [400, 0], sizes = [200, 32], strides = [1, 1]} : vector<800x32xf32> to vector<200x32xf32>
    %206 = vector.extract_strided_slice %201 {offsets = [600, 0], sizes = [200, 32], strides = [1, 1]} : vector<800x32xf32> to vector<200x32xf32>
    %207 = arith.maximumf %205, %206 : vector<200x32xf32>
    %208 = arith.maximumf %204, %207 : vector<200x32xf32>
    %209 = arith.truncf %208 : vector<200x32xf32> to vector<200x32xbf16>
    %c0_194 = arith.constant 0 : index
    %c0_195 = arith.constant 0 : index
    %210 = vector.load %arg7[%c0_194, %c0_195] : memref<200x32xbf16, #tpu.memory_space<vmem>>, vector<200x32xbf16>
    tpu.vector_store %arg7[%c0_194, %c0_195], %209 {strides = array<i32>} : memref<200x32xbf16, #tpu.memory_space<vmem>>, vector<200x32xbf16>,
    %cst_196 = arith.constant 0.000000e+00 : f32
    %211 = vector.broadcast %cst_196 : f32 to vector<42x64xf32>
    %c0_197 = arith.constant 0 : index
    %c0_198 = arith.constant 0 : index
    %212 = vector.load %arg7[%c0_197, %c0_198] : memref<200x32xbf16, #tpu.memory_space<vmem>>, vector<42x32xbf16>
    %c0_199 = arith.constant 0 : index
    %c0_200 = arith.constant 0 : index
    %213 = vector.load %arg4[%c0_199, %c0_200] : memref<288x64xbf16, #tpu.memory_space<vmem>>, vector<32x64xbf16>
    %cst_201 = arith.constant dense<0.000000e+00> : vector<42x64xf32>
    %214 = tpu.matmul %212, %213, %cst_201 {dimension_numbers = #tpu.dot_dimension_numbers<[1], [0], [0], [1], [0, 0, 1, 1], [], []>} : vector<42x32xbf16>, vector<32x64xbf16>, vector<42x64xf32> -> vector<42x64xf32>
    %215 = arith.addf %211, %214 : vector<42x64xf32>
    %c49_202 = arith.constant 49 : index
    %c0_203 = arith.constant 0 : index
    %216 = vector.load %arg7[%c49_202, %c0_203] : memref<200x32xbf16, #tpu.memory_space<vmem>>, vector<42x32xbf16>
    %c32_204 = arith.constant 32 : index
    %c0_205 = arith.constant 0 : index
    %217 = vector.load %arg4[%c32_204, %c0_205] : memref<288x64xbf16, #tpu.memory_space<vmem>>, vector<32x64xbf16>
    %cst_206 = arith.constant dense<0.000000e+00> : vector<42x64xf32>
    %218 = tpu.matmul %216, %217, %cst_206 {dimension_numbers = #tpu.dot_dimension_numbers<[1], [0], [0], [1], [0, 0, 1, 1], [], []>} : vector<42x32xbf16>, vector<32x64xbf16>, vector<42x64xf32> -> vector<42x64xf32>
    %219 = arith.addf %215, %218 : vector<42x64xf32>
    %c1_207 = arith.constant 1 : index
    %c0_208 = arith.constant 0 : index
    %220 = vector.load %arg7[%c1_207, %c0_208] : memref<200x32xbf16, #tpu.memory_space<vmem>>, vector<42x32xbf16>
    %c64_209 = arith.constant 64 : index
    %c0_210 = arith.constant 0 : index
    %221 = vector.load %arg4[%c64_209, %c0_210] : memref<288x64xbf16, #tpu.memory_space<vmem>>, vector<32x64xbf16>
    %cst_211 = arith.constant dense<0.000000e+00> : vector<42x64xf32>
    %222 = tpu.matmul %220, %221, %cst_211 {dimension_numbers = #tpu.dot_dimension_numbers<[1], [0], [0], [1], [0, 0, 1, 1], [], []>} : vector<42x32xbf16>, vector<32x64xbf16>, vector<42x64xf32> -> vector<42x64xf32>
    %223 = arith.addf %219, %222 : vector<42x64xf32>
    %c98_212 = arith.constant 98 : index
    %c0_213 = arith.constant 0 : index
    %224 = vector.load %arg7[%c98_212, %c0_213] : memref<200x32xbf16, #tpu.memory_space<vmem>>, vector<42x32xbf16>
    %c96_214 = arith.constant 96 : index
    %c0_215 = arith.constant 0 : index
    %225 = vector.load %arg4[%c96_214, %c0_215] : memref<288x64xbf16, #tpu.memory_space<vmem>>, vector<32x64xbf16>
    %cst_216 = arith.constant dense<0.000000e+00> : vector<42x64xf32>
    %226 = tpu.matmul %224, %225, %cst_216 {dimension_numbers = #tpu.dot_dimension_numbers<[1], [0], [0], [1], [0, 0, 1, 1], [], []>} : vector<42x32xbf16>, vector<32x64xbf16>, vector<42x64xf32> -> vector<42x64xf32>
    %227 = arith.addf %223, %226 : vector<42x64xf32>
    %c147_217 = arith.constant 147 : index
    %c0_218 = arith.constant 0 : index
    %228 = vector.load %arg7[%c147_217, %c0_218] : memref<200x32xbf16, #tpu.memory_space<vmem>>, vector<42x32xbf16>
    %c128_219 = arith.constant 128 : index
    %c0_220 = arith.constant 0 : index
    %229 = vector.load %arg4[%c128_219, %c0_220] : memref<288x64xbf16, #tpu.memory_space<vmem>>, vector<32x64xbf16>
    %cst_221 = arith.constant dense<0.000000e+00> : vector<42x64xf32>
    %230 = tpu.matmul %228, %229, %cst_221 {dimension_numbers = #tpu.dot_dimension_numbers<[1], [0], [0], [1], [0, 0, 1, 1], [], []>} : vector<42x32xbf16>, vector<32x64xbf16>, vector<42x64xf32> -> vector<42x64xf32>
    %231 = arith.addf %227, %230 : vector<42x64xf32>
    %c99_222 = arith.constant 99 : index
    %c0_223 = arith.constant 0 : index
    %232 = vector.load %arg7[%c99_222, %c0_223] : memref<200x32xbf16, #tpu.memory_space<vmem>>, vector<42x32xbf16>
    %c160_224 = arith.constant 160 : index
    %c0_225 = arith.constant 0 : index
    %233 = vector.load %arg4[%c160_224, %c0_225] : memref<288x64xbf16, #tpu.memory_space<vmem>>, vector<32x64xbf16>
    %cst_226 = arith.constant dense<0.000000e+00> : vector<42x64xf32>
    %234 = tpu.matmul %232, %233, %cst_226 {dimension_numbers = #tpu.dot_dimension_numbers<[1], [0], [0], [1], [0, 0, 1, 1], [], []>} : vector<42x32xbf16>, vector<32x64xbf16>, vector<42x64xf32> -> vector<42x64xf32>
    %235 = arith.addf %231, %234 : vector<42x64xf32>
    %c7_227 = arith.constant 7 : index
    %c0_228 = arith.constant 0 : index
    %236 = vector.load %arg7[%c7_227, %c0_228] : memref<200x32xbf16, #tpu.memory_space<vmem>>, vector<42x32xbf16>
    %c192_229 = arith.constant 192 : index
    %c0_230 = arith.constant 0 : index
    %237 = vector.load %arg4[%c192_229, %c0_230] : memref<288x64xbf16, #tpu.memory_space<vmem>>, vector<32x64xbf16>
    %cst_231 = arith.constant dense<0.000000e+00> : vector<42x64xf32>
    %238 = tpu.matmul %236, %237, %cst_231 {dimension_numbers = #tpu.dot_dimension_numbers<[1], [0], [0], [1], [0, 0, 1, 1], [], []>} : vector<42x32xbf16>, vector<32x64xbf16>, vector<42x64xf32> -> vector<42x64xf32>
    %239 = arith.addf %235, %238 : vector<42x64xf32>
    %c56_232 = arith.constant 56 : index
    %c0_233 = arith.constant 0 : index
    %240 = vector.load %arg7[%c56_232, %c0_233] : memref<200x32xbf16, #tpu.memory_space<vmem>>, vector<42x32xbf16>
    %c224_234 = arith.constant 224 : index
    %c0_235 = arith.constant 0 : index
    %241 = vector.load %arg4[%c224_234, %c0_235] : memref<288x64xbf16, #tpu.memory_space<vmem>>, vector<32x64xbf16>
    %cst_236 = arith.constant dense<0.000000e+00> : vector<42x64xf32>
    %242 = tpu.matmul %240, %241, %cst_236 {dimension_numbers = #tpu.dot_dimension_numbers<[1], [0], [0], [1], [0, 0, 1, 1], [], []>} : vector<42x32xbf16>, vector<32x64xbf16>, vector<42x64xf32> -> vector<42x64xf32>
    %243 = arith.addf %239, %242 : vector<42x64xf32>
    %c8_237 = arith.constant 8 : index
    %c0_238 = arith.constant 0 : index
    %244 = vector.load %arg7[%c8_237, %c0_238] : memref<200x32xbf16, #tpu.memory_space<vmem>>, vector<42x32xbf16>
    %c256_239 = arith.constant 256 : index
    %c0_240 = arith.constant 0 : index
    %245 = vector.load %arg4[%c256_239, %c0_240] : memref<288x64xbf16, #tpu.memory_space<vmem>>, vector<32x64xbf16>
    %cst_241 = arith.constant dense<0.000000e+00> : vector<42x64xf32>
    %246 = tpu.matmul %244, %245, %cst_241 {dimension_numbers = #tpu.dot_dimension_numbers<[1], [0], [0], [1], [0, 0, 1, 1], [], []>} : vector<42x32xbf16>, vector<32x64xbf16>, vector<42x64xf32> -> vector<42x64xf32>
    %247 = arith.addf %243, %246 : vector<42x64xf32>
    %c0_242 = arith.constant 0 : index
    %c0_243 = arith.constant 0 : index
    %248 = vector.load %arg5[%c0_242, %c0_243] : memref<1x64xf32, #tpu.memory_space<vmem>>, vector<1x64xf32>
    %249 = vector.broadcast %248 : vector<1x64xf32> to vector<42x64xf32>
    %250 = arith.addf %247, %249 : vector<42x64xf32>
    %cst_244 = arith.constant 0.000000e+00 : f32
    %251 = vector.broadcast %cst_244 : f32 to vector<42x64xf32>
    %252 = arith.maximumf %250, %251 : vector<42x64xf32>
    %cst_245 = arith.constant 0.000000e+00 : f32
    %253 = vector.broadcast %cst_245 : f32 to vector<42x64xf32>
    %c49_246 = arith.constant 49 : index
    %c0_247 = arith.constant 0 : index
    %254 = vector.load %arg7[%c49_246, %c0_247] : memref<200x32xbf16, #tpu.memory_space<vmem>>, vector<42x32xbf16>
    %c0_248 = arith.constant 0 : index
    %c0_249 = arith.constant 0 : index
    %255 = vector.load %arg4[%c0_248, %c0_249] : memref<288x64xbf16, #tpu.memory_space<vmem>>, vector<32x64xbf16>
    %cst_250 = arith.constant dense<0.000000e+00> : vector<42x64xf32>
    %256 = tpu.matmul %254, %255, %cst_250 {dimension_numbers = #tpu.dot_dimension_numbers<[1], [0], [0], [1], [0, 0, 1, 1], [], []>} : vector<42x32xbf16>, vector<32x64xbf16>, vector<42x64xf32> -> vector<42x64xf32>
    %257 = arith.addf %253, %256 : vector<42x64xf32>
    %c1_251 = arith.constant 1 : index
    %c0_252 = arith.constant 0 : index
    %258 = vector.load %arg7[%c1_251, %c0_252] : memref<200x32xbf16, #tpu.memory_space<vmem>>, vector<42x32xbf16>
    %c32_253 = arith.constant 32 : index
    %c0_254 = arith.constant 0 : index
    %259 = vector.load %arg4[%c32_253, %c0_254] : memref<288x64xbf16, #tpu.memory_space<vmem>>, vector<32x64xbf16>
    %cst_255 = arith.constant dense<0.000000e+00> : vector<42x64xf32>
    %260 = tpu.matmul %258, %259, %cst_255 {dimension_numbers = #tpu.dot_dimension_numbers<[1], [0], [0], [1], [0, 0, 1, 1], [], []>} : vector<42x32xbf16>, vector<32x64xbf16>, vector<42x64xf32> -> vector<42x64xf32>
    %261 = arith.addf %257, %260 : vector<42x64xf32>
    %c50_256 = arith.constant 50 : index
    %c0_257 = arith.constant 0 : index
    %262 = vector.load %arg7[%c50_256, %c0_257] : memref<200x32xbf16, #tpu.memory_space<vmem>>, vector<42x32xbf16>
    %c64_258 = arith.constant 64 : index
    %c0_259 = arith.constant 0 : index
    %263 = vector.load %arg4[%c64_258, %c0_259] : memref<288x64xbf16, #tpu.memory_space<vmem>>, vector<32x64xbf16>
    %cst_260 = arith.constant dense<0.000000e+00> : vector<42x64xf32>
    %264 = tpu.matmul %262, %263, %cst_260 {dimension_numbers = #tpu.dot_dimension_numbers<[1], [0], [0], [1], [0, 0, 1, 1], [], []>} : vector<42x32xbf16>, vector<32x64xbf16>, vector<42x64xf32> -> vector<42x64xf32>
    %265 = arith.addf %261, %264 : vector<42x64xf32>
    %c147_261 = arith.constant 147 : index
    %c0_262 = arith.constant 0 : index
    %266 = vector.load %arg7[%c147_261, %c0_262] : memref<200x32xbf16, #tpu.memory_space<vmem>>, vector<42x32xbf16>
    %c96_263 = arith.constant 96 : index
    %c0_264 = arith.constant 0 : index
    %267 = vector.load %arg4[%c96_263, %c0_264] : memref<288x64xbf16, #tpu.memory_space<vmem>>, vector<32x64xbf16>
    %cst_265 = arith.constant dense<0.000000e+00> : vector<42x64xf32>
    %268 = tpu.matmul %266, %267, %cst_265 {dimension_numbers = #tpu.dot_dimension_numbers<[1], [0], [0], [1], [0, 0, 1, 1], [], []>} : vector<42x32xbf16>, vector<32x64xbf16>, vector<42x64xf32> -> vector<42x64xf32>
    %269 = arith.addf %265, %268 : vector<42x64xf32>
    %c99_266 = arith.constant 99 : index
    %c0_267 = arith.constant 0 : index
    %270 = vector.load %arg7[%c99_266, %c0_267] : memref<200x32xbf16, #tpu.memory_space<vmem>>, vector<42x32xbf16>
    %c128_268 = arith.constant 128 : index
    %c0_269 = arith.constant 0 : index
    %271 = vector.load %arg4[%c128_268, %c0_269] : memref<288x64xbf16, #tpu.memory_space<vmem>>, vector<32x64xbf16>
    %cst_270 = arith.constant dense<0.000000e+00> : vector<42x64xf32>
    %272 = tpu.matmul %270, %271, %cst_270 {dimension_numbers = #tpu.dot_dimension_numbers<[1], [0], [0], [1], [0, 0, 1, 1], [], []>} : vector<42x32xbf16>, vector<32x64xbf16>, vector<42x64xf32> -> vector<42x64xf32>
    %273 = arith.addf %269, %272 : vector<42x64xf32>
    %c148_271 = arith.constant 148 : index
    %c0_272 = arith.constant 0 : index
    %274 = vector.load %arg7[%c148_271, %c0_272] : memref<200x32xbf16, #tpu.memory_space<vmem>>, vector<42x32xbf16>
    %c160_273 = arith.constant 160 : index
    %c0_274 = arith.constant 0 : index
    %275 = vector.load %arg4[%c160_273, %c0_274] : memref<288x64xbf16, #tpu.memory_space<vmem>>, vector<32x64xbf16>
    %cst_275 = arith.constant dense<0.000000e+00> : vector<42x64xf32>
    %276 = tpu.matmul %274, %275, %cst_275 {dimension_numbers = #tpu.dot_dimension_numbers<[1], [0], [0], [1], [0, 0, 1, 1], [], []>} : vector<42x32xbf16>, vector<32x64xbf16>, vector<42x64xf32> -> vector<42x64xf32>
    %277 = arith.addf %273, %276 : vector<42x64xf32>
    %c56_276 = arith.constant 56 : index
    %c0_277 = arith.constant 0 : index
    %278 = vector.load %arg7[%c56_276, %c0_277] : memref<200x32xbf16, #tpu.memory_space<vmem>>, vector<42x32xbf16>
    %c192_278 = arith.constant 192 : index
    %c0_279 = arith.constant 0 : index
    %279 = vector.load %arg4[%c192_278, %c0_279] : memref<288x64xbf16, #tpu.memory_space<vmem>>, vector<32x64xbf16>
    %cst_280 = arith.constant dense<0.000000e+00> : vector<42x64xf32>
    %280 = tpu.matmul %278, %279, %cst_280 {dimension_numbers = #tpu.dot_dimension_numbers<[1], [0], [0], [1], [0, 0, 1, 1], [], []>} : vector<42x32xbf16>, vector<32x64xbf16>, vector<42x64xf32> -> vector<42x64xf32>
    %281 = arith.addf %277, %280 : vector<42x64xf32>
    %c8_281 = arith.constant 8 : index
    %c0_282 = arith.constant 0 : index
    %282 = vector.load %arg7[%c8_281, %c0_282] : memref<200x32xbf16, #tpu.memory_space<vmem>>, vector<42x32xbf16>
    %c224_283 = arith.constant 224 : index
    %c0_284 = arith.constant 0 : index
    %283 = vector.load %arg4[%c224_283, %c0_284] : memref<288x64xbf16, #tpu.memory_space<vmem>>, vector<32x64xbf16>
    %cst_285 = arith.constant dense<0.000000e+00> : vector<42x64xf32>
    %284 = tpu.matmul %282, %283, %cst_285 {dimension_numbers = #tpu.dot_dimension_numbers<[1], [0], [0], [1], [0, 0, 1, 1], [], []>} : vector<42x32xbf16>, vector<32x64xbf16>, vector<42x64xf32> -> vector<42x64xf32>
    %285 = arith.addf %281, %284 : vector<42x64xf32>
    %c57_286 = arith.constant 57 : index
    %c0_287 = arith.constant 0 : index
    %286 = vector.load %arg7[%c57_286, %c0_287] : memref<200x32xbf16, #tpu.memory_space<vmem>>, vector<42x32xbf16>
    %c256_288 = arith.constant 256 : index
    %c0_289 = arith.constant 0 : index
    %287 = vector.load %arg4[%c256_288, %c0_289] : memref<288x64xbf16, #tpu.memory_space<vmem>>, vector<32x64xbf16>
    %cst_290 = arith.constant dense<0.000000e+00> : vector<42x64xf32>
    %288 = tpu.matmul %286, %287, %cst_290 {dimension_numbers = #tpu.dot_dimension_numbers<[1], [0], [0], [1], [0, 0, 1, 1], [], []>} : vector<42x32xbf16>, vector<32x64xbf16>, vector<42x64xf32> -> vector<42x64xf32>
    %289 = arith.addf %285, %288 : vector<42x64xf32>
    %c0_291 = arith.constant 0 : index
    %c0_292 = arith.constant 0 : index
    %290 = vector.load %arg5[%c0_291, %c0_292] : memref<1x64xf32, #tpu.memory_space<vmem>>, vector<1x64xf32>
    %291 = vector.broadcast %290 : vector<1x64xf32> to vector<42x64xf32>
    %292 = arith.addf %289, %291 : vector<42x64xf32>
    %cst_293 = arith.constant 0.000000e+00 : f32
    %293 = vector.broadcast %cst_293 : f32 to vector<42x64xf32>
    %294 = arith.maximumf %292, %293 : vector<42x64xf32>
    %295 = arith.maximumf %252, %294 : vector<42x64xf32>
    %cst_294 = arith.constant 0.000000e+00 : f32
    %296 = vector.broadcast %cst_294 : f32 to vector<42x64xf32>
    %c98_295 = arith.constant 98 : index
    %c0_296 = arith.constant 0 : index
    %297 = vector.load %arg7[%c98_295, %c0_296] : memref<200x32xbf16, #tpu.memory_space<vmem>>, vector<42x32xbf16>
    %c0_297 = arith.constant 0 : index
    %c0_298 = arith.constant 0 : index
    %298 = vector.load %arg4[%c0_297, %c0_298] : memref<288x64xbf16, #tpu.memory_space<vmem>>, vector<32x64xbf16>
    %cst_299 = arith.constant dense<0.000000e+00> : vector<42x64xf32>
    %299 = tpu.matmul %297, %298, %cst_299 {dimension_numbers = #tpu.dot_dimension_numbers<[1], [0], [0], [1], [0, 0, 1, 1], [], []>} : vector<42x32xbf16>, vector<32x64xbf16>, vector<42x64xf32> -> vector<42x64xf32>
    %300 = arith.addf %296, %299 : vector<42x64xf32>
    %c147_300 = arith.constant 147 : index
    %c0_301 = arith.constant 0 : index
    %301 = vector.load %arg7[%c147_300, %c0_301] : memref<200x32xbf16, #tpu.memory_space<vmem>>, vector<42x32xbf16>
    %c32_302 = arith.constant 32 : index
    %c0_303 = arith.constant 0 : index
    %302 = vector.load %arg4[%c32_302, %c0_303] : memref<288x64xbf16, #tpu.memory_space<vmem>>, vector<32x64xbf16>
    %cst_304 = arith.constant dense<0.000000e+00> : vector<42x64xf32>
    %303 = tpu.matmul %301, %302, %cst_304 {dimension_numbers = #tpu.dot_dimension_numbers<[1], [0], [0], [1], [0, 0, 1, 1], [], []>} : vector<42x32xbf16>, vector<32x64xbf16>, vector<42x64xf32> -> vector<42x64xf32>
    %304 = arith.addf %300, %303 : vector<42x64xf32>
    %c99_305 = arith.constant 99 : index
    %c0_306 = arith.constant 0 : index
    %305 = vector.load %arg7[%c99_305, %c0_306] : memref<200x32xbf16, #tpu.memory_space<vmem>>, vector<42x32xbf16>
    %c64_307 = arith.constant 64 : index
    %c0_308 = arith.constant 0 : index
    %306 = vector.load %arg4[%c64_307, %c0_308] : memref<288x64xbf16, #tpu.memory_space<vmem>>, vector<32x64xbf16>
    %cst_309 = arith.constant dense<0.000000e+00> : vector<42x64xf32>
    %307 = tpu.matmul %305, %306, %cst_309 {dimension_numbers = #tpu.dot_dimension_numbers<[1], [0], [0], [1], [0, 0, 1, 1], [], []>} : vector<42x32xbf16>, vector<32x64xbf16>, vector<42x64xf32> -> vector<42x64xf32>
    %308 = arith.addf %304, %307 : vector<42x64xf32>
    %c7_310 = arith.constant 7 : index
    %c0_311 = arith.constant 0 : index
    %309 = vector.load %arg7[%c7_310, %c0_311] : memref<200x32xbf16, #tpu.memory_space<vmem>>, vector<42x32xbf16>
    %c96_312 = arith.constant 96 : index
    %c0_313 = arith.constant 0 : index
    %310 = vector.load %arg4[%c96_312, %c0_313] : memref<288x64xbf16, #tpu.memory_space<vmem>>, vector<32x64xbf16>
    %cst_314 = arith.constant dense<0.000000e+00> : vector<42x64xf32>
    %311 = tpu.matmul %309, %310, %cst_314 {dimension_numbers = #tpu.dot_dimension_numbers<[1], [0], [0], [1], [0, 0, 1, 1], [], []>} : vector<42x32xbf16>, vector<32x64xbf16>, vector<42x64xf32> -> vector<42x64xf32>
    %312 = arith.addf %308, %311 : vector<42x64xf32>
    %c56_315 = arith.constant 56 : index
    %c0_316 = arith.constant 0 : index
    %313 = vector.load %arg7[%c56_315, %c0_316] : memref<200x32xbf16, #tpu.memory_space<vmem>>, vector<42x32xbf16>
    %c128_317 = arith.constant 128 : index
    %c0_318 = arith.constant 0 : index
    %314 = vector.load %arg4[%c128_317, %c0_318] : memref<288x64xbf16, #tpu.memory_space<vmem>>, vector<32x64xbf16>
    %cst_319 = arith.constant dense<0.000000e+00> : vector<42x64xf32>
    %315 = tpu.matmul %313, %314, %cst_319 {dimension_numbers = #tpu.dot_dimension_numbers<[1], [0], [0], [1], [0, 0, 1, 1], [], []>} : vector<42x32xbf16>, vector<32x64xbf16>, vector<42x64xf32> -> vector<42x64xf32>
    %316 = arith.addf %312, %315 : vector<42x64xf32>
    %c8_320 = arith.constant 8 : index
    %c0_321 = arith.constant 0 : index
    %317 = vector.load %arg7[%c8_320, %c0_321] : memref<200x32xbf16, #tpu.memory_space<vmem>>, vector<42x32xbf16>
    %c160_322 = arith.constant 160 : index
    %c0_323 = arith.constant 0 : index
    %318 = vector.load %arg4[%c160_322, %c0_323] : memref<288x64xbf16, #tpu.memory_space<vmem>>, vector<32x64xbf16>
    %cst_324 = arith.constant dense<0.000000e+00> : vector<42x64xf32>
    %319 = tpu.matmul %317, %318, %cst_324 {dimension_numbers = #tpu.dot_dimension_numbers<[1], [0], [0], [1], [0, 0, 1, 1], [], []>} : vector<42x32xbf16>, vector<32x64xbf16>, vector<42x64xf32> -> vector<42x64xf32>
    %320 = arith.addf %316, %319 : vector<42x64xf32>
    %c105_325 = arith.constant 105 : index
    %c0_326 = arith.constant 0 : index
    %321 = vector.load %arg7[%c105_325, %c0_326] : memref<200x32xbf16, #tpu.memory_space<vmem>>, vector<42x32xbf16>
    %c192_327 = arith.constant 192 : index
    %c0_328 = arith.constant 0 : index
    %322 = vector.load %arg4[%c192_327, %c0_328] : memref<288x64xbf16, #tpu.memory_space<vmem>>, vector<32x64xbf16>
    %cst_329 = arith.constant dense<0.000000e+00> : vector<42x64xf32>
    %323 = tpu.matmul %321, %322, %cst_329 {dimension_numbers = #tpu.dot_dimension_numbers<[1], [0], [0], [1], [0, 0, 1, 1], [], []>} : vector<42x32xbf16>, vector<32x64xbf16>, vector<42x64xf32> -> vector<42x64xf32>
    %324 = arith.addf %320, %323 : vector<42x64xf32>
    %c154_330 = arith.constant 154 : index
    %c0_331 = arith.constant 0 : index
    %325 = vector.load %arg7[%c154_330, %c0_331] : memref<200x32xbf16, #tpu.memory_space<vmem>>, vector<42x32xbf16>
    %c224_332 = arith.constant 224 : index
    %c0_333 = arith.constant 0 : index
    %326 = vector.load %arg4[%c224_332, %c0_333] : memref<288x64xbf16, #tpu.memory_space<vmem>>, vector<32x64xbf16>
    %cst_334 = arith.constant dense<0.000000e+00> : vector<42x64xf32>
    %327 = tpu.matmul %325, %326, %cst_334 {dimension_numbers = #tpu.dot_dimension_numbers<[1], [0], [0], [1], [0, 0, 1, 1], [], []>} : vector<42x32xbf16>, vector<32x64xbf16>, vector<42x64xf32> -> vector<42x64xf32>
    %328 = arith.addf %324, %327 : vector<42x64xf32>
    %c106_335 = arith.constant 106 : index
    %c0_336 = arith.constant 0 : index
    %329 = vector.load %arg7[%c106_335, %c0_336] : memref<200x32xbf16, #tpu.memory_space<vmem>>, vector<42x32xbf16>
    %c256_337 = arith.constant 256 : index
    %c0_338 = arith.constant 0 : index
    %330 = vector.load %arg4[%c256_337, %c0_338] : memref<288x64xbf16, #tpu.memory_space<vmem>>, vector<32x64xbf16>
    %cst_339 = arith.constant dense<0.000000e+00> : vector<42x64xf32>
    %331 = tpu.matmul %329, %330, %cst_339 {dimension_numbers = #tpu.dot_dimension_numbers<[1], [0], [0], [1], [0, 0, 1, 1], [], []>} : vector<42x32xbf16>, vector<32x64xbf16>, vector<42x64xf32> -> vector<42x64xf32>
    %332 = arith.addf %328, %331 : vector<42x64xf32>
    %c0_340 = arith.constant 0 : index
    %c0_341 = arith.constant 0 : index
    %333 = vector.load %arg5[%c0_340, %c0_341] : memref<1x64xf32, #tpu.memory_space<vmem>>, vector<1x64xf32>
    %334 = vector.broadcast %333 : vector<1x64xf32> to vector<42x64xf32>
    %335 = arith.addf %332, %334 : vector<42x64xf32>
    %cst_342 = arith.constant 0.000000e+00 : f32
    %336 = vector.broadcast %cst_342 : f32 to vector<42x64xf32>
    %337 = arith.maximumf %335, %336 : vector<42x64xf32>
    %338 = arith.maximumf %295, %337 : vector<42x64xf32>
    %cst_343 = arith.constant 0.000000e+00 : f32
    %339 = vector.broadcast %cst_343 : f32 to vector<42x64xf32>
    %c147_344 = arith.constant 147 : index
    %c0_345 = arith.constant 0 : index
    %340 = vector.load %arg7[%c147_344, %c0_345] : memref<200x32xbf16, #tpu.memory_space<vmem>>, vector<42x32xbf16>
    %c0_346 = arith.constant 0 : index
    %c0_347 = arith.constant 0 : index
    %341 = vector.load %arg4[%c0_346, %c0_347] : memref<288x64xbf16, #tpu.memory_space<vmem>>, vector<32x64xbf16>
    %cst_348 = arith.constant dense<0.000000e+00> : vector<42x64xf32>
    %342 = tpu.matmul %340, %341, %cst_348 {dimension_numbers = #tpu.dot_dimension_numbers<[1], [0], [0], [1], [0, 0, 1, 1], [], []>} : vector<42x32xbf16>, vector<32x64xbf16>, vector<42x64xf32> -> vector<42x64xf32>
    %343 = arith.addf %339, %342 : vector<42x64xf32>
    %c99_349 = arith.constant 99 : index
    %c0_350 = arith.constant 0 : index
    %344 = vector.load %arg7[%c99_349, %c0_350] : memref<200x32xbf16, #tpu.memory_space<vmem>>, vector<42x32xbf16>
    %c32_351 = arith.constant 32 : index
    %c0_352 = arith.constant 0 : index
    %345 = vector.load %arg4[%c32_351, %c0_352] : memref<288x64xbf16, #tpu.memory_space<vmem>>, vector<32x64xbf16>
    %cst_353 = arith.constant dense<0.000000e+00> : vector<42x64xf32>
    %346 = tpu.matmul %344, %345, %cst_353 {dimension_numbers = #tpu.dot_dimension_numbers<[1], [0], [0], [1], [0, 0, 1, 1], [], []>} : vector<42x32xbf16>, vector<32x64xbf16>, vector<42x64xf32> -> vector<42x64xf32>
    %347 = arith.addf %343, %346 : vector<42x64xf32>
    %c148_354 = arith.constant 148 : index
    %c0_355 = arith.constant 0 : index
    %348 = vector.load %arg7[%c148_354, %c0_355] : memref<200x32xbf16, #tpu.memory_space<vmem>>, vector<42x32xbf16>
    %c64_356 = arith.constant 64 : index
    %c0_357 = arith.constant 0 : index
    %349 = vector.load %arg4[%c64_356, %c0_357] : memref<288x64xbf16, #tpu.memory_space<vmem>>, vector<32x64xbf16>
    %cst_358 = arith.constant dense<0.000000e+00> : vector<42x64xf32>
    %350 = tpu.matmul %348, %349, %cst_358 {dimension_numbers = #tpu.dot_dimension_numbers<[1], [0], [0], [1], [0, 0, 1, 1], [], []>} : vector<42x32xbf16>, vector<32x64xbf16>, vector<42x64xf32> -> vector<42x64xf32>
    %351 = arith.addf %347, %350 : vector<42x64xf32>
    %c56_359 = arith.constant 56 : index
    %c0_360 = arith.constant 0 : index
    %352 = vector.load %arg7[%c56_359, %c0_360] : memref<200x32xbf16, #tpu.memory_space<vmem>>, vector<42x32xbf16>
    %c96_361 = arith.constant 96 : index
    %c0_362 = arith.constant 0 : index
    %353 = vector.load %arg4[%c96_361, %c0_362] : memref<288x64xbf16, #tpu.memory_space<vmem>>, vector<32x64xbf16>
    %cst_363 = arith.constant dense<0.000000e+00> : vector<42x64xf32>
    %354 = tpu.matmul %352, %353, %cst_363 {dimension_numbers = #tpu.dot_dimension_numbers<[1], [0], [0], [1], [0, 0, 1, 1], [], []>} : vector<42x32xbf16>, vector<32x64xbf16>, vector<42x64xf32> -> vector<42x64xf32>
    %355 = arith.addf %351, %354 : vector<42x64xf32>
    %c8_364 = arith.constant 8 : index
    %c0_365 = arith.constant 0 : index
    %356 = vector.load %arg7[%c8_364, %c0_365] : memref<200x32xbf16, #tpu.memory_space<vmem>>, vector<42x32xbf16>
    %c128_366 = arith.constant 128 : index
    %c0_367 = arith.constant 0 : index
    %357 = vector.load %arg4[%c128_366, %c0_367] : memref<288x64xbf16, #tpu.memory_space<vmem>>, vector<32x64xbf16>
    %cst_368 = arith.constant dense<0.000000e+00> : vector<42x64xf32>
    %358 = tpu.matmul %356, %357, %cst_368 {dimension_numbers = #tpu.dot_dimension_numbers<[1], [0], [0], [1], [0, 0, 1, 1], [], []>} : vector<42x32xbf16>, vector<32x64xbf16>, vector<42x64xf32> -> vector<42x64xf32>
    %359 = arith.addf %355, %358 : vector<42x64xf32>
    %c57_369 = arith.constant 57 : index
    %c0_370 = arith.constant 0 : index
    %360 = vector.load %arg7[%c57_369, %c0_370] : memref<200x32xbf16, #tpu.memory_space<vmem>>, vector<42x32xbf16>
    %c160_371 = arith.constant 160 : index
    %c0_372 = arith.constant 0 : index
    %361 = vector.load %arg4[%c160_371, %c0_372] : memref<288x64xbf16, #tpu.memory_space<vmem>>, vector<32x64xbf16>
    %cst_373 = arith.constant dense<0.000000e+00> : vector<42x64xf32>
    %362 = tpu.matmul %360, %361, %cst_373 {dimension_numbers = #tpu.dot_dimension_numbers<[1], [0], [0], [1], [0, 0, 1, 1], [], []>} : vector<42x32xbf16>, vector<32x64xbf16>, vector<42x64xf32> -> vector<42x64xf32>
    %363 = arith.addf %359, %362 : vector<42x64xf32>
    %c154_374 = arith.constant 154 : index
    %c0_375 = arith.constant 0 : index
    %364 = vector.load %arg7[%c154_374, %c0_375] : memref<200x32xbf16, #tpu.memory_space<vmem>>, vector<42x32xbf16>
    %c192_376 = arith.constant 192 : index
    %c0_377 = arith.constant 0 : index
    %365 = vector.load %arg4[%c192_376, %c0_377] : memref<288x64xbf16, #tpu.memory_space<vmem>>, vector<32x64xbf16>
    %cst_378 = arith.constant dense<0.000000e+00> : vector<42x64xf32>
    %366 = tpu.matmul %364, %365, %cst_378 {dimension_numbers = #tpu.dot_dimension_numbers<[1], [0], [0], [1], [0, 0, 1, 1], [], []>} : vector<42x32xbf16>, vector<32x64xbf16>, vector<42x64xf32> -> vector<42x64xf32>
    %367 = arith.addf %363, %366 : vector<42x64xf32>
    %c106_379 = arith.constant 106 : index
    %c0_380 = arith.constant 0 : index
    %368 = vector.load %arg7[%c106_379, %c0_380] : memref<200x32xbf16, #tpu.memory_space<vmem>>, vector<42x32xbf16>
    %c224_381 = arith.constant 224 : index
    %c0_382 = arith.constant 0 : index
    %369 = vector.load %arg4[%c224_381, %c0_382] : memref<288x64xbf16, #tpu.memory_space<vmem>>, vector<32x64xbf16>
    %cst_383 = arith.constant dense<0.000000e+00> : vector<42x64xf32>
    %370 = tpu.matmul %368, %369, %cst_383 {dimension_numbers = #tpu.dot_dimension_numbers<[1], [0], [0], [1], [0, 0, 1, 1], [], []>} : vector<42x32xbf16>, vector<32x64xbf16>, vector<42x64xf32> -> vector<42x64xf32>
    %371 = arith.addf %367, %370 : vector<42x64xf32>
    %c155_384 = arith.constant 155 : index
    %c0_385 = arith.constant 0 : index
    %372 = vector.load %arg7[%c155_384, %c0_385] : memref<200x32xbf16, #tpu.memory_space<vmem>>, vector<42x32xbf16>
    %c256_386 = arith.constant 256 : index
    %c0_387 = arith.constant 0 : index
    %373 = vector.load %arg4[%c256_386, %c0_387] : memref<288x64xbf16, #tpu.memory_space<vmem>>, vector<32x64xbf16>
    %cst_388 = arith.constant dense<0.000000e+00> : vector<42x64xf32>
    %374 = tpu.matmul %372, %373, %cst_388 {dimension_numbers = #tpu.dot_dimension_numbers<[1], [0], [0], [1], [0, 0, 1, 1], [], []>} : vector<42x32xbf16>, vector<32x64xbf16>, vector<42x64xf32> -> vector<42x64xf32>
    %375 = arith.addf %371, %374 : vector<42x64xf32>
    %c0_389 = arith.constant 0 : index
    %c0_390 = arith.constant 0 : index
    %376 = vector.load %arg5[%c0_389, %c0_390] : memref<1x64xf32, #tpu.memory_space<vmem>>, vector<1x64xf32>
    %377 = vector.broadcast %376 : vector<1x64xf32> to vector<42x64xf32>
    %378 = arith.addf %375, %377 : vector<42x64xf32>
    %cst_391 = arith.constant 0.000000e+00 : f32
    %379 = vector.broadcast %cst_391 : f32 to vector<42x64xf32>
    %380 = arith.maximumf %378, %379 : vector<42x64xf32>
    %381 = arith.maximumf %338, %380 : vector<42x64xf32>
    %382 = arith.truncf %381 : vector<42x64xf32> to vector<42x64xbf16>
    %c1_392 = arith.constant 1 : index
    %c0_393 = arith.constant 0 : index
    %c0_394 = arith.constant 0 : index
    %383 = vector.load %arg6[%c1_392, %c0_393, %c0_394] : memref<2x42x64xbf16, #tpu.memory_space<vmem>>, vector<1x42x64xbf16>
    %384 = vector.shape_cast %383 : vector<1x42x64xbf16> to vector<42x64xbf16>
    %385 = vector.shape_cast %382 : vector<42x64xbf16> to vector<1x42x64xbf16>
    tpu.vector_store %arg6[%c1_392, %c0_393, %c0_394], %385 {strides = array<i32>} : memref<2x42x64xbf16, #tpu.memory_space<vmem>>, vector<1x42x64xbf16>,
    return
  }
  func.func @transform_0(%arg0: i32) -> (i32, i32, i32) {
    %c0_i32 = arith.constant 0 : i32
    %c0_i32_0 = arith.constant 0 : i32
    %c0_i32_1 = arith.constant 0 : i32
    return %arg0, %c0_i32, %c0_i32_0 : i32, i32, i32
  }
  func.func @transform_1(%arg0: i32) -> (i32, i32) {
    %c0_i32 = arith.constant 0 : i32
    %c0_i32_0 = arith.constant 0 : i32
    %c0_i32_1 = arith.constant 0 : i32
    return %c0_i32, %c0_i32_0 : i32, i32
  }
  func.func @transform_2(%arg0: i32) -> (i32, i32) {
    %c0_i32 = arith.constant 0 : i32
    %c0_i32_0 = arith.constant 0 : i32
    %c0_i32_1 = arith.constant 0 : i32
    return %c0_i32, %c0_i32_0 : i32, i32
  }
  func.func @transform_3(%arg0: i32) -> (i32, i32) {
    %c0_i32 = arith.constant 0 : i32
    %c0_i32_0 = arith.constant 0 : i32
    %c0_i32_1 = arith.constant 0 : i32
    return %c0_i32, %c0_i32_0 : i32, i32
  }
  func.func @transform_4(%arg0: i32) -> (i32, i32) {
    %c0_i32 = arith.constant 0 : i32
    %c0_i32_0 = arith.constant 0 : i32
    %c0_i32_1 = arith.constant 0 : i32
    return %c0_i32, %c0_i32_0 : i32, i32
  }
  func.func @transform_5(%arg0: i32) -> (i32, i32, i32) {
    %c0_i32 = arith.constant 0 : i32
    %c0_i32_0 = arith.constant 0 : i32
    %c0_i32_1 = arith.constant 0 : i32
    return %arg0, %c0_i32, %c0_i32_0 : i32, i32, i32
  }
}

module attributes {stable_mosaic.version = 11 : i64} {
  func.func @mlp_kernel(%arg0: memref<2x2304xbf16, #tpu.memory_space<vmem>>, %arg1: memref<2304x600xbf16, #tpu.memory_space<vmem>>, %arg2: memref<1x600xf32, #tpu.memory_space<vmem>>, %arg3: memref<600x120xbf16, #tpu.memory_space<vmem>>, %arg4: memref<1x120xf32, #tpu.memory_space<vmem>>, %arg5: memref<120x10xbf16, #tpu.memory_space<vmem>>, %arg6: memref<1x10xf32, #tpu.memory_space<vmem>>, %arg7: memref<2x10xf32, #tpu.memory_space<vmem>>) attributes {dimension_semantics = [], scalar_prefetch = 0 : i64, scratch_operands = 0 : i64, tpu.core_type = #tpu.core_type<tc>} {
    %c0 = arith.constant 0 : index
    %c0_0 = arith.constant 0 : index
    %0 = vector.load %arg0[%c0, %c0_0] : memref<2x2304xbf16, #tpu.memory_space<vmem>>, vector<2x2304xbf16>
    %c0_1 = arith.constant 0 : index
    %c0_2 = arith.constant 0 : index
    %1 = vector.load %arg1[%c0_1, %c0_2] : memref<2304x600xbf16, #tpu.memory_space<vmem>>, vector<2304x600xbf16>
    %cst = arith.constant dense<0.000000e+00> : vector<2x600xf32>
    %2 = tpu.matmul %0, %1, %cst {dimension_numbers = #tpu.dot_dimension_numbers<[1], [0], [0], [1], [0, 0, 1, 1], [], []>} : vector<2x2304xbf16>, vector<2304x600xbf16>, vector<2x600xf32> -> vector<2x600xf32>
    %c0_3 = arith.constant 0 : index
    %c0_4 = arith.constant 0 : index
    %3 = vector.load %arg2[%c0_3, %c0_4] : memref<1x600xf32, #tpu.memory_space<vmem>>, vector<1x600xf32>
    %4 = vector.broadcast %3 : vector<1x600xf32> to vector<2x600xf32>
    %5 = arith.addf %2, %4 : vector<2x600xf32>
    %6 = arith.truncf %5 : vector<2x600xf32> to vector<2x600xbf16>
    %c0_5 = arith.constant 0 : index
    %c0_6 = arith.constant 0 : index
    %7 = vector.load %arg3[%c0_5, %c0_6] : memref<600x120xbf16, #tpu.memory_space<vmem>>, vector<600x120xbf16>
    %cst_7 = arith.constant dense<0.000000e+00> : vector<2x120xf32>
    %8 = tpu.matmul %6, %7, %cst_7 {dimension_numbers = #tpu.dot_dimension_numbers<[1], [0], [0], [1], [0, 0, 1, 1], [], []>} : vector<2x600xbf16>, vector<600x120xbf16>, vector<2x120xf32> -> vector<2x120xf32>
    %c0_8 = arith.constant 0 : index
    %c0_9 = arith.constant 0 : index
    %9 = vector.load %arg4[%c0_8, %c0_9] : memref<1x120xf32, #tpu.memory_space<vmem>>, vector<1x120xf32>
    %10 = vector.broadcast %9 : vector<1x120xf32> to vector<2x120xf32>
    %11 = arith.addf %8, %10 : vector<2x120xf32>
    %12 = arith.truncf %11 : vector<2x120xf32> to vector<2x120xbf16>
    %c0_10 = arith.constant 0 : index
    %c0_11 = arith.constant 0 : index
    %13 = vector.load %arg5[%c0_10, %c0_11] : memref<120x10xbf16, #tpu.memory_space<vmem>>, vector<120x10xbf16>
    %cst_12 = arith.constant dense<0.000000e+00> : vector<2x10xf32>
    %14 = tpu.matmul %12, %13, %cst_12 {dimension_numbers = #tpu.dot_dimension_numbers<[1], [0], [0], [1], [0, 0, 1, 1], [], []>} : vector<2x120xbf16>, vector<120x10xbf16>, vector<2x10xf32> -> vector<2x10xf32>
    %c0_13 = arith.constant 0 : index
    %c0_14 = arith.constant 0 : index
    %15 = vector.load %arg6[%c0_13, %c0_14] : memref<1x10xf32, #tpu.memory_space<vmem>>, vector<1x10xf32>
    %16 = vector.broadcast %15 : vector<1x10xf32> to vector<2x10xf32>
    %17 = arith.addf %14, %16 : vector<2x10xf32>
    %c0_15 = arith.constant 0 : index
    %c0_16 = arith.constant 0 : index
    %18 = vector.load %arg7[%c0_15, %c0_16] : memref<2x10xf32, #tpu.memory_space<vmem>>, vector<2x10xf32>
    tpu.vector_store %arg7[%c0_15, %c0_16], %17 {strides = array<i32>} : memref<2x10xf32, #tpu.memory_space<vmem>>, vector<2x10xf32>,
    return
  }
}

</mosaic_0001>

<bundles_post_ra>
// kernel: fashion_cnn_forward.2
= control target key start
LH: loop header
LB: loop body
LE: loop exit
PB: predicated region body
PF: predicated region fallthrough
CT: control target
= control target key end

     0   :  { %vm536_vm0 = vcmask 1043456   ;;  %vm537_vm1 = vcmask 1044480   ;;  %vm385_vm2 = vcmask 72704   ;;  %v11440_v1 = vmov 65535   ;;  %s15135_s1 = inlined_call_operand.vmem [shape: bf16[9,32], index: 1, kind: input, shape index: {}]   ;;  %s15136_s0 = inlined_call_operand.vmem [shape: bf16[2,800,9], index: 0, kind: input, shape index: {}]   ;;  %s15137_s3 = inlined_call_operand.vmem [shape: bf16[288,64], index: 3, kind: input, shape index: {}]   ;;  %s15138_s2 = inlined_call_operand.vmem [shape: f32[1,32], index: 2, kind: input, shape index: {}]   ;;  %s15139_s4 = inlined_call_operand.vmem [shape: f32[1,64], index: 4, kind: input, shape index: {}]   ;;  %s15140_s5 = inlined_call_operand.vmem [shape: bf16[2,42,64], index: 5, kind: output, shape index: {}]  }
   0x1   :  { %v11194_v0 = vld [vmem:[%s15135_s1] sm:$0x1f]   ;;  %v538_v2 = vsel %vm536_vm0, 4294967295, %v11440_v1  ;;  %v11197_v8 = vld [vmem:[%s15136_s0 + $0x8] sm:$0xff]   ;;  %v11198_v9 = vld [vmem:[%s15136_s0 + $0x10] sm:$0xff]   ;;  %vm11442_vm3 = vmmov 0  }
   0x2   :  { %v11196_v3 = vld [vmem:[%s15136_s0] sm:$0xff]   ;;  %v539_v4 = vsel %vm537_vm1, %v538_v2, 0  ;;  %v11199_v10 = vld [vmem:[%s15136_s0 + $0x18] sm:$0xff]   ;;  %v11201_v12 = vld [vmem:[%s15136_s0 + $0x28] sm:$0xff]   ;;  %vm1252_vm4 = vcmask 257024   ;;  %vm1349_vm6 = vcmask 261120  }
   0x3   :  { %v11195_v5 = vld [vmem:[%s15135_s1] sm:$0x1f]   ;;  %v541_v6 = vand.u32 %v11194_v0, %v539_v4  ;;  %9837 = vmatprep.mubr.msk.bf16.mxu0 %vm385_vm2, %v11196_v3  ;;  %v11202_v13 = vld [vmem:[%s15136_s0 + $0x30] sm:$0xff]   ;;  %v11203_v14 = vld [vmem:[%s15136_s0 + $0x38] sm:$0xff]   ;;  %vm1313_vm5 = vsmask.f32 7424 }
   0x4   :  { %v11483_v7 = vand.u32 %v11195_v5, %v539_v4  ;;  %v11200_v11 = vld [vmem:[%s15136_s0 + $0x20] sm:$0xff]   ;;  %v11205_v16 = vld [vmem:[%s15136_s0 + $0x48] sm:$0xff]   ;;  %v11206_v17 = vld [vmem:[%s15136_s0 + $0x50] sm:$0xff]   ;;  %vm1647_vm7 = vcmask 1046528   ;;  %vm1762_vm8 = vsmask.f32 6400 }
   0x5   :  { %9835 = vmatprep.subr.bf16.mxu0 %v541_v6  ;;  %v11204_v15 = vld [vmem:[%s15136_s0 + $0x40] sm:$0xff]   ;;  %v11207_v18 = vld [vmem:[%s15136_s0 + $0x58] sm:$0xff]   ;;  %v11209_v20 = vld [vmem:[%s15136_s0 + $0x68] sm:$0xff]   ;;  %vm2020_vm9 = vsmask.f32 4352  ;;  %vm2680_vm10 = vcmask 1045504  }
   0x6   :  { %15144 = vst [vmem:[#allocation3_spill] sm:$0xff] %v11483_v7  ;;  %9836 = vmatpush3.bf16.msra.mxu0 %v541_v6  ;;  %v11208_v19 = vld [vmem:[%s15136_s0 + $0x60] sm:$0xff]   ;;  %v11210_v21 = vld [vmem:[%s15136_s0 + $0x70] sm:$0xff]   ;;  %v11211_v22 = vld [vmem:[%s15136_s0 + $0x78] sm:$0xff]   ;;  %vm4314_vm11 = vcmask 519168   ;;  %vm4320_vm12 = vcmask 516096  }
   0x7   :  { %v11212_v23 = vld [vmem:[%s15136_s0 + $0x80] sm:$0xff]   ;;  %v11213_v24 = vld [vmem:[%s15136_s0 + $0x88] sm:$0xff]   ;;  %v11214_v25 = vld [vmem:[%s15136_s0 + $0x90] sm:$0xff]  }
   0x8   :  { %v11215_v26 = vld [vmem:[%s15136_s0 + $0x98] sm:$0xff]   ;;  %v11216_v27 = vld [vmem:[%s15136_s0 + $0xa0] sm:$0xff]   ;;  %v11217_v28 = vld [vmem:[%s15136_s0 + $0xa8] sm:$0xff]  }
   0x9   :  { %9838 = vmatmul.mubr.msk.bf16.vlgmr.msra.gmra.mrb[0].mxu0 %vm385_vm2, %v11197_v8  ;;  %v11218_v29 = vld [vmem:[%s15136_s0 + $0xb0] sm:$0xff]   ;;  %v11219_v30 = vld [vmem:[%s15136_s0 + $0xb8] sm:$0xff]   ;;  %v11220_v31 = vld [vmem:[%s15136_s0 + $0xc0] sm:$0xff]  }
   0xa   :  { %9841 = vmatprep.mubr.msk.bf16.mxu0 %vm385_vm2, %v11198_v9  ;;  %v11221_v32 = vld [vmem:[%s15136_s0 + $0xc8] sm:$0xff]   ;;  %v11222_v33 = vld [vmem:[%s15136_s0 + $0xd0] sm:$0xff]   ;;  %v11223_v34 = vld [vmem:[%s15136_s0 + $0xd8] sm:$0xff]  }
   0xb   :  { %v11224_v35 = vld [vmem:[%s15136_s0 + $0xe0] sm:$0xff]   ;;  %v11225_v36 = vld [vmem:[%s15136_s0 + $0xe8] sm:$0xff]   ;;  %v11226_v37 = vld [vmem:[%s15136_s0 + $0xf0] sm:$0xff]  }
   0xc   :  { %v11227_v38 = vld [vmem:[%s15136_s0 + $0xf8] sm:$0xff]   ;;  %v11228_v39 = vld [vmem:[%s15136_s0 + $0x100] sm:$0xff]   ;;  %v11229_v40 = vld [vmem:[%s15136_s0 + $0x108] sm:$0xff]  }
   0xd   :  { %v11230_v41 = vld [vmem:[%s15136_s0 + $0x110] sm:$0xff]   ;;  %v11231_v42 = vld [vmem:[%s15136_s0 + $0x118] sm:$0xff]   ;;  %v11232_v43 = vld [vmem:[%s15136_s0 + $0x120] sm:$0xff]  }
   0xe   :  { %v11233_v44 = vld [vmem:[%s15136_s0 + $0x128] sm:$0xff]   ;;  %v11234_v45 = vld [vmem:[%s15136_s0 + $0x130] sm:$0xff]   ;;  %v11235_v46 = vld [vmem:[%s15136_s0 + $0x138] sm:$0xff]  }
   0xf   :  { %v11236_v47 = vld [vmem:[%s15136_s0 + $0x140] sm:$0xff]   ;;  %v11237_v48 = vld [vmem:[%s15136_s0 + $0x148] sm:$0xff]   ;;  %v11238_v49 = vld [vmem:[%s15136_s0 + $0x150] sm:$0xff]  }
  0x10   :  { %v11239_v50 = vld [vmem:[%s15136_s0 + $0x158] sm:$0xff]   ;;  %v11240_v51 = vld [vmem:[%s15136_s0 + $0x160] sm:$0xff]   ;;  %v11241_v52 = vld [vmem:[%s15136_s0 + $0x168] sm:$0xff]  }
  0x11   :  { %9842 = vmatmul.mubr.msk.bf16.gmra.mrb[4].mxu0 %vm385_vm2, %v11199_v10  ;;  %v11242_v53 = vld [vmem:[%s15136_s0 + $0x170] sm:$0xff]   ;;  %v11243_v54 = vld [vmem:[%s15136_s0 + $0x178] sm:$0xff]   ;;  %v11244_v55 = vld [vmem:[%s15136_s0 + $0x180] sm:$0xff]  }
  0x12   :  { %9845 = vmatprep.mubr.msk.bf16.mxu0 %vm385_vm2, %v11200_v11  ;;  %v11245_v56 = vld [vmem:[%s15136_s0 + $0x188] sm:$0xff]  }
  0x19   :  { %9846 = vmatmul.mubr.msk.bf16.gmra.mrb[8].mxu0 %vm385_vm2, %v11201_v12 }
  0x1a   :  { %9849 = vmatprep.mubr.msk.bf16.mxu0 %vm385_vm2, %v11202_v13 }
  0x21   :  { %9850 = vmatmul.mubr.msk.bf16.gmra.mrb[12].mxu0 %vm385_vm2, %v11203_v14 }
  0x22   :  { %9853 = vmatprep.mubr.msk.bf16.mxu0 %vm385_vm2, %v11204_v15 }
  0x29   :  { %9854 = vmatmul.mubr.msk.bf16.gmra.mrb[16].mxu0 %vm385_vm2, %v11205_v16 }
  0x2a   :  { %9857 = vmatprep.mubr.msk.bf16.mxu0 %vm385_vm2, %v11206_v17 }
  0x31   :  { %9858 = vmatmul.mubr.msk.bf16.gmra.mrb[20].mxu0 %vm385_vm2, %v11207_v18  ;;  %v11246_v18 = vld [vmem:[%s15137_s3 + $0x10] sm:$0xff]  }
  0x32   :  { %9861 = vmatprep.mubr.msk.bf16.mxu0 %vm385_vm2, %v11208_v19  ;;  %v15141_v19 = vmov 0.0  }
  0x33   :  { %10081 = vmatprep.subr.bf16.mxu0 %v15141_v19  ;;  %9937 = vmatprep.subr.bf16.mxu1 %v15141_v19 }
  0x34   :  { %10082 = vmatpush3.bf16.msra.mxu0 %v11246_v18  ;;  %9938 = vmatpush3.bf16.msra.mxu1 %v11246_v18 }
  0x35   :  { %10083 = vmatprep.subr.bf16.mxu0 %v15141_v19  ;;  %9939 = vmatprep.subr.bf16.mxu1 %v15141_v19 }
  0x36   :  { %9941 = vmatprep.mubr.msk.bf16.mxu1 %vm11442_vm3, %v15141_v19 }
  0x39   :  { %9862 = vmatmul.mubr.msk.bf16.gmra.mrb[24].mxu0 %vm385_vm2, %v11209_v20  ;;  %v11725_v20 = vld [vmem:[%s15138_s2] ss:$0 sm:$0xff] }
  0x3a   :  { %9865 = vmatprep.mubr.msk.bf16.mxu0 %vm385_vm2, %v11210_v21 }
  0x41   :  { %9866 = vmatmul.mubr.msk.bf16.gmra.mrb[28].mxu0 %vm385_vm2, %v11211_v22  ;;  %v11247_v22 = vld [vmem:[%s15137_s3 + $0x18] sm:$0xff]  }
  0x42   :  { %9869 = vmatprep.mubr.msk.bf16.mxu0 %vm385_vm2, %v11212_v23  ;;  %10084 = vmatpush3.bf16.msra.mxu0 %v11247_v22 }
  0x43   :  { %9940 = vmatpush3.bf16.msra.mxu1 %v11247_v22  ;;  %10113 = vmatprep.subr.bf16.mxu0 %v15141_v19 }
  0x44   :  { %9953 = vmatprep.subr.bf16.mxu1 %v15141_v19 }
  0x49   :  { %9870 = vmatmul.mubr.msk.bf16.gmra.mrb[32].mxu0 %vm385_vm2, %v11213_v24 }
  0x4a   :  { %9873 = vmatprep.mubr.msk.bf16.mxu0 %vm385_vm2, %v11214_v25 }
  0x51   :  { %9874 = vmatmul.mubr.msk.bf16.gmra.mrb[36].mxu0 %vm385_vm2, %v11215_v26 }
  0x52   :  { %9877 = vmatprep.mubr.msk.bf16.mxu0 %vm385_vm2, %v11216_v27 }
  0x59   :  { %9878 = vmatmul.mubr.msk.bf16.gmra.mrb[40].mxu0 %vm385_vm2, %v11217_v28 }
  0x5a   :  { %9881 = vmatprep.mubr.msk.bf16.mxu0 %vm385_vm2, %v11218_v29 }
  0x61   :  { %9882 = vmatmul.mubr.msk.bf16.gmra.mrb[44].mxu0 %vm385_vm2, %v11219_v30 }
  0x62   :  { %9885 = vmatprep.mubr.msk.bf16.mxu0 %vm385_vm2, %v11220_v31 }
  0x69   :  { %9886 = vmatmul.mubr.msk.bf16.gmra.mrb[48].mxu0 %vm385_vm2, %v11221_v32 }
  0x6a   :  { %9889 = vmatprep.mubr.msk.bf16.mxu0 %vm385_vm2, %v11222_v33 }
  0x71   :  { %9890 = vmatmul.mubr.msk.bf16.gmra.mrb[52].mxu0 %vm385_vm2, %v11223_v34 }
  0x72   :  { %9893 = vmatprep.mubr.msk.bf16.mxu0 %vm385_vm2, %v11224_v35 }
  0x79   :  { %9894 = vmatmul.mubr.msk.bf16.gmra.mrb[56].mxu0 %vm385_vm2, %v11225_v36 }
  0x7a   :  { %9897 = vmatprep.mubr.msk.bf16.mxu0 %vm385_vm2, %v11226_v37 }
  0x81   :  { %9898 = vmatmul.mubr.msk.bf16.gmra.mrb[60].mxu0 %vm385_vm2, %v11227_v38 }
  0x82   :  { %9901 = vmatprep.mubr.msk.bf16.mxu0 %vm385_vm2, %v11228_v39 }
  0x89   :  { %9902 = vmatmul.mubr.msk.bf16.gmra.mrb[64].mxu0 %vm385_vm2, %v11229_v40 }
  0x8a   :  { %9905 = vmatprep.mubr.msk.bf16.mxu0 %vm385_vm2, %v11230_v41 }
  0x91   :  { %9906 = vmatmul.mubr.msk.bf16.gmra.mrb[68].mxu0 %vm385_vm2, %v11231_v42 }
  0x92   :  { %9909 = vmatprep.mubr.msk.bf16.mxu0 %vm385_vm2, %v11232_v43 }
  0x99   :  { %9910 = vmatmul.mubr.msk.bf16.gmra.mrb[72].mxu0 %vm385_vm2, %v11233_v44 }
  0x9a   :  { %9913 = vmatprep.mubr.msk.bf16.mxu0 %vm385_vm2, %v11234_v45 }
  0xa1   :  { %9914 = vmatmul.mubr.msk.bf16.gmra.mrb[76].mxu0 %vm385_vm2, %v11235_v46 }
  0xa2   :  { %9917 = vmatprep.mubr.msk.bf16.mxu0 %vm385_vm2, %v11236_v47 }
  0xa9   :  { %9918 = vmatmul.mubr.msk.bf16.gmra.mrb[80].mxu0 %vm385_vm2, %v11237_v48 }
  0xaa   :  { %9921 = vmatprep.mubr.msk.bf16.mxu0 %vm385_vm2, %v11238_v49 }
  0xb1   :  { %9922 = vmatmul.mubr.msk.bf16.gmra.mrb[84].mxu0 %vm385_vm2, %v11239_v50 }
  0xb2   :  { %9925 = vmatprep.mubr.msk.bf16.mxu0 %vm385_vm2, %v11240_v51 }
  0xb9   :  { %9926 = vmatmul.mubr.msk.bf16.gmra.mrb[88].mxu0 %vm385_vm2, %v11241_v52 }
  0xba   :  { %9929 = vmatprep.mubr.msk.bf16.mxu0 %vm385_vm2, %v11242_v53 }
  0xc1   :  { %9930 = vmatmul.mubr.msk.bf16.gmra.mrb[92].mxu0 %vm385_vm2, %v11243_v54 }
  0xc2   :  { %9933 = vmatprep.mubr.msk.bf16.mxu0 %vm385_vm2, %v11244_v55 }
  0xc9   :  { %9934 = vmatmul.mubr.msk.bf16.gmra.mrb[96].mxu0 %vm385_vm2, %v11245_v56 }
  0xca   :  { %10085 = vmatprep.mubr.msk.bf16.mxu0 %vm11442_vm3, %v15141_v19 }
  0xdc   :  { %v9839_v57 = vpop.f32.mrb[0].mxu0 }
  0xdd   :  { %v577_v58 = vpop.f32.mrb[1].mxu0  ;;  %v586_v24 = vadd.f32 %v9839_v57, %v11725_v20 }
  0xde   :  { %v9840_v59 = vpop.f32.mrb[2].mxu0  ;;  %v578_v27 = vadd.f32 %v11725_v20, %v577_v58 }
  0xdf   :  { %v580_v60 = vpop.f32.mrb[3].mxu0  ;;  %v978_v34 = vmax.f32 %v586_v24, 0.0  ;;  %v589_v41 = vadd.f32 %v9840_v59, %v11725_v20 }
  0xe0   :  { %v581_v21 = vadd.f32 %v11725_v20, %v580_v60  ;;  %v976_v37 = vmax.f32 %v578_v27, 0.0 }
  0xe1   :  { %v979_v54 = vmax.f32 %v589_v41, 0.0 }
  0xe2   :  { %v977_v29 = vmax.f32 %v581_v21, 0.0 }
  0xe4   :  { %v9843_v61 = vpop.f32.mrb[4].mxu0 }
  0xe5   :  { %v11681_v62 = vpop.f32.mrb[5].mxu0  ;;  %v602_v44 = vadd.f32 %v9843_v61, %v11725_v20 }
  0xe6   :  { %v11683_v63 = vpop.f32.mrb[6].mxu0  ;;  %v594_v47 = vadd.f32 %v11725_v20, %v11681_v62 }
  0xe7   :  { %v596_v0 = vpop.f32.mrb[7].mxu0  ;;  %v982_v57 = vmax.f32 %v602_v44, 0.0  ;;  %v605_v21 = vadd.f32 %v11683_v63, %v11725_v20 }
  0xe8   :  { %v597_v38 = vadd.f32 %v11725_v20, %v596_v0  ;;  %v980_v60 = vmax.f32 %v594_v47, 0.0 }
  0xea   :  { %v981_v48 = vmax.f32 %v597_v38, 0.0 }
  0xec   :  { %v11685_v1 = vpop.f32.mrb[8].mxu0 }
  0xed   :  { %v11687_v2 = vpop.f32.mrb[9].mxu0  ;;  %v618_v24 = vadd.f32 %v11685_v1, %v11725_v20 }
  0xee   :  { %v11689_v3 = vpop.f32.mrb[10].mxu0 }
  0xef   :  { %v11691_v4 = vpop.f32.mrb[11].mxu0 }
  0xf0   :  { %v613_v61 = vadd.f32 %v11725_v20, %v11691_v4  ;;  %v610_v4 = vadd.f32 %v11725_v20, %v11687_v2 }
  0xf4   :  { %v11693_v5 = vpop.f32.mrb[12].mxu0 }
  0xf5   :  { %v11695_v6 = vpop.f32.mrb[13].mxu0 }
  0xf6   :  { %v11697_v8 = vpop.f32.mrb[14].mxu0 }
  0xf7   :  { %v11699_v9 = vpop.f32.mrb[15].mxu0 }
  0xf8   :  { %v629_v2 = vadd.f32 %v11725_v20, %v11699_v9  ;;  %v626_v9 = vadd.f32 %v11725_v20, %v11695_v6 }
  0xfc   :  { %v11701_v10 = vpop.f32.mrb[16].mxu0 }
  0xfd   :  { %v11703_v11 = vpop.f32.mrb[17].mxu0 }
  0xfe   :  { %v11705_v12 = vpop.f32.mrb[18].mxu0 }
  0xff   :  { %v11707_v13 = vpop.f32.mrb[19].mxu0 }
 0x104   :  { %v11709_v14 = vpop.f32.mrb[20].mxu0 }
 0x105   :  { %v11711_v15 = vpop.f32.mrb[21].mxu0 }
 0x106   :  { %v11713_v16 = vpop.f32.mrb[22].mxu0 }
 0x107   :  { %v11715_v17 = vpop.f32.mrb[23].mxu0 }
 0x10c   :  { %v9863_v23 = vpop.f32.mrb[24].mxu0 }
 0x10d   :  { %v682_v25 = vadd.f32 %v9863_v23, %v11725_v20  ;;  %v11735_v26 = vpop.f32.mrb[25].mxu0 }
 0x10e   :  { %v9864_v28 = vpop.f32.mrb[26].mxu0 }
 0x10f   :  { %v1002_v30 = vmax.f32 %v682_v25, 0.0  ;;  %v685_v31 = vadd.f32 %v9864_v28, %v11725_v20  ;;  %v676_v32 = vpop.f32.mrb[27].mxu0  ;;  %v985_v28 = vmax.f32 %v613_v61, 0.0 }
 0x110   :  { %v677_v33 = vadd.f32 %v11725_v20, %v676_v32 }
 0x111   :  { %v11746_v35 = vmax.f32 %v977_v29, %v1002_v30  ;;  %v1003_v36 = vmax.f32 %v685_v31, 0.0 }
 0x112   :  { %v1001_v39 = vmax.f32 %v677_v33, 0.0  ;;  %v983_v33 = vmax.f32 %v605_v21, 0.0 }
 0x113   :  { %v11749_v40 = vmax.f32 %v978_v34, %v1003_v36 }
 0x114   :  { %v11752_v42 = vmax.f32 %v976_v37, %v1001_v39  ;;  %v9867_v43 = vpop.f32.mrb[28].mxu0  ;;  %v986_v37 = vmax.f32 %v618_v24, 0.0  ;;  %v984_v39 = vmax.f32 %v610_v4, 0.0 }
 0x115   :  { %v698_v45 = vadd.f32 %v9867_v43, %v11725_v20  ;;  %v689_v46 = vpop.f32.mrb[29].mxu0 }
 0x116   :  { %v690_v49 = vadd.f32 %v11725_v20, %v689_v46  ;;  %v9868_v50 = vpop.f32.mrb[30].mxu0 }
 0x117   :  { %v1006_v51 = vmax.f32 %v698_v45, 0.0  ;;  %v701_v52 = vadd.f32 %v9868_v50, %v11725_v20  ;;  %v692_v53 = vpop.f32.mrb[31].mxu0  ;;  %v621_v45 = vadd.f32 %v11689_v3, %v11725_v20 }
 0x118   :  { %v1004_v55 = vmax.f32 %v690_v49, 0.0  ;;  %v693_v56 = vadd.f32 %v11725_v20, %v692_v53 }
 0x119   :  { %v11761_v58 = vmax.f32 %v981_v48, %v1006_v51  ;;  %v1007_v59 = vmax.f32 %v701_v52, 0.0  ;;  %v634_v48 = vadd.f32 %v11693_v5, %v11725_v20  ;;  %v989_v51 = vmax.f32 %v629_v2, 0.0 }
 0x11a   :  { %v11765_v62 = vmax.f32 %v979_v54, %v1004_v55  ;;  %v1005_v0 = vmax.f32 %v693_v56, 0.0  ;;  %v987_v56 = vmax.f32 %v621_v45, 0.0 }
 0x11b   :  { %v11767_v18 = vmax.f32 %v982_v57, %v1007_v59 }
 0x11c   :  { %v11771_v22 = vmax.f32 %v980_v60, %v1005_v0  ;;  %v9871_v23 = vpop.f32.mrb[32].mxu0  ;;  %v990_v60 = vmax.f32 %v634_v48, 0.0  ;;  %v988_v0 = vmax.f32 %v626_v9, 0.0 }
 0x11d   :  { %v714_v25 = vadd.f32 %v9871_v23, %v11725_v20  ;;  %v705_v27 = vpop.f32.mrb[33].mxu0  ;;  %v645_v23 = vadd.f32 %v11725_v20, %v11707_v13 }
 0x11e   :  { %v706_v29 = vadd.f32 %v11725_v20, %v705_v27  ;;  %v9872_v30 = vpop.f32.mrb[34].mxu0 }
 0x11f   :  { %v1010_v31 = vmax.f32 %v714_v25, 0.0  ;;  %v717_v32 = vadd.f32 %v9872_v30, %v11725_v20  ;;  %v708_v63 = vpop.f32.mrb[35].mxu0  ;;  %v637_v25 = vadd.f32 %v11697_v8, %v11725_v20 }
 0x120   :  { %v1008_v34 = vmax.f32 %v706_v29, 0.0  ;;  %v709_v36 = vadd.f32 %v11725_v20, %v708_v63  ;;  %v993_v63 = vmax.f32 %v645_v23, 0.0 }
 0x121   :  { %v11781_v1 = vmax.f32 %v985_v28, %v1010_v31  ;;  %v1011_v38 = vmax.f32 %v717_v32, 0.0  ;;  %v650_v28 = vadd.f32 %v11701_v10, %v11725_v20  ;;  %v642_v31 = vadd.f32 %v11725_v20, %v11703_v11 }
 0x122   :  { %v11785_v41 = vmax.f32 %v983_v33, %v1008_v34  ;;  %v1009_v43 = vmax.f32 %v709_v36, 0.0  ;;  %v991_v36 = vmax.f32 %v637_v25, 0.0 }
 0x123   :  { %v11787_v44 = vmax.f32 %v986_v37, %v1011_v38 }
 0x124   :  { %v11791_v46 = vmax.f32 %v984_v39, %v1009_v43  ;;  %v9875_v47 = vpop.f32.mrb[36].mxu0  ;;  %v994_v39 = vmax.f32 %v650_v28, 0.0  ;;  %v992_v43 = vmax.f32 %v642_v31, 0.0  ;;  %v669_v28 = vadd.f32 %v11713_v16, %v11725_v20 }
 0x125   :  { %v730_v49 = vadd.f32 %v9875_v47, %v11725_v20  ;;  %v721_v50 = vpop.f32.mrb[37].mxu0  ;;  %v661_v47 = vadd.f32 %v11725_v20, %v11715_v17 }
 0x126   :  { %v722_v52 = vadd.f32 %v11725_v20, %v721_v50  ;;  %v9876_v53 = vpop.f32.mrb[38].mxu0 }
 0x127   :  { %v1014_v54 = vmax.f32 %v730_v49, 0.0  ;;  %v733_v55 = vadd.f32 %v9876_v53, %v11725_v20  ;;  %v724_v3 = vpop.f32.mrb[39].mxu0  ;;  %v653_v49 = vadd.f32 %v11705_v12, %v11725_v20 }
 0x128   :  { %v1012_v57 = vmax.f32 %v722_v52, 0.0  ;;  %v725_v59 = vadd.f32 %v11725_v20, %v724_v3  ;;  %v997_v3 = vmax.f32 %v661_v47, 0.0 }
 0x129   :  { %v11801_v5 = vmax.f32 %v989_v51, %v1014_v54  ;;  %v1015_v61 = vmax.f32 %v733_v55, 0.0  ;;  %v666_v51 = vadd.f32 %v11709_v14, %v11725_v20  ;;  %v658_v54 = vadd.f32 %v11725_v20, %v11711_v15 }
 0x12a   :  { %v11803_v21 = vmax.f32 %v987_v56, %v1012_v57  ;;  %v1013_v6 = vmax.f32 %v725_v59, 0.0  ;;  %v995_v59 = vmax.f32 %v653_v49, 0.0 }
 0x12b   :  { %v11807_v24 = vmax.f32 %v990_v60, %v1015_v61  ;;  %v996_v23 = vmax.f32 %v658_v54, 0.0 }
 0x12c   :  { %v11811_v27 = vmax.f32 %v988_v0, %v1013_v6  ;;  %v9879_v4 = vpop.f32.mrb[40].mxu0  ;;  %v998_v0 = vmax.f32 %v666_v51, 0.0 }
 0x12d   :  { %v746_v29 = vadd.f32 %v9879_v4, %v11725_v20  ;;  %v737_v30 = vpop.f32.mrb[41].mxu0 }
 0x12e   :  { %v738_v32 = vadd.f32 %v11725_v20, %v737_v30  ;;  %v9880_v13 = vpop.f32.mrb[42].mxu0 }
 0x12f   :  { %v1018_v33 = vmax.f32 %v746_v29, 0.0  ;;  %v749_v34 = vadd.f32 %v9880_v13, %v11725_v20  ;;  %v740_v8 = vpop.f32.mrb[43].mxu0 }
 0x130   :  { %v1016_v37 = vmax.f32 %v738_v32, 0.0  ;;  %v741_v38 = vadd.f32 %v11725_v20, %v740_v8  ;;  %v674_v32 = vadd.f32 %v11725_v20, %v11735_v26 }
 0x131   :  { %v11821_v10 = vmax.f32 %v993_v63, %v1018_v33  ;;  %v1019_v2 = vmax.f32 %v749_v34, 0.0  ;;  %v999_v34 = vmax.f32 %v669_v28, 0.0 }
 0x132   :  { %v11823_v45 = vmax.f32 %v991_v36, %v1016_v37  ;;  %v1017_v11 = vmax.f32 %v741_v38, 0.0  ;;  %v1000_v37 = vmax.f32 %v674_v32, 0.0 }
 0x133   :  { %v11827_v48 = vmax.f32 %v994_v39, %v1019_v2 }
 0x134   :  { %v11831_v50 = vmax.f32 %v992_v43, %v1017_v11  ;;  %v9883_v9 = vpop.f32.mrb[44].mxu0 }
 0x135   :  { %v762_v52 = vadd.f32 %v9883_v9, %v11725_v20  ;;  %v753_v53 = vpop.f32.mrb[45].mxu0 }
 0x136   :  { %v754_v55 = vadd.f32 %v11725_v20, %v753_v53  ;;  %v9884_v17 = vpop.f32.mrb[46].mxu0 }
 0x137   :  { %v1022_v56 = vmax.f32 %v762_v52, 0.0  ;;  %v765_v57 = vadd.f32 %v9884_v17, %v11725_v20  ;;  %v756_v12 = vpop.f32.mrb[47].mxu0 }
 0x138   :  { %v1020_v60 = vmax.f32 %v754_v55, 0.0  ;;  %v757_v61 = vadd.f32 %v11725_v20, %v756_v12 }
 0x139   :  { %v11841_v14 = vmax.f32 %v997_v3, %v1022_v56  ;;  %v1023_v6 = vmax.f32 %v765_v57, 0.0 }
 0x13a   :  { %v11843_v25 = vmax.f32 %v995_v59, %v1020_v60  ;;  %v1021_v15 = vmax.f32 %v757_v61, 0.0 }
 0x13b   :  { %15145 = vst [vmem:[#allocation4_spill] sm:$0xff] %v11841_v14  ;;  %v11845_v4 = vmax.f32 %v998_v0, %v1023_v6 }
 0x13c   :  { %v11849_v29 = vmax.f32 %v996_v23, %v1021_v15  ;;  %v9887_v30 = vpop.f32.mrb[48].mxu0 }
 0x13d   :  { %15146 = vst [vmem:[#allocation5_spill] sm:$0xff] %v11845_v4  ;;  %v769_v31 = vpop.f32.mrb[49].mxu0  ;;  %v778_v6 = vadd.f32 %v9887_v30, %v11725_v20 }
 0x13e   :  { %v770_v13 = vadd.f32 %v11725_v20, %v769_v31  ;;  %v9888_v63 = vpop.f32.mrb[50].mxu0 }
 0x13f   :  { %v772_v33 = vpop.f32.mrb[51].mxu0  ;;  %v781_v32 = vadd.f32 %v9888_v63, %v11725_v20 }
 0x140   :  { %v1024_v8 = vmax.f32 %v770_v13, 0.0  ;;  %v773_v36 = vadd.f32 %v11725_v20, %v772_v33  ;;  %v1026_v13 = vmax.f32 %v778_v6, 0.0 }
 0x142   :  { %v11855_v38 = vmax.f32 %v999_v34, %v1024_v8  ;;  %v1025_v39 = vmax.f32 %v773_v36, 0.0  ;;  %v1027_v36 = vmax.f32 %v781_v32, 0.0 }
 0x144   :  { %v11857_v16 = vmax.f32 %v1000_v37, %v1025_v39  ;;  %v9891_v2 = vpop.f32.mrb[52].mxu0 }
 0x145   :  { %v785_v43 = vpop.f32.mrb[53].mxu0  ;;  %v794_v37 = vadd.f32 %v9891_v2, %v11725_v20 }
 0x146   :  { %15147 = vst [vmem:[#allocation6_spill] sm:$0xff] %v11857_v16  ;;  %v9892_v11 = vpop.f32.mrb[54].mxu0  ;;  %v786_v39 = vadd.f32 %v11725_v20, %v785_v43 }
 0x147   :  { %v788_v47 = vpop.f32.mrb[55].mxu0  ;;  %v11888_v19 = vadd.f32 %v9892_v11, %v11725_v20 }
 0x148   :  { %v789_v34 = vadd.f32 %v11725_v20, %v788_v47 }
 0x14a   :  { %v1029_v47 = vmax.f32 %v789_v34, 0.0 }
 0x14c   :  { %v9895_v49 = vpop.f32.mrb[56].mxu0 }
 0x14d   :  { %v801_v26 = vpop.f32.mrb[57].mxu0 }
 0x14e   :  { %v9896_v9 = vpop.f32.mrb[58].mxu0  ;;  %v11896_v32 = vadd.f32 %v11725_v20, %v801_v26  ;;  %v1031_v26 = vmax.f32 %v11888_v19, 0.0 }
 0x14f   :  { %v804_v51 = vpop.f32.mrb[59].mxu0  ;;  %v11899_v2 = vadd.f32 %v9896_v9, %v11725_v20 }
 0x150   :  { %v805_v11 = vadd.f32 %v11725_v20, %v804_v51  ;;  %v1032_v51 = vmax.f32 %v11896_v32, 0.0 }
 0x152   :  { %v1033_v14 = vmax.f32 %v805_v11, 0.0 }
 0x154   :  { %v9899_v52 = vpop.f32.mrb[60].mxu0 }
 0x155   :  { %v817_v53 = vpop.f32.mrb[61].mxu0 }
 0x156   :  { %v9900_v54 = vpop.f32.mrb[62].mxu0  ;;  %v11915_v19 = vadd.f32 %v11725_v20, %v817_v53 }
 0x157   :  { %v820_v55 = vpop.f32.mrb[63].mxu0 }
 0x15c   :  { %v11859_v17 = vpop.f32.mrb[64].mxu0 }
 0x15d   :  { %v11861_v3 = vpop.f32.mrb[65].mxu0 }
 0x15e   :  { %v11863_v56 = vpop.f32.mrb[66].mxu0 }
 0x15f   :  { %v11865_v57 = vpop.f32.mrb[67].mxu0 }
 0x164   :  { %v11867_v12 = vpop.f32.mrb[68].mxu0 }
 0x165   :  { %v11869_v59 = vpop.f32.mrb[69].mxu0 }
 0x166   :  { %v11871_v60 = vpop.f32.mrb[70].mxu0 }
 0x167   :  { %v11873_v61 = vpop.f32.mrb[71].mxu0 }
 0x16c   :  { %v11875_v0 = vpop.f32.mrb[72].mxu0 }
 0x16d   :  { %v11878_v23 = vpop.f32.mrb[73].mxu0 }
 0x16e   :  { %v9912_v15 = vpop.f32.mrb[74].mxu0 }
 0x16f   :  { %v877_v28 = vadd.f32 %v9912_v15, %v11725_v20  ;;  %v11881_v31 = vpop.f32.mrb[75].mxu0  ;;  %v11891_v15 = vadd.f32 %v9895_v49, %v11725_v20 }
 0x171   :  { %v1051_v33 = vmax.f32 %v877_v28, 0.0  ;;  %v1034_v9 = vmax.f32 %v11891_v15, 0.0  ;;  %v11918_v15 = vadd.f32 %v9900_v54, %v11725_v20 }
 0x173   :  { %v1101_v8 = vmax.f32 %v1026_v13, %v1051_v33 }
 0x174   :  { %v9915_v30 = vpop.f32.mrb[76].mxu0 }
 0x175   :  { %v1126_v63 = vmax.f32 %v11752_v42, %v1101_v8  ;;  %v890_v6 = vadd.f32 %v9915_v30, %v11725_v20  ;;  %v881_v28 = vpop.f32.mrb[77].mxu0  ;;  %v1030_v8 = vmax.f32 %v794_v37, 0.0  ;;  %v1028_v30 = vmax.f32 %v786_v39, 0.0 }
 0x176   :  { %v882_v43 = vadd.f32 %v11725_v20, %v881_v28  ;;  %v9916_v13 = vpop.f32.mrb[78].mxu0  ;;  %v11911_v37 = vadd.f32 %v9899_v52, %v11725_v20 }
 0x177   :  { %v9311_v33 = vpack.c.bf16 %v1126_v63, %v1126_v63  ;;  %v1054_v49 = vmax.f32 %v890_v6, 0.0  ;;  %v893_v7 = vadd.f32 %v9916_v13, %v11725_v20  ;;  %v884_v42 = vpop.f32.mrb[79].mxu0  ;;  %v1035_v63 = vmax.f32 %v11899_v2, 0.0 }
 0x178   :  { %v1052_v4 = vmax.f32 %v882_v43, 0.0  ;;  %v885_v34 = vadd.f32 %v11725_v20, %v884_v42 }
 0x179   :  { %1253 = vst.msk [vmem:[#allocation2] sm:$0xf] %vm1252_vm4, %v9311_v33  ;;  %v1104_v28 = vmax.f32 %v1029_v47, %v1054_v49  ;;  %v1055_v16 = vmax.f32 %v893_v7, 0.0 }
 0x17a   :  { %v1102_v6 = vmax.f32 %v1027_v36, %v1052_v4  ;;  %v1053_v13 = vmax.f32 %v885_v34, 0.0  ;;  %v11922_v4 = vadd.f32 %v11725_v20, %v820_v55  ;;  %v11934_v55 = vadd.f32 %v11725_v20, %v11861_v3 }
 0x17b   :  { %v1129_v39 = vmax.f32 %v11765_v62, %v1104_v28  ;;  %v1105_v43 = vmax.f32 %v1030_v8, %v1055_v16  ;;  %v11928_v16 = vadd.f32 %v11859_v17, %v11725_v20  ;;  %v11940_v17 = vadd.f32 %v11863_v56, %v11725_v20 }
 0x17c   :  { %v1127_v7 = vmax.f32 %v11746_v35, %v1102_v6  ;;  %v1103_v47 = vmax.f32 %v1028_v30, %v1053_v13  ;;  %v9919_v32 = vpop.f32.mrb[80].mxu0  ;;  %v1038_v3 = vmax.f32 %v11911_v37, 0.0  ;;  %v1036_v28 = vmax.f32 %v11915_v19, 0.0 }
 0x17d   :  { %v9314_v36 = vpack.c.bf16 %v1129_v39, %v1129_v39  ;;  %v1130_v52 = vmax.f32 %v11771_v22, %v1105_v43  ;;  %v906_v11 = vadd.f32 %v9919_v32, %v11725_v20  ;;  %v897_v62 = vpop.f32.mrb[81].mxu0  ;;  %v1039_v39 = vmax.f32 %v11918_v15, 0.0 }
 0x17e   :  { %v9312_v53 = vpack.c.bf16 %v1127_v7, %v1127_v7  ;;  %v1128_v54 = vmax.f32 %v11749_v40, %v1103_v47  ;;  %v898_v35 = vadd.f32 %v11725_v20, %v897_v62  ;;  %v9920_v33 = vpop.f32.mrb[82].mxu0  ;;  %v1037_v43 = vmax.f32 %v11922_v4, 0.0 }
 0x17f   :  { %1256 = vst.msk [vmem:[#allocation2 + $0xc] sm:$0xf] %vm1252_vm4, %v9314_v36  ;;  %v9315_v22 = vpack.c.bf16 %v1130_v52, %v1130_v52  ;;  %v1058_v49 = vmax.f32 %v906_v11, 0.0  ;;  %v909_v42 = vadd.f32 %v9920_v33, %v11725_v20  ;;  %v900_v8 = vpop.f32.mrb[83].mxu0  ;;  %v1042_v47 = vmax.f32 %v11928_v16, 0.0 }
 0x180   :  { %1254 = vst.msk [vmem:[#allocation2 + $0x4] sm:$0xf] %vm1252_vm4, %v9312_v53  ;;  %v9313_v40 = vpack.c.bf16 %v1128_v54, %v1128_v54  ;;  %v1056_v30 = vmax.f32 %v898_v35, 0.0  ;;  %v901_v34 = vadd.f32 %v11725_v20, %v900_v8  ;;  %v11953_v32 = vadd.f32 %v11725_v20, %v11865_v57 }
 0x181   :  { %1257 = vst.msk [vmem:[#allocation2 + $0x10] sm:$0xf] %vm1252_vm4, %v9315_v22  ;;  %v1108_v6 = vmax.f32 %v1033_v14, %v1058_v49  ;;  %v1059_v13 = vmax.f32 %v909_v42, 0.0  ;;  %v1040_v14 = vmax.f32 %v11934_v55, 0.0  ;;  %v1043_v36 = vmax.f32 %v11940_v17, 0.0 }
 0x182   :  { %1255 = vst.msk [vmem:[#allocation2 + $0x8] sm:$0xf] %vm1252_vm4, %v9313_v40  ;;  %v1106_v56 = vmax.f32 %v1031_v26, %v1056_v30  ;;  %v1057_v7 = vmax.f32 %v901_v34, 0.0  ;;  %v11961_v26 = vadd.f32 %v11867_v12, %v11725_v20  ;;  %v1041_v12 = vmax.f32 %v11953_v32, 0.0 }
 0x183   :  { %v1133_v37 = vmax.f32 %v11785_v41, %v1108_v6  ;;  %v1109_v19 = vmax.f32 %v1034_v9, %v1059_v13  ;;  %v11967_v41 = vadd.f32 %v11725_v20, %v11869_v59  ;;  %v11978_v59 = vadd.f32 %v11871_v60, %v11725_v20 }
 0x184   :  { %v1131_v52 = vmax.f32 %v11761_v58, %v1106_v56  ;;  %v1107_v4 = vmax.f32 %v1032_v51, %v1057_v7  ;;  %v9923_v11 = vpop.f32.mrb[84].mxu0  ;;  %v1046_v30 = vmax.f32 %v11961_v26, 0.0 }
 0x185   :  { %v9318_v62 = vpack.c.bf16 %v1133_v37, %v1133_v37  ;;  %v1134_v53 = vmax.f32 %v11791_v46, %v1109_v19  ;;  %v922_v57 = vadd.f32 %v9923_v11, %v11725_v20  ;;  %v913_v54 = vpop.f32.mrb[85].mxu0  ;;  %v1044_v7 = vmax.f32 %v11967_v41, 0.0 }
 0x186   :  { %v9316_v9 = vpack.c.bf16 %v1131_v52, %v1131_v52  ;;  %v1132_v58 = vmax.f32 %v11767_v18, %v1107_v4  ;;  %v914_v51 = vadd.f32 %v11725_v20, %v913_v54  ;;  %v9924_v35 = vpop.f32.mrb[86].mxu0  ;;  %v1047_v11 = vmax.f32 %v11978_v59, 0.0 }
 0x187   :  { %1260 = vst.msk [vmem:[#allocation2 + $0x1c] sm:$0xf] %vm1252_vm4, %v9318_v62  ;;  %v9319_v46 = vpack.c.bf16 %v1134_v53, %v1134_v53  ;;  %v1062_v33 = vmax.f32 %v922_v57, 0.0  ;;  %v925_v22 = vadd.f32 %v9924_v35, %v11725_v20  ;;  %v916_v49 = vpop.f32.mrb[87].mxu0  ;;  %v11974_v42 = vld [vmem:[#allocation2] sm:$0xff]   ;;  %v11997_v62 = vadd.f32 %v11725_v20, %v11873_v61 }
 0x188   :  { %1258 = vst.msk [vmem:[#allocation2 + $0x14] sm:$0xf] %vm1252_vm4, %v9316_v9  ;;  %v9317_v18 = vpack.c.bf16 %v1132_v58, %v1132_v58  ;;  %v1060_v8 = vmax.f32 %v914_v51, 0.0  ;;  %v917_v40 = vadd.f32 %v11725_v20, %v916_v49  ;;  %v1519_v56 = vshll.u32 %v11974_v42, 16  ;;  %v12011_v49 = vld [vmem:[#allocation2 + $0x10] sm:$0xf] }
 0x189   :  { %1261 = vst.msk [vmem:[#allocation2 + $0x20] sm:$0xf] %vm1252_vm4, %v9319_v46  ;;  %v1112_v34 = vmax.f32 %v1037_v43, %v1062_v33  ;;  %v1063_v6 = vmax.f32 %v925_v22, 0.0  ;;  %v11984_v13 = vld [vmem:[#allocation2 + $0x8] sm:$0xff]   ;;  %v1517_v37 = vshrl.u32 %v11974_v42, 16 }
 0x18a   :  { %1259 = vst.msk [vmem:[#allocation2 + $0x18] sm:$0xf] %vm1252_vm4, %v9317_v18  ;;  %v1110_v60 = vmax.f32 %v1035_v63, %v1060_v8  ;;  %v1061_v32 = vmax.f32 %v917_v40, 0.0  ;;  %v1521_v4 = vrot.slane %v1519_v56, 1  ;;  %v1523_v43 = vshll.u32 %v11984_v13, 16 }
 0x18b   :  { %v1137_v19 = vmax.f32 %v11803_v21, %v1112_v34  ;;  %v1113_v52 = vmax.f32 %v1038_v3, %v1063_v6  ;;  %v1045_v6 = vmax.f32 %v11997_v62, 0.0 }
 0x18c   :  { %v1135_v53 = vmax.f32 %v11781_v1, %v1110_v60  ;;  %v1111_v57 = vmax.f32 %v1036_v28, %v1061_v32  ;;  %v9927_v2 = vpop.f32.mrb[88].mxu0  ;;  %v1522_v3 = vor.u32 %v1521_v4, %v1517_v37  ;;  %v1525_v33 = vrot.slane %v1523_v43, 1  ;;  %v12007_v1 = vld [vmem:[%s15137_s3 + $0x20] sm:$0xff]  }
 0x18d   :  { %v9322_v63 = vpack.c.bf16 %v1137_v19, %v1137_v19  ;;  %v1138_v54 = vmax.f32 %v11811_v27, %v1113_v52  ;;  %v938_v9 = vadd.f32 %v9927_v2, %v11725_v20  ;;  %v929_v21 = vpop.f32.mrb[89].mxu0  ;;  %v15148_v43 = vmov 0.0  }
 0x18e   :  { %v9320_v58 = vpack.c.bf16 %v1135_v53, %v1135_v53  ;;  %v1136_v51 = vmax.f32 %v11787_v44, %v1111_v57  ;;  %v930_v35 = vadd.f32 %v11725_v20, %v929_v21  ;;  %v9928_v46 = vpop.f32.mrb[90].mxu0  ;;  %v12016_v34 = vsel %vm1313_vm5, %v1522_v3, %v1525_v33  ;;  %v12025_v19 = vld [vmem:[#allocation2 + $0x1c] sm:$0xf]  ;;  %v12038_v53 = vld [vmem:[%s15137_s3 + $0x28] sm:$0xff]  }
 0x18f   :  { %1264 = vst.msk [vmem:[#allocation2 + $0x2c] sm:$0xf] %vm1252_vm4, %v9322_v63  ;;  %v9323_v61 = vpack.c.bf16 %v1138_v54, %v1138_v54  ;;  %v1066_v27 = vmax.f32 %v938_v9, 0.0  ;;  %v941_v28 = vadd.f32 %v9928_v46, %v11725_v20  ;;  %v932_v22 = vpop.f32.mrb[91].mxu0  ;;  %v1509_v18 = vld [vmem:[#allocation2 + $0x14] sm:$0x3]  ;;  %10086 = vmatmul.mubr.msk.bf16.vlgmr.msra.gmra.mrb[100].mxu0 %vm1349_vm6, %v12016_v34  ;;  %v12042_v57 = vadd.f32 %v11725_v20, %v11881_v31 }
 0x190   :  { %1262 = vst.msk [vmem:[#allocation2 + $0x24] sm:$0xf] %vm1252_vm4, %v9320_v58  ;;  %v9321_v44 = vpack.c.bf16 %v1136_v51, %v1136_v51  ;;  %v1064_v8 = vmax.f32 %v930_v35, 0.0  ;;  %v933_v40 = vadd.f32 %v11725_v20, %v932_v22  ;;  %v12023_v32 = vcombine.low %v12011_v49, %v1509_v18  ;;  %10089 = vmatprep.mubr.msk.bf16.mxu0 %vm11442_vm3, %v15148_v43 }
 0x191   :  { %1265 = vst.msk [vmem:[#allocation2 + $0x30] sm:$0xf] %vm1252_vm4, %v9323_v61  ;;  %v1116_v56 = vmax.f32 %v1041_v12, %v1066_v27  ;;  %v1067_v60 = vmax.f32 %v941_v28, 0.0  ;;  %v1288_v37 = vld [vmem:[#allocation2 + $0x18] sm:$0xf]  ;;  %v1527_v12 = vshrl.u32 %v11984_v13, 16  ;;  %10114 = vmatpush3.bf16.msra.mxu0 %v12007_v1 }
 0x192   :  { %1263 = vst.msk [vmem:[#allocation2 + $0x28] sm:$0xf] %vm1252_vm4, %v9321_v44  ;;  %v1114_v52 = vmax.f32 %v1039_v39, %v1064_v8  ;;  %v1065_v4 = vmax.f32 %v933_v40, 0.0  ;;  %v8742_v62 = vcombine.low %v1288_v37, %v12025_v19  ;;  %v1531_v2 = vshll.u32 %v12023_v32, 16  ;;  %10115 = vmatprep.subr.bf16.mxu0 %v15148_v43 }
 0x193   :  { %v1141_v15 = vmax.f32 %v11823_v45, %v1116_v56  ;;  %v1117_v39 = vmax.f32 %v1042_v47, %v1067_v60  ;;  %v1529_v21 = vor.u32 %v1527_v12, %v1525_v33  ;;  %v12069_v8 = vadd.f32 %v11875_v0, %v11725_v20 }
 0x194   :  { %v1139_v63 = vmax.f32 %v11801_v5, %v1114_v52  ;;  %v1115_v54 = vmax.f32 %v1040_v14, %v1065_v4  ;;  %v9931_v9 = vpop.f32.mrb[92].mxu0  ;;  %v1317_v3 = vshll.u32 %v8742_v62, 16  ;;  %v1533_v16 = vrot.slane %v1531_v2, 1 }
 0x195   :  { %v9326_v58 = vpack.c.bf16 %v1141_v15, %v1141_v15  ;;  %v1142_v31 = vmax.f32 %v11831_v50, %v1117_v39  ;;  %v954_v45 = vadd.f32 %v9931_v9, %v11725_v20  ;;  %v945_v51 = vpop.f32.mrb[93].mxu0  ;;  %10116 = vmatpush3.bf16.msra.mxu0 %v12038_v53  ;;  %v1315_v44 = vshrl.u32 %v8742_v62, 16 }
 0x196   :  { %v9324_v47 = vpack.c.bf16 %v1139_v63, %v1139_v63  ;;  %v1140_v35 = vmax.f32 %v11807_v24, %v1115_v54  ;;  %v946_v46 = vadd.f32 %v11725_v20, %v945_v51  ;;  %v9932_v61 = vpop.f32.mrb[94].mxu0  ;;  %v1319_v5 = vrot.slane %v1317_v3, 1  ;;  %10145 = vmatprep.subr.bf16.mxu0 %v15148_v43 }
 0x197   :  { %1268 = vst.msk [vmem:[#allocation2 + $0x3c] sm:$0xf] %vm1252_vm4, %v9326_v58  ;;  %v9327_v55 = vpack.c.bf16 %v1142_v31, %v1142_v31  ;;  %v1070_v14 = vmax.f32 %v954_v45, 0.0  ;;  %v957_v33 = vadd.f32 %v9932_v61, %v11725_v20  ;;  %v948_v50 = vpop.f32.mrb[95].mxu0  ;;  %v12060_v27 = vsel %vm1313_vm5, %v1529_v21, %v1533_v16  ;;  %v12062_v28 = vld [vmem:[#allocation2 + $0x20] sm:$0xff]  }
 0x198   :  { %1266 = vst.msk [vmem:[#allocation2 + $0x34] sm:$0xf] %vm1252_vm4, %v9324_v47  ;;  %v9325_v24 = vpack.c.bf16 %v1140_v35, %v1140_v35  ;;  %v1068_v22 = vmax.f32 %v946_v46, 0.0  ;;  %v949_v18 = vadd.f32 %v11725_v20, %v948_v50  ;;  %10090 = vmatmul.mubr.msk.bf16.gmra.mrb[104].mxu0 %vm1349_vm6, %v12060_v27  ;;  %v1322_v60 = vshll.u32 %v12062_v28, 16  ;;  %v2469_v21 = vld [vmem:[#allocation2 + $0x18] sm:$0xe] }
 0x199   :  { %1269 = vst.msk [vmem:[#allocation2 + $0x40] sm:$0xf] %vm1252_vm4, %v9327_v55  ;;  %v1120_v40 = vmax.f32 %v1045_v6, %v1070_v14  ;;  %v1071_v56 = vmax.f32 %v957_v33, 0.0  ;;  %v12075_v37 = vld [vmem:[#allocation2 + $0x28] sm:$0x3f]   ;;  %v866_v52 = vadd.f32 %v11725_v20, %v11878_v23  ;;  %v1049_v4 = vmax.f32 %v12042_v57, 0.0  ;;  %10093 = vmatprep.mubr.msk.bf16.mxu0 %vm11442_vm3, %v15148_v43 }
 0x19a   :  { %1267 = vst.msk [vmem:[#allocation2 + $0x38] sm:$0xf] %vm1252_vm4, %v9325_v24  ;;  %v1118_v0 = vmax.f32 %v1043_v36, %v1068_v22  ;;  %v1069_v12 = vmax.f32 %v949_v18, 0.0  ;;  %v1320_v15 = vor.u32 %v1319_v5, %v1315_v44  ;;  %v1324_v39 = vrot.slane %v1322_v60, 1  ;;  %v12091_v23 = vld [vmem:[%s15137_s3] sm:$0xff]  }
 0x19b   :  { %v1145_v6 = vmax.f32 %v11843_v25, %v1120_v40  ;;  %v1121_v62 = vmax.f32 %v1046_v30, %v1071_v56  ;;  %v1535_v2 = vshrl.u32 %v12023_v32, 16  ;;  %v1330_v25 = vshll.u32 %v12075_v37, 16  ;;  %v11400_v31 = vld [vmem:[%s15138_s2] ss:$0 sm:$0xff] }
 0x19c   :  { %v1143_v57 = vmax.f32 %v11821_v10, %v1118_v0  ;;  %v1119_v17 = vmax.f32 %v1044_v7, %v1069_v12  ;;  %v9935_v36 = vpop.f32.mrb[96].mxu0  ;;  %v12101_v9 = vsel %vm1313_vm5, %v1320_v15, %v1324_v39  ;;  %v1048_v33 = vmax.f32 %v866_v52, 0.0  ;;  %v15151_v0 = vld [vmem:[#allocation5_spill] sm:$0xff] }
 0x19d   :  { %v9330_v63 = vpack.c.bf16 %v1145_v6, %v1145_v6  ;;  %v1146_v26 = vmax.f32 %v11849_v29, %v1121_v62  ;;  %v970_v30 = vadd.f32 %v9935_v36, %v11725_v20  ;;  %v961_v54 = vpop.f32.mrb[97].mxu0  ;;  %9942 = vmatmul.mubr.msk.bf16.vlgmr.msra.gmra.mrb[0].mxu1 %vm1349_vm6, %v12101_v9  ;;  %v12107_v32 = vor.u32 %v1535_v2, %v1533_v16 }
 0x19e   :  { %v9328_v3 = vpack.c.bf16 %v1143_v57, %v1143_v57  ;;  %v1144_v10 = vmax.f32 %v11827_v48, %v1119_v17  ;;  %v962_v41 = vadd.f32 %v11725_v20, %v961_v54  ;;  %v9936_v7 = vpop.f32.mrb[98].mxu0  ;;  %9954 = vmatpush3.bf16.msra.mxu1 %v12091_v23  ;;  %9945 = vmatprep.mubr.msk.bf16.mxu1 %vm11442_vm3, %v15148_v43  ;;  %v1326_v20 = vshrl.u32 %v12062_v28, 16  ;;  %v12120_v48 = vld [vmem:[%s15137_s3 + $0x8] sm:$0xff]  }
 0x19f   :  { %1272 = vst.msk [vmem:[#allocation2 + $0x4c] sm:$0xf] %vm1252_vm4, %v9330_v63  ;;  %v9331_v29 = vpack.c.bf16 %v1146_v26, %v1146_v26  ;;  %v1074_v58 = vmax.f32 %v970_v30, 0.0  ;;  %v973_v45 = vadd.f32 %v11400_v31, %v9936_v7  ;;  %v964_v51 = vpop.f32.mrb[99].mxu0  ;;  %v1050_v16 = vmax.f32 %v12069_v8, 0.0  ;;  %9955 = vmatprep.subr.bf16.mxu1 %v15148_v43  ;;  %v15149_v8 = vld [vmem:[#allocation4_spill] sm:$0xff] }
 0x1a0   :  { %1270 = vst.msk [vmem:[#allocation2 + $0x44] sm:$0xf] %vm1252_vm4, %v9328_v3  ;;  %v9329_v47 = vpack.c.bf16 %v1144_v10, %v1144_v10  ;;  %v1072_v35 = vmax.f32 %v962_v41, 0.0  ;;  %v965_v46 = vadd.f32 %v11400_v31, %v964_v51  ;;  %10094 = vmatmul.mubr.msk.bf16.gmra.mrb[108].mxu0 %vm1349_vm6, %v12107_v32  ;;  %v1328_v55 = vor.u32 %v1326_v20, %v1324_v39  ;;  %v12166_v57 = vld [vmem:[%s15137_s3 + $0x48] sm:$0xff]   ;;  %v12195_v3 = vld [vmem:[#allocation2 + $0x40] sm:$0xf] }
 0x1a1   :  { %1273 = vst.msk [vmem:[#allocation2 + $0x50] sm:$0xf] %vm1252_vm4, %v9331_v29  ;;  %v1124_v61 = vmax.f32 %v1049_v4, %v1074_v58  ;;  %v1075_v5 = vmax.f32 %v973_v45, 0.0  ;;  %v1332_v14 = vrot.slane %v1330_v25, 1  ;;  %10117 = vmatprep.mubr.msk.bf16.mxu0 %vm11442_vm3, %v15148_v43  ;;  %v8818_v22 = vcombine.low %v2469_v21, %v12025_v19  ;;  %v12179_v25 = vld [vmem:[#allocation2 + $0x38] sm:$0xff]   ;;  %v12209_v20 = vld [vmem:[%s15137_s3 + $0x60] sm:$0xff]  }
 0x1a2   :  { %1271 = vst.msk [vmem:[#allocation2 + $0x48] sm:$0xf] %vm1252_vm4, %v9329_v47  ;;  %v1122_v50 = vmax.f32 %v1047_v11, %v1072_v35  ;;  %v1073_v24 = vmax.f32 %v965_v46, 0.0  ;;  %9956 = vmatpush3.bf16.msra.mxu1 %v12120_v48  ;;  %v2474_v60 = vrot.slane %v12062_v28, 1  ;;  %v15150_v11 = vld [vmem:[#allocation6_spill] sm:$0xff]  ;;  %v1334_v39 = vshrl.u32 %v12075_v37, 16 }
 0x1a3   :  { %v1149_v18 = vmax.f32 %v11855_v38, %v1124_v61  ;;  %v1125_v44 = vmax.f32 %v1050_v16, %v1075_v5  ;;  %9969 = vmatprep.subr.bf16.mxu1 %v15148_v43  ;;  %v12141_v4 = vsel %vm1313_vm5, %v1328_v55, %v1332_v14  ;;  %v2473_v12 = vrot.slane %v8818_v22, 1  ;;  %v12149_v28 = vld [vmem:[%s15137_s3 + $0x40] sm:$0xff]   ;;  %v1283_v46 = vld [vmem:[#allocation2 + $0x14] sm:$0x1] }
 0x1a4   :  { %v1147_v40 = vmax.f32 %v15149_v8, %v1122_v50  ;;  %v1123_v56 = vmax.f32 %v1048_v33, %v1073_v24  ;;  %v12169_v17 = vor.u32 %v1334_v39, %v1332_v14  ;;  %v2476_v36 = vrot.slane %v12075_v37, 1  ;;  %v12184_v37 = vld [vmem:[#allocation2 + $0x30] sm:$0xfe]   ;;  %v12256_v14 = vld [vmem:[%s15137_s3 + $0x38] sm:$0xff]   ;;  %v12290_v50 = vld [vmem:[#allocation2 + $0x24] sm:$0xff]  }
 0x1a5   :  { %v9334_v59 = vpack.c.bf16 %v1149_v18, %v1149_v18  ;;  %v1150_v52 = vmax.f32 %v15150_v11, %v1125_v44  ;;  %9946 = vmatmul.mubr.msk.bf16.gmra.mrb[4].mxu1 %vm1349_vm6, %v12141_v4  ;;  %v2475_v15 = vsel %vm1647_vm7, %v2473_v12, %v2474_v60  ;;  %v1890_v63 = vshrl.u32 %v12179_v25, 16  ;;  %v12272_v33 = vld [vmem:[#allocation2 + $0x1c] sm:$0xff]   ;;  %v2141_v18 = vld [vmem:[#allocation2 + $0x30] sm:$0x1] }
 0x1a6   :  { %v9332_v19 = vpack.c.bf16 %v1147_v40, %v1147_v40  ;;  %v1148_v38 = vmax.f32 %v15151_v0, %v1123_v56  ;;  %9949 = vmatprep.mubr.msk.bf16.mxu1 %vm11442_vm3, %v15148_v43  ;;  %v2477_v2 = vsel %vm1647_vm7, %v2474_v60, %v2476_v36  ;;  %v1893_v26 = vshll.u32 %v12179_v25, 16  ;;  %v2140_v40 = vld [vmem:[#allocation2 + $0x2c] sm:$0xf] }
 0x1a7   :  { %1276 = vst.msk [vmem:[#allocation2 + $0x5c] sm:$0xf] %vm1252_vm4, %v9334_v59  ;;  %v9335_v6 = vpack.c.bf16 %v1150_v52, %v1150_v52  ;;  %v1873_v30 = vld [vmem:[#allocation2 + $0x44] sm:$0x7]  ;;  %v1882_v54 = vshrl.u32 %v12184_v37, 16  ;;  %v1885_v21 = vshll.u32 %v12184_v37, 16  ;;  %v8752_v61 = vcombine.low %v12011_v49, %v1283_v46 }
 0x1a8   :  { %1274 = vst.msk [vmem:[#allocation2 + $0x54] sm:$0xf] %vm1252_vm4, %v9332_v19  ;;  %v9333_v62 = vpack.c.bf16 %v1148_v38, %v1148_v38  ;;  %10118 = vmatmul.mubr.msk.bf16.vlgmr.msra.gmra.mrb[112].mxu0 %vm1349_vm6, %v2475_v15  ;;  %v1892_v10 = vrot.slane %v1890_v63, 1  ;;  %v1895_v41 = vrot.slane %v1893_v26, 2  ;;  %v8780_v7 = vcombine.low %v12195_v3, %v1873_v30  ;;  %v12246_v49 = vld [vmem:[%s15137_s3 + $0x30] sm:$0xff]  }
 0x1a9   :  { %1277 = vst.msk [vmem:[#allocation2 + $0x60] sm:$0xf] %vm1252_vm4, %v9335_v6  ;;  %10121 = vmatprep.mubr.msk.bf16.mxu0 %vm11442_vm3, %v15148_v43  ;;  %10146 = vmatpush3.bf16.msra.mxu0 %v12149_v28  ;;  %v1887_v29 = vrot.slane %v1885_v21, 2  ;;  %v1649_v24 = vrot.slane %v12179_v25, 1  ;;  %v1627_v22 = vld [vmem:[#allocation2 + $0x44] sm:$0x3]  ;;  %v12309_v60 = vcombine.low %v2140_v40, %v2141_v18 }
 0x1aa   :  { %1275 = vst.msk [vmem:[#allocation2 + $0x58] sm:$0xf] %vm1252_vm4, %v9333_v62  ;;  %10147 = vmatprep.subr.bf16.mxu0 %v15148_v43  ;;  %v1896_v58 = vor.u32 %v1895_v41, %v1892_v10  ;;  %v1899_v31 = vshrl.u32 %v8780_v7, 16  ;;  %v1902_v45 = vshll.u32 %v8780_v7, 16  ;;  %v8766_v8 = vcombine.low %v12195_v3, %v1627_v22  ;;  %v2884_v19 = vld [vmem:[#allocation2 + $0x30] sm:$0x3] }
 0x1ab   :  { %v2890_v56 = vshll.u32 %v12272_v33, 16  ;;  %v2894_v59 = vshll.u32 %v12290_v50, 16  ;;  %v2888_v0 = vshrl.u32 %v12272_v33, 16  ;;  %v1737_v12 = vld [vmem:[#allocation2 + $0x48] sm:$0xe]  ;;  %v8838_v39 = vcombine.low %v2140_v40, %v2884_v19  ;;  %v12369_v46 = vld [vmem:[%s15137_s3 + $0x50] sm:$0xff]  }
 0x1ac   :  { %v1901_v47 = vrot.slane %v1899_v31, 1  ;;  %v1904_v35 = vrot.slane %v1902_v45, 2  ;;  %v12317_v11 = vrot.slane %v8766_v8, 1  ;;  %v2898_v26 = vshrl.u32 %v12290_v50, 16  ;;  %v12384_v8 = vld [vmem:[%s15137_s3 + $0x58] sm:$0xff]  }
 0x1ad   :  { %9950 = vmatmul.mubr.msk.bf16.gmra.mrb[8].mxu1 %vm1349_vm6, %v12169_v17  ;;  %10148 = vmatpush3.bf16.msra.mxu0 %v12166_v57  ;;  %v2892_v52 = vrot.slane %v2890_v56, 1  ;;  %v2896_v38 = vrot.slane %v2894_v59, 1  ;;  %v2902_v30 = vshll.u32 %v8838_v39, 16  ;;  %v12409_v59 = vld [vmem:[#allocation2 + $0x8] sm:$0xf] }
 0x1ae   :  { %9957 = vmatprep.mubr.msk.bf16.mxu1 %vm11442_vm3, %v15148_v43  ;;  %10177 = vmatprep.subr.bf16.mxu0 %v15148_v43  ;;  %v12228_v5 = vor.u32 %v1904_v35, %v1901_v47  ;;  %v12326_v6 = vsel %vm1647_vm7, %v1649_v24, %v12317_v11 }
 0x1af   :  { %v12328_v62 = vld [vmem:[#allocation2 + $0x50] sm:$0xff]   ;;  %v2893_v15 = vor.u32 %v2892_v52, %v2888_v0  ;;  %v2900_v3 = vor.u32 %v2898_v26, %v2896_v38  ;;  %v12416_v52 = vld [vmem:[#allocation2 + $0x4] sm:$0xf]  ;;  %v1991_v0 = vld [vmem:[#allocation2] sm:$0x8] }
 0x1b0   :  { %10122 = vmatmul.mubr.msk.bf16.gmra.mrb[116].mxu0 %vm1349_vm6, %v2477_v2  ;;  %v12237_v55 = vsel %vm1762_vm8, %v1896_v58, %v12228_v5  ;;  %v1775_v63 = vshll.u32 %v12328_v62, 16 }
 0x1b1   :  { %10125 = vmatprep.mubr.msk.bf16.mxu0 %vm11442_vm3, %v15148_v43  ;;  %v12338_v25 = vsel %vm1313_vm5, %v2893_v15, %v2896_v38  ;;  %v12349_v7 = vld [vmem:[#allocation2 + $0x58] sm:$0x7f]   ;;  %v8786_v38 = vcombine.low %v1991_v0, %v12416_v52 }
 0x1b2   :  { %v1777_v41 = vrot.slane %v1775_v63, 2  ;;  %v1784_v47 = vshll.u32 %v12349_v7, 16 }
 0x1b5   :  { %9958 = vmatmul.mubr.msk.bf16.vlgmr.msra.gmra.mrb[12].mxu1 %vm1349_vm6, %v11974_v42  ;;  %v1884_v42 = vrot.slane %v1882_v54, 1 }
 0x1b6   :  { %9970 = vmatpush3.bf16.msra.mxu1 %v12007_v1  ;;  %9961 = vmatprep.mubr.msk.bf16.mxu1 %vm11442_vm3, %v15148_v43 }
 0x1b7   :  { %9971 = vmatprep.subr.bf16.mxu1 %v15148_v43  ;;  %v1888_v51 = vor.u32 %v1887_v29, %v1884_v42  ;;  %v2904_v42 = vrot.slane %v2902_v30, 1 }
 0x1b8   :  { %10126 = vmatmul.mubr.msk.bf16.gmra.mrb[120].mxu0 %vm1349_vm6, %v2476_v36  ;;  %v12332_v36 = vld [vmem:[#allocation2 + $0x4c] sm:$0xf] }
 0x1b9   :  { %10149 = vmatprep.mubr.msk.bf16.mxu0 %vm11442_vm3, %v15148_v43  ;;  %v12214_v16 = vsel %vm1762_vm8, %v1888_v51, %v1896_v58  ;;  %v8772_v2 = vcombine.low %v1737_v12, %v12332_v36  ;;  %v12358_v31 = vsel %vm1313_vm5, %v2900_v3, %v2904_v42  ;;  %v1781_v51 = vshrl.u32 %v12349_v7, 16 }
 0x1ba   :  { %9972 = vmatpush3.bf16.msra.mxu1 %v12038_v53 }
 0x1bb   :  { %9985 = vmatprep.subr.bf16.mxu1 %v15148_v43  ;;  %v1764_v54 = vshrl.u32 %v8772_v2, 16  ;;  %v1767_v21 = vshll.u32 %v8772_v2, 16  ;;  %v1783_v22 = vrot.slane %v1781_v51, 1  ;;  %v2022_v2 = vshrl.u32 %v8786_v38, 16 }
 0x1bd   :  { %9962 = vmatmul.mubr.msk.bf16.gmra.mrb[16].mxu1 %vm1349_vm6, %v11984_v13  ;;  %v12224_v13 = vld [vmem:[%s15137_s3 + $0x68] sm:$0xff]   ;;  %v1766_v29 = vrot.slane %v1764_v54, 1  ;;  %v1769_v58 = vrot.slane %v1767_v21, 2  ;;  %v2024_v54 = vrot.slane %v2022_v2, 3  ;;  %v12534_v2 = vld [vmem:[#allocation2 + $0x5c] sm:$0xf] }
 0x1be   :  { %9965 = vmatprep.mubr.msk.bf16.mxu1 %vm11442_vm3, %v15148_v43 }
 0x1bf   :  { %v1770_v35 = vor.u32 %v1769_v58, %v1766_v29 }
 0x1c0   :  { %10150 = vmatmul.mubr.msk.bf16.vlgmr.msra.gmra.mrb[124].mxu0 %vm1349_vm6, %v12214_v16 }
 0x1c1   :  { %10153 = vmatprep.mubr.msk.bf16.mxu0 %vm11442_vm3, %v15148_v43  ;;  %10178 = vmatpush3.bf16.msra.mxu0 %v12209_v20 }
 0x1c2   :  { %10179 = vmatprep.subr.bf16.mxu0 %v15148_v43 }
 0x1c5   :  { %9966 = vmatmul.mubr.msk.bf16.gmra.mrb[20].mxu1 %vm1349_vm6, %v8752_v61  ;;  %10180 = vmatpush3.bf16.msra.mxu0 %v12224_v13 }
 0x1c6   :  { %9973 = vmatprep.mubr.msk.bf16.mxu1 %vm11442_vm3, %v15148_v43  ;;  %10209 = vmatprep.subr.bf16.mxu0 %v15148_v43 }
 0x1c8   :  { %10154 = vmatmul.mubr.msk.bf16.gmra.mrb[128].mxu0 %vm1349_vm6, %v12237_v55 }
 0x1c9   :  { %10157 = vmatprep.mubr.msk.bf16.mxu0 %vm11442_vm3, %v15148_v43 }
 0x1cd   :  { %9974 = vmatmul.mubr.msk.bf16.vlgmr.msra.gmra.mrb[24].mxu1 %vm1349_vm6, %v12016_v34  ;;  %v12270_v34 = vld [vmem:[%s15137_s3 + $0x80] sm:$0xff]  }
 0x1ce   :  { %9986 = vmatpush3.bf16.msra.mxu1 %v12246_v49  ;;  %9977 = vmatprep.mubr.msk.bf16.mxu1 %vm11442_vm3, %v15148_v43 }
 0x1cf   :  { %9987 = vmatprep.subr.bf16.mxu1 %v15148_v43 }
 0x1d0   :  { %10158 = vmatmul.mubr.msk.bf16.gmra.mrb[132].mxu0 %vm1349_vm6, %v12228_v5 }
 0x1d1   :  { %10181 = vmatprep.mubr.msk.bf16.mxu0 %vm11442_vm3, %v15148_v43 }
 0x1d2   :  { %9988 = vmatpush3.bf16.msra.mxu1 %v12256_v14 }
 0x1d3   :  { %10001 = vmatprep.subr.bf16.mxu1 %v15148_v43 }
 0x1d5   :  { %9978 = vmatmul.mubr.msk.bf16.gmra.mrb[28].mxu1 %vm1349_vm6, %v12060_v27  ;;  %v12284_v27 = vld [vmem:[%s15137_s3 + $0x88] sm:$0xff]  }
 0x1d6   :  { %9981 = vmatprep.mubr.msk.bf16.mxu1 %vm11442_vm3, %v15148_v43 }
 0x1d8   :  { %10182 = vmatmul.mubr.msk.bf16.vlgmr.msra.gmra.mrb[136].mxu0 %vm1349_vm6, %v12272_v33 }
 0x1d9   :  { %10185 = vmatprep.mubr.msk.bf16.mxu0 %vm11442_vm3, %v15148_v43  ;;  %10210 = vmatpush3.bf16.msra.mxu0 %v12270_v34 }
 0x1da   :  { %10211 = vmatprep.subr.bf16.mxu0 %v15148_v43 }
 0x1dd   :  { %9982 = vmatmul.mubr.msk.bf16.gmra.mrb[32].mxu1 %vm1349_vm6, %v12107_v32  ;;  %10212 = vmatpush3.bf16.msra.mxu0 %v12284_v27  ;;  %v1648_v32 = vrot.slane %v12184_v37, 1  ;;  %v1772_v37 = vshrl.u32 %v12328_v62, 16 }
 0x1de   :  { %9989 = vmatprep.mubr.msk.bf16.mxu1 %vm11442_vm3, %v15148_v43  ;;  %10241 = vmatprep.subr.bf16.mxu0 %v15148_v43 }
 0x1df   :  { %v12302_v44 = vsel %vm1647_vm7, %v1648_v32, %v1649_v24  ;;  %v1774_v10 = vrot.slane %v1772_v37, 1  ;;  %v2906_v24 = vshrl.u32 %v8838_v39, 16  ;;  %v1786_v32 = vrot.slane %v1784_v47, 2  ;;  %v12428_v39 = vld [vmem:[#allocation2 + $0x14] sm:$0xf] }
 0x1e0   :  { %10186 = vmatmul.mubr.msk.bf16.gmra.mrb[140].mxu0 %vm1349_vm6, %v12290_v50  ;;  %v2025_v37 = vshll.u32 %v8786_v38, 16  ;;  %v12487_v38 = vcombine.low %v12416_v52, %v12409_v59 }
 0x1e1   :  { %10189 = vmatprep.mubr.msk.bf16.mxu0 %vm11442_vm3, %v15148_v43  ;;  %v1778_v45 = vor.u32 %v1777_v41, %v1774_v10  ;;  %v12377_v18 = vor.u32 %v2906_v24, %v2904_v42  ;;  %v12389_v40 = vor.u32 %v1786_v32, %v1783_v22  ;;  %v12466_v22 = vld [vmem:[%s15137_s3 + $0x70] sm:$0xff]  }
 0x1e2   :  { %v2027_v21 = vrot.slane %v2025_v37, 4 }
 0x1e3   :  { %v12372_v61 = vsel %vm1762_vm8, %v1770_v35, %v1778_v45  ;;  %v12397_v56 = vsel %vm1762_vm8, %v1778_v45, %v12389_v40  ;;  %v1997_v45 = vld [vmem:[#allocation2 + $0x18] sm:$0x1] }
 0x1e4   :  { %v2028_v42 = vor.u32 %v2027_v21, %v2024_v54  ;;  %v8789_v47 = vcombine.low %v1997_v45, %v1997_v45  ;;  %v12513_v52 = vcombine.low %v12428_v39, %v1997_v45 }
 0x1e5   :  { %9990 = vmatmul.mubr.msk.bf16.vlgmr.msra.gmra.mrb[36].mxu1 %vm1349_vm6, %v12302_v44 }
 0x1e6   :  { %10002 = vmatpush3.bf16.msra.mxu1 %v12149_v28  ;;  %9993 = vmatprep.mubr.msk.bf16.mxu1 %vm11442_vm3, %v15148_v43  ;;  %v2048_v24 = vshll.u32 %v8789_v47, 16 }
 0x1e7   :  { %10003 = vmatprep.subr.bf16.mxu1 %v15148_v43 }
 0x1e8   :  { %10190 = vmatmul.mubr.msk.bf16.gmra.mrb[144].mxu0 %vm1349_vm6, %v12309_v60  ;;  %v2050_v32 = vrot.slane %v2048_v24, 4 }
 0x1e9   :  { %10213 = vmatprep.mubr.msk.bf16.mxu0 %vm11442_vm3, %v15148_v43 }
 0x1ea   :  { %10004 = vmatpush3.bf16.msra.mxu1 %v12166_v57 }
 0x1eb   :  { %10017 = vmatprep.subr.bf16.mxu1 %v15148_v43 }
 0x1ed   :  { %9994 = vmatmul.mubr.msk.bf16.gmra.mrb[40].mxu1 %vm1349_vm6, %v12326_v6 }
 0x1ee   :  { %9997 = vmatprep.mubr.msk.bf16.mxu1 %vm11442_vm3, %v15148_v43 }
 0x1f0   :  { %10214 = vmatmul.mubr.msk.bf16.vlgmr.msra.gmra.mrb[148].mxu0 %vm1349_vm6, %v12338_v25 }
 0x1f1   :  { %10217 = vmatprep.mubr.msk.bf16.mxu0 %vm11442_vm3, %v15148_v43  ;;  %10242 = vmatpush3.bf16.msra.mxu0 %v12091_v23 }
 0x1f2   :  { %10243 = vmatprep.subr.bf16.mxu0 %v15148_v43 }
 0x1f5   :  { %9998 = vmatmul.mubr.msk.bf16.gmra.mrb[44].mxu1 %vm1349_vm6, %v12317_v11  ;;  %10244 = vmatpush3.bf16.msra.mxu0 %v12120_v48 }
 0x1f6   :  { %10005 = vmatprep.mubr.msk.bf16.mxu1 %vm11442_vm3, %v15148_v43  ;;  %10273 = vmatprep.subr.bf16.mxu0 %v15148_v43 }
 0x1f8   :  { %10218 = vmatmul.mubr.msk.bf16.gmra.mrb[152].mxu0 %vm1349_vm6, %v12358_v31 }
 0x1f9   :  { %10221 = vmatprep.mubr.msk.bf16.mxu0 %vm11442_vm3, %v15148_v43 }
 0x1fd   :  { %10006 = vmatmul.mubr.msk.bf16.vlgmr.msra.gmra.mrb[48].mxu1 %vm1349_vm6, %v12372_v61 }
 0x1fe   :  { %10018 = vmatpush3.bf16.msra.mxu1 %v12369_v46  ;;  %10009 = vmatprep.mubr.msk.bf16.mxu1 %vm11442_vm3, %v15148_v43 }
 0x1ff   :  { %10019 = vmatprep.subr.bf16.mxu1 %v15148_v43 }
 0x200   :  { %10222 = vmatmul.mubr.msk.bf16.gmra.mrb[156].mxu0 %vm1349_vm6, %v12377_v18 }
 0x201   :  { %10245 = vmatprep.mubr.msk.bf16.mxu0 %vm11442_vm3, %v15148_v43 }
 0x202   :  { %10020 = vmatpush3.bf16.msra.mxu1 %v12384_v8 }
 0x203   :  { %10033 = vmatprep.subr.bf16.mxu1 %v15148_v43 }
 0x205   :  { %10010 = vmatmul.mubr.msk.bf16.gmra.mrb[52].mxu1 %vm1349_vm6, %v12397_v56 }
 0x206   :  { %10013 = vmatprep.mubr.msk.bf16.mxu1 %vm11442_vm3, %v15148_v43 }
 0x208   :  { %10246 = vmatmul.mubr.msk.bf16.vlgmr.msra.gmra.mrb[160].mxu0 %vm1349_vm6, %v12302_v44  ;;  %v12418_v44 = vld [vmem:[#allocation2 + $0xc] sm:$0xf] }
 0x209   :  { %10249 = vmatprep.mubr.msk.bf16.mxu0 %vm11442_vm3, %v15148_v43  ;;  %10274 = vmatpush3.bf16.msra.mxu0 %v12246_v49  ;;  %v8787_v19 = vcombine.low %v12409_v59, %v12418_v44 }
 0x20a   :  { %10275 = vmatprep.subr.bf16.mxu0 %v15148_v43 }
 0x20b   :  { %v2030_v12 = vshrl.u32 %v8787_v19, 16  ;;  %v2033_v15 = vshll.u32 %v8787_v19, 16  ;;  %v12475_v19 = vld [vmem:[%s15137_s3 + $0x78] sm:$0xff]  }
 0x20d   :  { %10014 = vmatmul.mubr.msk.bf16.gmra.mrb[56].mxu1 %vm1349_vm6, %v12389_v40  ;;  %10276 = vmatpush3.bf16.msra.mxu0 %v12256_v14  ;;  %v2032_v63 = vrot.slane %v2030_v12, 3  ;;  %v2035_v26 = vrot.slane %v2033_v15, 4  ;;  %v12524_v12 = vld [vmem:[#allocation2 + $0x4c] sm:$0xfe]   ;;  %v3486_v15 = vld [vmem:[#allocation2 + $0x60] sm:$0x3] }
 0x20e   :  { %10021 = vmatprep.mubr.msk.bf16.mxu1 %vm11442_vm3, %v15148_v43  ;;  %10305 = vmatprep.subr.bf16.mxu0 %v15148_v43 }
 0x20f   :  { %v2036_v3 = vor.u32 %v2035_v26, %v2032_v63  ;;  %v12558_v26 = vld [vmem:[%s15137_s3 + $0x18] sm:$0xff]  }
 0x210   :  { %10250 = vmatmul.mubr.msk.bf16.gmra.mrb[164].mxu0 %vm1349_vm6, %v12326_v6  ;;  %v1995_v6 = vld [vmem:[#allocation2 + $0x10] sm:$0xf] }
 0x211   :  { %10253 = vmatprep.mubr.msk.bf16.mxu0 %vm11442_vm3, %v15148_v43  ;;  %v8788_v30 = vcombine.low %v1995_v6, %v12428_v39  ;;  %v12500_v59 = vcombine.low %v12418_v44, %v1995_v6  ;;  %v12517_v44 = vld [vmem:[#allocation2 + $0x54] sm:$0xff]   ;;  %v3502_v39 = vrot.slane %v12524_v12, 1  ;;  %v8868_v6 = vcombine.low %v12534_v2, %v3486_v15 }
 0x212   :  { %v2682_v15 = vrot.slane %v12328_v62, 2 }
 0x213   :  { %v2039_v10 = vshrl.u32 %v8788_v30, 16  ;;  %v2042_v41 = vshll.u32 %v8788_v30, 16  ;;  %v12551_v63 = vrot.slane %v8868_v6, 1 }
 0x215   :  { %10022 = vmatmul.mubr.msk.bf16.vlgmr.msra.gmra.mrb[60].mxu1 %vm1349_vm6, %v12214_v16  ;;  %v2041_v29 = vrot.slane %v2039_v10, 3  ;;  %v2044_v58 = vrot.slane %v2042_v41, 4 }
 0x216   :  { %10034 = vmatpush3.bf16.msra.mxu1 %v12209_v20  ;;  %10025 = vmatprep.mubr.msk.bf16.mxu1 %vm11442_vm3, %v15148_v43 }
 0x217   :  { %10035 = vmatprep.subr.bf16.mxu1 %v15148_v43  ;;  %v2045_v51 = vor.u32 %v2044_v58, %v2041_v29 }
 0x218   :  { %10254 = vmatmul.mubr.msk.bf16.gmra.mrb[168].mxu0 %vm1349_vm6, %v12317_v11  ;;  %v2037_v11 = vsel %vm2020_vm9, %v2028_v42, %v2036_v3 }
 0x219   :  { %10277 = vmatprep.mubr.msk.bf16.mxu0 %vm11442_vm3, %v15148_v43  ;;  %v2046_v35 = vsel %vm2020_vm9, %v2036_v3, %v2045_v51  ;;  %v2051_v0 = vsel %vm2020_vm9, %v2045_v51, %v2050_v32 }
 0x21a   :  { %10036 = vmatpush3.bf16.msra.mxu1 %v12224_v13 }
 0x21b   :  { %10049 = vmatprep.subr.bf16.mxu1 %v15148_v43 }
 0x21d   :  { %10026 = vmatmul.mubr.msk.bf16.gmra.mrb[64].mxu1 %vm1349_vm6, %v12237_v55 }
 0x21e   :  { %10029 = vmatprep.mubr.msk.bf16.mxu1 %vm11442_vm3, %v15148_v43 }
 0x220   :  { %10278 = vmatmul.mubr.msk.bf16.vlgmr.msra.gmra.mrb[172].mxu0 %vm1349_vm6, %v2037_v11 }
 0x221   :  { %10281 = vmatprep.mubr.msk.bf16.mxu0 %vm11442_vm3, %v15148_v43  ;;  %10306 = vmatpush3.bf16.msra.mxu0 %v12369_v46 }
 0x222   :  { %10307 = vmatprep.subr.bf16.mxu0 %v15148_v43 }
 0x225   :  { %10030 = vmatmul.mubr.msk.bf16.gmra.mrb[68].mxu1 %vm1349_vm6, %v12228_v5  ;;  %10308 = vmatpush3.bf16.msra.mxu0 %v12384_v8 }
 0x226   :  { %10037 = vmatprep.mubr.msk.bf16.mxu1 %vm11442_vm3, %v15148_v43  ;;  %10337 = vmatprep.subr.bf16.mxu0 %v15148_v43 }
 0x228   :  { %10282 = vmatmul.mubr.msk.bf16.gmra.mrb[176].mxu0 %vm1349_vm6, %v2046_v35 }
 0x229   :  { %10285 = vmatprep.mubr.msk.bf16.mxu0 %vm11442_vm3, %v15148_v43 }
 0x22d   :  { %10038 = vmatmul.mubr.msk.bf16.vlgmr.msra.gmra.mrb[72].mxu1 %vm1349_vm6, %v2037_v11 }
 0x22e   :  { %10050 = vmatpush3.bf16.msra.mxu1 %v12466_v22  ;;  %10041 = vmatprep.mubr.msk.bf16.mxu1 %vm11442_vm3, %v15148_v43 }
 0x22f   :  { %10051 = vmatprep.subr.bf16.mxu1 %v15148_v43 }
 0x230   :  { %10286 = vmatmul.mubr.msk.bf16.gmra.mrb[180].mxu0 %vm1349_vm6, %v2051_v0 }
 0x231   :  { %10309 = vmatprep.mubr.msk.bf16.mxu0 %vm11442_vm3, %v15148_v43 }
 0x232   :  { %10052 = vmatpush3.bf16.msra.mxu1 %v12475_v19 }
 0x233   :  { %10065 = vmatprep.subr.bf16.mxu1 %v15148_v43 }
 0x235   :  { %10042 = vmatmul.mubr.msk.bf16.gmra.mrb[76].mxu1 %vm1349_vm6, %v2046_v35  ;;  %v2676_v35 = vld [vmem:[#allocation2 + $0x48] sm:$0xc] }
 0x236   :  { %10045 = vmatprep.mubr.msk.bf16.mxu1 %vm11442_vm3, %v15148_v43 }
 0x238   :  { %10310 = vmatmul.mubr.msk.bf16.vlgmr.msra.gmra.mrb[184].mxu0 %vm1349_vm6, %v12487_v38 }
 0x239   :  { %10313 = vmatprep.mubr.msk.bf16.mxu0 %vm11442_vm3, %v15148_v43  ;;  %10338 = vmatpush3.bf16.msra.mxu0 %v12466_v22 }
 0x23a   :  { %10339 = vmatprep.subr.bf16.mxu0 %v15148_v43 }
 0x23d   :  { %10046 = vmatmul.mubr.msk.bf16.gmra.mrb[80].mxu1 %vm1349_vm6, %v2051_v0  ;;  %10340 = vmatpush3.bf16.msra.mxu0 %v12475_v19  ;;  %v8828_v0 = vcombine.low %v2676_v35, %v12332_v36 }
 0x23e   :  { %10053 = vmatprep.mubr.msk.bf16.mxu1 %vm11442_vm3, %v15148_v43  ;;  %10369 = vmatprep.subr.bf16.mxu0 %v15148_v43 }
 0x240   :  { %10314 = vmatmul.mubr.msk.bf16.gmra.mrb[188].mxu0 %vm1349_vm6, %v12500_v59 }
 0x241   :  { %10317 = vmatprep.mubr.msk.bf16.mxu0 %vm11442_vm3, %v15148_v43 }
 0x245   :  { %10054 = vmatmul.mubr.msk.bf16.vlgmr.msra.gmra.mrb[84].mxu1 %vm1349_vm6, %v12272_v33  ;;  %v3503_v33 = vrot.slane %v12517_v44, 1 }
 0x246   :  { %10066 = vmatpush3.bf16.msra.mxu1 %v12270_v34  ;;  %10057 = vmatprep.mubr.msk.bf16.mxu1 %vm11442_vm3, %v15148_v43 }
 0x247   :  { %10067 = vmatprep.subr.bf16.mxu1 %v15148_v43  ;;  %v12537_v37 = vsel %vm1647_vm7, %v3502_v39, %v3503_v33  ;;  %v12566_v30 = vsel %vm1647_vm7, %v3503_v33, %v12551_v63 }
 0x248   :  { %10318 = vmatmul.mubr.msk.bf16.gmra.mrb[192].mxu0 %vm1349_vm6, %v12513_v52 }
 0x249   :  { %10341 = vmatprep.mubr.msk.bf16.mxu0 %vm11442_vm3, %v15148_v43 }
 0x24a   :  { %10068 = vmatpush3.bf16.msra.mxu1 %v12284_v27 }
 0x24b   :  { %10097 = vmatprep.subr.bf16.mxu1 %v15148_v43 }
 0x24d   :  { %10058 = vmatmul.mubr.msk.bf16.gmra.mrb[88].mxu1 %vm1349_vm6, %v12290_v50  ;;  %v12547_v50 = vld [vmem:[%s15137_s3 + $0x10] sm:$0xff]  }
 0x24e   :  { %10061 = vmatprep.mubr.msk.bf16.mxu1 %vm11442_vm3, %v15148_v43 }
 0x250   :  { %10342 = vmatmul.mubr.msk.bf16.vlgmr.msra.gmra.mrb[196].mxu0 %vm1349_vm6, %v12537_v37 }
 0x251   :  { %10345 = vmatprep.mubr.msk.bf16.mxu0 %vm11442_vm3, %v15148_v43  ;;  %10370 = vmatpush3.bf16.msra.mxu0 %v12547_v50 }
 0x252   :  { %10371 = vmatprep.subr.bf16.mxu0 %v15148_v43 }
 0x255   :  { %10062 = vmatmul.mubr.msk.bf16.gmra.mrb[92].mxu1 %vm1349_vm6, %v12309_v60  ;;  %10372 = vmatpush3.bf16.msra.mxu0 %v12558_v26 }
 0x256   :  { %10069 = vmatprep.mubr.msk.bf16.mxu1 %vm11442_vm3, %v15148_v43  ;;  %10401 = vmatprep.subr.bf16.mxu0 %v15148_v43 }
 0x258   :  { %10346 = vmatmul.mubr.msk.bf16.gmra.mrb[200].mxu0 %vm1349_vm6, %v12566_v30 }
 0x259   :  { %10349 = vmatprep.mubr.msk.bf16.mxu0 %vm11442_vm3, %v15148_v43 }
 0x25d   :  { %10070 = vmatmul.mubr.msk.bf16.vlgmr.msra.gmra.mrb[96].mxu1 %vm1349_vm6, %v12487_v38 }
 0x25e   :  { %10098 = vmatpush3.bf16.msra.mxu1 %v12091_v23  ;;  %10073 = vmatprep.mubr.msk.bf16.mxu1 %vm11442_vm3, %v15148_v43 }
 0x25f   :  { %10099 = vmatprep.subr.bf16.mxu1 %v15148_v43 }
 0x260   :  { %10350 = vmatmul.mubr.msk.bf16.gmra.mrb[204].mxu0 %vm1349_vm6, %v12551_v63 }
 0x261   :  { %10373 = vmatprep.mubr.msk.bf16.mxu0 %vm11442_vm3, %v15148_v43 }
 0x262   :  { %10100 = vmatpush3.bf16.msra.mxu1 %v12120_v48  ;;  %v12583_v54 = vpop.f32.mrb[100].mxu0 }
 0x263   :  { %10129 = vmatprep.subr.bf16.mxu1 %v15148_v43  ;;  %v10087_v21 = vpop.f32.mrb[101].mxu0 }
 0x264   :  { %v12586_v3 = vpop.f32.mrb[102].mxu0  ;;  %v2681_v21 = vrot.slane %v8828_v0, 2 }
 0x265   :  { %10074 = vmatmul.mubr.msk.bf16.gmra.mrb[100].mxu1 %vm1349_vm6, %v12500_v59  ;;  %v10088_v23 = vpop.f32.mrb[103].mxu0 }
 0x266   :  { %10077 = vmatprep.mubr.msk.bf16.mxu1 %vm11442_vm3, %v15148_v43 }
 0x268   :  { %10374 = vmatmul.mubr.msk.bf16.vlgmr.msra.gmra.mrb[208].mxu0 %vm1349_vm6, %v12214_v16 }
 0x269   :  { %10377 = vmatprep.mubr.msk.bf16.mxu0 %vm11442_vm3, %v15148_v43  ;;  %10402 = vmatpush3.bf16.msra.mxu0 %v12007_v1 }
 0x26a   :  { %10403 = vmatprep.subr.bf16.mxu0 %v15148_v43 }
 0x26b   :  { %v12598_v48 = vpop.f32.mrb[104].mxu0 }
 0x26c   :  { %v10091_v10 = vpop.f32.mrb[105].mxu0 }
 0x26d   :  { %v12600_v41 = vpop.f32.mrb[106].mxu0  ;;  %10078 = vmatmul.mubr.msk.bf16.gmra.mrb[104].mxu1 %vm1349_vm6, %v12513_v52  ;;  %10404 = vmatpush3.bf16.msra.mxu0 %v12038_v53 }
 0x26e   :  { %v10092_v42 = vpop.f32.mrb[107].mxu0  ;;  %10101 = vmatprep.mubr.msk.bf16.mxu1 %vm11442_vm3, %v15148_v43  ;;  %10433 = vmatprep.subr.bf16.mxu0 %v15148_v43 }
 0x270   :  { %10378 = vmatmul.mubr.msk.bf16.gmra.mrb[212].mxu0 %vm1349_vm6, %v12237_v55  ;;  %v1393_v1 = vpop.f32.mrb[0].mxu1 }
 0x271   :  { %v9943_v11 = vpop.f32.mrb[1].mxu1  ;;  %10381 = vmatprep.mubr.msk.bf16.mxu0 %vm11442_vm3, %v15148_v43 }
 0x272   :  { %v1396_v29 = vpop.f32.mrb[2].mxu1  ;;  %v12650_v11 = vrot.slane %v12349_v7, 2 }
 0x273   :  { %v12612_v58 = vpop.f32.mrb[108].mxu0  ;;  %v9944_v45 = vpop.f32.mrb[3].mxu1 }
 0x274   :  { %v10095_v51 = vpop.f32.mrb[109].mxu0 }
 0x275   :  { %v12614_v53 = vpop.f32.mrb[110].mxu0  ;;  %10102 = vmatmul.mubr.msk.bf16.vlgmr.msra.gmra.mrb[108].mxu1 %vm1349_vm6, %v12101_v9 }
 0x276   :  { %v10096_v47 = vpop.f32.mrb[111].mxu0  ;;  %10130 = vmatpush3.bf16.msra.mxu1 %v12246_v49  ;;  %10105 = vmatprep.mubr.msk.bf16.mxu1 %vm11442_vm3, %v15148_v43 }
 0x277   :  { %10131 = vmatprep.subr.bf16.mxu1 %v15148_v43 }
 0x278   :  { %10382 = vmatmul.mubr.msk.bf16.gmra.mrb[216].mxu0 %vm1349_vm6, %v12228_v5  ;;  %v1401_v24 = vpop.f32.mrb[4].mxu1 }
 0x279   :  { %v9947_v32 = vpop.f32.mrb[5].mxu1  ;;  %10405 = vmatprep.mubr.msk.bf16.mxu0 %vm11442_vm3, %v15148_v43 }
 0x27a   :  { %v1404_v9 = vpop.f32.mrb[6].mxu1  ;;  %10132 = vmatpush3.bf16.msra.mxu1 %v12256_v14  ;;  %v12639_v14 = vsel %vm2680_vm10, %v2681_v21, %v2682_v15 }
 0x27b   :  { %v12628_v49 = vpop.f32.mrb[112].mxu0  ;;  %v9948_v33 = vpop.f32.mrb[7].mxu1  ;;  %10161 = vmatprep.subr.bf16.mxu1 %v15148_v43 }
 0x27c   :  { %v10119_v39 = vpop.f32.mrb[113].mxu0 }
 0x27d   :  { %v12632_v6 = vpop.f32.mrb[114].mxu0  ;;  %10106 = vmatmul.mubr.msk.bf16.gmra.mrb[112].mxu1 %vm1349_vm6, %v12141_v4 }
 0x27e   :  { %v10120_v23 = vpop.f32.mrb[115].mxu0  ;;  %10109 = vmatprep.mubr.msk.bf16.mxu1 %vm11442_vm3, %v15148_v43 }
 0x280   :  { %10406 = vmatmul.mubr.msk.bf16.vlgmr.msra.gmra.mrb[220].mxu0 %vm1349_vm6, %v12639_v14  ;;  %v1409_v62 = vpop.f32.mrb[8].mxu1 }
 0x281   :  { %v9951_v36 = vpop.f32.mrb[9].mxu1  ;;  %10409 = vmatprep.mubr.msk.bf16.mxu0 %vm11442_vm3, %v15148_v43  ;;  %10434 = vmatpush3.bf16.msra.mxu0 %v12149_v28  ;;  %v12662_v28 = vsel %vm2680_vm10, %v2682_v15, %v12650_v11 }
 0x282   :  { %v1412_v10 = vpop.f32.mrb[10].mxu1  ;;  %10435 = vmatprep.subr.bf16.mxu0 %v15148_v43 }
 0x283   :  { %v12647_v4 = vpop.f32.mrb[116].mxu0  ;;  %v9952_v42 = vpop.f32.mrb[11].mxu1 }
 0x284   :  { %v10123_v45 = vpop.f32.mrb[117].mxu0 }
 0x285   :  { %v12652_v51 = vpop.f32.mrb[118].mxu0  ;;  %10110 = vmatmul.mubr.msk.bf16.gmra.mrb[116].mxu1 %vm1349_vm6, %v12169_v17  ;;  %10436 = vmatpush3.bf16.msra.mxu0 %v12166_v57 }
 0x286   :  { %v10124_v47 = vpop.f32.mrb[119].mxu0  ;;  %10133 = vmatprep.mubr.msk.bf16.mxu1 %vm11442_vm3, %v15148_v43  ;;  %10465 = vmatprep.subr.bf16.mxu0 %v15148_v43 }
 0x288   :  { %10410 = vmatmul.mubr.msk.bf16.gmra.mrb[224].mxu0 %vm1349_vm6, %v12662_v28  ;;  %v1486_v7 = vpop.f32.mrb[12].mxu1 }
 0x289   :  { %v1487_v35 = vadd.f32 %v1486_v7, %v1393_v1  ;;  %v9959_v32 = vpop.f32.mrb[13].mxu1  ;;  %10413 = vmatprep.mubr.msk.bf16.mxu0 %vm11442_vm3, %v15148_v43 }
 0x28a   :  { %v1489_v57 = vpop.f32.mrb[14].mxu1 }
 0x28b   :  { %v1490_v17 = vadd.f32 %v1489_v57, %v1396_v29  ;;  %v12668_v0 = vpop.f32.mrb[120].mxu0  ;;  %v9960_v33 = vpop.f32.mrb[15].mxu1 }
 0x28c   :  { %v10127_v39 = vpop.f32.mrb[121].mxu0 }
 0x28d   :  { %v12670_v21 = vpop.f32.mrb[122].mxu0  ;;  %10134 = vmatmul.mubr.msk.bf16.vlgmr.msra.gmra.mrb[120].mxu1 %vm1349_vm6, %v12372_v61 }
 0x28e   :  { %v10128_v15 = vpop.f32.mrb[123].mxu0  ;;  %10162 = vmatpush3.bf16.msra.mxu1 %v12369_v46  ;;  %10137 = vmatprep.mubr.msk.bf16.mxu1 %vm11442_vm3, %v15148_v43 }
 0x28f   :  { %10163 = vmatprep.subr.bf16.mxu1 %v15148_v43 }
 0x290   :  { %10414 = vmatmul.mubr.msk.bf16.gmra.mrb[228].mxu0 %vm1349_vm6, %v12650_v11  ;;  %v1494_v1 = vpop.f32.mrb[16].mxu1 }
 0x291   :  { %v1495_v29 = vadd.f32 %v1494_v1, %v1401_v24  ;;  %v9963_v23 = vpop.f32.mrb[17].mxu1  ;;  %10437 = vmatprep.mubr.msk.bf16.mxu0 %vm11442_vm3, %v15148_v43 }
 0x292   :  { %v1497_v36 = vpop.f32.mrb[18].mxu1  ;;  %10164 = vmatpush3.bf16.msra.mxu1 %v12384_v8 }
 0x293   :  { %v1498_v42 = vadd.f32 %v1497_v36, %v1404_v9  ;;  %v12683_v45 = vpop.f32.mrb[124].mxu0  ;;  %v9964_v46 = vpop.f32.mrb[19].mxu1  ;;  %10193 = vmatprep.subr.bf16.mxu1 %v15148_v43 }
 0x294   :  { %v10151_v47 = vpop.f32.mrb[125].mxu0 }
 0x295   :  { %v12686_v7 = vpop.f32.mrb[126].mxu0  ;;  %10138 = vmatmul.mubr.msk.bf16.gmra.mrb[124].mxu1 %vm1349_vm6, %v12397_v56 }
 0x296   :  { %v10152_v24 = vpop.f32.mrb[127].mxu0  ;;  %10141 = vmatprep.mubr.msk.bf16.mxu1 %vm11442_vm3, %v15148_v43 }
 0x298   :  { %10438 = vmatmul.mubr.msk.bf16.vlgmr.msra.gmra.mrb[232].mxu0 %vm1349_vm6, %v12487_v38  ;;  %v1502_v8 = vpop.f32.mrb[20].mxu1 }
 0x299   :  { %v1503_v9 = vadd.f32 %v1502_v8, %v1409_v62  ;;  %v9967_v32 = vpop.f32.mrb[21].mxu1  ;;  %10441 = vmatprep.mubr.msk.bf16.mxu0 %vm11442_vm3, %v15148_v43  ;;  %10466 = vmatpush3.bf16.msra.mxu0 %v12209_v20 }
 0x29a   :  { %v1505_v57 = vpop.f32.mrb[22].mxu1  ;;  %10467 = vmatprep.subr.bf16.mxu0 %v15148_v43 }
 0x29b   :  { %v1506_v33 = vadd.f32 %v1505_v57, %v1412_v10  ;;  %v12698_v39 = vpop.f32.mrb[128].mxu0  ;;  %v9968_v15 = vpop.f32.mrb[23].mxu1 }
 0x29c   :  { %v10155_v1 = vpop.f32.mrb[129].mxu0 }
 0x29d   :  { %v12700_v23 = vpop.f32.mrb[130].mxu0  ;;  %10142 = vmatmul.mubr.msk.bf16.gmra.mrb[128].mxu1 %vm1349_vm6, %v12389_v40  ;;  %10468 = vmatpush3.bf16.msra.mxu0 %v12224_v13 }
 0x29e   :  { %v10156_v62 = vpop.f32.mrb[131].mxu0  ;;  %10165 = vmatprep.mubr.msk.bf16.mxu1 %vm11442_vm3, %v15148_v43  ;;  %10497 = vmatprep.subr.bf16.mxu0 %v15148_v43 }
 0x2a0   :  { %10442 = vmatmul.mubr.msk.bf16.gmra.mrb[236].mxu0 %vm1349_vm6, %v12500_v59  ;;  %v1593_v20 = vpop.f32.mrb[24].mxu1 }
 0x2a1   :  { %v1616_v10 = vadd.f32 %v1593_v20, %v1487_v35  ;;  %v9975_v36 = vpop.f32.mrb[25].mxu1  ;;  %10445 = vmatprep.mubr.msk.bf16.mxu0 %vm11442_vm3, %v15148_v43 }
 0x2a2   :  { %v1596_v46 = vpop.f32.mrb[26].mxu1 }
 0x2a3   :  { %v1617_v47 = vadd.f32 %v1596_v46, %v1490_v17  ;;  %v12712_v24 = vpop.f32.mrb[132].mxu0  ;;  %v9976_v13 = vpop.f32.mrb[27].mxu1 }
 0x2a4   :  { %v10159_v8 = vpop.f32.mrb[133].mxu0 }
 0x2a5   :  { %v12714_v32 = vpop.f32.mrb[134].mxu0  ;;  %10166 = vmatmul.mubr.msk.bf16.vlgmr.msra.gmra.mrb[132].mxu1 %vm1349_vm6, %v12639_v14 }
 0x2a6   :  { %v10160_v57 = vpop.f32.mrb[135].mxu0  ;;  %10194 = vmatpush3.bf16.msra.mxu1 %v12466_v22  ;;  %10169 = vmatprep.mubr.msk.bf16.mxu1 %vm11442_vm3, %v15148_v43 }
 0x2a7   :  { %10195 = vmatprep.subr.bf16.mxu1 %v15148_v43 }
 0x2a8   :  { %10446 = vmatmul.mubr.msk.bf16.gmra.mrb[240].mxu0 %vm1349_vm6, %v12513_v52  ;;  %v1601_v35 = vpop.f32.mrb[28].mxu1 }
 0x2a9   :  { %v1618_v17 = vadd.f32 %v1601_v35, %v1495_v29  ;;  %v9979_v15 = vpop.f32.mrb[29].mxu1  ;;  %10469 = vmatprep.mubr.msk.bf16.mxu0 %vm11442_vm3, %v15148_v43 }
 0x2aa   :  { %v1604_v1 = vpop.f32.mrb[30].mxu1  ;;  %10196 = vmatpush3.bf16.msra.mxu1 %v12475_v19 }
 0x2ab   :  { %v12727_v14 = vadd.f32 %v1604_v1, %v1498_v42  ;;  %v12729_v22 = vpop.f32.mrb[136].mxu0  ;;  %v9980_v62 = vpop.f32.mrb[31].mxu1  ;;  %10225 = vmatprep.subr.bf16.mxu1 %v15148_v43 }
 0x2ac   :  { %v10183_v20 = vpop.f32.mrb[137].mxu0 }
 0x2ad   :  { %v12732_v36 = vpop.f32.mrb[138].mxu0  ;;  %10170 = vmatmul.mubr.msk.bf16.gmra.mrb[136].mxu1 %vm1349_vm6, %v12662_v28 }
 0x2ae   :  { %v10184_v29 = vpop.f32.mrb[139].mxu0  ;;  %10173 = vmatprep.mubr.msk.bf16.mxu1 %vm11442_vm3, %v15148_v43 }
 0x2b0   :  { %10470 = vmatmul.mubr.msk.bf16.vlgmr.msra.gmra.mrb[244].mxu0 %vm1349_vm6, %v12537_v37  ;;  %v1609_v19 = vpop.f32.mrb[32].mxu1 }
 0x2b1   :  { %v12740_v42 = vadd.f32 %v1609_v19, %v1503_v9  ;;  %v9983_v46 = vpop.f32.mrb[33].mxu1  ;;  %10473 = vmatprep.mubr.msk.bf16.mxu0 %vm11442_vm3, %v15148_v43  ;;  %10498 = vmatpush3.bf16.msra.mxu0 %v12270_v34  ;;  %v4170_v19 = vld [vmem:[#allocation2 + $0x60] sm:$0x7] }
 0x2b2   :  { %v1612_v13 = vpop.f32.mrb[34].mxu1  ;;  %10499 = vmatprep.subr.bf16.mxu0 %v15148_v43 }
 0x2b3   :  { %v12746_v28 = vadd.f32 %v1612_v13, %v1506_v33  ;;  %v12748_v8 = vpop.f32.mrb[140].mxu0  ;;  %v9984_v57 = vpop.f32.mrb[35].mxu1 }
 0x2b4   :  { %v10187_v35 = vpop.f32.mrb[141].mxu0 }
 0x2b5   :  { %v12750_v15 = vpop.f32.mrb[142].mxu0  ;;  %10174 = vmatmul.mubr.msk.bf16.gmra.mrb[140].mxu1 %vm1349_vm6, %v12650_v11  ;;  %10500 = vmatpush3.bf16.msra.mxu0 %v12284_v27  ;;  %v4183_v11 = vshrl.u32 %v12517_v44, 16  ;;  %v4186_v27 = vshll.u32 %v12517_v44, 16  ;;  %v8900_v35 = vcombine.low %v12534_v2, %v4170_v19 }
 0x2b6   :  { %v10188_v37 = vpop.f32.mrb[143].mxu0  ;;  %10197 = vmatprep.mubr.msk.bf16.mxu1 %vm11442_vm3, %v15148_v43  ;;  %10615 = vmatprep.subr.bf16.mxu0 %v15148_v43 }
 0x2b7   :  { %v4185_v44 = vrot.slane %v4183_v11, 1  ;;  %v4192_v11 = vshrl.u32 %v8900_v35, 16 }
 0x2b8   :  { %10474 = vmatmul.mubr.msk.bf16.gmra.mrb[248].mxu0 %vm1349_vm6, %v12566_v30  ;;  %v1708_v34 = vpop.f32.mrb[36].mxu1  ;;  %v4175_v30 = vshrl.u32 %v12524_v12, 16 }
 0x2b9   :  { %v12760_v9 = vadd.f32 %v1708_v34, %v1616_v10  ;;  %v9991_v33 = vpop.f32.mrb[37].mxu1  ;;  %10477 = vmatprep.mubr.msk.bf16.mxu0 %vm11442_vm3, %v15148_v43  ;;  %v4178_v10 = vshll.u32 %v12524_v12, 16 }
 0x2ba   :  { %v1711_v1 = vpop.f32.mrb[38].mxu1  ;;  %v4177_v37 = vrot.slane %v4175_v30, 1 }
 0x2bb   :  { %v12766_v62 = vadd.f32 %v1711_v1, %v1617_v47  ;;  %v12768_v20 = vpop.f32.mrb[144].mxu0  ;;  %v9992_v29 = vpop.f32.mrb[39].mxu1  ;;  %v4188_v47 = vrot.slane %v4186_v27, 2  ;;  %v4180_v34 = vrot.slane %v4178_v10, 2  ;;  %v4195_v27 = vshll.u32 %v8900_v35, 16 }
 0x2bc   :  { %v10191_v46 = vpop.f32.mrb[145].mxu0 }
 0x2bd   :  { %v12772_v13 = vpop.f32.mrb[146].mxu0  ;;  %10198 = vmatmul.mubr.msk.bf16.vlgmr.msra.gmra.mrb[144].mxu1 %vm1349_vm6, %v12487_v38  ;;  %v4189_v1 = vor.u32 %v4188_v47, %v4185_v44  ;;  %v4181_v46 = vor.u32 %v4180_v34, %v4177_v37  ;;  %v4197_v10 = vrot.slane %v4195_v27, 2 }
 0x2be   :  { %v10192_v57 = vpop.f32.mrb[147].mxu0  ;;  %10226 = vmatpush3.bf16.msra.mxu1 %v12547_v50  ;;  %10201 = vmatprep.mubr.msk.bf16.mxu1 %vm11442_vm3, %v15148_v43 }
 0x2bf   :  { %10227 = vmatprep.subr.bf16.mxu1 %v15148_v43 }
 0x2c0   :  { %10478 = vmatmul.mubr.msk.bf16.gmra.mrb[252].mxu0 %vm1349_vm6, %v12551_v63  ;;  %v1716_v12 = vpop.f32.mrb[40].mxu1 }
 0x2c1   :  { %v1733_v33 = vadd.f32 %v1716_v12, %v1618_v17  ;;  %v9995_v38 = vpop.f32.mrb[41].mxu1  ;;  %10501 = vmatprep.mubr.msk.bf16.mxu0 %vm11442_vm3, %v15148_v43 }
 0x2c2   :  { %v1719_v50 = vpop.f32.mrb[42].mxu1  ;;  %10228 = vmatpush3.bf16.msra.mxu1 %v12558_v26  ;;  %v4194_v26 = vrot.slane %v4192_v11, 1 }
 0x2c3   :  { %v1734_v2 = vadd.f32 %v1719_v50, %v12727_v14  ;;  %v12787_v29 = vpop.f32.mrb[148].mxu0  ;;  %v9996_v19 = vpop.f32.mrb[43].mxu1  ;;  %10257 = vmatprep.subr.bf16.mxu1 %v15148_v43  ;;  %v4190_v14 = vsel %vm1762_vm8, %v4181_v46, %v4189_v1 }
 0x2c4   :  { %v10215_v63 = vpop.f32.mrb[149].mxu0  ;;  %v4198_v12 = vor.u32 %v4197_v10, %v4194_v26 }
 0x2c5   :  { %v12790_v17 = vpop.f32.mrb[150].mxu0  ;;  %10202 = vmatmul.mubr.msk.bf16.gmra.mrb[148].mxu1 %vm1349_vm6, %v12500_v59 }
 0x2c6   :  { %v10216_v30 = vpop.f32.mrb[151].mxu0  ;;  %10205 = vmatprep.mubr.msk.bf16.mxu1 %vm11442_vm3, %v15148_v43 }
 0x2c8   :  { %10502 = vmatmul.mubr.msk.bf16.vlgmr.msra.gmra.mrb[0].mxu0 %vm1349_vm6, %v4190_v14  ;;  %v1724_v57 = vpop.f32.mrb[44].mxu1 }
 0x2c9   :  { %v1735_v44 = vadd.f32 %v1724_v57, %v12740_v42  ;;  %v9999_v47 = vpop.f32.mrb[45].mxu1  ;;  %10505 = vmatprep.mubr.msk.bf16.mxu0 %vm11442_vm3, %v15148_v43  ;;  %v4199_v42 = vsel %vm1762_vm8, %v4189_v1, %v4198_v12 }
 0x2ca   :  { %v1727_v35 = vpop.f32.mrb[46].mxu1 }
 0x2cb   :  { %v1736_v59 = vadd.f32 %v1727_v35, %v12746_v28  ;;  %v12802_v37 = vpop.f32.mrb[152].mxu0  ;;  %v10000_v34 = vpop.f32.mrb[47].mxu1  ;;  %v11404_v35 = vld [vmem:[%s15137_s3 + $0x28] sm:$0xff]  }
 0x2cc   :  { %v10219_v38 = vpop.f32.mrb[153].mxu0 }
 0x2cd   :  { %v12804_v50 = vpop.f32.mrb[154].mxu0  ;;  %10206 = vmatmul.mubr.msk.bf16.gmra.mrb[152].mxu1 %vm1349_vm6, %v12513_v52 }
 0x2ce   :  { %v10220_v11 = vpop.f32.mrb[155].mxu0  ;;  %10229 = vmatprep.mubr.msk.bf16.mxu1 %vm11442_vm3, %v15148_v43 }
 0x2d0   :  { %10506 = vmatmul.mubr.msk.bf16.gmra.mrb[4].mxu0 %vm1349_vm6, %v4199_v42  ;;  %v1844_v27 = vpop.f32.mrb[48].mxu1 }
 0x2d1   :  { %v1867_v28 = vadd.f32 %v1844_v27, %v12760_v9  ;;  %v10007_v19 = vpop.f32.mrb[49].mxu1  ;;  %10509 = vmatprep.mubr.msk.bf16.mxu0 %vm11442_vm3, %v15148_v43  ;;  %v11403_v9 = vld [vmem:[%s15137_s3 + $0x20] sm:$0xff]  }
 0x2d2   :  { %v1847_v63 = vpop.f32.mrb[50].mxu1 }
 0x2d3   :  { %v1868_v46 = vadd.f32 %v1847_v63, %v12766_v62  ;;  %v12816_v30 = vpop.f32.mrb[156].mxu0  ;;  %v10008_v52 = vpop.f32.mrb[51].mxu1 }
 0x2d4   :  { %v10223_v26 = vpop.f32.mrb[157].mxu0 }
 0x2d5   :  { %v12818_v10 = vpop.f32.mrb[158].mxu0  ;;  %10230 = vmatmul.mubr.msk.bf16.vlgmr.msra.gmra.mrb[156].mxu1 %vm1349_vm6, %v12372_v61 }
 0x2d6   :  { %15152 = vst [vmem:[#allocation4_spill] sm:$0xff] %v12818_v10  ;;  %v10224_v1 = vpop.f32.mrb[159].mxu0  ;;  %10258 = vmatpush3.bf16.msra.mxu1 %v11403_v9  ;;  %10233 = vmatprep.mubr.msk.bf16.mxu1 %vm11442_vm3, %v15148_v43 }
 0x2d7   :  { %10259 = vmatprep.subr.bf16.mxu1 %v15148_v43 }
 0x2d8   :  { %10510 = vmatmul.mubr.msk.bf16.gmra.mrb[8].mxu0 %vm1349_vm6, %v4198_v12  ;;  %v1852_v62 = vpop.f32.mrb[52].mxu1 }
 0x2d9   :  { %v1869_v14 = vadd.f32 %v1852_v62, %v1733_v33  ;;  %v10011_v57 = vpop.f32.mrb[53].mxu1  ;;  %10619 = vmatprep.mubr.msk.bf16.mxu0 %vm11442_vm3, %v15148_v43 }
 0x2da   :  { %v1855_v47 = vpop.f32.mrb[54].mxu1  ;;  %10260 = vmatpush3.bf16.msra.mxu1 %v11404_v35 }
 0x2db   :  { %v1870_v34 = vadd.f32 %v1855_v47, %v1734_v2  ;;  %v12834_v38 = vpop.f32.mrb[160].mxu0  ;;  %v10012_v11 = vpop.f32.mrb[55].mxu1  ;;  %10289 = vmatprep.subr.bf16.mxu1 %v15148_v43 }
 0x2dc   :  { %15153 = vst [vmem:[#allocation6_spill] sm:$0xff] %v12834_v38  ;;  %v10247_v42 = vpop.f32.mrb[161].mxu0 }
 0x2dd   :  { %v12837_v12 = vpop.f32.mrb[162].mxu0  ;;  %10234 = vmatmul.mubr.msk.bf16.gmra.mrb[160].mxu1 %vm1349_vm6, %v12397_v56 }
 0x2de   :  { %15154 = vst [vmem:[#allocation5_spill] sm:$0xff] %v12837_v12  ;;  %v10248_v33 = vpop.f32.mrb[163].mxu0  ;;  %10237 = vmatprep.mubr.msk.bf16.mxu1 %vm11442_vm3, %v15148_v43 }
 0x2e0   :  { %v1860_v27 = vpop.f32.mrb[56].mxu1 }
 0x2e1   :  { %v1871_v19 = vadd.f32 %v1860_v27, %v1735_v44  ;;  %v10015_v63 = vpop.f32.mrb[57].mxu1 }
 0x2e2   :  { %v1863_v52 = vpop.f32.mrb[58].mxu1 }
 0x2e3   :  { %v1872_v2 = vadd.f32 %v1863_v52, %v1736_v59  ;;  %v12843_v26 = vpop.f32.mrb[164].mxu0  ;;  %v10016_v1 = vpop.f32.mrb[59].mxu1 }
 0x2e4   :  { %15155 = vst [vmem:[#allocation7_spill] sm:$0xff] %v12843_v26  ;;  %v10251_v9 = vpop.f32.mrb[165].mxu0  ;;  %v11405_v1 = vld [vmem:[%s15137_s3 + $0x40] sm:$0xff]  }
 0x2e5   :  { %v12845_v62 = vpop.f32.mrb[166].mxu0  ;;  %10238 = vmatmul.mubr.msk.bf16.gmra.mrb[164].mxu1 %vm1349_vm6, %v12389_v40 }
 0x2e6   :  { %15156 = vst [vmem:[#allocation8_spill] sm:$0xff] %v12845_v62  ;;  %v10252_v57 = vpop.f32.mrb[167].mxu0  ;;  %10261 = vmatprep.mubr.msk.bf16.mxu1 %vm11442_vm3, %v15148_v43 }
 0x2e8   :  { %v1962_v47 = vpop.f32.mrb[60].mxu1 }
 0x2e9   :  { %v1985_v35 = vadd.f32 %v1962_v47, %v1867_v28  ;;  %v10023_v11 = vpop.f32.mrb[61].mxu1  ;;  %v11406_v47 = vld [vmem:[%s15137_s3 + $0x48] sm:$0xff]  }
 0x2ea   :  { %v1965_v44 = vpop.f32.mrb[62].mxu1 }
 0x2eb   :  { %v1986_v42 = vadd.f32 %v1965_v44, %v1868_v46  ;;  %v12851_v33 = vpop.f32.mrb[168].mxu0  ;;  %v10024_v59 = vpop.f32.mrb[63].mxu1 }
 0x2ec   :  { %15157 = vst [vmem:[#allocation9_spill] sm:$0xff] %v12851_v33  ;;  %v10255_v27 = vpop.f32.mrb[169].mxu0 }
 0x2ed   :  { %v12853_v63 = vpop.f32.mrb[170].mxu0  ;;  %10262 = vmatmul.mubr.msk.bf16.vlgmr.msra.gmra.mrb[168].mxu1 %vm1349_vm6, %v12214_v16 }
 0x2ee   :  { %15158 = vst [vmem:[#allocation10_spill] sm:$0xff] %v12853_v63  ;;  %v10256_v52 = vpop.f32.mrb[171].mxu0  ;;  %10290 = vmatpush3.bf16.msra.mxu1 %v11405_v1  ;;  %10265 = vmatprep.mubr.msk.bf16.mxu1 %vm11442_vm3, %v15148_v43 }
 0x2ef   :  { %10291 = vmatprep.subr.bf16.mxu1 %v15148_v43 }
 0x2f0   :  { %v1970_v28 = vpop.f32.mrb[64].mxu1 }
 0x2f1   :  { %v1987_v46 = vadd.f32 %v1970_v28, %v1869_v14  ;;  %v10027_v9 = vpop.f32.mrb[65].mxu1 }
 0x2f2   :  { %v1973_v57 = vpop.f32.mrb[66].mxu1  ;;  %10292 = vmatpush3.bf16.msra.mxu1 %v11406_v47 }
 0x2f3   :  { %v1988_v16 = vadd.f32 %v1973_v57, %v1870_v34  ;;  %v12866_v11 = vpop.f32.mrb[172].mxu0  ;;  %v10028_v44 = vpop.f32.mrb[67].mxu1  ;;  %10321 = vmatprep.subr.bf16.mxu1 %v15148_v43 }
 0x2f4   :  { %15159 = vst [vmem:[#allocation11_spill] sm:$0xff] %v12866_v11  ;;  %v10279_v59 = vpop.f32.mrb[173].mxu0 }
 0x2f5   :  { %v12869_v27 = vpop.f32.mrb[174].mxu0  ;;  %10266 = vmatmul.mubr.msk.bf16.gmra.mrb[172].mxu1 %vm1349_vm6, %v12237_v55 }
 0x2f6   :  { %15160 = vst [vmem:[#allocation12_spill] sm:$0xff] %v12869_v27  ;;  %v10280_v14 = vpop.f32.mrb[175].mxu0  ;;  %10269 = vmatprep.mubr.msk.bf16.mxu1 %vm11442_vm3, %v15148_v43 }
 0x2f8   :  { %v1978_v52 = vpop.f32.mrb[68].mxu1 }
 0x2f9   :  { %v1989_v1 = vadd.f32 %v1978_v52, %v1871_v19  ;;  %v10031_v28 = vpop.f32.mrb[69].mxu1 }
 0x2fa   :  { %v1981_v9 = vpop.f32.mrb[70].mxu1 }
 0x2fb   :  { %v1990_v34 = vadd.f32 %v1981_v9, %v1872_v2  ;;  %v12875_v57 = vpop.f32.mrb[176].mxu0  ;;  %v10032_v47 = vpop.f32.mrb[71].mxu1 }
 0x2fc   :  { %15161 = vst [vmem:[#allocation13_spill] sm:$0xff] %v12875_v57  ;;  %v10283_v44 = vpop.f32.mrb[177].mxu0  ;;  %v12914_v57 = vld [vmem:[#allocation2 + $0x3c] sm:$0xff]  }
 0x2fd   :  { %v12877_v11 = vpop.f32.mrb[178].mxu0  ;;  %10270 = vmatmul.mubr.msk.bf16.gmra.mrb[176].mxu1 %vm1349_vm6, %v12228_v5  ;;  %v12887_v44 = vld [vmem:[#allocation2 + $0x1c] sm:$0xff]  }
 0x2fe   :  { %15162 = vst [vmem:[#allocation14_spill] sm:$0xff] %v12877_v11  ;;  %v10284_v59 = vpop.f32.mrb[179].mxu0  ;;  %10293 = vmatprep.mubr.msk.bf16.mxu1 %vm11442_vm3, %v15148_v43 }
 0x2ff   :  { %v11408_v59 = vld [vmem:[%s15137_s3 + $0x60] sm:$0xff]  }
 0x300   :  { %v2107_v55 = vpop.f32.mrb[72].mxu1 }
 0x301   :  { %v2130_v14 = vadd.f32 %v2107_v55, %v1985_v35  ;;  %v10039_v27 = vpop.f32.mrb[73].mxu1  ;;  %v12897_v55 = vld [vmem:[#allocation2 + $0x38] sm:$0xf] }
 0x302   :  { %v2110_v19 = vpop.f32.mrb[74].mxu1 }
 0x303   :  { %v2131_v52 = vadd.f32 %v2110_v19, %v1986_v42  ;;  %v12883_v28 = vpop.f32.mrb[180].mxu0  ;;  %v10040_v2 = vpop.f32.mrb[75].mxu1 }
 0x304   :  { %15163 = vst [vmem:[#allocation15_spill] sm:$0xff] %v12883_v28  ;;  %v10287_v9 = vpop.f32.mrb[181].mxu0  ;;  %v11409_v2 = vld [vmem:[%s15137_s3 + $0x68] sm:$0xff]  }
 0x305   :  { %v12885_v47 = vpop.f32.mrb[182].mxu0  ;;  %10294 = vmatmul.mubr.msk.bf16.vlgmr.msra.gmra.mrb[180].mxu1 %vm1349_vm6, %v12887_v44 }
 0x306   :  { %15164 = vst [vmem:[#allocation16_spill] sm:$0xff] %v12885_v47  ;;  %v10288_v5 = vpop.f32.mrb[183].mxu0  ;;  %10322 = vmatpush3.bf16.msra.mxu1 %v11408_v59  ;;  %10297 = vmatprep.mubr.msk.bf16.mxu1 %vm11442_vm3, %v15148_v43  ;;  %v3365_v47 = vld [vmem:[#allocation2 + $0x34] sm:$0xf] }
 0x307   :  { %10323 = vmatprep.subr.bf16.mxu1 %v15148_v43  ;;  %v8860_v11 = vcombine.low %v3365_v47, %v12897_v55 }
 0x308   :  { %v2115_v35 = vpop.f32.mrb[76].mxu1 }
 0x309   :  { %v2132_v42 = vadd.f32 %v2115_v35, %v1987_v46  ;;  %v10043_v27 = vpop.f32.mrb[77].mxu1  ;;  %v12908_v35 = vld [vmem:[#allocation2 + $0x24] sm:$0xff]  }
 0x30a   :  { %v2118_v19 = vpop.f32.mrb[78].mxu1  ;;  %10324 = vmatpush3.bf16.msra.mxu1 %v11409_v2 }
 0x30b   :  { %v2133_v9 = vadd.f32 %v2118_v19, %v1988_v16  ;;  %v12902_v5 = vpop.f32.mrb[184].mxu0  ;;  %v10044_v59 = vpop.f32.mrb[79].mxu1  ;;  %10353 = vmatprep.subr.bf16.mxu1 %v15148_v43  ;;  %v3389_v19 = vshll.u32 %v8860_v11, 16 }
 0x30c   :  { %15165 = vst [vmem:[#allocation17_spill] sm:$0xff] %v12902_v5  ;;  %v10311_v28 = vpop.f32.mrb[185].mxu0 }
 0x30d   :  { %v12906_v46 = vpop.f32.mrb[186].mxu0  ;;  %10298 = vmatmul.mubr.msk.bf16.gmra.mrb[184].mxu1 %vm1349_vm6, %v12908_v35  ;;  %v3391_v33 = vrot.slane %v3389_v19, 1 }
 0x30e   :  { %15166 = vst [vmem:[#allocation18_spill] sm:$0xff] %v12906_v46  ;;  %v10312_v27 = vpop.f32.mrb[187].mxu0  ;;  %10301 = vmatprep.mubr.msk.bf16.mxu1 %vm11442_vm3, %v15148_v43 }
 0x310   :  { %v2123_v16 = vpop.f32.mrb[80].mxu1 }
 0x311   :  { %v2134_v2 = vadd.f32 %v2123_v16, %v1989_v1  ;;  %v10047_v59 = vpop.f32.mrb[81].mxu1  ;;  %v3387_v1 = vshrl.u32 %v8860_v11, 16  ;;  %v3394_v16 = vshll.u32 %v12914_v57, 16 }
 0x312   :  { %v2126_v5 = vpop.f32.mrb[82].mxu1 }
 0x313   :  { %v2135_v28 = vadd.f32 %v2126_v5, %v1990_v34  ;;  %v12916_v47 = vpop.f32.mrb[188].mxu0  ;;  %v10048_v46 = vpop.f32.mrb[83].mxu1  ;;  %v3392_v26 = vor.u32 %v3391_v33, %v3387_v1  ;;  %v12925_v34 = vld [vmem:[#allocation2 + $0x44] sm:$0x3f]   ;;  %v3396_v19 = vrot.slane %v3394_v16, 1 }
 0x314   :  { %15167 = vst [vmem:[#allocation19_spill] sm:$0xff] %v12916_v47  ;;  %v10315_v63 = vpop.f32.mrb[189].mxu0  ;;  %v3402_v10 = vshll.u32 %v12925_v34, 16 }
 0x315   :  { %v12918_v62 = vpop.f32.mrb[190].mxu0  ;;  %10302 = vmatmul.mubr.msk.bf16.gmra.mrb[188].mxu1 %vm1349_vm6, %v12309_v60 }
 0x316   :  { %15168 = vst [vmem:[#allocation20_spill] sm:$0xff] %v12918_v62  ;;  %v10316_v27 = vpop.f32.mrb[191].mxu0  ;;  %10325 = vmatprep.mubr.msk.bf16.mxu1 %vm11442_vm3, %v15148_v43 }
 0x317   :  { %v3397_v27 = vsel %vm1313_vm5, %v3392_v26, %v3396_v19  ;;  %v3404_v26 = vrot.slane %v3402_v10, 1 }
 0x318   :  { %v2216_v59 = vpop.f32.mrb[84].mxu1 }
 0x319   :  { %v2239_v5 = vadd.f32 %v2216_v59, %v2130_v14  ;;  %v10055_v46 = vpop.f32.mrb[85].mxu1  ;;  %v11411_v14 = vld [vmem:[%s15137_s3 + $0x80] sm:$0xff]  }
 0x31a   :  { %v2219_v63 = vpop.f32.mrb[86].mxu1  ;;  %v11412_v46 = vld [vmem:[%s15137_s3 + $0x88] sm:$0xff]  }
 0x31b   :  { %v2240_v47 = vadd.f32 %v2219_v63, %v2131_v52  ;;  %v12927_v62 = vpop.f32.mrb[192].mxu0  ;;  %v10056_v12 = vpop.f32.mrb[87].mxu1 }
 0x31c   :  { %15169 = vst [vmem:[#allocation21_spill] sm:$0xff] %v12927_v62  ;;  %v10319_v38 = vpop.f32.mrb[193].mxu0  ;;  %v3398_v12 = vshrl.u32 %v12914_v57, 16 }
 0x31d   :  { %v12931_v11 = vpop.f32.mrb[194].mxu0  ;;  %10326 = vmatmul.mubr.msk.bf16.vlgmr.msra.gmra.mrb[192].mxu1 %vm1349_vm6, %v3397_v27 }
 0x31e   :  { %15170 = vst [vmem:[#allocation22_spill] sm:$0xff] %v12931_v11  ;;  %v10320_v33 = vpop.f32.mrb[195].mxu0  ;;  %10354 = vmatpush3.bf16.msra.mxu1 %v11411_v14  ;;  %10329 = vmatprep.mubr.msk.bf16.mxu1 %vm11442_vm3, %v15148_v43  ;;  %v3400_v59 = vor.u32 %v3398_v12, %v3396_v19 }
 0x31f   :  { %10355 = vmatprep.subr.bf16.mxu1 %v15148_v43 }
 0x320   :  { %v2224_v38 = vpop.f32.mrb[88].mxu1  ;;  %v3405_v11 = vsel %vm1313_vm5, %v3400_v59, %v3404_v26  ;;  %v3579_v59 = vld [vmem:[#allocation2 + $0x34] sm:$0xe] }
 0x321   :  { %v2241_v52 = vadd.f32 %v2224_v38, %v2132_v42  ;;  %v10059_v1 = vpop.f32.mrb[89].mxu1 }
 0x322   :  { %v2227_v16 = vpop.f32.mrb[90].mxu1  ;;  %10356 = vmatpush3.bf16.msra.mxu1 %v11412_v46 }
 0x323   :  { %v2242_v63 = vadd.f32 %v2227_v16, %v2133_v9  ;;  %v12944_v27 = vpop.f32.mrb[196].mxu0  ;;  %v10060_v33 = vpop.f32.mrb[91].mxu1  ;;  %10385 = vmatprep.subr.bf16.mxu1 %v15148_v43  ;;  %v3406_v9 = vshrl.u32 %v12925_v34, 16 }
 0x324   :  { %v10343_v14 = vpop.f32.mrb[197].mxu0 }
 0x325   :  { %v12948_v62 = vpop.f32.mrb[198].mxu0  ;;  %10330 = vmatmul.mubr.msk.bf16.gmra.mrb[196].mxu1 %vm1349_vm6, %v3405_v11  ;;  %v3408_v33 = vor.u32 %v3406_v9, %v3404_v26  ;;  %v3584_v26 = vrot.slane %v12914_v57, 1 }
 0x326   :  { %15171 = vst [vmem:[#allocation23_spill] sm:$0xff] %v12948_v62  ;;  %v10344_v10 = vpop.f32.mrb[199].mxu0  ;;  %10333 = vmatprep.mubr.msk.bf16.mxu1 %vm11442_vm3, %v15148_v43  ;;  %v8872_v62 = vcombine.low %v3579_v59, %v12897_v55 }
 0x328   :  { %v2232_v42 = vpop.f32.mrb[92].mxu1 }
 0x329   :  { %v2243_v19 = vadd.f32 %v2232_v42, %v2134_v2  ;;  %v10063_v38 = vpop.f32.mrb[93].mxu1  ;;  %v3583_v42 = vrot.slane %v8872_v62, 1 }
 0x32a   :  { %v2235_v12 = vpop.f32.mrb[94].mxu1 }
 0x32b   :  { %v2244_v1 = vadd.f32 %v2235_v12, %v2135_v28  ;;  %v12954_v16 = vpop.f32.mrb[200].mxu0  ;;  %v10064_v46 = vpop.f32.mrb[95].mxu1 }
 0x32c   :  { %v10347_v14 = vpop.f32.mrb[201].mxu0 }
 0x32d   :  { %v12957_v11 = vpop.f32.mrb[202].mxu0  ;;  %10334 = vmatmul.mubr.msk.bf16.gmra.mrb[200].mxu1 %vm1349_vm6, %v3408_v33  ;;  %v12970_v33 = vsel %vm1647_vm7, %v3583_v42, %v3584_v26 }
 0x32e   :  { %v10348_v10 = vpop.f32.mrb[203].mxu0  ;;  %10357 = vmatprep.mubr.msk.bf16.mxu1 %vm11442_vm3, %v15148_v43 }
 0x330   :  { %v2307_v2 = vpop.f32.mrb[96].mxu1 }
 0x331   :  { %v12962_v38 = vadd.f32 %v2307_v2, %v2239_v5  ;;  %v10071_v28 = vpop.f32.mrb[97].mxu1  ;;  %v11413_v5 = vld [vmem:[%s15137_s3] sm:$0xff]  }
 0x332   :  { %v2310_v12 = vpop.f32.mrb[98].mxu1  ;;  %v11414_v28 = vld [vmem:[%s15137_s3 + $0x8] sm:$0xff]  }
 0x333   :  { %v12965_v9 = vadd.f32 %v2310_v12, %v2240_v47  ;;  %v12967_v46 = vpop.f32.mrb[204].mxu0  ;;  %v10072_v55 = vpop.f32.mrb[99].mxu1  ;;  %v12983_v47 = vrot.slane %v12925_v34, 1 }
 0x334   :  { %v10351_v59 = vpop.f32.mrb[205].mxu0 }
 0x335   :  { %v12972_v14 = vpop.f32.mrb[206].mxu0  ;;  %10358 = vmatmul.mubr.msk.bf16.vlgmr.msra.gmra.mrb[204].mxu1 %vm1349_vm6, %v12970_v33  ;;  %v12997_v34 = vsel %vm1647_vm7, %v3584_v26, %v12983_v47 }
 0x336   :  { %15172 = vst [vmem:[#allocation24_spill] sm:$0xff] %v12972_v14  ;;  %v10352_v62 = vpop.f32.mrb[207].mxu0  ;;  %10386 = vmatpush3.bf16.msra.mxu1 %v11413_v5  ;;  %10361 = vmatprep.mubr.msk.bf16.mxu1 %vm11442_vm3, %v15148_v43 }
 0x337   :  { %10387 = vmatprep.subr.bf16.mxu1 %v15148_v43 }
 0x338   :  { %v2315_v57 = vpop.f32.mrb[100].mxu1 }
 0x339   :  { %v12985_v10 = vadd.f32 %v2315_v57, %v2241_v52  ;;  %v10075_v2 = vpop.f32.mrb[101].mxu1 }
 0x33a   :  { %v2318_v42 = vpop.f32.mrb[102].mxu1  ;;  %10388 = vmatpush3.bf16.msra.mxu1 %v11414_v28 }
 0x33b   :  { %v12990_v12 = vadd.f32 %v2318_v42, %v2242_v63  ;;  %v12992_v55 = vpop.f32.mrb[208].mxu0  ;;  %v10076_v59 = vpop.f32.mrb[103].mxu1  ;;  %10417 = vmatprep.subr.bf16.mxu1 %v15148_v43 }
 0x33c   :  { %15173 = vst [vmem:[#allocation25_spill] sm:$0xff] %v12992_v55  ;;  %v10375_v62 = vpop.f32.mrb[209].mxu0 }
 0x33d   :  { %v12999_v52 = vpop.f32.mrb[210].mxu0  ;;  %10362 = vmatmul.mubr.msk.bf16.gmra.mrb[208].mxu1 %vm1349_vm6, %v12997_v34 }
 0x33e   :  { %15174 = vst [vmem:[#allocation26_spill] sm:$0xff] %v12999_v52  ;;  %v10376_v5 = vpop.f32.mrb[211].mxu0  ;;  %10365 = vmatprep.mubr.msk.bf16.mxu1 %vm11442_vm3, %v15148_v43 }
 0x340   :  { %v2323_v63 = vpop.f32.mrb[104].mxu1 }
 0x341   :  { %v13005_v57 = vadd.f32 %v2323_v63, %v2243_v19  ;;  %v10079_v2 = vpop.f32.mrb[105].mxu1 }
 0x342   :  { %v2326_v42 = vpop.f32.mrb[106].mxu1 }
 0x343   :  { %v13007_v28 = vadd.f32 %v2326_v42, %v2244_v1  ;;  %v13009_v59 = vpop.f32.mrb[212].mxu0  ;;  %v10080_v26 = vpop.f32.mrb[107].mxu1 }
 0x344   :  { %15175 = vst [vmem:[#allocation27_spill] sm:$0xff] %v13009_v59  ;;  %v10379_v62 = vpop.f32.mrb[213].mxu0 }
 0x345   :  { %v13011_v55 = vpop.f32.mrb[214].mxu0  ;;  %10366 = vmatmul.mubr.msk.bf16.gmra.mrb[212].mxu1 %vm1349_vm6, %v12983_v47 }
 0x346   :  { %15176 = vst [vmem:[#allocation28_spill] sm:$0xff] %v13011_v55  ;;  %v10380_v5 = vpop.f32.mrb[215].mxu0  ;;  %10389 = vmatprep.mubr.msk.bf16.mxu1 %vm11442_vm3, %v15148_v43 }
 0x348   :  { %v2446_v52 = vpop.f32.mrb[108].mxu1 }
 0x349   :  { %v2447_v19 = vadd.f32 %v2446_v52, %v12583_v54  ;;  %v10103_v63 = vpop.f32.mrb[109].mxu1  ;;  %v11415_v54 = vld [vmem:[%s15137_s3 + $0x30] sm:$0xff]  }
 0x34a   :  { %v2449_v2 = vpop.f32.mrb[110].mxu1 }
 0x34b   :  { %v2450_v1 = vadd.f32 %v2449_v2, %v12586_v3  ;;  %v13019_v42 = vpop.f32.mrb[216].mxu0  ;;  %v10104_v26 = vpop.f32.mrb[111].mxu1  ;;  %v2544_v62 = vadd.f32 %v12628_v49, %v2447_v19 }
 0x34c   :  { %v10383_v55 = vpop.f32.mrb[217].mxu0 }
 0x34d   :  { %v13022_v59 = vpop.f32.mrb[218].mxu0  ;;  %10390 = vmatmul.mubr.msk.bf16.vlgmr.msra.gmra.mrb[216].mxu1 %vm1349_vm6, %v12372_v61  ;;  %v2545_v5 = vadd.f32 %v12632_v6, %v2450_v1  ;;  %v11416_v61 = vld [vmem:[%s15137_s3 + $0x38] sm:$0xff]  }
 0x34e   :  { %v10384_v14 = vpop.f32.mrb[219].mxu0  ;;  %10418 = vmatpush3.bf16.msra.mxu1 %v11415_v54  ;;  %10393 = vmatprep.mubr.msk.bf16.mxu1 %vm11442_vm3, %v15148_v43 }
 0x34f   :  { %10419 = vmatprep.subr.bf16.mxu1 %v15148_v43 }
 0x350   :  { %v2454_v3 = vpop.f32.mrb[112].mxu1 }
 0x351   :  { %v2455_v49 = vadd.f32 %v2454_v3, %v12598_v48  ;;  %v10107_v55 = vpop.f32.mrb[113].mxu1 }
 0x352   :  { %v2457_v52 = vpop.f32.mrb[114].mxu1  ;;  %10420 = vmatpush3.bf16.msra.mxu1 %v11416_v61 }
 0x353   :  { %v2458_v6 = vadd.f32 %v2457_v52, %v12600_v41  ;;  %v13038_v14 = vpop.f32.mrb[220].mxu0  ;;  %v10108_v19 = vpop.f32.mrb[115].mxu1  ;;  %10449 = vmatprep.subr.bf16.mxu1 %v15148_v43  ;;  %v2546_v63 = vadd.f32 %v12647_v4, %v2455_v49 }
 0x354   :  { %v10407_v2 = vpop.f32.mrb[221].mxu0 }
 0x355   :  { %v13042_v1 = vpop.f32.mrb[222].mxu0  ;;  %10394 = vmatmul.mubr.msk.bf16.gmra.mrb[220].mxu1 %vm1349_vm6, %v12397_v56  ;;  %v2547_v48 = vadd.f32 %v12652_v51, %v2458_v6 }
 0x356   :  { %v10408_v26 = vpop.f32.mrb[223].mxu0  ;;  %10397 = vmatprep.mubr.msk.bf16.mxu1 %vm11442_vm3, %v15148_v43 }
 0x358   :  { %v2462_v41 = vpop.f32.mrb[116].mxu1 }
 0x359   :  { %v2463_v54 = vadd.f32 %v2462_v41, %v12612_v58  ;;  %v10111_v3 = vpop.f32.mrb[117].mxu1 }
 0x35a   :  { %v2465_v55 = vpop.f32.mrb[118].mxu1 }
 0x35b   :  { %v2466_v52 = vadd.f32 %v2465_v55, %v12614_v53  ;;  %v13051_v4 = vpop.f32.mrb[224].mxu0  ;;  %v10112_v49 = vpop.f32.mrb[119].mxu1  ;;  %v2548_v61 = vadd.f32 %v12668_v0, %v2463_v54 }
 0x35c   :  { %v10411_v19 = vpop.f32.mrb[225].mxu0 }
 0x35d   :  { %v13054_v56 = vpop.f32.mrb[226].mxu0  ;;  %10398 = vmatmul.mubr.msk.bf16.gmra.mrb[224].mxu1 %vm1349_vm6, %v12389_v40  ;;  %v2549_v51 = vadd.f32 %v12670_v21, %v2466_v52 }
 0x35e   :  { %v10412_v6 = vpop.f32.mrb[227].mxu0  ;;  %10421 = vmatprep.mubr.msk.bf16.mxu1 %vm11442_vm3, %v15148_v43 }
 0x360   :  { %v2584_v58 = vpop.f32.mrb[120].mxu1 }
 0x361   :  { %v2607_v2 = vadd.f32 %v2584_v58, %v2544_v62  ;;  %v10135_v53 = vpop.f32.mrb[121].mxu1  ;;  %v11417_v62 = vld [vmem:[%s15137_s3 + $0x50] sm:$0xff]  }
 0x362   :  { %v2587_v26 = vpop.f32.mrb[122].mxu1 }
 0x363   :  { %v2608_v41 = vadd.f32 %v2587_v26, %v2545_v5  ;;  %v13061_v3 = vpop.f32.mrb[228].mxu0  ;;  %v10136_v0 = vpop.f32.mrb[123].mxu1  ;;  %v2670_v54 = vadd.f32 %v12683_v45, %v2607_v2 }
 0x364   :  { %v10415_v55 = vpop.f32.mrb[229].mxu0 }
 0x365   :  { %v13064_v49 = vpop.f32.mrb[230].mxu0  ;;  %10422 = vmatmul.mubr.msk.bf16.vlgmr.msra.gmra.mrb[228].mxu1 %vm1349_vm6, %v12887_v44  ;;  %v2671_v40 = vadd.f32 %v12686_v7, %v2608_v41  ;;  %v11418_v44 = vld [vmem:[%s15137_s3 + $0x58] sm:$0xff]  }
 0x366   :  { %v10416_v21 = vpop.f32.mrb[231].mxu0  ;;  %10450 = vmatpush3.bf16.msra.mxu1 %v11417_v62  ;;  %10425 = vmatprep.mubr.msk.bf16.mxu1 %vm11442_vm3, %v15148_v43 }
 0x367   :  { %10451 = vmatprep.subr.bf16.mxu1 %v15148_v43 }
 0x368   :  { %v2592_v45 = vpop.f32.mrb[124].mxu1 }
 0x369   :  { %v2609_v5 = vadd.f32 %v2592_v45, %v2546_v63  ;;  %v10139_v52 = vpop.f32.mrb[125].mxu1 }
 0x36a   :  { %v2595_v19 = vpop.f32.mrb[126].mxu1  ;;  %10452 = vmatpush3.bf16.msra.mxu1 %v11418_v44 }
 0x36b   :  { %v2610_v7 = vadd.f32 %v2595_v19, %v2547_v48  ;;  %v13078_v6 = vpop.f32.mrb[232].mxu0  ;;  %v10140_v58 = vpop.f32.mrb[127].mxu1  ;;  %10481 = vmatprep.subr.bf16.mxu1 %v15148_v43  ;;  %v2672_v2 = vadd.f32 %v12698_v39, %v2609_v5 }
 0x36c   :  { %v10439_v53 = vpop.f32.mrb[233].mxu0 }
 0x36d   :  { %v13082_v26 = vpop.f32.mrb[234].mxu0  ;;  %10426 = vmatmul.mubr.msk.bf16.gmra.mrb[232].mxu1 %vm1349_vm6, %v12908_v35  ;;  %v2673_v63 = vadd.f32 %v12700_v23, %v2610_v7 }
 0x36e   :  { %v10440_v41 = vpop.f32.mrb[235].mxu0  ;;  %10429 = vmatprep.mubr.msk.bf16.mxu1 %vm11442_vm3, %v15148_v43 }
 0x370   :  { %v2600_v48 = vpop.f32.mrb[128].mxu1 }
 0x371   :  { %v2611_v0 = vadd.f32 %v2600_v48, %v2548_v61  ;;  %v10143_v55 = vpop.f32.mrb[129].mxu1 }
 0x372   :  { %v2603_v21 = vpop.f32.mrb[130].mxu1 }
 0x373   :  { %v2612_v62 = vadd.f32 %v2603_v21, %v2549_v51  ;;  %v13089_v45 = vpop.f32.mrb[236].mxu0  ;;  %v10144_v39 = vpop.f32.mrb[131].mxu1  ;;  %v2674_v5 = vadd.f32 %v12712_v24, %v2611_v0 }
 0x374   :  { %v10443_v52 = vpop.f32.mrb[237].mxu0 }
 0x375   :  { %v13092_v19 = vpop.f32.mrb[238].mxu0  ;;  %10430 = vmatmul.mubr.msk.bf16.gmra.mrb[236].mxu1 %vm1349_vm6, %v12309_v60  ;;  %v2675_v23 = vadd.f32 %v12714_v32, %v2612_v62  ;;  %v15177_v52 = vld [vmem:[#allocation3_spill] sm:$0xff] }
 0x376   :  { %v10444_v35 = vpop.f32.mrb[239].mxu0  ;;  %10453 = vmatprep.mubr.msk.bf16.mxu1 %vm11442_vm3, %v15148_v43 }
 0x378   :  { %v2729_v61 = vpop.f32.mrb[132].mxu1 }
 0x379   :  { %v2752_v44 = vadd.f32 %v2729_v61, %v2670_v54  ;;  %v10167_v51 = vpop.f32.mrb[133].mxu1  ;;  %v11419_v54 = vld [vmem:[%s15137_s3 + $0x70] sm:$0xff]  }
 0x37a   :  { %v2732_v7 = vpop.f32.mrb[134].mxu1 }
 0x37b   :  { %v2753_v58 = vadd.f32 %v2732_v7, %v2671_v40  ;;  %v13099_v53 = vpop.f32.mrb[240].mxu0  ;;  %v10168_v24 = vpop.f32.mrb[135].mxu1  ;;  %v2815_v41 = vadd.f32 %v12729_v22, %v2752_v44 }
 0x37c   :  { %v10447_v48 = vpop.f32.mrb[241].mxu0 }
 0x37d   :  { %v13102_v0 = vpop.f32.mrb[242].mxu0  ;;  %10454 = vmatmul.mubr.msk.bf16.vlgmr.msra.gmra.mrb[240].mxu1 %vm1349_vm6, %v12338_v25  ;;  %v2816_v60 = vadd.f32 %v12732_v36, %v2753_v58  ;;  %v11420_v25 = vld [vmem:[%s15137_s3 + $0x78] sm:$0xff]  }
 0x37e   :  { %v10448_v32 = vpop.f32.mrb[243].mxu0  ;;  %10482 = vmatpush3.bf16.msra.mxu1 %v11419_v54  ;;  %10457 = vmatprep.mubr.msk.bf16.mxu1 %vm11442_vm3, %v15148_v43 }
 0x37f   :  { %10483 = vmatprep.subr.bf16.mxu1 %v15148_v43 }
 0x380   :  { %v2737_v22 = vpop.f32.mrb[136].mxu1 }
 0x381   :  { %v2754_v40 = vadd.f32 %v2737_v22, %v2672_v2  ;;  %v10171_v55 = vpop.f32.mrb[137].mxu1 }
 0x382   :  { %v2740_v21 = vpop.f32.mrb[138].mxu1  ;;  %10484 = vmatpush3.bf16.msra.mxu1 %v11420_v25 }
 0x383   :  { %v2755_v36 = vadd.f32 %v2740_v21, %v2673_v63  ;;  %v13116_v62 = vpop.f32.mrb[244].mxu0  ;;  %v10172_v39 = vpop.f32.mrb[139].mxu1  ;;  %10513 = vmatprep.subr.bf16.mxu1 %v15177_v52  ;;  %v2817_v35 = vadd.f32 %v12748_v8, %v2754_v40 }
 0x384   :  { %v10471_v61 = vpop.f32.mrb[245].mxu0 }
 0x385   :  { %v13120_v44 = vpop.f32.mrb[246].mxu0  ;;  %10458 = vmatmul.mubr.msk.bf16.gmra.mrb[244].mxu1 %vm1349_vm6, %v12358_v31  ;;  %v2818_v2 = vadd.f32 %v12750_v15, %v2755_v36 }
 0x386   :  { %v10472_v51 = vpop.f32.mrb[247].mxu0  ;;  %10461 = vmatprep.mubr.msk.bf16.mxu1 %vm11442_vm3, %v15148_v43 }
 0x388   :  { %v2745_v63 = vpop.f32.mrb[140].mxu1 }
 0x389   :  { %v2756_v7 = vadd.f32 %v2745_v63, %v2674_v5  ;;  %v10175_v58 = vpop.f32.mrb[141].mxu1  ;;  %v13140_v5 = vld [vmem:[%s15139_s4] ss:$0 sm:$0xff] }
 0x38a   :  { %v2748_v24 = vpop.f32.mrb[142].mxu1  ;;  %v2343_v25 = vadd.f32 %v13140_v5, %v12962_v38  ;;  %v2344_v51 = vadd.f32 %v13140_v5, %v12965_v9 }
 0x38b   :  { %v2757_v48 = vadd.f32 %v2748_v24, %v2675_v23  ;;  %v13127_v32 = vpop.f32.mrb[248].mxu0  ;;  %v10176_v8 = vpop.f32.mrb[143].mxu1  ;;  %v2819_v54 = vadd.f32 %v12768_v20, %v2756_v7 }
 0x38c   :  { %v10475_v22 = vpop.f32.mrb[249].mxu0  ;;  %v2350_v24 = vmax.f32 %v2344_v51, 0.0 }
 0x38d   :  { %v13130_v40 = vpop.f32.mrb[250].mxu0  ;;  %10462 = vmatmul.mubr.msk.bf16.gmra.mrb[248].mxu1 %vm1349_vm6, %v12377_v18  ;;  %v2820_v31 = vadd.f32 %v12772_v13, %v2757_v48 }
 0x38e   :  { %v10476_v15 = vpop.f32.mrb[251].mxu0  ;;  %10485 = vmatprep.mubr.msk.bf16.mxu1 %vm11442_vm3, %v15148_v43 }
 0x390   :  { %v2855_v23 = vpop.f32.mrb[144].mxu1 }
 0x391   :  { %v2878_v55 = vadd.f32 %v2855_v23, %v2815_v41  ;;  %v10199_v20 = vpop.f32.mrb[145].mxu1 }
 0x392   :  { %v2858_v21 = vpop.f32.mrb[146].mxu1 }
 0x393   :  { %v2975_v18 = vadd.f32 %v12787_v29, %v2878_v55  ;;  %v2879_v36 = vadd.f32 %v2858_v21, %v2816_v60  ;;  %v13145_v13 = vpop.f32.mrb[252].mxu0  ;;  %v10200_v39 = vpop.f32.mrb[147].mxu1  ;;  %v2349_v29 = vmax.f32 %v2343_v25, 0.0 }
 0x394   :  { %v10479_v61 = vpop.f32.mrb[253].mxu0 }
 0x395   :  { %v2981_v63 = vadd.f32 %v13140_v5, %v2975_v18  ;;  %v2976_v7 = vadd.f32 %v12790_v17, %v2879_v36  ;;  %v13151_v41 = vpop.f32.mrb[254].mxu0  ;;  %10486 = vmatmul.mubr.msk.bf16.vlgmr.msra.gmra.mrb[252].mxu1 %vm1349_vm6, %v12970_v33  ;;  %v2346_v18 = vadd.f32 %v13140_v5, %v12990_v12 }
 0x396   :  { %v10480_v38 = vpop.f32.mrb[255].mxu0  ;;  %10514 = vmatpush3.bf16.msra.mxu1 %v15177_v52  ;;  %10489 = vmatprep.mubr.msk.bf16.mxu1 %vm11442_vm3, %v15148_v43  ;;  %v2345_v52 = vadd.f32 %v13140_v5, %v12985_v10 }
 0x397   :  { %v2987_v60 = vmax.f32 %v2981_v63, 0.0  ;;  %v2982_v58 = vadd.f32 %v13140_v5, %v2976_v7  ;;  %10759 = vmatprep.subr.bf16.mxu1 %v15148_v43  ;;  %v2352_v63 = vmax.f32 %v2346_v18, 0.0 }
 0x398   :  { %v2863_v9 = vpop.f32.mrb[148].mxu1  ;;  %v2351_v10 = vmax.f32 %v2345_v52, 0.0  ;;  %v15178_v52 = vld [vmem:[#allocation4_spill] sm:$0xff] }
 0x399   :  { %v2988_v17 = vmax.f32 %v2982_v58, 0.0  ;;  %v2880_v48 = vadd.f32 %v2863_v9, %v2817_v35  ;;  %v10203_v8 = vpop.f32.mrb[149].mxu1  ;;  %v13160_v22 = vmax.f32 %v2349_v29, %v2987_v60  ;;  %v2347_v60 = vadd.f32 %v13140_v5, %v13005_v57 }
 0x39a   :  { %v2866_v33 = vpop.f32.mrb[150].mxu1  ;;  %v2348_v8 = vadd.f32 %v13140_v5, %v13007_v28  ;;  %v15179_v28 = vld [vmem:[#allocation6_spill] sm:$0xff] }
 0x39b   :  { %v2977_v15 = vadd.f32 %v12802_v37, %v2880_v48  ;;  %v2881_v23 = vadd.f32 %v2866_v33, %v2818_v2  ;;  %v13165_v55 = vpop.f32.mrb[0].mxu0  ;;  %v10204_v20 = vpop.f32.mrb[151].mxu1  ;;  %v13167_v21 = vmax.f32 %v2350_v24, %v2988_v17  ;;  %v2353_v57 = vmax.f32 %v2347_v60, 0.0 }
 0x39c   :  { %v10503_v25 = vpop.f32.mrb[1].mxu0  ;;  %v2354_v18 = vmax.f32 %v2348_v8, 0.0  ;;  %v11301_v8 = vld [vmem:[%s15136_s0 + $0x1a8] sm:$0xff]  }
 0x39d   :  { %v2983_v35 = vadd.f32 %v13140_v5, %v2977_v15  ;;  %v2978_v36 = vadd.f32 %v12804_v50, %v2881_v23  ;;  %v13173_v39 = vpop.f32.mrb[2].mxu0  ;;  %10490 = vmatmul.mubr.msk.bf16.gmra.mrb[0].mxu1 %vm1349_vm6, %v12997_v34  ;;  %v11298_v34 = vld [vmem:[%s15136_s0 + $0x190] sm:$0xff]  }
 0x39e   :  { %v10504_v37 = vpop.f32.mrb[3].mxu0  ;;  %10493 = vmatprep.mubr.msk.bf16.mxu1 %vm11442_vm3, %v15148_v43 }
 0x39f   :  { %v2989_v2 = vmax.f32 %v2983_v35, 0.0  ;;  %v2984_v61 = vadd.f32 %v13140_v5, %v2978_v36 }
 0x3a0   :  { %v2871_v51 = vpop.f32.mrb[152].mxu1 }
 0x3a1   :  { %v2990_v12 = vmax.f32 %v2984_v61, 0.0  ;;  %v2882_v7 = vadd.f32 %v2871_v51, %v2819_v54  ;;  %v10207_v38 = vpop.f32.mrb[153].mxu1  ;;  %v13180_v29 = vmax.f32 %v2351_v10, %v2989_v2  ;;  %v11299_v10 = vld [vmem:[%s15136_s0 + $0x198] sm:$0xff]   ;;  %v11300_v61 = vld [vmem:[%s15136_s0 + $0x1a0] sm:$0xff]  }
 0x3a2   :  { %v2874_v50 = vpop.f32.mrb[154].mxu1  ;;  %v15180_v51 = vld [vmem:[#allocation5_spill] sm:$0xff] }
 0x3a3   :  { %v2979_v58 = vadd.f32 %v12816_v30, %v2882_v7  ;;  %v2883_v9 = vadd.f32 %v2874_v50, %v2820_v31  ;;  %v13188_v24 = vpop.f32.mrb[4].mxu0  ;;  %v10208_v17 = vpop.f32.mrb[155].mxu1  ;;  %v13190_v48 = vmax.f32 %v2352_v63, %v2990_v12 }
 0x3a4   :  { %v10507_v54 = vpop.f32.mrb[5].mxu0 }
 0x3a5   :  { %v2985_v33 = vadd.f32 %v13140_v5, %v2979_v58  ;;  %v2980_v15 = vadd.f32 %v15178_v52, %v2883_v9  ;;  %v13196_v23 = vpop.f32.mrb[6].mxu0  ;;  %10494 = vmatmul.mubr.msk.bf16.gmra.mrb[4].mxu1 %vm1349_vm6, %v12983_v47  ;;  %v15181_v9 = vld [vmem:[#allocation7_spill] sm:$0xff]  ;;  %v11302_v52 = vld [vmem:[%s15136_s0 + $0x1b0] sm:$0xff]  }
 0x3a6   :  { %v10508_v30 = vpop.f32.mrb[7].mxu0  ;;  %10515 = vmatprep.mubr.msk.bf16.mxu1 %vm385_vm2, %v11298_v34 }
 0x3a7   :  { %v2991_v31 = vmax.f32 %v2985_v33, 0.0  ;;  %v2986_v20 = vadd.f32 %v13140_v5, %v2980_v15  ;;  %v15182_v15 = vld [vmem:[#allocation8_spill] sm:$0xff] }
 0x3a8   :  { %v3033_v25 = vpop.f32.mrb[156].mxu1 }
 0x3a9   :  { %v2992_v35 = vmax.f32 %v2986_v20, 0.0  ;;  %v3091_v36 = vadd.f32 %v15179_v28, %v3033_v25  ;;  %v10231_v37 = vpop.f32.mrb[157].mxu1  ;;  %v13206_v2 = vmax.f32 %v2353_v57, %v2991_v31  ;;  %v15183_v20 = vld [vmem:[#allocation9_spill] sm:$0xff] }
 0x3aa   :  { %v3036_v47 = vpop.f32.mrb[158].mxu1  ;;  %v11304_v37 = vld [vmem:[%s15136_s0 + $0x1c0] sm:$0xff]  }
 0x3ab   :  { %v3094_v63 = vadd.f32 %v15180_v51, %v3036_v47  ;;  %v13212_v12 = vpop.f32.mrb[8].mxu0  ;;  %v10232_v7 = vpop.f32.mrb[159].mxu1  ;;  %v13214_v38 = vmax.f32 %v2354_v18, %v2992_v35  ;;  %v11303_v35 = vld [vmem:[%s15136_s0 + $0x1b8] sm:$0xff]  }
 0x3ac   :  { %v10511_v50 = vpop.f32.mrb[9].mxu0 }
 0x3ad   :  { %v13216_v34 = vpop.f32.mrb[10].mxu0  ;;  %10516 = vmatmul.mubr.msk.bf16.vlgmr.msra.gmra.mrb[8].mxu1 %vm385_vm2, %v11299_v10  ;;  %v15184_v10 = vld [vmem:[#allocation10_spill] sm:$0xff] }
 0x3ae   :  { %v10512_v60 = vpop.f32.mrb[11].mxu0  ;;  %10519 = vmatprep.mubr.msk.bf16.mxu1 %vm385_vm2, %v11300_v61 }
 0x3af   :  { %v11305_v60 = vld [vmem:[%s15136_s0 + $0x1c8] sm:$0xff]  }
 0x3b0   :  { %v3041_v58 = vpop.f32.mrb[160].mxu1 }
 0x3b1   :  { %v3099_v17 = vadd.f32 %v15181_v9, %v3041_v58  ;;  %v10235_v54 = vpop.f32.mrb[161].mxu1  ;;  %v11306_v9 = vld [vmem:[%s15136_s0 + $0x1d0] sm:$0xff]  }
 0x3b2   :  { %v3044_v33 = vpop.f32.mrb[162].mxu1 }
 0x3b3   :  { %v3102_v30 = vadd.f32 %v15182_v15, %v3044_v33  ;;  %v10236_v57 = vpop.f32.mrb[163].mxu1  ;;  %v15185_v33 = vld [vmem:[#allocation11_spill] sm:$0xff]  ;;  %v15186_v15 = vld [vmem:[#allocation12_spill] sm:$0xff] }
 0x3b5   :  { %10520 = vmatmul.mubr.msk.bf16.gmra.mrb[12].mxu1 %vm385_vm2, %v11301_v8 }
 0x3b6   :  { %10523 = vmatprep.mubr.msk.bf16.mxu1 %vm385_vm2, %v11302_v52 }
 0x3b8   :  { %v3049_v31 = vpop.f32.mrb[164].mxu1 }
 0x3b9   :  { %v3107_v25 = vadd.f32 %v15183_v20, %v3049_v31  ;;  %v10239_v18 = vpop.f32.mrb[165].mxu1 }
 0x3ba   :  { %v3052_v28 = vpop.f32.mrb[166].mxu1  ;;  %v11307_v18 = vld [vmem:[%s15136_s0 + $0x1d8] sm:$0xff]  }
 0x3bb   :  { %v3110_v47 = vadd.f32 %v15184_v10, %v3052_v28  ;;  %v10240_v61 = vpop.f32.mrb[167].mxu1  ;;  %v15187_v10 = vld [vmem:[#allocation13_spill] sm:$0xff] }
 0x3bd   :  { %10524 = vmatmul.mubr.msk.bf16.gmra.mrb[16].mxu1 %vm385_vm2, %v11303_v35 }
 0x3be   :  { %10527 = vmatprep.mubr.msk.bf16.mxu1 %vm385_vm2, %v11304_v37 }
 0x3c0   :  { %v3147_v51 = vpop.f32.mrb[168].mxu1 }
 0x3c1   :  { %v3170_v7 = vadd.f32 %v3147_v51, %v3091_v36  ;;  %v10263_v50 = vpop.f32.mrb[169].mxu1  ;;  %v15188_v51 = vld [vmem:[#allocation14_spill] sm:$0xff] }
 0x3c2   :  { %v3150_v58 = vpop.f32.mrb[170].mxu1 }
 0x3c3   :  { %v3171_v54 = vadd.f32 %v3150_v58, %v3094_v63  ;;  %v10264_v8 = vpop.f32.mrb[171].mxu1  ;;  %v3233_v52 = vadd.f32 %v15185_v33, %v3170_v7  ;;  %v11308_v63 = vld [vmem:[%s15136_s0 + $0x1e0] sm:$0xff]   ;;  %v11309_v58 = vld [vmem:[%s15136_s0 + $0x1e8] sm:$0xff]  }
 0x3c4   :  { %v15189_v33 = vld [vmem:[#allocation15_spill] sm:$0xff] }
 0x3c5   :  { %10528 = vmatmul.mubr.msk.bf16.gmra.mrb[20].mxu1 %vm385_vm2, %v11305_v60  ;;  %v3234_v57 = vadd.f32 %v15186_v15, %v3171_v54 }
 0x3c6   :  { %10531 = vmatprep.mubr.msk.bf16.mxu1 %vm385_vm2, %v11306_v9 }
 0x3c8   :  { %v3155_v36 = vpop.f32.mrb[172].mxu1 }
 0x3c9   :  { %v3172_v31 = vadd.f32 %v3155_v36, %v3099_v17  ;;  %v10267_v20 = vpop.f32.mrb[173].mxu1  ;;  %v15190_v36 = vld [vmem:[#allocation16_spill] sm:$0xff] }
 0x3ca   :  { %v3158_v35 = vpop.f32.mrb[174].mxu1 }
 0x3cb   :  { %v3173_v28 = vadd.f32 %v3158_v35, %v3102_v30  ;;  %v10268_v37 = vpop.f32.mrb[175].mxu1  ;;  %v3235_v61 = vadd.f32 %v15187_v10, %v3172_v31  ;;  %v11310_v30 = vld [vmem:[%s15136_s0 + $0x1f0] sm:$0xff]   ;;  %v11311_v35 = vld [vmem:[%s15136_s0 + $0x1f8] sm:$0xff]  }
 0x3cc   :  { %v15191_v10 = vld [vmem:[#allocation17_spill] sm:$0xff] }
 0x3cd   :  { %10532 = vmatmul.mubr.msk.bf16.gmra.mrb[24].mxu1 %vm385_vm2, %v11307_v18  ;;  %v3236_v7 = vadd.f32 %v15188_v51, %v3173_v28 }
 0x3ce   :  { %10535 = vmatprep.mubr.msk.bf16.mxu1 %vm385_vm2, %v11308_v63 }
 0x3d0   :  { %v3163_v17 = vpop.f32.mrb[176].mxu1 }
 0x3d1   :  { %v3174_v50 = vadd.f32 %v3163_v17, %v3107_v25  ;;  %v10271_v60 = vpop.f32.mrb[177].mxu1  ;;  %v15192_v17 = vld [vmem:[#allocation18_spill] sm:$0xff] }
 0x3d2   :  { %v3166_v9 = vpop.f32.mrb[178].mxu1 }
 0x3d3   :  { %v3175_v54 = vadd.f32 %v3166_v9, %v3110_v47  ;;  %v10272_v8 = vpop.f32.mrb[179].mxu1  ;;  %v3237_v15 = vadd.f32 %v15189_v33, %v3174_v50  ;;  %v11312_v47 = vld [vmem:[%s15136_s0 + $0x200] sm:$0xff]   ;;  %v11313_v9 = vld [vmem:[%s15136_s0 + $0x208] sm:$0xff]  }
 0x3d4   :  { %v15193_v33 = vld [vmem:[#allocation19_spill] sm:$0xff] }
 0x3d5   :  { %10536 = vmatmul.mubr.msk.bf16.gmra.mrb[28].mxu1 %vm385_vm2, %v11309_v58  ;;  %v3238_v31 = vadd.f32 %v15190_v36, %v3175_v54 }
 0x3d6   :  { %10539 = vmatprep.mubr.msk.bf16.mxu1 %vm385_vm2, %v11310_v30 }
 0x3d8   :  { %v3273_v25 = vpop.f32.mrb[180].mxu1 }
 0x3d9   :  { %v3296_v20 = vadd.f32 %v3273_v25, %v3233_v52  ;;  %v10295_v18 = vpop.f32.mrb[181].mxu1  ;;  %v15194_v25 = vld [vmem:[#allocation20_spill] sm:$0xff] }
 0x3da   :  { %v3276_v63 = vpop.f32.mrb[182].mxu1 }
 0x3db   :  { %v3297_v28 = vadd.f32 %v3276_v63, %v3234_v57  ;;  %v10296_v37 = vpop.f32.mrb[183].mxu1  ;;  %v3359_v51 = vadd.f32 %v15191_v10, %v3296_v20  ;;  %v11314_v57 = vld [vmem:[%s15136_s0 + $0x210] sm:$0xff]   ;;  %v11315_v63 = vld [vmem:[%s15136_s0 + $0x218] sm:$0xff]  }
 0x3dc   :  { %v15195_v10 = vld [vmem:[#allocation21_spill] sm:$0xff] }
 0x3dd   :  { %10540 = vmatmul.mubr.msk.bf16.gmra.mrb[32].mxu1 %vm385_vm2, %v11311_v35  ;;  %v3360_v50 = vadd.f32 %v15192_v17, %v3297_v28 }
 0x3de   :  { %10543 = vmatprep.mubr.msk.bf16.mxu1 %vm385_vm2, %v11312_v47 }
 0x3e0   :  { %v3281_v52 = vpop.f32.mrb[184].mxu1 }
 0x3e1   :  { %v3298_v60 = vadd.f32 %v3281_v52, %v3235_v61  ;;  %v10299_v58 = vpop.f32.mrb[185].mxu1  ;;  %v15196_v52 = vld [vmem:[#allocation22_spill] sm:$0xff] }
 0x3e2   :  { %v3284_v30 = vpop.f32.mrb[186].mxu1 }
 0x3e3   :  { %v3299_v54 = vadd.f32 %v3284_v30, %v3236_v7  ;;  %v10300_v8 = vpop.f32.mrb[187].mxu1  ;;  %v3361_v36 = vadd.f32 %v15193_v33, %v3298_v60  ;;  %v11316_v7 = vld [vmem:[%s15136_s0 + $0x220] sm:$0xff]   ;;  %v11317_v30 = vld [vmem:[%s15136_s0 + $0x228] sm:$0xff]  }
 0x3e5   :  { %10544 = vmatmul.mubr.msk.bf16.gmra.mrb[36].mxu1 %vm385_vm2, %v11313_v9  ;;  %v3362_v20 = vadd.f32 %v15194_v25, %v3299_v54  ;;  %v15197_v25 = vld [vmem:[#allocation23_spill] sm:$0xff] }
 0x3e6   :  { %10547 = vmatprep.mubr.msk.bf16.mxu1 %vm385_vm2, %v11314_v57 }
 0x3e8   :  { %v3289_v61 = vpop.f32.mrb[188].mxu1 }
 0x3e9   :  { %v3300_v18 = vadd.f32 %v3289_v61, %v3237_v15  ;;  %v10303_v35 = vpop.f32.mrb[189].mxu1 }
 0x3ea   :  { %v3292_v47 = vpop.f32.mrb[190].mxu1 }
 0x3eb   :  { %v3301_v28 = vadd.f32 %v3292_v47, %v3238_v31  ;;  %v10304_v37 = vpop.f32.mrb[191].mxu1  ;;  %v3363_v17 = vadd.f32 %v15195_v10, %v3300_v18  ;;  %v11318_v31 = vld [vmem:[%s15136_s0 + $0x230] sm:$0xff]  }
 0x3ed   :  { %10548 = vmatmul.mubr.msk.bf16.gmra.mrb[40].mxu1 %vm385_vm2, %v11315_v63  ;;  %v3364_v60 = vadd.f32 %v15196_v52, %v3301_v28  ;;  %v11319_v63 = vld [vmem:[%s15136_s0 + $0x238] sm:$0xff]  }
 0x3ee   :  { %10551 = vmatprep.mubr.msk.bf16.mxu1 %vm385_vm2, %v11316_v7 }
 0x3f0   :  { %v3452_v15 = vpop.f32.mrb[192].mxu1 }
 0x3f1   :  { %v3475_v58 = vadd.f32 %v3452_v15, %v3359_v51  ;;  %v10327_v9 = vpop.f32.mrb[193].mxu1  ;;  %v11321_v15 = vld [vmem:[%s15136_s0 + $0x248] sm:$0xff]  }
 0x3f2   :  { %v3455_v57 = vpop.f32.mrb[194].mxu1 }
 0x3f3   :  { %v3476_v54 = vadd.f32 %v3455_v57, %v3360_v50  ;;  %v10328_v8 = vpop.f32.mrb[195].mxu1  ;;  %v3573_v33 = vadd.f32 %v12944_v27, %v3475_v58  ;;  %v11320_v50 = vld [vmem:[%s15136_s0 + $0x240] sm:$0xff]  }
 0x3f4   :  { %v11323_v8 = vld [vmem:[%s15136_s0 + $0x258] sm:$0xff]  }
 0x3f5   :  { %10552 = vmatmul.mubr.msk.bf16.gmra.mrb[44].mxu1 %vm385_vm2, %v11317_v30  ;;  %v3574_v61 = vadd.f32 %v15197_v25, %v3476_v54 }
 0x3f6   :  { %10555 = vmatprep.mubr.msk.bf16.mxu1 %vm385_vm2, %v11318_v31 }
 0x3f8   :  { %v3460_v51 = vpop.f32.mrb[196].mxu1 }
 0x3f9   :  { %v3477_v18 = vadd.f32 %v3460_v51, %v3361_v36  ;;  %v10331_v35 = vpop.f32.mrb[197].mxu1 }
 0x3fa   :  { %v3463_v47 = vpop.f32.mrb[198].mxu1 }
 0x3fb   :  { %v3478_v7 = vadd.f32 %v3463_v47, %v3362_v20  ;;  %v10332_v27 = vpop.f32.mrb[199].mxu1  ;;  %v3575_v28 = vadd.f32 %v12954_v16, %v3477_v18  ;;  %v11322_v20 = vld [vmem:[%s15136_s0 + $0x250] sm:$0xff]  }
 0x3fd   :  { %10556 = vmatmul.mubr.msk.bf16.gmra.mrb[48].mxu1 %vm385_vm2, %v11319_v63  ;;  %v3576_v37 = vadd.f32 %v12957_v11, %v3478_v7  ;;  %v15198_v11 = vld [vmem:[#allocation24_spill] sm:$0xff] }
 0x3fe   :  { %10559 = vmatprep.mubr.msk.bf16.mxu1 %vm385_vm2, %v11320_v50 }
 0x400   :  { %v3468_v36 = vpop.f32.mrb[200].mxu1 }
 0x401   :  { %v3479_v10 = vadd.f32 %v3468_v36, %v3363_v17  ;;  %v10335_v52 = vpop.f32.mrb[201].mxu1 }
 0x402   :  { %v3471_v58 = vpop.f32.mrb[202].mxu1  ;;  %v11326_v52 = vld [vmem:[%s15136_s0 + $0x270] sm:$0xff]  }
 0x403   :  { %v3480_v9 = vadd.f32 %v3471_v58, %v3364_v60  ;;  %v10336_v16 = vpop.f32.mrb[203].mxu1  ;;  %v3577_v30 = vadd.f32 %v12967_v46, %v3479_v10  ;;  %v11324_v60 = vld [vmem:[%s15136_s0 + $0x260] sm:$0xff]  }
 0x405   :  { %10560 = vmatmul.mubr.msk.bf16.gmra.mrb[52].mxu1 %vm385_vm2, %v11321_v15  ;;  %v3578_v57 = vadd.f32 %v15198_v11, %v3480_v9 }
 0x406   :  { %10563 = vmatprep.mubr.msk.bf16.mxu1 %vm385_vm2, %v11322_v20 }
 0x408   :  { %v3631_v17 = vpop.f32.mrb[204].mxu1 }
 0x409   :  { %v3654_v31 = vadd.f32 %v3631_v17, %v3573_v33  ;;  %v10359_v54 = vpop.f32.mrb[205].mxu1 }
 0x40a   :  { %v3634_v25 = vpop.f32.mrb[206].mxu1 }
 0x40b   :  { %v3660_v46 = vadd.f32 %v13140_v5, %v3654_v31  ;;  %v3655_v51 = vadd.f32 %v3634_v25, %v3574_v61  ;;  %v10360_v18 = vpop.f32.mrb[207].mxu1  ;;  %v11325_v61 = vld [vmem:[%s15136_s0 + $0x268] sm:$0xff]  }
 0x40d   :  { %v3666_v35 = vmax.f32 %v3660_v46, 0.0  ;;  %v3661_v63 = vadd.f32 %v13140_v5, %v3655_v51  ;;  %10564 = vmatmul.mubr.msk.bf16.gmra.mrb[56].mxu1 %vm385_vm2, %v11323_v8  ;;  %v11328_v8 = vld [vmem:[%s15136_s0 + $0x280] sm:$0xff]  }
 0x40e   :  { %10567 = vmatprep.mubr.msk.bf16.mxu1 %vm385_vm2, %v11324_v60 }
 0x40f   :  { %v13341_v33 = vmax.f32 %v13160_v22, %v3666_v35  ;;  %v3667_v47 = vmax.f32 %v3661_v63, 0.0  ;;  %v15199_v63 = vld [vmem:[#allocation25_spill] sm:$0xff] }
 0x410   :  { %v3639_v50 = vpop.f32.mrb[208].mxu1 }
 0x411   :  { %v13344_v7 = vmax.f32 %v13167_v21, %v3667_v47  ;;  %v3656_v27 = vadd.f32 %v3639_v50, %v3575_v28  ;;  %v10363_v36 = vpop.f32.mrb[209].mxu1 }
 0x412   :  { %v3642_v10 = vpop.f32.mrb[210].mxu1  ;;  %v11330_v36 = vld [vmem:[%s15136_s0 + $0x290] sm:$0xff]  }
 0x413   :  { %v3662_v15 = vadd.f32 %v13140_v5, %v3656_v27  ;;  %v3657_v22 = vadd.f32 %v3642_v10, %v3576_v37  ;;  %v10364_v58 = vpop.f32.mrb[211].mxu1  ;;  %v11327_v37 = vld [vmem:[%s15136_s0 + $0x278] sm:$0xff]  }
 0x415   :  { %v3668_v20 = vmax.f32 %v3662_v15, 0.0  ;;  %v3663_v9 = vadd.f32 %v13140_v5, %v3657_v22  ;;  %10568 = vmatmul.mubr.msk.bf16.gmra.mrb[60].mxu1 %vm385_vm2, %v11325_v61  ;;  %v15200_v61 = vld [vmem:[#allocation26_spill] sm:$0xff]  ;;  %v15201_v22 = vld [vmem:[#allocation27_spill] sm:$0xff] }
 0x416   :  { %10571 = vmatprep.mubr.msk.bf16.mxu1 %vm385_vm2, %v11326_v52 }
 0x417   :  { %v13357_v21 = vmax.f32 %v13180_v29, %v3668_v20  ;;  %v3669_v28 = vmax.f32 %v3663_v9, 0.0  ;;  %v11331_v9 = vld [vmem:[%s15136_s0 + $0x298] sm:$0xff]  }
 0x418   :  { %v3647_v16 = vpop.f32.mrb[212].mxu1 }
 0x419   :  { %v13360_v11 = vmax.f32 %v13190_v48, %v3669_v28  ;;  %v3658_v17 = vadd.f32 %v3647_v16, %v3577_v30  ;;  %v10367_v31 = vpop.f32.mrb[213].mxu1  ;;  %v11332_v16 = vld [vmem:[%s15136_s0 + $0x2a0] sm:$0xff]  }
 0x41a   :  { %v3650_v54 = vpop.f32.mrb[214].mxu1 }
 0x41b   :  { %v3664_v25 = vadd.f32 %v13140_v5, %v3658_v17  ;;  %v3659_v29 = vadd.f32 %v3650_v54, %v3578_v57  ;;  %v10368_v60 = vpop.f32.mrb[215].mxu1  ;;  %v11329_v57 = vld [vmem:[%s15136_s0 + $0x288] sm:$0xff]  }
 0x41d   :  { %v3670_v46 = vmax.f32 %v3664_v25, 0.0  ;;  %v3665_v51 = vadd.f32 %v13140_v5, %v3659_v29  ;;  %10572 = vmatmul.mubr.msk.bf16.gmra.mrb[64].mxu1 %vm385_vm2, %v11327_v37  ;;  %v11333_v29 = vld [vmem:[%s15136_s0 + $0x2a8] sm:$0xff]  }
 0x41e   :  { %10575 = vmatprep.mubr.msk.bf16.mxu1 %vm385_vm2, %v11328_v8 }
 0x41f   :  { %v13373_v48 = vmax.f32 %v13206_v2, %v3670_v46  ;;  %v3671_v30 = vmax.f32 %v3665_v51, 0.0  ;;  %v11334_v46 = vld [vmem:[%s15136_s0 + $0x2b0] sm:$0xff]  }
 0x420   :  { %v3769_v18 = vpop.f32.mrb[216].mxu1 }
 0x421   :  { %v13376_v35 = vmax.f32 %v13214_v38, %v3671_v30  ;;  %v3770_v47 = vadd.f32 %v3769_v18, %v15199_v63  ;;  %v10391_v50 = vpop.f32.mrb[217].mxu1 }
 0x422   :  { %v3772_v27 = vpop.f32.mrb[218].mxu1 }
 0x423   :  { %v3773_v2 = vadd.f32 %v3772_v27, %v15200_v61  ;;  %v10392_v10 = vpop.f32.mrb[219].mxu1  ;;  %v3849_v52 = vadd.f32 %v13038_v14, %v3770_v47  ;;  %v15202_v14 = vld [vmem:[#allocation28_spill] sm:$0xff]  ;;  %v11335_v47 = vld [vmem:[%s15136_s0 + $0x2b8] sm:$0xff]  }
 0x424   :  { %v11337_v10 = vld [vmem:[%s15136_s0 + $0x2c8] sm:$0xff]  }
 0x425   :  { %10576 = vmatmul.mubr.msk.bf16.gmra.mrb[68].mxu1 %vm385_vm2, %v11329_v57  ;;  %v3850_v38 = vadd.f32 %v13042_v1, %v3773_v2 }
 0x426   :  { %10579 = vmatprep.mubr.msk.bf16.mxu1 %vm385_vm2, %v11330_v36 }
 0x428   :  { %v3777_v15 = vpop.f32.mrb[220].mxu1 }
 0x429   :  { %v3778_v58 = vadd.f32 %v3777_v15, %v15201_v22  ;;  %v10395_v20 = vpop.f32.mrb[221].mxu1 }
 0x42a   :  { %v3780_v28 = vpop.f32.mrb[222].mxu1 }
 0x42b   :  { %v3781_v17 = vadd.f32 %v3780_v28, %v15202_v14  ;;  %v10396_v31 = vpop.f32.mrb[223].mxu1  ;;  %v3851_v1 = vadd.f32 %v13051_v4, %v3778_v58  ;;  %v11339_v28 = vld [vmem:[%s15136_s0 + $0x2d8] sm:$0xff]   ;;  %v11340_v14 = vld [vmem:[%s15136_s0 + $0x2e0] sm:$0xff]  }
 0x42d   :  { %10580 = vmatmul.mubr.msk.bf16.gmra.mrb[72].mxu1 %vm385_vm2, %v11331_v9  ;;  %v3852_v37 = vadd.f32 %v13054_v56, %v3781_v17 }
 0x42e   :  { %10583 = vmatprep.mubr.msk.bf16.mxu1 %vm385_vm2, %v11332_v16 }
 0x430   :  { %v3785_v54 = vpop.f32.mrb[224].mxu1 }
 0x431   :  { %v3786_v8 = vadd.f32 %v3785_v54, %v13019_v42  ;;  %v10399_v25 = vpop.f32.mrb[225].mxu1 }
 0x432   :  { %v3788_v60 = vpop.f32.mrb[226].mxu1 }
 0x433   :  { %v3789_v4 = vadd.f32 %v3788_v60, %v13022_v59  ;;  %v10400_v51 = vpop.f32.mrb[227].mxu1  ;;  %v3853_v56 = vadd.f32 %v13061_v3, %v3786_v8  ;;  %v11336_v59 = vld [vmem:[%s15136_s0 + $0x2c0] sm:$0xff]   ;;  %v11341_v8 = vld [vmem:[%s15136_s0 + $0x2e8] sm:$0xff]  }
 0x435   :  { %10584 = vmatmul.mubr.msk.bf16.gmra.mrb[76].mxu1 %vm385_vm2, %v11333_v29  ;;  %v3854_v30 = vadd.f32 %v13064_v49, %v3789_v4  ;;  %v11342_v29 = vld [vmem:[%s15136_s0 + $0x2f0] sm:$0xff]  }
 0x436   :  { %10587 = vmatprep.mubr.msk.bf16.mxu1 %vm385_vm2, %v11334_v46 }
 0x438   :  { %v3889_v42 = vpop.f32.mrb[228].mxu1 }
 0x439   :  { %v3912_v18 = vadd.f32 %v3889_v42, %v3849_v52  ;;  %v10423_v63 = vpop.f32.mrb[229].mxu1 }
 0x43a   :  { %v3892_v50 = vpop.f32.mrb[230].mxu1 }
 0x43b   :  { %v3913_v57 = vadd.f32 %v3892_v50, %v3850_v38  ;;  %v10424_v3 = vpop.f32.mrb[231].mxu1  ;;  %v3975_v27 = vadd.f32 %v13078_v6, %v3912_v18  ;;  %v11338_v38 = vld [vmem:[%s15136_s0 + $0x2d0] sm:$0xff]   ;;  %v11344_v18 = vld [vmem:[%s15136_s0 + $0x300] sm:$0xff]  }
 0x43c   :  { %v11345_v3 = vld [vmem:[%s15136_s0 + $0x308] sm:$0xff]  }
 0x43d   :  { %10588 = vmatmul.mubr.msk.bf16.gmra.mrb[80].mxu1 %vm385_vm2, %v11335_v47  ;;  %v3976_v49 = vadd.f32 %v13082_v26, %v3913_v57 }
 0x43e   :  { %10591 = vmatprep.mubr.msk.bf16.mxu1 %vm385_vm2, %v11336_v59 }
 0x440   :  { %v3897_v36 = vpop.f32.mrb[232].mxu1 }
 0x441   :  { %v3914_v61 = vadd.f32 %v3897_v36, %v3851_v1  ;;  %v10427_v2 = vpop.f32.mrb[233].mxu1 }
 0x442   :  { %v3900_v52 = vpop.f32.mrb[234].mxu1 }
 0x443   :  { %v3915_v15 = vadd.f32 %v3900_v52, %v3852_v37  ;;  %v10428_v6 = vpop.f32.mrb[235].mxu1  ;;  %v3977_v22 = vadd.f32 %v13089_v45, %v3914_v61 }
 0x445   :  { %10592 = vmatmul.mubr.msk.bf16.gmra.mrb[84].mxu1 %vm385_vm2, %v11337_v10  ;;  %v3978_v26 = vadd.f32 %v13092_v19, %v3915_v15 }
 0x446   :  { %10595 = vmatprep.mubr.msk.bf16.mxu1 %vm385_vm2, %v11338_v38  ;;  %v11347_v38 = vld [vmem:[%s15136_s0 + $0x318] sm:$0xff]  }
 0x448   :  { %v3905_v58 = vpop.f32.mrb[236].mxu1 }
 0x449   :  { %v3916_v20 = vadd.f32 %v3905_v58, %v3853_v56  ;;  %v10431_v9 = vpop.f32.mrb[237].mxu1 }
 0x44a   :  { %v3908_v16 = vpop.f32.mrb[238].mxu1 }
 0x44b   :  { %v3917_v17 = vadd.f32 %v3908_v16, %v3854_v30  ;;  %v10432_v45 = vpop.f32.mrb[239].mxu1  ;;  %v3979_v31 = vadd.f32 %v13099_v53, %v3916_v20  ;;  %v11343_v30 = vld [vmem:[%s15136_s0 + $0x2f8] sm:$0xff]  }
 0x44d   :  { %10596 = vmatmul.mubr.msk.bf16.gmra.mrb[88].mxu1 %vm385_vm2, %v11339_v28  ;;  %v3980_v19 = vadd.f32 %v13102_v0, %v3917_v17 }
 0x44e   :  { %10599 = vmatprep.mubr.msk.bf16.mxu1 %vm385_vm2, %v11340_v14 }
 0x450   :  { %v4015_v1 = vpop.f32.mrb[240].mxu1 }
 0x451   :  { %v4038_v37 = vadd.f32 %v4015_v1, %v3975_v27  ;;  %v10455_v54 = vpop.f32.mrb[241].mxu1 }
 0x452   :  { %v4018_v25 = vpop.f32.mrb[242].mxu1 }
 0x453   :  { %v4039_v60 = vadd.f32 %v4018_v25, %v3976_v49  ;;  %v10456_v53 = vpop.f32.mrb[243].mxu1  ;;  %v4101_v46 = vadd.f32 %v13116_v62, %v4038_v37  ;;  %v11346_v49 = vld [vmem:[%s15136_s0 + $0x310] sm:$0xff]  }
 0x455   :  { %10600 = vmatmul.mubr.msk.bf16.gmra.mrb[92].mxu1 %vm385_vm2, %v11341_v8  ;;  %v4102_v0 = vadd.f32 %v13120_v44, %v4039_v60 }
 0x456   :  { %10603 = vmatprep.mubr.msk.bf16.mxu1 %vm385_vm2, %v11342_v29 }
 0x458   :  { %v4023_v4 = vpop.f32.mrb[244].mxu1 }
 0x459   :  { %v4040_v51 = vadd.f32 %v4023_v4, %v3977_v22  ;;  %v10459_v56 = vpop.f32.mrb[245].mxu1 }
 0x45a   :  { %v4026_v42 = vpop.f32.mrb[246].mxu1 }
 0x45b   :  { %v4041_v63 = vadd.f32 %v4026_v42, %v3978_v26  ;;  %v10460_v62 = vpop.f32.mrb[247].mxu1  ;;  %v4103_v47 = vadd.f32 %v13127_v32, %v4040_v51 }
 0x45d   :  { %10604 = vmatmul.mubr.msk.bf16.gmra.mrb[96].mxu1 %vm385_vm2, %v11343_v30  ;;  %v4104_v44 = vadd.f32 %v13130_v40, %v4041_v63 }
 0x45e   :  { %10607 = vmatprep.mubr.msk.bf16.mxu1 %vm385_vm2, %v11344_v18 }
 0x460   :  { %v4031_v50 = vpop.f32.mrb[248].mxu1 }
 0x461   :  { %v4042_v59 = vadd.f32 %v4031_v50, %v3979_v31  ;;  %v10463_v57 = vpop.f32.mrb[249].mxu1 }
 0x462   :  { %v4034_v27 = vpop.f32.mrb[250].mxu1 }
 0x463   :  { %v4043_v36 = vadd.f32 %v4034_v27, %v3980_v19  ;;  %v10464_v32 = vpop.f32.mrb[251].mxu1  ;;  %v4105_v61 = vadd.f32 %v13145_v13, %v4042_v59 }
 0x465   :  { %10608 = vmatmul.mubr.msk.bf16.gmra.mrb[100].mxu1 %vm385_vm2, %v11345_v3  ;;  %v4106_v40 = vadd.f32 %v13151_v41, %v4043_v36 }
 0x466   :  { %10611 = vmatprep.mubr.msk.bf16.mxu1 %vm385_vm2, %v11346_v49 }
 0x468   :  { %v4141_v2 = vpop.f32.mrb[252].mxu1 }
 0x469   :  { %v4164_v10 = vadd.f32 %v4141_v2, %v4101_v46  ;;  %v10487_v52 = vpop.f32.mrb[253].mxu1 }
 0x46a   :  { %v4144_v15 = vpop.f32.mrb[254].mxu1 }
 0x46b   :  { %v4266_v6 = vadd.f32 %v13165_v55, %v4164_v10  ;;  %v4165_v22 = vadd.f32 %v4144_v15, %v4102_v0  ;;  %v10488_v26 = vpop.f32.mrb[255].mxu1 }
 0x46d   :  { %v4272_v13 = vadd.f32 %v13140_v5, %v4266_v6  ;;  %v4267_v58 = vadd.f32 %v13173_v39, %v4165_v22  ;;  %10612 = vmatmul.mubr.msk.bf16.gmra.mrb[104].mxu1 %vm385_vm2, %v11347_v38 }
 0x46e   :  { %10763 = vmatprep.mubr.msk.bf16.mxu1 %vm11442_vm3, %v15148_v43 }
 0x46f   :  { %v4278_v41 = vmax.f32 %v4272_v13, 0.0  ;;  %v4273_v20 = vadd.f32 %v13140_v5, %v4267_v58 }
 0x470   :  { %v4149_v9 = vpop.f32.mrb[0].mxu1 }
 0x471   :  { %v4284_v28 = vmax.f32 %v13341_v33, %v4278_v41  ;;  %v4279_v16 = vmax.f32 %v4273_v20, 0.0  ;;  %v4166_v14 = vadd.f32 %v4149_v9, %v4103_v47  ;;  %v10491_v55 = vpop.f32.mrb[1].mxu1  ;;  %v13557_v41 = vld [vmem:[%s15138_s2] ss:$0 sm:$0xff] }
 0x472   :  { %v4152_v17 = vpop.f32.mrb[2].mxu1 }
 0x473   :  { %v9336_v45 = vpack.c.bf16 %v4284_v28, %v4284_v28  ;;  %v4285_v31 = vmax.f32 %v13344_v7, %v4279_v16  ;;  %v4268_v39 = vadd.f32 %v13188_v24, %v4166_v14  ;;  %v4167_v19 = vadd.f32 %v4152_v17, %v4104_v44  ;;  %v10492_v1 = vpop.f32.mrb[3].mxu1 }
 0x475   :  { %4315 = vst.msk [vmem:[%s15140_s5] sm:$0xf] %vm4314_vm11, %v9336_v45  ;;  %v9337_v37 = vpack.c.bf16 %v4285_v31, %v4285_v31  ;;  %v4274_v33 = vadd.f32 %v13140_v5, %v4268_v39  ;;  %v4269_v54 = vadd.f32 %v13196_v23, %v4167_v19 }
 0x477   :  { %4316 = vst.msk [vmem:[%s15140_s5 + $0x4] sm:$0xf] %vm4314_vm11, %v9337_v37  ;;  %v4280_v7 = vmax.f32 %v4274_v33, 0.0  ;;  %v4275_v24 = vadd.f32 %v13140_v5, %v4269_v54 }
 0x478   :  { %v4157_v8 = vpop.f32.mrb[4].mxu1 }
 0x479   :  { %v4286_v25 = vmax.f32 %v13357_v21, %v4280_v7  ;;  %v4281_v29 = vmax.f32 %v4275_v24, 0.0  ;;  %v4168_v60 = vadd.f32 %v4157_v8, %v4105_v61  ;;  %v10495_v53 = vpop.f32.mrb[5].mxu1  ;;  %v11348_v8 = vld [vmem:[%s15137_s3 + $0x10] sm:$0xff]  }
 0x47a   :  { %v4160_v46 = vpop.f32.mrb[6].mxu1  ;;  %10616 = vmatpush3.bf16.msra.mxu0 %v11348_v8  ;;  %10760 = vmatpush3.bf16.msra.mxu1 %v11348_v8 }
 0x47b   :  { %v9338_v0 = vpack.c.bf16 %v4286_v25, %v4286_v25  ;;  %v4287_v4 = vmax.f32 %v13360_v11, %v4281_v29  ;;  %v4270_v23 = vadd.f32 %v13212_v12, %v4168_v60  ;;  %v4169_v51 = vadd.f32 %v4160_v46, %v4106_v40  ;;  %v10496_v56 = vpop.f32.mrb[7].mxu1  ;;  %10761 = vmatprep.subr.bf16.mxu1 %v15148_v43 }
 0x47c   :  { %10617 = vmatprep.subr.bf16.mxu0 %v15148_v43 }
 0x47d   :  { %4317 = vst.msk [vmem:[%s15140_s5 + $0x8] sm:$0xf] %vm4314_vm11, %v9338_v0  ;;  %v9339_v30 = vpack.c.bf16 %v4287_v4, %v4287_v4  ;;  %v4276_v42 = vadd.f32 %v13140_v5, %v4270_v23  ;;  %v4271_v21 = vadd.f32 %v13216_v34, %v4169_v51 }
 0x47f   :  { %4318 = vst.msk [vmem:[%s15140_s5 + $0xc] sm:$0xf] %vm4314_vm11, %v9339_v30  ;;  %v4282_v11 = vmax.f32 %v4276_v42, 0.0  ;;  %v4277_v12 = vadd.f32 %v13140_v5, %v4271_v21 }
 0x480   :  { %v10517_v18 = vpop.f32.mrb[8].mxu1 }
 0x481   :  { %v4288_v63 = vmax.f32 %v13373_v48, %v4282_v11  ;;  %v4283_v62 = vmax.f32 %v4277_v12, 0.0  ;;  %v4874_v47 = vpop.f32.mrb[9].mxu1  ;;  %v4883_v28 = vadd.f32 %v10517_v18, %v13557_v41 }
 0x482   :  { %v10518_v44 = vpop.f32.mrb[10].mxu1  ;;  %v4875_v55 = vadd.f32 %v13557_v41, %v4874_v47 }
 0x483   :  { %v9340_v50 = vpack.c.bf16 %v4288_v63, %v4288_v63  ;;  %v4289_v59 = vmax.f32 %v13376_v35, %v4283_v62  ;;  %v4877_v57 = vpop.f32.mrb[11].mxu1  ;;  %v5275_v37 = vmax.f32 %v4883_v28, 0.0  ;;  %v4886_v60 = vadd.f32 %v10518_v44, %v13557_v41 }
 0x484   :  { %v4878_v20 = vadd.f32 %v13557_v41, %v4877_v57  ;;  %v5273_v7 = vmax.f32 %v4875_v55, 0.0 }
 0x485   :  { %4319 = vst.msk [vmem:[%s15140_s5 + $0x10] sm:$0xf] %vm4314_vm11, %v9340_v50  ;;  %v9341_v34 = vpack.c.bf16 %v4289_v59, %v4289_v59  ;;  %v5276_v18 = vmax.f32 %v4886_v60, 0.0  ;;  %v11349_v59 = vld [vmem:[%s15137_s3 + $0x18] sm:$0xff]  }
 0x486   :  { %v5274_v45 = vmax.f32 %v4878_v20, 0.0  ;;  %10762 = vmatpush3.bf16.msra.mxu1 %v11349_v59  ;;  %10618 = vmatpush3.bf16.msra.mxu0 %v11349_v59 }
 0x487   :  { %4321 = vst.msk [vmem:[%s15140_s5 + $0x14] sm:$0x1] %vm4320_vm12, %v9341_v34  ;;  %10631 = vmatprep.subr.bf16.mxu0 %v15148_v43  ;;  %10791 = vmatprep.subr.bf16.mxu1 %v15148_v43 }
 0x488   :  { %v10521_v5 = vpop.f32.mrb[12].mxu1 }
 0x489   :  { %v4890_v48 = vpop.f32.mrb[13].mxu1  ;;  %v4899_v0 = vadd.f32 %v10521_v5, %v13557_v41 }
 0x48a   :  { %v13522_v3 = vpop.f32.mrb[14].mxu1  ;;  %v4891_v51 = vadd.f32 %v13557_v41, %v4890_v48 }
 0x48b   :  { %v4893_v27 = vpop.f32.mrb[15].mxu1  ;;  %v5279_v47 = vmax.f32 %v4899_v0, 0.0  ;;  %v4902_v20 = vadd.f32 %v13522_v3, %v13557_v41 }
 0x48c   :  { %v4894_v25 = vadd.f32 %v13557_v41, %v4893_v27  ;;  %v5277_v57 = vmax.f32 %v4891_v51, 0.0 }
 0x48e   :  { %v5278_v42 = vmax.f32 %v4894_v25, 0.0 }
 0x490   :  { %v13524_v49 = vpop.f32.mrb[16].mxu1 }
 0x491   :  { %v13526_v35 = vpop.f32.mrb[17].mxu1 }
 0x492   :  { %v13528_v36 = vpop.f32.mrb[18].mxu1 }
 0x493   :  { %v4909_v32 = vpop.f32.mrb[19].mxu1 }
 0x494   :  { %v4910_v48 = vadd.f32 %v13557_v41, %v4909_v32 }
 0x496   :  { %v5282_v3 = vmax.f32 %v4910_v48, 0.0 }
 0x498   :  { %v13530_v61 = vpop.f32.mrb[20].mxu1 }
 0x499   :  { %v13532_v40 = vpop.f32.mrb[21].mxu1 }
 0x49a   :  { %v13534_v2 = vpop.f32.mrb[22].mxu1 }
 0x49b   :  { %v13536_v10 = vpop.f32.mrb[23].mxu1 }
 0x4a0   :  { %v13538_v52 = vpop.f32.mrb[24].mxu1 }
 0x4a1   :  { %v13540_v38 = vpop.f32.mrb[25].mxu1 }
 0x4a2   :  { %v13542_v15 = vpop.f32.mrb[26].mxu1 }
 0x4a3   :  { %v13544_v6 = vpop.f32.mrb[27].mxu1 }
 0x4a8   :  { %v13546_v22 = vpop.f32.mrb[28].mxu1 }
 0x4a9   :  { %v13548_v26 = vpop.f32.mrb[29].mxu1 }
 0x4aa   :  { %v13550_v13 = vpop.f32.mrb[30].mxu1 }
 0x4ab   :  { %v13552_v58 = vpop.f32.mrb[31].mxu1 }
 0x4b0   :  { %v10541_v9 = vpop.f32.mrb[32].mxu1 }
 0x4b1   :  { %v4979_v16 = vadd.f32 %v10541_v9, %v13557_v41  ;;  %v13562_v14 = vpop.f32.mrb[33].mxu1 }
 0x4b2   :  { %v10542_v17 = vpop.f32.mrb[34].mxu1 }
 0x4b3   :  { %v5299_v31 = vmax.f32 %v4979_v16, 0.0  ;;  %v4982_v39 = vadd.f32 %v10542_v17, %v13557_v41  ;;  %v4973_v19 = vpop.f32.mrb[35].mxu1  ;;  %v4915_v16 = vadd.f32 %v13524_v49, %v13557_v41  ;;  %v4907_v17 = vadd.f32 %v13557_v41, %v13526_v35 }
 0x4b4   :  { %v4974_v1 = vadd.f32 %v13557_v41, %v4973_v19 }
 0x4b5   :  { %v13567_v33 = vmax.f32 %v5274_v45, %v5299_v31  ;;  %v5300_v54 = vmax.f32 %v4982_v39, 0.0  ;;  %v5281_v25 = vmax.f32 %v4907_v17, 0.0  ;;  %v4947_v17 = vadd.f32 %v13538_v52, %v13557_v41 }
 0x4b6   :  { %v5298_v24 = vmax.f32 %v4974_v1, 0.0 }
 0x4b7   :  { %v13573_v29 = vmax.f32 %v5275_v37, %v5300_v54  ;;  %v5280_v37 = vmax.f32 %v4902_v20, 0.0  ;;  %v4942_v20 = vadd.f32 %v13557_v41, %v13544_v6 }
 0x4b8   :  { %v13576_v53 = vmax.f32 %v5273_v7, %v5298_v24  ;;  %v10545_v46 = vpop.f32.mrb[36].mxu1  ;;  %v5283_v24 = vmax.f32 %v4915_v16, 0.0  ;;  %v4934_v16 = vadd.f32 %v13534_v2, %v13557_v41 }
 0x4b9   :  { %v4995_v4 = vadd.f32 %v10545_v46, %v13557_v41  ;;  %v4986_v23 = vpop.f32.mrb[37].mxu1  ;;  %v4926_v46 = vadd.f32 %v13557_v41, %v13536_v10 }
 0x4ba   :  { %v4987_v56 = vadd.f32 %v13557_v41, %v4986_v23  ;;  %v10546_v30 = vpop.f32.mrb[38].mxu1 }
 0x4bb   :  { %v5303_v21 = vmax.f32 %v4995_v4, 0.0  ;;  %v4998_v11 = vadd.f32 %v10546_v30, %v13557_v41  ;;  %v4989_v12 = vpop.f32.mrb[39].mxu1  ;;  %v4918_v4 = vadd.f32 %v13528_v36, %v13557_v41 }
 0x4bc   :  { %v5301_v63 = vmax.f32 %v4987_v56, 0.0  ;;  %v4990_v62 = vadd.f32 %v13557_v41, %v4989_v12  ;;  %v4931_v56 = vadd.f32 %v13530_v61, %v13557_v41  ;;  %v5286_v12 = vmax.f32 %v4926_v46, 0.0 }
 0x4bd   :  { %v13586_v44 = vmax.f32 %v5278_v42, %v5303_v21  ;;  %v5304_v50 = vmax.f32 %v4998_v11, 0.0  ;;  %v4923_v21 = vadd.f32 %v13557_v41, %v13532_v40 }
 0x4be   :  { %v13591_v34 = vmax.f32 %v5276_v18, %v5301_v63  ;;  %v5302_v5 = vmax.f32 %v4990_v62, 0.0  ;;  %v5284_v62 = vmax.f32 %v4918_v4, 0.0  ;;  %v5287_v59 = vmax.f32 %v4931_v56, 0.0 }
 0x4bf   :  { %v13594_v27 = vmax.f32 %v5279_v47, %v5304_v50  ;;  %v4958_v4 = vadd.f32 %v13557_v41, %v13552_v58  ;;  %v4950_v56 = vadd.f32 %v13542_v15, %v13557_v41 }
 0x4c0   :  { %v13598_v9 = vmax.f32 %v5277_v57, %v5302_v5  ;;  %v10549_v28 = vpop.f32.mrb[40].mxu1  ;;  %v5285_v5 = vmax.f32 %v4923_v21, 0.0  ;;  %v4963_v21 = vadd.f32 %v13546_v22, %v13557_v41 }
 0x4c1   :  { %v5011_v55 = vadd.f32 %v10549_v28, %v13557_v41  ;;  %v5002_v32 = vpop.f32.mrb[41].mxu1 }
 0x4c2   :  { %v5003_v45 = vadd.f32 %v13557_v41, %v5002_v32  ;;  %v10550_v31 = vpop.f32.mrb[42].mxu1 }
 0x4c3   :  { %v5307_v39 = vmax.f32 %v5011_v55, 0.0  ;;  %v5014_v19 = vadd.f32 %v10550_v31, %v13557_v41  ;;  %v5005_v1 = vpop.f32.mrb[43].mxu1 }
 0x4c4   :  { %v5305_v54 = vmax.f32 %v5003_v45, 0.0  ;;  %v5006_v7 = vadd.f32 %v13557_v41, %v5005_v1 }
 0x4c5   :  { %v13610_v49 = vmax.f32 %v5282_v3, %v5307_v39  ;;  %v5308_v8 = vmax.f32 %v5014_v19, 0.0  ;;  %v4939_v3 = vadd.f32 %v13557_v41, %v13540_v38  ;;  %v5290_v19 = vmax.f32 %v4942_v20, 0.0 }
 0x4c6   :  { %v13612_v60 = vmax.f32 %v5280_v37, %v5305_v54  ;;  %v5306_v35 = vmax.f32 %v5006_v7, 0.0  ;;  %v5288_v54 = vmax.f32 %v4934_v16, 0.0 }
 0x4c7   :  { %v13616_v0 = vmax.f32 %v5283_v24, %v5308_v8  ;;  %v5291_v8 = vmax.f32 %v4947_v17, 0.0 }
 0x4c8   :  { %v13620_v23 = vmax.f32 %v5281_v25, %v5306_v35  ;;  %v10553_v51 = vpop.f32.mrb[44].mxu1  ;;  %v5289_v35 = vmax.f32 %v4939_v3, 0.0  ;;  %v4971_v3 = vadd.f32 %v13557_v41, %v13562_v14 }
 0x4c9   :  { %v5027_v30 = vadd.f32 %v10553_v51, %v13557_v41  ;;  %v5018_v42 = vpop.f32.mrb[45].mxu1 }
 0x4ca   :  { %v5019_v11 = vadd.f32 %v13557_v41, %v5018_v42  ;;  %v10554_v10 = vpop.f32.mrb[46].mxu1 }
 0x4cb   :  { %v5311_v18 = vmax.f32 %v5027_v30, 0.0  ;;  %v5030_v63 = vadd.f32 %v10554_v10, %v13557_v41  ;;  %v5021_v36 = vpop.f32.mrb[47].mxu1 }
 0x4cc   :  { %v5309_v47 = vmax.f32 %v5019_v11, 0.0  ;;  %v5022_v50 = vadd.f32 %v13557_v41, %v5021_v36 }
 0x4cd   :  { %v13630_v61 = vmax.f32 %v5286_v12, %v5311_v18  ;;  %v5312_v57 = vmax.f32 %v5030_v63, 0.0  ;;  %v4955_v12 = vadd.f32 %v13557_v41, %v13548_v26  ;;  %v5294_v63 = vmax.f32 %v4958_v4, 0.0 }
 0x4ce   :  { %v13632_v48 = vmax.f32 %v5284_v62, %v5309_v47  ;;  %v5310_v40 = vmax.f32 %v5022_v50, 0.0  ;;  %v5292_v47 = vmax.f32 %v4950_v56, 0.0 }
 0x4cf   :  { %v13636_v28 = vmax.f32 %v5287_v59, %v5312_v57  ;;  %v5295_v57 = vmax.f32 %v4963_v21, 0.0 }
 0x4d0   :  { %v13640_v55 = vmax.f32 %v5285_v5, %v5310_v40  ;;  %v10557_v32 = vpop.f32.mrb[48].mxu1  ;;  %v5293_v40 = vmax.f32 %v4955_v12, 0.0 }
 0x4d1   :  { %v5043_v45 = vadd.f32 %v10557_v32, %v13557_v41  ;;  %v5034_v31 = vpop.f32.mrb[49].mxu1  ;;  %v4966_v32 = vadd.f32 %v13550_v13, %v13557_v41 }
 0x4d2   :  { %v5035_v39 = vadd.f32 %v13557_v41, %v5034_v31  ;;  %v10558_v6 = vpop.f32.mrb[50].mxu1 }
 0x4d3   :  { %v5315_v1 = vmax.f32 %v5043_v45, 0.0  ;;  %v5046_v37 = vadd.f32 %v10558_v6, %v13557_v41  ;;  %v5037_v2 = vpop.f32.mrb[51].mxu1 }
 0x4d4   :  { %v5313_v7 = vmax.f32 %v5035_v39, 0.0  ;;  %v5038_v24 = vadd.f32 %v13557_v41, %v5037_v2 }
 0x4d5   :  { %v13650_v52 = vmax.f32 %v5290_v19, %v5315_v1  ;;  %v5316_v25 = vmax.f32 %v5046_v37, 0.0  ;;  %v5296_v1 = vmax.f32 %v4966_v32, 0.0 }
 0x4d6   :  { %v13652_v46 = vmax.f32 %v5288_v54, %v5313_v7  ;;  %v5314_v38 = vmax.f32 %v5038_v24, 0.0  ;;  %v5297_v54 = vmax.f32 %v4971_v3, 0.0 }
 0x4d7   :  { %v13656_v51 = vmax.f32 %v5291_v8, %v5316_v25 }
 0x4d8   :  { %v13660_v30 = vmax.f32 %v5289_v35, %v5314_v38  ;;  %v10561_v42 = vpop.f32.mrb[52].mxu1 }
 0x4d9   :  { %v5059_v11 = vadd.f32 %v10561_v42, %v13557_v41  ;;  %v5050_v10 = vpop.f32.mrb[53].mxu1 }
 0x4da   :  { %v5051_v18 = vadd.f32 %v13557_v41, %v5050_v10  ;;  %v10562_v58 = vpop.f32.mrb[54].mxu1 }
 0x4db   :  { %v5319_v36 = vmax.f32 %v5059_v11, 0.0  ;;  %v5062_v62 = vadd.f32 %v10562_v58, %v13557_v41  ;;  %v5053_v15 = vpop.f32.mrb[55].mxu1 }
 0x4dc   :  { %v5317_v50 = vmax.f32 %v5051_v18, 0.0  ;;  %v5054_v59 = vadd.f32 %v13557_v41, %v5053_v15 }
 0x4dd   :  { %v13670_v22 = vmax.f32 %v5294_v63, %v5319_v36  ;;  %v5320_v5 = vmax.f32 %v5062_v62, 0.0 }
 0x4de   :  { %v13672_v20 = vmax.f32 %v5292_v47, %v5317_v50  ;;  %v5318_v26 = vmax.f32 %v5054_v59, 0.0 }
 0x4df   :  { %15203 = vst [vmem:[#allocation3_spill] sm:$0xff] %v13670_v22  ;;  %v13674_v16 = vmax.f32 %v5295_v57, %v5320_v5 }
 0x4e0   :  { %v13678_v17 = vmax.f32 %v5293_v40, %v5318_v26  ;;  %v10565_v45 = vpop.f32.mrb[56].mxu1 }
 0x4e1   :  { %15204 = vst [vmem:[#allocation4_spill] sm:$0xff] %v13674_v16  ;;  %v5066_v31 = vpop.f32.mrb[57].mxu1  ;;  %v5075_v57 = vadd.f32 %v10565_v45, %v13557_v41 }
 0x4e2   :  { %v5067_v39 = vadd.f32 %v13557_v41, %v5066_v31  ;;  %v10566_v6 = vpop.f32.mrb[58].mxu1 }
 0x4e3   :  { %v5069_v19 = vpop.f32.mrb[59].mxu1  ;;  %v5323_v31 = vmax.f32 %v5075_v57, 0.0 }
 0x4e4   :  { %v5321_v37 = vmax.f32 %v5067_v39, 0.0  ;;  %v5070_v2 = vadd.f32 %v13557_v41, %v5069_v19 }
 0x4e6   :  { %v13684_v7 = vmax.f32 %v5296_v1, %v5321_v37  ;;  %v5322_v24 = vmax.f32 %v5070_v2, 0.0  ;;  %v5078_v1 = vadd.f32 %v10566_v6, %v13557_v41 }
 0x4e8   :  { %15205 = vst [vmem:[#allocation6_spill] sm:$0xff] %v13684_v7  ;;  %v13686_v13 = vmax.f32 %v5297_v54, %v5322_v24  ;;  %v10569_v8 = vpop.f32.mrb[60].mxu1 }
 0x4e9   :  { %v5082_v25 = vpop.f32.mrb[61].mxu1  ;;  %v5091_v37 = vadd.f32 %v10569_v8, %v13557_v41 }
 0x4ea   :  { %15206 = vst [vmem:[#allocation5_spill] sm:$0xff] %v13686_v13  ;;  %v10570_v35 = vpop.f32.mrb[62].mxu1  ;;  %v5083_v2 = vadd.f32 %v13557_v41, %v5082_v25 }
 0x4eb   :  { %v5085_v38 = vpop.f32.mrb[63].mxu1  ;;  %v13719_v45 = vadd.f32 %v10570_v35, %v13557_v41 }
 0x4ec   :  { %v5086_v3 = vadd.f32 %v13557_v41, %v5085_v38 }
 0x4ed   :  { %v5328_v22 = vmax.f32 %v13719_v45, 0.0 }
 0x4ee   :  { %v5326_v24 = vmax.f32 %v5086_v3, 0.0 }
 0x4f0   :  { %v10573_v4 = vpop.f32.mrb[64].mxu1 }
 0x4f1   :  { %v5098_v14 = vpop.f32.mrb[65].mxu1  ;;  %v13724_v38 = vadd.f32 %v10573_v4, %v13557_v41 }
 0x4f2   :  { %v10574_v56 = vpop.f32.mrb[66].mxu1 }
 0x4f3   :  { %v5101_v42 = vpop.f32.mrb[67].mxu1  ;;  %v13730_v6 = vadd.f32 %v10574_v56, %v13557_v41  ;;  %v5331_v7 = vmax.f32 %v13724_v38, 0.0 }
 0x4f4   :  { %v5102_v35 = vadd.f32 %v13557_v41, %v5101_v42 }
 0x4f8   :  { %v10577_v21 = vpop.f32.mrb[68].mxu1 }
 0x4f9   :  { %v5114_v11 = vpop.f32.mrb[69].mxu1 }
 0x4fa   :  { %v10578_v10 = vpop.f32.mrb[70].mxu1  ;;  %v13746_v45 = vadd.f32 %v13557_v41, %v5114_v11 }
 0x4fb   :  { %v13688_v12 = vpop.f32.mrb[71].mxu1 }
 0x500   :  { %v13690_v18 = vpop.f32.mrb[72].mxu1 }
 0x501   :  { %v13692_v58 = vpop.f32.mrb[73].mxu1 }
 0x502   :  { %v13694_v63 = vpop.f32.mrb[74].mxu1 }
 0x503   :  { %v13696_v36 = vpop.f32.mrb[75].mxu1 }
 0x508   :  { %v13698_v62 = vpop.f32.mrb[76].mxu1 }
 0x509   :  { %v13700_v15 = vpop.f32.mrb[77].mxu1 }
 0x50a   :  { %v13702_v47 = vpop.f32.mrb[78].mxu1 }
 0x50b   :  { %v13704_v50 = vpop.f32.mrb[79].mxu1 }
 0x510   :  { %v13706_v59 = vpop.f32.mrb[80].mxu1 }
 0x511   :  { %v13709_v5 = vpop.f32.mrb[81].mxu1 }
 0x512   :  { %v10590_v40 = vpop.f32.mrb[82].mxu1 }
 0x513   :  { %v5174_v26 = vadd.f32 %v10590_v40, %v13557_v41  ;;  %v13712_v32 = vpop.f32.mrb[83].mxu1 }
 0x515   :  { %v5348_v39 = vmax.f32 %v5174_v26, 0.0  ;;  %v13727_v26 = vadd.f32 %v13557_v41, %v5098_v14  ;;  %v5325_v14 = vmax.f32 %v5083_v2, 0.0  ;;  %v13743_v2 = vadd.f32 %v10577_v21, %v13557_v41 }
 0x516   :  { %v5118_v21 = vadd.f32 %v13557_v41, %v13688_v12  ;;  %v13766_v12 = vadd.f32 %v13557_v41, %v13692_v58  ;;  %v13776_v58 = vadd.f32 %v13694_v63, %v13557_v41 }
 0x517   :  { %v5398_v19 = vmax.f32 %v5323_v31, %v5348_v39  ;;  %v5329_v42 = vmax.f32 %v13727_v26, 0.0  ;;  %v13750_v26 = vadd.f32 %v10578_v10, %v13557_v41 }
 0x518   :  { %v10593_v54 = vpop.f32.mrb[84].mxu1 }
 0x519   :  { %v5423_v40 = vmax.f32 %v13576_v53, %v5398_v19  ;;  %v5187_v16 = vadd.f32 %v10593_v54, %v13557_v41  ;;  %v5178_v57 = vpop.f32.mrb[85].mxu1  ;;  %v5324_v19 = vmax.f32 %v5078_v1, 0.0  ;;  %v5327_v54 = vmax.f32 %v5091_v37, 0.0 }
 0x51a   :  { %v5179_v8 = vadd.f32 %v13557_v41, %v5178_v57  ;;  %v10594_v25 = vpop.f32.mrb[86].mxu1  ;;  %v5330_v1 = vmax.f32 %v5102_v35, 0.0 }
 0x51b   :  { %v9342_v31 = vpack.c.bf16 %v5423_v40, %v5423_v40  ;;  %v5351_v3 = vmax.f32 %v5187_v16, 0.0  ;;  %v5190_v53 = vadd.f32 %v10594_v25, %v13557_v41  ;;  %v5181_v39 = vpop.f32.mrb[87].mxu1  ;;  %v5332_v25 = vmax.f32 %v13730_v6, 0.0 }
 0x51c   :  { %v5349_v4 = vmax.f32 %v5179_v8, 0.0  ;;  %v5182_v13 = vadd.f32 %v13557_v41, %v5181_v39 }
 0x51d   :  { %5549 = vst.msk [vmem:[#allocation2] sm:$0xf] %vm1252_vm4, %v9342_v31  ;;  %v5401_v56 = vmax.f32 %v5326_v24, %v5351_v3  ;;  %v5352_v57 = vmax.f32 %v5190_v53, 0.0 }
 0x51e   :  { %v5399_v16 = vmax.f32 %v5324_v19, %v5349_v4  ;;  %v5350_v40 = vmax.f32 %v5182_v13, 0.0  ;;  %v13760_v19 = vadd.f32 %v13690_v18, %v13557_v41  ;;  %v5335_v18 = vmax.f32 %v13743_v2, 0.0 }
 0x51f   :  { %v5426_v37 = vmax.f32 %v13591_v34, %v5401_v56  ;;  %v5402_v8 = vmax.f32 %v5327_v54, %v5352_v57  ;;  %v5333_v57 = vmax.f32 %v13746_v45, 0.0  ;;  %v13781_v2 = vadd.f32 %v13557_v41, %v13696_v36 }
 0x520   :  { %v5424_v24 = vmax.f32 %v13567_v33, %v5399_v16  ;;  %v5400_v31 = vmax.f32 %v5325_v14, %v5350_v40  ;;  %v10597_v38 = vpop.f32.mrb[88].mxu1 }
 0x521   :  { %v9345_v13 = vpack.c.bf16 %v5426_v37, %v5426_v37  ;;  %v5427_v3 = vmax.f32 %v13598_v9, %v5402_v8  ;;  %v5203_v35 = vadd.f32 %v10597_v38, %v13557_v41  ;;  %v5194_v34 = vpop.f32.mrb[89].mxu1  ;;  %v5336_v37 = vmax.f32 %v13750_v26, 0.0 }
 0x522   :  { %v9343_v53 = vpack.c.bf16 %v5424_v24, %v5424_v24  ;;  %v5425_v11 = vmax.f32 %v13573_v29, %v5400_v31  ;;  %v5195_v39 = vadd.f32 %v13557_v41, %v5194_v34  ;;  %v10598_v33 = vpop.f32.mrb[90].mxu1  ;;  %v5334_v31 = vmax.f32 %v5118_v21, 0.0 }
 0x523   :  { %5552 = vst.msk [vmem:[#allocation2 + $0xc] sm:$0xf] %vm1252_vm4, %v9345_v13  ;;  %v9346_v10 = vpack.c.bf16 %v5427_v3, %v5427_v3  ;;  %v5355_v9 = vmax.f32 %v5203_v35, 0.0  ;;  %v5206_v54 = vadd.f32 %v10598_v33, %v13557_v41  ;;  %v5197_v4 = vpop.f32.mrb[91].mxu1  ;;  %v5337_v13 = vmax.f32 %v13766_v12, 0.0 }
 0x524   :  { %5550 = vst.msk [vmem:[#allocation2 + $0x4] sm:$0xf] %vm1252_vm4, %v9343_v53  ;;  %v9344_v29 = vpack.c.bf16 %v5425_v11, %v5425_v11  ;;  %v5353_v14 = vmax.f32 %v5195_v39, 0.0  ;;  %v5198_v56 = vadd.f32 %v13557_v41, %v5197_v4 }
 0x525   :  { %5553 = vst.msk [vmem:[#allocation2 + $0x10] sm:$0xf] %vm1252_vm4, %v9346_v10  ;;  %v5405_v16 = vmax.f32 %v5330_v1, %v5355_v9  ;;  %v5356_v40 = vmax.f32 %v5206_v54, 0.0  ;;  %v5339_v1 = vmax.f32 %v13760_v19, 0.0  ;;  %v13803_v54 = vadd.f32 %v13557_v41, %v13700_v15 }
 0x526   :  { %5551 = vst.msk [vmem:[#allocation2 + $0x8] sm:$0xf] %vm1252_vm4, %v9344_v29  ;;  %v5403_v8 = vmax.f32 %v5328_v22, %v5353_v14  ;;  %v5354_v24 = vmax.f32 %v5198_v56, 0.0  ;;  %v13789_v22 = vadd.f32 %v13698_v62, %v13557_v41  ;;  %v13814_v15 = vadd.f32 %v13702_v47, %v13557_v41 }
 0x527   :  { %v5430_v45 = vmax.f32 %v13612_v60, %v5405_v16  ;;  %v5406_v38 = vmax.f32 %v5331_v7, %v5356_v40  ;;  %v5340_v60 = vmax.f32 %v13776_v58, 0.0  ;;  %v13825_v47 = vadd.f32 %v13557_v41, %v13704_v50 }
 0x528   :  { %v5428_v3 = vmax.f32 %v13586_v44, %v5403_v8  ;;  %v5404_v63 = vmax.f32 %v5329_v42, %v5354_v24  ;;  %v10601_v35 = vpop.f32.mrb[92].mxu1  ;;  %v5338_v42 = vmax.f32 %v13781_v2, 0.0  ;;  %v5343_v14 = vmax.f32 %v13789_v22, 0.0 }
 0x529   :  { %v9349_v34 = vpack.c.bf16 %v5430_v45, %v5430_v45  ;;  %v5431_v21 = vmax.f32 %v13620_v23, %v5406_v38  ;;  %v5219_v36 = vadd.f32 %v10601_v35, %v13557_v41  ;;  %v5210_v53 = vpop.f32.mrb[93].mxu1  ;;  %v5341_v35 = vmax.f32 %v13803_v54, 0.0 }
 0x52a   :  { %v9347_v7 = vpack.c.bf16 %v5428_v3, %v5428_v3  ;;  %v5429_v11 = vmax.f32 %v13594_v27, %v5404_v63  ;;  %v5211_v39 = vadd.f32 %v13557_v41, %v5210_v53  ;;  %v10602_v44 = vpop.f32.mrb[94].mxu1  ;;  %v5344_v50 = vmax.f32 %v13814_v15, 0.0 }
 0x52b   :  { %5556 = vst.msk [vmem:[#allocation2 + $0x1c] sm:$0xf] %vm1252_vm4, %v9349_v34  ;;  %v9350_v62 = vpack.c.bf16 %v5431_v21, %v5431_v21  ;;  %v5359_v33 = vmax.f32 %v5219_v36, 0.0  ;;  %v5222_v10 = vadd.f32 %v10602_v44, %v13557_v41  ;;  %v5213_v23 = vpop.f32.mrb[95].mxu1  ;;  %v13799_v9 = vld [vmem:[#allocation2] sm:$0xff]  }
 0x52c   :  { %5554 = vst.msk [vmem:[#allocation2 + $0x14] sm:$0xf] %vm1252_vm4, %v9347_v7  ;;  %v9348_v27 = vpack.c.bf16 %v5429_v11, %v5429_v11  ;;  %v5357_v4 = vmax.f32 %v5211_v39, 0.0  ;;  %v5214_v29 = vadd.f32 %v13557_v41, %v5213_v23  ;;  %v5813_v8 = vshll.u32 %v13799_v9, 16 }
 0x52d   :  { %5557 = vst.msk [vmem:[#allocation2 + $0x20] sm:$0xf] %vm1252_vm4, %v9350_v62  ;;  %v5409_v56 = vmax.f32 %v5334_v31, %v5359_v33  ;;  %v5360_v16 = vmax.f32 %v5222_v10, 0.0  ;;  %v13809_v40 = vld [vmem:[#allocation2 + $0x8] sm:$0xff]   ;;  %v5811_v45 = vshrl.u32 %v13799_v9, 16 }
 0x52e   :  { %5555 = vst.msk [vmem:[#allocation2 + $0x18] sm:$0xf] %vm1252_vm4, %v9348_v27  ;;  %v5407_v24 = vmax.f32 %v5332_v25, %v5357_v4  ;;  %v5358_v2 = vmax.f32 %v5214_v29, 0.0  ;;  %v5815_v3 = vrot.slane %v5813_v8, 1  ;;  %v5817_v63 = vshll.u32 %v13809_v40, 16 }
 0x52f   :  { %v5434_v38 = vmax.f32 %v13632_v48, %v5409_v56  ;;  %v5410_v31 = vmax.f32 %v5335_v18, %v5360_v16  ;;  %v13845_v56 = vld [vmem:[#allocation2 + $0x10] sm:$0xf]  ;;  %v5342_v16 = vmax.f32 %v13825_v47, 0.0  ;;  %v13867_v47 = vld [vmem:[%s15137_s3 + $0x28] sm:$0xff]  }
 0x530   :  { %v5432_v34 = vmax.f32 %v13610_v49, %v5407_v24  ;;  %v5408_v21 = vmax.f32 %v5333_v57, %v5358_v2  ;;  %v10605_v6 = vpop.f32.mrb[96].mxu1  ;;  %v5816_v18 = vor.u32 %v5815_v3, %v5811_v45  ;;  %v5819_v62 = vrot.slane %v5817_v63, 1  ;;  %v13835_v49 = vld [vmem:[%s15137_s3 + $0x20] sm:$0xff]  }
 0x531   :  { %v9353_v25 = vpack.c.bf16 %v5434_v38, %v5434_v38  ;;  %v5435_v36 = vmax.f32 %v13640_v55, %v5410_v31  ;;  %v5235_v53 = vadd.f32 %v10605_v6, %v13557_v41  ;;  %v5226_v48 = vpop.f32.mrb[97].mxu1 }
 0x532   :  { %v9351_v7 = vpack.c.bf16 %v5432_v34, %v5432_v34  ;;  %v5433_v11 = vmax.f32 %v13616_v0, %v5408_v21  ;;  %v5227_v39 = vadd.f32 %v13557_v41, %v5226_v48  ;;  %v10606_v44 = vpop.f32.mrb[98].mxu1  ;;  %v13843_v29 = vsel %vm1313_vm5, %v5816_v18, %v5819_v62  ;;  %v13854_v38 = vld [vmem:[#allocation2 + $0x1c] sm:$0xf] }
 0x533   :  { %5560 = vst.msk [vmem:[#allocation2 + $0x2c] sm:$0xf] %vm1252_vm4, %v9353_v25  ;;  %v9354_v55 = vpack.c.bf16 %v5435_v36, %v5435_v36  ;;  %v5363_v57 = vmax.f32 %v5235_v53, 0.0  ;;  %v5238_v33 = vadd.f32 %v10606_v44, %v13557_v41  ;;  %v5229_v10 = vpop.f32.mrb[99].mxu1  ;;  %v5803_v23 = vld [vmem:[#allocation2 + $0x14] sm:$0x3]  ;;  %10764 = vmatmul.mubr.msk.bf16.vlgmr.msra.gmra.mrb[108].mxu1 %vm1349_vm6, %v13843_v29  ;;  %v13871_v34 = vadd.f32 %v13557_v41, %v13712_v32 }
 0x534   :  { %5558 = vst.msk [vmem:[#allocation2 + $0x24] sm:$0xf] %vm1252_vm4, %v9351_v7  ;;  %v9352_v0 = vpack.c.bf16 %v5433_v11, %v5433_v11  ;;  %v5361_v27 = vmax.f32 %v5227_v39, 0.0  ;;  %v5230_v4 = vadd.f32 %v13557_v41, %v5229_v10  ;;  %v13852_v2 = vcombine.low %v13845_v56, %v5803_v23  ;;  %10767 = vmatprep.mubr.msk.bf16.mxu1 %vm11442_vm3, %v15148_v43 }
 0x535   :  { %5561 = vst.msk [vmem:[#allocation2 + $0x30] sm:$0xf] %vm1252_vm4, %v9354_v55  ;;  %v5413_v8 = vmax.f32 %v5338_v42, %v5363_v57  ;;  %v5364_v24 = vmax.f32 %v5238_v33, 0.0  ;;  %v5584_v45 = vld [vmem:[#allocation2 + $0x18] sm:$0xf]  ;;  %v5821_v42 = vshrl.u32 %v13809_v40, 16  ;;  %10792 = vmatpush3.bf16.msra.mxu1 %v13835_v49 }
 0x536   :  { %5559 = vst.msk [vmem:[#allocation2 + $0x28] sm:$0xf] %vm1252_vm4, %v9352_v0  ;;  %v5411_v31 = vmax.f32 %v5336_v37, %v5361_v27  ;;  %v5362_v3 = vmax.f32 %v5230_v4, 0.0  ;;  %v9137_v63 = vcombine.low %v5584_v45, %v13854_v38  ;;  %v5825_v21 = vshll.u32 %v13852_v2, 16  ;;  %10793 = vmatprep.subr.bf16.mxu1 %v15148_v43 }
 0x537   :  { %v5438_v26 = vmax.f32 %v13652_v46, %v5413_v8  ;;  %v5414_v37 = vmax.f32 %v5339_v1, %v5364_v24  ;;  %v5823_v53 = vor.u32 %v5821_v42, %v5819_v62  ;;  %v13898_v0 = vadd.f32 %v13706_v59, %v13557_v41 }
 0x538   :  { %v5436_v6 = vmax.f32 %v13630_v61, %v5411_v31  ;;  %v5412_v25 = vmax.f32 %v5337_v13, %v5362_v3  ;;  %v10609_v36 = vpop.f32.mrb[100].mxu1  ;;  %v5612_v48 = vshll.u32 %v9137_v63, 16  ;;  %v5827_v19 = vrot.slane %v5825_v21, 1 }
 0x539   :  { %v9357_v18 = vpack.c.bf16 %v5438_v26, %v5438_v26  ;;  %v5439_v32 = vmax.f32 %v13660_v30, %v5414_v37  ;;  %v5251_v46 = vadd.f32 %v10609_v36, %v13557_v41  ;;  %v5242_v7 = vpop.f32.mrb[101].mxu1  ;;  %10794 = vmatpush3.bf16.msra.mxu1 %v13867_v47  ;;  %v5610_v23 = vshrl.u32 %v9137_v63, 16  ;;  %v6760_v36 = vld [vmem:[#allocation2 + $0x18] sm:$0xe] }
 0x53a   :  { %v9355_v1 = vpack.c.bf16 %v5436_v6, %v5436_v6  ;;  %v5437_v11 = vmax.f32 %v13636_v28, %v5412_v25  ;;  %v5243_v39 = vadd.f32 %v13557_v41, %v5242_v7  ;;  %v10610_v44 = vpop.f32.mrb[102].mxu1  ;;  %v5614_v61 = vrot.slane %v5612_v48, 1  ;;  %10823 = vmatprep.subr.bf16.mxu1 %v15148_v43 }
 0x53b   :  { %5564 = vst.msk [vmem:[#allocation2 + $0x3c] sm:$0xf] %vm1252_vm4, %v9357_v18  ;;  %v9358_v12 = vpack.c.bf16 %v5439_v32, %v5439_v32  ;;  %v5367_v13 = vmax.f32 %v5251_v46, 0.0  ;;  %v5254_v62 = vadd.f32 %v10610_v44, %v13557_v41  ;;  %v5245_v30 = vpop.f32.mrb[103].mxu1  ;;  %v13889_v55 = vsel %vm1313_vm5, %v5823_v53, %v5827_v19  ;;  %v13891_v57 = vld [vmem:[#allocation2 + $0x20] sm:$0xff]   ;;  %v13947_v46 = vld [vmem:[%s15137_s3 + $0x8] sm:$0xff]  }
 0x53c   :  { %5562 = vst.msk [vmem:[#allocation2 + $0x34] sm:$0xf] %vm1252_vm4, %v9355_v1  ;;  %v9356_v28 = vpack.c.bf16 %v5437_v11, %v5437_v11  ;;  %v5365_v33 = vmax.f32 %v5243_v39, 0.0  ;;  %v5246_v10 = vadd.f32 %v13557_v41, %v5245_v30  ;;  %10768 = vmatmul.mubr.msk.bf16.gmra.mrb[112].mxu1 %vm1349_vm6, %v13889_v55  ;;  %v5617_v8 = vshll.u32 %v13891_v57, 16 }
 0x53d   :  { %5565 = vst.msk [vmem:[#allocation2 + $0x40] sm:$0xf] %vm1252_vm4, %v9358_v12  ;;  %v5417_v27 = vmax.f32 %v5342_v16, %v5367_v13  ;;  %v5368_v4 = vmax.f32 %v5254_v62, 0.0  ;;  %v13904_v24 = vld [vmem:[#allocation2 + $0x28] sm:$0x3f]   ;;  %v5163_v45 = vadd.f32 %v13557_v41, %v13709_v5  ;;  %v5346_v31 = vmax.f32 %v13871_v34, 0.0  ;;  %10771 = vmatprep.mubr.msk.bf16.mxu1 %vm11442_vm3, %v15148_v43 }
 0x53e   :  { %5563 = vst.msk [vmem:[#allocation2 + $0x38] sm:$0xf] %vm1252_vm4, %v9356_v28  ;;  %v5415_v59 = vmax.f32 %v5340_v60, %v5365_v33  ;;  %v5366_v3 = vmax.f32 %v5246_v10, 0.0  ;;  %v5615_v63 = vor.u32 %v5614_v61, %v5610_v23  ;;  %v5619_v26 = vrot.slane %v5617_v8, 1  ;;  %v13920_v5 = vld [vmem:[%s15137_s3] sm:$0xff]  }
 0x53f   :  { %v5442_v16 = vmax.f32 %v13672_v20, %v5417_v27  ;;  %v5418_v42 = vmax.f32 %v5343_v14, %v5368_v4  ;;  %v5829_v60 = vshrl.u32 %v13852_v2, 16  ;;  %v5625_v20 = vshll.u32 %v13904_v24, 16  ;;  %v15207_v28 = vld [vmem:[#allocation6_spill] sm:$0xff]  ;;  %v15208_v23 = vld [vmem:[#allocation3_spill] sm:$0xff] }
 0x540   :  { %v5440_v34 = vmax.f32 %v13650_v52, %v5415_v59  ;;  %v5416_v58 = vmax.f32 %v5341_v35, %v5366_v3  ;;  %v10613_v37 = vpop.f32.mrb[104].mxu1  ;;  %v13930_v25 = vsel %vm1313_vm5, %v5615_v63, %v5619_v26  ;;  %v5347_v7 = vmax.f32 %v13898_v0, 0.0 }
 0x541   :  { %v9361_v21 = vpack.c.bf16 %v5442_v16, %v5442_v16  ;;  %v5443_v22 = vmax.f32 %v13678_v17, %v5418_v42  ;;  %v5267_v14 = vadd.f32 %v10613_v37, %v13557_v41  ;;  %v5258_v6 = vpop.f32.mrb[105].mxu1  ;;  %v13933_v54 = vor.u32 %v5829_v60, %v5827_v19  ;;  %10620 = vmatmul.mubr.msk.bf16.vlgmr.msra.gmra.mrb[12].mxu0 %vm1349_vm6, %v13930_v25  ;;  %v13977_v16 = vld [vmem:[%s15137_s3 + $0x40] sm:$0xff]  }
 0x542   :  { %v9359_v53 = vpack.c.bf16 %v5440_v34, %v5440_v34  ;;  %v5441_v52 = vmax.f32 %v13656_v51, %v5416_v58  ;;  %v5259_v35 = vadd.f32 %v13557_v41, %v5258_v6  ;;  %v10614_v2 = vpop.f32.mrb[106].mxu1  ;;  %10632 = vmatpush3.bf16.msra.mxu0 %v13920_v5  ;;  %10623 = vmatprep.mubr.msk.bf16.mxu0 %vm11442_vm3, %v15148_v43  ;;  %v5621_v51 = vshrl.u32 %v13891_v57, 16  ;;  %v13994_v34 = vld [vmem:[%s15137_s3 + $0x48] sm:$0xff]  }
 0x543   :  { %5568 = vst.msk [vmem:[#allocation2 + $0x4c] sm:$0xf] %vm1252_vm4, %v9361_v21  ;;  %v9362_v17 = vpack.c.bf16 %v5443_v22, %v5443_v22  ;;  %v5371_v48 = vmax.f32 %v5267_v14, 0.0  ;;  %v5270_v18 = vadd.f32 %v10614_v2, %v13557_v41  ;;  %v5261_v32 = vpop.f32.mrb[107].mxu1  ;;  %10633 = vmatprep.subr.bf16.mxu0 %v15148_v43  ;;  %v5627_v12 = vrot.slane %v5625_v20, 1 }
 0x544   :  { %5566 = vst.msk [vmem:[#allocation2 + $0x44] sm:$0xf] %vm1252_vm4, %v9359_v53  ;;  %v9360_v19 = vpack.c.bf16 %v5441_v52, %v5441_v52  ;;  %v5369_v1 = vmax.f32 %v5259_v35, 0.0  ;;  %v5262_v11 = vadd.f32 %v13557_v41, %v5261_v32  ;;  %10772 = vmatmul.mubr.msk.bf16.gmra.mrb[116].mxu1 %vm1349_vm6, %v13933_v54  ;;  %v5623_v61 = vor.u32 %v5621_v51, %v5619_v26  ;;  %v14010_v21 = vld [vmem:[#allocation2 + $0x30] sm:$0xfe]  }
 0x545   :  { %5569 = vst.msk [vmem:[#allocation2 + $0x50] sm:$0xf] %vm1252_vm4, %v9362_v17  ;;  %v5421_v39 = vmax.f32 %v5346_v31, %v5371_v48  ;;  %v5372_v44 = vmax.f32 %v5270_v18, 0.0  ;;  %v5345_v13 = vmax.f32 %v5163_v45, 0.0  ;;  %10795 = vmatprep.mubr.msk.bf16.mxu1 %vm11442_vm3, %v15148_v43  ;;  %v9213_v41 = vcombine.low %v6760_v36, %v13854_v38  ;;  %v15210_v38 = vld [vmem:[#allocation4_spill] sm:$0xff]  ;;  %v14003_v37 = vld [vmem:[#allocation2 + $0x38] sm:$0xff]  }
 0x546   :  { %5567 = vst.msk [vmem:[#allocation2 + $0x48] sm:$0xf] %vm1252_vm4, %v9360_v19  ;;  %v5419_v62 = vmax.f32 %v5344_v50, %v5369_v1  ;;  %v5370_v30 = vmax.f32 %v5262_v11, 0.0  ;;  %10634 = vmatpush3.bf16.msra.mxu0 %v13947_v46  ;;  %v6765_v4 = vrot.slane %v13891_v57, 1  ;;  %v15209_v50 = vld [vmem:[#allocation5_spill] sm:$0xff]  ;;  %v13969_v45 = vsel %vm1313_vm5, %v5623_v61, %v5627_v12 }
 0x547   :  { %v5446_v33 = vmax.f32 %v15207_v28, %v5421_v39  ;;  %v5422_v10 = vmax.f32 %v5347_v7, %v5372_v44  ;;  %10647 = vmatprep.subr.bf16.mxu0 %v15148_v43  ;;  %v6764_v3 = vrot.slane %v9213_v41, 1  ;;  %v5629_v26 = vshrl.u32 %v13904_v24, 16  ;;  %v14018_v53 = vld [vmem:[#allocation2 + $0x40] sm:$0xf] }
 0x548   :  { %v5444_v0 = vmax.f32 %v15208_v23, %v5419_v62  ;;  %v5420_v27 = vmax.f32 %v5345_v13, %v5370_v30  ;;  %v6767_v60 = vrot.slane %v13904_v24, 1  ;;  %v6182_v24 = vshrl.u32 %v14003_v37, 16 }
 0x549   :  { %v9365_v15 = vpack.c.bf16 %v5446_v33, %v5446_v33  ;;  %v5447_v8 = vmax.f32 %v15209_v50, %v5422_v10  ;;  %10624 = vmatmul.mubr.msk.bf16.gmra.mrb[16].mxu0 %vm1349_vm6, %v13969_v45  ;;  %v6766_v63 = vsel %vm1647_vm7, %v6764_v3, %v6765_v4  ;;  %v13997_v58 = vor.u32 %v5629_v26, %v5627_v12 }
 0x54a   :  { %v9363_v31 = vpack.c.bf16 %v5444_v0, %v5444_v0  ;;  %v5445_v59 = vmax.f32 %v15210_v38, %v5420_v27  ;;  %10627 = vmatprep.mubr.msk.bf16.mxu0 %vm11442_vm3, %v15148_v43  ;;  %v6768_v20 = vsel %vm1647_vm7, %v6765_v4, %v6767_v60  ;;  %v6185_v22 = vshll.u32 %v14003_v37, 16  ;;  %v14038_v39 = vld [vmem:[#allocation2 + $0x4c] sm:$0xf]  ;;  %v14058_v0 = vld [vmem:[%s15137_s3 + $0x60] sm:$0xff]  }
 0x54b   :  { %5572 = vst.msk [vmem:[#allocation2 + $0x5c] sm:$0xf] %vm1252_vm4, %v9365_v15  ;;  %v9366_v57 = vpack.c.bf16 %v5447_v8, %v5447_v8  ;;  %v6165_v14 = vld [vmem:[#allocation2 + $0x44] sm:$0x7]  ;;  %v6174_v6 = vshrl.u32 %v14010_v21, 16  ;;  %v6177_v36 = vshll.u32 %v14010_v21, 16 }
 0x54c   :  { %5570 = vst.msk [vmem:[#allocation2 + $0x54] sm:$0xf] %vm1252_vm4, %v9363_v31  ;;  %v9364_v42 = vpack.c.bf16 %v5445_v59, %v5445_v59  ;;  %10796 = vmatmul.mubr.msk.bf16.vlgmr.msra.gmra.mrb[120].mxu1 %vm1349_vm6, %v6766_v63  ;;  %v6184_v52 = vrot.slane %v6182_v24, 1  ;;  %v6187_v35 = vrot.slane %v6185_v22, 2  ;;  %v9175_v2 = vcombine.low %v14018_v53, %v6165_v14  ;;  %v14028_v48 = vld [vmem:[#allocation2 + $0x4c] sm:$0xfe]  }
 0x54d   :  { %5573 = vst.msk [vmem:[#allocation2 + $0x60] sm:$0xf] %vm1252_vm4, %v9366_v57  ;;  %10799 = vmatprep.mubr.msk.bf16.mxu1 %vm11442_vm3, %v15148_v43  ;;  %10824 = vmatpush3.bf16.msra.mxu1 %v13977_v16  ;;  %v6967_v18 = vld [vmem:[#allocation2 + $0x48] sm:$0xc]  ;;  %v6176_v7 = vrot.slane %v6174_v6, 1  ;;  %v6179_v19 = vrot.slane %v6177_v36, 2 }
 0x54e   :  { %5571 = vst.msk [vmem:[#allocation2 + $0x58] sm:$0xf] %vm1252_vm4, %v9364_v42  ;;  %10825 = vmatprep.subr.bf16.mxu1 %v15148_v43  ;;  %v6188_v1 = vor.u32 %v6187_v35, %v6184_v52  ;;  %v6191_v11 = vshrl.u32 %v9175_v2, 16  ;;  %v6194_v61 = vshll.u32 %v9175_v2, 16  ;;  %v9223_v13 = vcombine.low %v6967_v18, %v14038_v39  ;;  %v5579_v42 = vld [vmem:[#allocation2 + $0x14] sm:$0x1] }
 0x54f   :  { %v8465_v41 = vshrl.u32 %v14028_v48, 16  ;;  %v8468_v28 = vshll.u32 %v14028_v48, 16  ;;  %v6180_v10 = vor.u32 %v6179_v19, %v6176_v7  ;;  %v9147_v6 = vcombine.low %v13845_v56, %v5579_v42  ;;  %v14112_v2 = vld [vmem:[%s15137_s3 + $0x30] sm:$0xff]   ;;  %v14122_v18 = vld [vmem:[%s15137_s3 + $0x38] sm:$0xff]   ;;  %v14136_v7 = vld [vmem:[%s15137_s3 + $0x80] sm:$0xff]  }
 0x550   :  { %v6971_v23 = vrot.slane %v9223_v13, 2  ;;  %v6193_v3 = vrot.slane %v6191_v11, 1  ;;  %v6196_v57 = vrot.slane %v6194_v61, 2  ;;  %v5942_v11 = vrot.slane %v14003_v37, 1  ;;  %v5921_v61 = vld [vmem:[#allocation2 + $0x44] sm:$0x3] }
 0x551   :  { %10628 = vmatmul.mubr.msk.bf16.gmra.mrb[20].mxu0 %vm1349_vm6, %v13997_v58  ;;  %10826 = vmatpush3.bf16.msra.mxu1 %v13994_v34  ;;  %v8467_v4 = vrot.slane %v8465_v41, 1  ;;  %v8470_v15 = vrot.slane %v8468_v28, 2  ;;  %v14071_v59 = vsel %vm1762_vm8, %v6180_v10, %v6188_v1  ;;  %v6431_v41 = vld [vmem:[#allocation2 + $0x2c] sm:$0xf]  ;;  %v7174_v10 = vld [vmem:[#allocation2 + $0x30] sm:$0x3] }
 0x552   :  { %10635 = vmatprep.mubr.msk.bf16.mxu0 %vm11442_vm3, %v15148_v43  ;;  %10855 = vmatprep.subr.bf16.mxu1 %v15148_v43  ;;  %v14040_v44 = vld [vmem:[#allocation2 + $0x5c] sm:$0xf]  ;;  %v14087_v36 = vor.u32 %v6196_v57, %v6193_v3 }
 0x553   :  { %v14026_v17 = vld [vmem:[#allocation2 + $0x50] sm:$0xff]   ;;  %v8471_v24 = vor.u32 %v8470_v15, %v8467_v4  ;;  %v6030_v15 = vld [vmem:[#allocation2 + $0x48] sm:$0xe] }
 0x554   :  { %10800 = vmatmul.mubr.msk.bf16.gmra.mrb[124].mxu1 %vm1349_vm6, %v6768_v20  ;;  %v6972_v62 = vrot.slane %v14026_v17, 2  ;;  %v14081_v20 = vld [vmem:[%s15137_s3 + $0x68] sm:$0xff]   ;;  %v14103_v56 = vsel %vm1762_vm8, %v6188_v1, %v14087_v36  ;;  %v6064_v57 = vshrl.u32 %v14026_v17, 16  ;;  %v6067_v42 = vshll.u32 %v14026_v17, 16 }
 0x555   :  { %10803 = vmatprep.mubr.msk.bf16.mxu1 %vm11442_vm3, %v15148_v43  ;;  %v14031_v32 = vld [vmem:[#allocation2 + $0x58] sm:$0x7f]   ;;  %v14156_v1 = vld [vmem:[#allocation2 + $0x24] sm:$0xff]  }
 0x556   :  { %v14033_v51 = vld [vmem:[#allocation2 + $0x54] sm:$0xff]   ;;  %v14048_v30 = vrot.slane %v14031_v32, 2  ;;  %v14067_v8 = vsel %vm2680_vm10, %v6971_v23, %v6972_v62 }
 0x557   :  { %v8473_v33 = vshrl.u32 %v14033_v51, 16 }
 0x558   :  { %v14062_v27 = vsel %vm2680_vm10, %v6972_v62, %v14048_v30  ;;  %v9161_v62 = vcombine.low %v14018_v53, %v5921_v61 }
 0x559   :  { %10636 = vmatmul.mubr.msk.bf16.vlgmr.msra.gmra.mrb[24].mxu0 %vm1349_vm6, %v13799_v9  ;;  %v8460_v9 = vld [vmem:[#allocation2 + $0x60] sm:$0x7]  ;;  %v8475_v50 = vrot.slane %v8473_v33, 1 }
 0x55a   :  { %10648 = vmatpush3.bf16.msra.mxu0 %v13835_v49  ;;  %10639 = vmatprep.mubr.msk.bf16.mxu0 %vm11442_vm3, %v15148_v43  ;;  %v9295_v12 = vcombine.low %v14040_v44, %v8460_v9  ;;  %v6427_v9 = vld [vmem:[#allocation2 + $0x1c] sm:$0xf]  ;;  %v14183_v53 = vrot.slane %v9161_v62, 1 }
 0x55b   :  { %10649 = vmatprep.subr.bf16.mxu0 %v15148_v43 }
 0x55c   :  { %10804 = vmatmul.mubr.msk.bf16.gmra.mrb[128].mxu1 %vm1349_vm6, %v6767_v60  ;;  %v8482_v31 = vshrl.u32 %v9295_v12, 16  ;;  %v8485_v38 = vshll.u32 %v9295_v12, 16  ;;  %v6432_v12 = vld [vmem:[#allocation2 + $0x30] sm:$0x1] }
 0x55d   :  { %10827 = vmatprep.mubr.msk.bf16.mxu1 %vm11442_vm3, %v15148_v43  ;;  %v14175_v37 = vcombine.low %v6431_v41, %v6432_v12  ;;  %v6076_v12 = vshll.u32 %v14031_v32, 16 }
 0x55e   :  { %10650 = vmatpush3.bf16.msra.mxu0 %v13867_v47  ;;  %v8484_v26 = vrot.slane %v8482_v31, 1  ;;  %v8487_v60 = vrot.slane %v8485_v38, 2  ;;  %v9233_v31 = vcombine.low %v6431_v41, %v7174_v10  ;;  %v9167_v38 = vcombine.low %v6030_v15, %v14038_v39  ;;  %v14229_v41 = vld [vmem:[%s15137_s3 + $0x50] sm:$0xff]  }
 0x55f   :  { %10663 = vmatprep.subr.bf16.mxu0 %v15148_v43  ;;  %v6078_v10 = vrot.slane %v6076_v12, 2 }
 0x560   :  { %v14084_v14 = vor.u32 %v8487_v60, %v8484_v26  ;;  %v7192_v26 = vshll.u32 %v9233_v31, 16  ;;  %v6056_v60 = vshrl.u32 %v9167_v38, 16  ;;  %v6059_v39 = vshll.u32 %v9167_v38, 16 }
 0x561   :  { %10640 = vmatmul.mubr.msk.bf16.gmra.mrb[28].mxu0 %vm1349_vm6, %v13809_v40  ;;  %v8476_v40 = vshll.u32 %v14033_v51, 16 }
 0x562   :  { %10643 = vmatprep.mubr.msk.bf16.mxu0 %vm11442_vm3, %v15148_v43  ;;  %v6058_v17 = vrot.slane %v6056_v60, 1  ;;  %v14288_v60 = vld [vmem:[#allocation2 + $0x14] sm:$0xf] }
 0x563   :  { %v8478_v63 = vrot.slane %v8476_v40, 2 }
 0x564   :  { %10828 = vmatmul.mubr.msk.bf16.vlgmr.msra.gmra.mrb[132].mxu1 %vm1349_vm6, %v14071_v59 }
 0x565   :  { %10831 = vmatprep.mubr.msk.bf16.mxu1 %vm11442_vm3, %v15148_v43  ;;  %10856 = vmatpush3.bf16.msra.mxu1 %v14058_v0  ;;  %v8479_v22 = vor.u32 %v8478_v63, %v8475_v50  ;;  %v14192_v50 = vsel %vm1647_vm7, %v5942_v11, %v14183_v53  ;;  %v7188_v63 = vshrl.u32 %v14156_v1, 16 }
 0x566   :  { %10857 = vmatprep.subr.bf16.mxu1 %v15148_v43 }
 0x567   :  { %v14090_v52 = vsel %vm1762_vm8, %v8471_v24, %v8479_v22  ;;  %v14094_v35 = vsel %vm1762_vm8, %v8479_v22, %v14084_v14  ;;  %v6066_v22 = vrot.slane %v6064_v57, 1  ;;  %v6283_v57 = vld [vmem:[#allocation2] sm:$0x8] }
 0x569   :  { %10644 = vmatmul.mubr.msk.bf16.gmra.mrb[32].mxu0 %vm1349_vm6, %v9147_v6  ;;  %10858 = vmatpush3.bf16.msra.mxu1 %v14081_v20  ;;  %v6069_v6 = vrot.slane %v6067_v42, 2 }
 0x56a   :  { %10651 = vmatprep.mubr.msk.bf16.mxu0 %vm11442_vm3, %v15148_v43  ;;  %10887 = vmatprep.subr.bf16.mxu1 %v15148_v43 }
 0x56b   :  { %v6070_v61 = vor.u32 %v6069_v6, %v6066_v22 }
 0x56c   :  { %10832 = vmatmul.mubr.msk.bf16.gmra.mrb[136].mxu1 %vm1349_vm6, %v14103_v56 }
 0x56d   :  { %10835 = vmatprep.mubr.msk.bf16.mxu1 %vm11442_vm3, %v15148_v43 }
 0x571   :  { %10652 = vmatmul.mubr.msk.bf16.vlgmr.msra.gmra.mrb[36].mxu0 %vm1349_vm6, %v13843_v29  ;;  %v6428_v29 = vld [vmem:[#allocation2 + $0x20] sm:$0xf] }
 0x572   :  { %10664 = vmatpush3.bf16.msra.mxu0 %v14112_v2  ;;  %10655 = vmatprep.mubr.msk.bf16.mxu0 %vm11442_vm3, %v15148_v43  ;;  %v14138_v19 = vcombine.low %v6427_v9, %v6428_v29  ;;  %v7194_v29 = vrot.slane %v7192_v26, 1  ;;  %v6061_v9 = vrot.slane %v6059_v39, 2 }
 0x573   :  { %10665 = vmatprep.subr.bf16.mxu0 %v15148_v43 }
 0x574   :  { %10836 = vmatmul.mubr.msk.bf16.gmra.mrb[140].mxu1 %vm1349_vm6, %v14087_v36  ;;  %v7180_v28 = vshll.u32 %v14138_v19, 16  ;;  %v7178_v23 = vshrl.u32 %v14138_v19, 16  ;;  %v6062_v62 = vor.u32 %v6061_v9, %v6058_v17 }
 0x575   :  { %10859 = vmatprep.mubr.msk.bf16.mxu1 %vm11442_vm3, %v15148_v43 }
 0x576   :  { %10666 = vmatpush3.bf16.msra.mxu0 %v14122_v18  ;;  %v7182_v33 = vrot.slane %v7180_v28, 1  ;;  %v7196_v28 = vshrl.u32 %v9233_v31, 16  ;;  %v14276_v31 = vld [vmem:[#allocation2 + $0x4] sm:$0xf] }
 0x577   :  { %10679 = vmatprep.subr.bf16.mxu0 %v15148_v43  ;;  %v9181_v42 = vcombine.low %v6283_v57, %v14276_v31 }
 0x578   :  { %v7183_v40 = vor.u32 %v7182_v33, %v7178_v23  ;;  %v14236_v23 = vor.u32 %v7196_v28, %v7194_v29 }
 0x579   :  { %10656 = vmatmul.mubr.msk.bf16.gmra.mrb[40].mxu0 %vm1349_vm6, %v13889_v55  ;;  %v14150_v55 = vld [vmem:[%s15137_s3 + $0x88] sm:$0xff]   ;;  %v6313_v39 = vshrl.u32 %v9181_v42, 16 }
 0x57a   :  { %10659 = vmatprep.mubr.msk.bf16.mxu0 %vm11442_vm3, %v15148_v43 }
 0x57b   :  { %v6315_v17 = vrot.slane %v6313_v39, 3 }
 0x57c   :  { %10860 = vmatmul.mubr.msk.bf16.vlgmr.msra.gmra.mrb[144].mxu1 %vm1349_vm6, %v14138_v19 }
 0x57d   :  { %10863 = vmatprep.mubr.msk.bf16.mxu1 %vm11442_vm3, %v15148_v43  ;;  %10888 = vmatpush3.bf16.msra.mxu1 %v14136_v7 }
 0x57e   :  { %10889 = vmatprep.subr.bf16.mxu1 %v15148_v43 }
 0x581   :  { %10660 = vmatmul.mubr.msk.bf16.gmra.mrb[44].mxu0 %vm1349_vm6, %v13933_v54  ;;  %10890 = vmatpush3.bf16.msra.mxu1 %v14150_v55  ;;  %v5941_v54 = vrot.slane %v14010_v21, 1  ;;  %v7184_v21 = vshll.u32 %v14156_v1, 16 }
 0x582   :  { %10667 = vmatprep.mubr.msk.bf16.mxu0 %vm11442_vm3, %v15148_v43  ;;  %10919 = vmatprep.subr.bf16.mxu1 %v15148_v43 }
 0x583   :  { %v14168_v13 = vsel %vm1647_vm7, %v5941_v54, %v5942_v11  ;;  %v7186_v4 = vrot.slane %v7184_v21, 1  ;;  %v6073_v54 = vshrl.u32 %v14031_v32, 16  ;;  %v14232_v21 = vsel %vm1762_vm8, %v6062_v62, %v6070_v61  ;;  %v14244_v32 = vld [vmem:[%s15137_s3 + $0x58] sm:$0xff]  }
 0x584   :  { %10864 = vmatmul.mubr.msk.bf16.gmra.mrb[148].mxu1 %vm1349_vm6, %v14156_v1 }
 0x585   :  { %10867 = vmatprep.mubr.msk.bf16.mxu1 %vm11442_vm3, %v15148_v43  ;;  %v14200_v3 = vsel %vm1313_vm5, %v7183_v40, %v7186_v4  ;;  %v7190_v24 = vor.u32 %v7188_v63, %v7186_v4  ;;  %v6075_v33 = vrot.slane %v6073_v54, 1  ;;  %v14269_v40 = vld [vmem:[#allocation2 + $0x8] sm:$0xf] }
 0x587   :  { %v14218_v11 = vsel %vm1313_vm5, %v7190_v24, %v7194_v29  ;;  %v14249_v4 = vor.u32 %v6078_v10, %v6075_v33  ;;  %v6316_v24 = vshll.u32 %v9181_v42, 16  ;;  %v6289_v10 = vld [vmem:[#allocation2 + $0x18] sm:$0x1] }
 0x588   :  { %v9184_v57 = vcombine.low %v6289_v10, %v6289_v10 }
 0x589   :  { %10668 = vmatmul.mubr.msk.bf16.vlgmr.msra.gmra.mrb[48].mxu0 %vm1349_vm6, %v14168_v13  ;;  %v14257_v15 = vsel %vm1762_vm8, %v6070_v61, %v14249_v4  ;;  %v6318_v9 = vrot.slane %v6316_v24, 4  ;;  %v14335_v24 = vld [vmem:[%s15137_s3 + $0x78] sm:$0xff]  }
 0x58a   :  { %10680 = vmatpush3.bf16.msra.mxu0 %v13977_v16  ;;  %10671 = vmatprep.mubr.msk.bf16.mxu0 %vm11442_vm3, %v15148_v43 }
 0x58b   :  { %10681 = vmatprep.subr.bf16.mxu0 %v15148_v43  ;;  %v6319_v62 = vor.u32 %v6318_v9, %v6315_v17 }
 0x58c   :  { %10868 = vmatmul.mubr.msk.bf16.gmra.mrb[152].mxu1 %vm1349_vm6, %v14175_v37 }
 0x58d   :  { %10891 = vmatprep.mubr.msk.bf16.mxu1 %vm11442_vm3, %v15148_v43 }
 0x58e   :  { %10682 = vmatpush3.bf16.msra.mxu0 %v13994_v34 }
 0x58f   :  { %10695 = vmatprep.subr.bf16.mxu0 %v15148_v43 }
 0x591   :  { %10672 = vmatmul.mubr.msk.bf16.gmra.mrb[52].mxu0 %vm1349_vm6, %v14192_v50 }
 0x592   :  { %10675 = vmatprep.mubr.msk.bf16.mxu0 %vm11442_vm3, %v15148_v43 }
 0x594   :  { %10892 = vmatmul.mubr.msk.bf16.vlgmr.msra.gmra.mrb[156].mxu1 %vm1349_vm6, %v14200_v3 }
 0x595   :  { %10895 = vmatprep.mubr.msk.bf16.mxu1 %vm11442_vm3, %v15148_v43  ;;  %10920 = vmatpush3.bf16.msra.mxu1 %v13920_v5 }
 0x596   :  { %10921 = vmatprep.subr.bf16.mxu1 %v15148_v43 }
 0x599   :  { %10676 = vmatmul.mubr.msk.bf16.gmra.mrb[56].mxu0 %vm1349_vm6, %v14183_v53  ;;  %10922 = vmatpush3.bf16.msra.mxu1 %v13947_v46 }
 0x59a   :  { %10683 = vmatprep.mubr.msk.bf16.mxu0 %vm11442_vm3, %v15148_v43  ;;  %10951 = vmatprep.subr.bf16.mxu1 %v15148_v43 }
 0x59c   :  { %10896 = vmatmul.mubr.msk.bf16.gmra.mrb[160].mxu1 %vm1349_vm6, %v14218_v11 }
 0x59d   :  { %10899 = vmatprep.mubr.msk.bf16.mxu1 %vm11442_vm3, %v15148_v43 }
 0x5a1   :  { %10684 = vmatmul.mubr.msk.bf16.vlgmr.msra.gmra.mrb[60].mxu0 %vm1349_vm6, %v14232_v21 }
 0x5a2   :  { %10696 = vmatpush3.bf16.msra.mxu0 %v14229_v41  ;;  %10687 = vmatprep.mubr.msk.bf16.mxu0 %vm11442_vm3, %v15148_v43 }
 0x5a3   :  { %10697 = vmatprep.subr.bf16.mxu0 %v15148_v43 }
 0x5a4   :  { %10900 = vmatmul.mubr.msk.bf16.gmra.mrb[164].mxu1 %vm1349_vm6, %v14236_v23 }
 0x5a5   :  { %10923 = vmatprep.mubr.msk.bf16.mxu1 %vm11442_vm3, %v15148_v43 }
 0x5a6   :  { %10698 = vmatpush3.bf16.msra.mxu0 %v14244_v32 }
 0x5a7   :  { %10711 = vmatprep.subr.bf16.mxu0 %v15148_v43 }
 0x5a9   :  { %10688 = vmatmul.mubr.msk.bf16.gmra.mrb[64].mxu0 %vm1349_vm6, %v14257_v15 }
 0x5aa   :  { %10691 = vmatprep.mubr.msk.bf16.mxu0 %vm11442_vm3, %v15148_v43 }
 0x5ac   :  { %10924 = vmatmul.mubr.msk.bf16.vlgmr.msra.gmra.mrb[168].mxu1 %vm1349_vm6, %v14168_v13  ;;  %v14278_v13 = vld [vmem:[#allocation2 + $0xc] sm:$0xf] }
 0x5ad   :  { %10927 = vmatprep.mubr.msk.bf16.mxu1 %vm11442_vm3, %v15148_v43  ;;  %10952 = vmatpush3.bf16.msra.mxu1 %v14112_v2  ;;  %v9182_v38 = vcombine.low %v14269_v40, %v14278_v13 }
 0x5ae   :  { %10953 = vmatprep.subr.bf16.mxu1 %v15148_v43 }
 0x5af   :  { %v6321_v63 = vshrl.u32 %v9182_v38, 16  ;;  %v6324_v26 = vshll.u32 %v9182_v38, 16 }
 0x5b1   :  { %10692 = vmatmul.mubr.msk.bf16.gmra.mrb[68].mxu0 %vm1349_vm6, %v14249_v4  ;;  %10954 = vmatpush3.bf16.msra.mxu1 %v14122_v18  ;;  %v6323_v22 = vrot.slane %v6321_v63, 3  ;;  %v6326_v6 = vrot.slane %v6324_v26, 4  ;;  %v6339_v63 = vshll.u32 %v9184_v57, 16  ;;  %v14326_v26 = vld [vmem:[%s15137_s3 + $0x70] sm:$0xff]  }
 0x5b2   :  { %10699 = vmatprep.mubr.msk.bf16.mxu0 %vm11442_vm3, %v15148_v43  ;;  %10983 = vmatprep.subr.bf16.mxu1 %v15148_v43 }
 0x5b3   :  { %v6327_v61 = vor.u32 %v6326_v6, %v6323_v22  ;;  %v6341_v39 = vrot.slane %v6339_v63, 4  ;;  %v14347_v6 = vcombine.low %v14276_v31, %v14269_v40  ;;  %v14372_v31 = vcombine.low %v14288_v60, %v6289_v10 }
 0x5b4   :  { %10928 = vmatmul.mubr.msk.bf16.gmra.mrb[172].mxu1 %vm1349_vm6, %v14192_v50  ;;  %v6287_v50 = vld [vmem:[#allocation2 + $0x10] sm:$0xf] }
 0x5b5   :  { %10931 = vmatprep.mubr.msk.bf16.mxu1 %vm11442_vm3, %v15148_v43  ;;  %v9183_v29 = vcombine.low %v6287_v50, %v14288_v60  ;;  %v14360_v40 = vcombine.low %v14278_v13, %v6287_v50  ;;  %v7793_v13 = vrot.slane %v14033_v51, 1  ;;  %v7776_v60 = vld [vmem:[#allocation2 + $0x60] sm:$0x3]  ;;  %v7792_v50 = vrot.slane %v14028_v48, 1  ;;  %v14401_v51 = vld [vmem:[%s15137_s3 + $0x10] sm:$0xff]  }
 0x5b6   :  { %v9263_v17 = vcombine.low %v14040_v44, %v7776_v60  ;;  %v14412_v44 = vld [vmem:[%s15137_s3 + $0x18] sm:$0xff]  }
 0x5b7   :  { %v6330_v54 = vshrl.u32 %v9183_v29, 16  ;;  %v6333_v12 = vshll.u32 %v9183_v29, 16  ;;  %v14391_v29 = vsel %vm1647_vm7, %v7792_v50, %v7793_v13 }
 0x5b8   :  { %v14405_v48 = vrot.slane %v9263_v17, 1 }
 0x5b9   :  { %10700 = vmatmul.mubr.msk.bf16.vlgmr.msra.gmra.mrb[72].mxu0 %vm1349_vm6, %v14071_v59  ;;  %v6332_v28 = vrot.slane %v6330_v54, 3  ;;  %v6335_v33 = vrot.slane %v6333_v12, 4 }
 0x5ba   :  { %10712 = vmatpush3.bf16.msra.mxu0 %v14058_v0  ;;  %10703 = vmatprep.mubr.msk.bf16.mxu0 %vm11442_vm3, %v15148_v43 }
 0x5bb   :  { %10713 = vmatprep.subr.bf16.mxu0 %v15148_v43  ;;  %v6336_v38 = vor.u32 %v6335_v33, %v6332_v28 }
 0x5bc   :  { %10932 = vmatmul.mubr.msk.bf16.gmra.mrb[176].mxu1 %vm1349_vm6, %v14183_v53  ;;  %v6328_v53 = vsel %vm2020_vm9, %v6319_v62, %v6327_v61 }
 0x5bd   :  { %10955 = vmatprep.mubr.msk.bf16.mxu1 %vm11442_vm3, %v15148_v43  ;;  %v6337_v42 = vsel %vm2020_vm9, %v6327_v61, %v6336_v38  ;;  %v6342_v22 = vsel %vm2020_vm9, %v6336_v38, %v6341_v39 }
 0x5be   :  { %10714 = vmatpush3.bf16.msra.mxu0 %v14081_v20 }
 0x5bf   :  { %10727 = vmatprep.subr.bf16.mxu0 %v15148_v43 }
 0x5c1   :  { %10704 = vmatmul.mubr.msk.bf16.gmra.mrb[76].mxu0 %vm1349_vm6, %v14103_v56 }
 0x5c2   :  { %10707 = vmatprep.mubr.msk.bf16.mxu0 %vm11442_vm3, %v15148_v43 }
 0x5c4   :  { %10956 = vmatmul.mubr.msk.bf16.vlgmr.msra.gmra.mrb[180].mxu1 %vm1349_vm6, %v6328_v53 }
 0x5c5   :  { %10959 = vmatprep.mubr.msk.bf16.mxu1 %vm11442_vm3, %v15148_v43  ;;  %10984 = vmatpush3.bf16.msra.mxu1 %v14229_v41 }
 0x5c6   :  { %10985 = vmatprep.subr.bf16.mxu1 %v15148_v43 }
 0x5c9   :  { %10708 = vmatmul.mubr.msk.bf16.gmra.mrb[80].mxu0 %vm1349_vm6, %v14087_v36  ;;  %10986 = vmatpush3.bf16.msra.mxu1 %v14244_v32 }
 0x5ca   :  { %10715 = vmatprep.mubr.msk.bf16.mxu0 %vm11442_vm3, %v15148_v43  ;;  %11015 = vmatprep.subr.bf16.mxu1 %v15148_v43 }
 0x5cc   :  { %10960 = vmatmul.mubr.msk.bf16.gmra.mrb[184].mxu1 %vm1349_vm6, %v6337_v42 }
 0x5cd   :  { %10963 = vmatprep.mubr.msk.bf16.mxu1 %vm11442_vm3, %v15148_v43 }
 0x5d1   :  { %10716 = vmatmul.mubr.msk.bf16.vlgmr.msra.gmra.mrb[84].mxu0 %vm1349_vm6, %v6328_v53 }
 0x5d2   :  { %10728 = vmatpush3.bf16.msra.mxu0 %v14326_v26  ;;  %10719 = vmatprep.mubr.msk.bf16.mxu0 %vm11442_vm3, %v15148_v43 }
 0x5d3   :  { %10729 = vmatprep.subr.bf16.mxu0 %v15148_v43 }
 0x5d4   :  { %10964 = vmatmul.mubr.msk.bf16.gmra.mrb[188].mxu1 %vm1349_vm6, %v6342_v22 }
 0x5d5   :  { %10987 = vmatprep.mubr.msk.bf16.mxu1 %vm11442_vm3, %v15148_v43 }
 0x5d6   :  { %10730 = vmatpush3.bf16.msra.mxu0 %v14335_v24 }
 0x5d7   :  { %10743 = vmatprep.subr.bf16.mxu0 %v15148_v43 }
 0x5d9   :  { %10720 = vmatmul.mubr.msk.bf16.gmra.mrb[88].mxu0 %vm1349_vm6, %v6337_v42 }
 0x5da   :  { %10723 = vmatprep.mubr.msk.bf16.mxu0 %vm11442_vm3, %v15148_v43 }
 0x5dc   :  { %10988 = vmatmul.mubr.msk.bf16.vlgmr.msra.gmra.mrb[192].mxu1 %vm1349_vm6, %v14347_v6 }
 0x5dd   :  { %10991 = vmatprep.mubr.msk.bf16.mxu1 %vm11442_vm3, %v15148_v43  ;;  %11016 = vmatpush3.bf16.msra.mxu1 %v14326_v26 }
 0x5de   :  { %11017 = vmatprep.subr.bf16.mxu1 %v15148_v43 }
 0x5e1   :  { %10724 = vmatmul.mubr.msk.bf16.gmra.mrb[92].mxu0 %vm1349_vm6, %v6342_v22  ;;  %11018 = vmatpush3.bf16.msra.mxu1 %v14335_v24 }
 0x5e2   :  { %10731 = vmatprep.mubr.msk.bf16.mxu0 %vm11442_vm3, %v15148_v43  ;;  %11047 = vmatprep.subr.bf16.mxu1 %v15148_v43 }
 0x5e4   :  { %10992 = vmatmul.mubr.msk.bf16.gmra.mrb[196].mxu1 %vm1349_vm6, %v14360_v40 }
 0x5e5   :  { %10995 = vmatprep.mubr.msk.bf16.mxu1 %vm11442_vm3, %v15148_v43 }
 0x5e9   :  { %10732 = vmatmul.mubr.msk.bf16.vlgmr.msra.gmra.mrb[96].mxu0 %vm1349_vm6, %v14138_v19 }
 0x5ea   :  { %10744 = vmatpush3.bf16.msra.mxu0 %v14136_v7  ;;  %10735 = vmatprep.mubr.msk.bf16.mxu0 %vm11442_vm3, %v15148_v43 }
 0x5eb   :  { %10745 = vmatprep.subr.bf16.mxu0 %v15148_v43 }
 0x5ec   :  { %10996 = vmatmul.mubr.msk.bf16.gmra.mrb[200].mxu1 %vm1349_vm6, %v14372_v31 }
 0x5ed   :  { %11019 = vmatprep.mubr.msk.bf16.mxu1 %vm11442_vm3, %v15148_v43 }
 0x5ee   :  { %10746 = vmatpush3.bf16.msra.mxu0 %v14150_v55 }
 0x5ef   :  { %10775 = vmatprep.subr.bf16.mxu0 %v15148_v43 }
 0x5f1   :  { %10736 = vmatmul.mubr.msk.bf16.gmra.mrb[100].mxu0 %vm1349_vm6, %v14156_v1  ;;  %v14420_v1 = vsel %vm1647_vm7, %v7793_v13, %v14405_v48 }
 0x5f2   :  { %10739 = vmatprep.mubr.msk.bf16.mxu0 %vm11442_vm3, %v15148_v43 }
 0x5f4   :  { %11020 = vmatmul.mubr.msk.bf16.vlgmr.msra.gmra.mrb[204].mxu1 %vm1349_vm6, %v14391_v29 }
 0x5f5   :  { %11023 = vmatprep.mubr.msk.bf16.mxu1 %vm11442_vm3, %v15148_v43  ;;  %11048 = vmatpush3.bf16.msra.mxu1 %v14401_v51 }
 0x5f6   :  { %11049 = vmatprep.subr.bf16.mxu1 %v15148_v43 }
 0x5f9   :  { %10740 = vmatmul.mubr.msk.bf16.gmra.mrb[104].mxu0 %vm1349_vm6, %v14175_v37  ;;  %11050 = vmatpush3.bf16.msra.mxu1 %v14412_v44 }
 0x5fa   :  { %10747 = vmatprep.mubr.msk.bf16.mxu0 %vm11442_vm3, %v15148_v43  ;;  %11079 = vmatprep.subr.bf16.mxu1 %v15148_v43 }
 0x5fc   :  { %11024 = vmatmul.mubr.msk.bf16.gmra.mrb[208].mxu1 %vm1349_vm6, %v14420_v1 }
 0x5fd   :  { %11027 = vmatprep.mubr.msk.bf16.mxu1 %vm11442_vm3, %v15148_v43 }
 0x601   :  { %10748 = vmatmul.mubr.msk.bf16.vlgmr.msra.gmra.mrb[108].mxu0 %vm1349_vm6, %v14347_v6 }
 0x602   :  { %10776 = vmatpush3.bf16.msra.mxu0 %v13920_v5  ;;  %10751 = vmatprep.mubr.msk.bf16.mxu0 %vm11442_vm3, %v15148_v43 }
 0x603   :  { %10777 = vmatprep.subr.bf16.mxu0 %v15148_v43 }
 0x604   :  { %11028 = vmatmul.mubr.msk.bf16.gmra.mrb[212].mxu1 %vm1349_vm6, %v14405_v48 }
 0x605   :  { %11051 = vmatprep.mubr.msk.bf16.mxu1 %vm11442_vm3, %v15148_v43 }
 0x606   :  { %10778 = vmatpush3.bf16.msra.mxu0 %v13947_v46  ;;  %v14437_v9 = vpop.f32.mrb[108].mxu1 }
 0x607   :  { %10807 = vmatprep.subr.bf16.mxu0 %v15148_v43  ;;  %v10765_v61 = vpop.f32.mrb[109].mxu1 }
 0x608   :  { %v14440_v54 = vpop.f32.mrb[110].mxu1 }
 0x609   :  { %10752 = vmatmul.mubr.msk.bf16.gmra.mrb[112].mxu0 %vm1349_vm6, %v14360_v40  ;;  %v10766_v5 = vpop.f32.mrb[111].mxu1 }
 0x60a   :  { %10755 = vmatprep.mubr.msk.bf16.mxu0 %vm11442_vm3, %v15148_v43 }
 0x60c   :  { %11052 = vmatmul.mubr.msk.bf16.vlgmr.msra.gmra.mrb[216].mxu1 %vm1349_vm6, %v14071_v59 }
 0x60d   :  { %11055 = vmatprep.mubr.msk.bf16.mxu1 %vm11442_vm3, %v15148_v43  ;;  %11080 = vmatpush3.bf16.msra.mxu1 %v13835_v49 }
 0x60e   :  { %11081 = vmatprep.subr.bf16.mxu1 %v15148_v43 }
 0x60f   :  { %v14452_v46 = vpop.f32.mrb[112].mxu1 }
 0x610   :  { %v10769_v12 = vpop.f32.mrb[113].mxu1 }
 0x611   :  { %v14454_v62 = vpop.f32.mrb[114].mxu1  ;;  %10756 = vmatmul.mubr.msk.bf16.gmra.mrb[116].mxu0 %vm1349_vm6, %v14372_v31  ;;  %11082 = vmatpush3.bf16.msra.mxu1 %v13867_v47 }
 0x612   :  { %v10770_v53 = vpop.f32.mrb[115].mxu1  ;;  %10779 = vmatprep.mubr.msk.bf16.mxu0 %vm11442_vm3, %v15148_v43  ;;  %11111 = vmatprep.subr.bf16.mxu1 %v15148_v43 }
 0x614   :  { %11056 = vmatmul.mubr.msk.bf16.gmra.mrb[220].mxu1 %vm1349_vm6, %v14103_v56  ;;  %v5687_v49 = vpop.f32.mrb[12].mxu0 }
 0x615   :  { %v10621_v28 = vpop.f32.mrb[13].mxu0  ;;  %11059 = vmatprep.mubr.msk.bf16.mxu1 %vm11442_vm3, %v15148_v43 }
 0x616   :  { %v5690_v33 = vpop.f32.mrb[14].mxu0 }
 0x617   :  { %v14466_v10 = vpop.f32.mrb[116].mxu1  ;;  %v10622_v38 = vpop.f32.mrb[15].mxu0 }
 0x618   :  { %v10773_v57 = vpop.f32.mrb[117].mxu1 }
 0x619   :  { %v14468_v47 = vpop.f32.mrb[118].mxu1  ;;  %10780 = vmatmul.mubr.msk.bf16.vlgmr.msra.gmra.mrb[120].mxu0 %vm1349_vm6, %v13930_v25 }
 0x61a   :  { %v10774_v42 = vpop.f32.mrb[119].mxu1  ;;  %10808 = vmatpush3.bf16.msra.mxu0 %v14112_v2  ;;  %10783 = vmatprep.mubr.msk.bf16.mxu0 %vm11442_vm3, %v15148_v43 }
 0x61b   :  { %10809 = vmatprep.subr.bf16.mxu0 %v15148_v43 }
 0x61c   :  { %11060 = vmatmul.mubr.msk.bf16.gmra.mrb[224].mxu1 %vm1349_vm6, %v14087_v36  ;;  %v5695_v63 = vpop.f32.mrb[16].mxu0 }
 0x61d   :  { %v10625_v39 = vpop.f32.mrb[17].mxu0  ;;  %11083 = vmatprep.mubr.msk.bf16.mxu1 %vm11442_vm3, %v15148_v43 }
 0x61e   :  { %v5698_v22 = vpop.f32.mrb[18].mxu0  ;;  %10810 = vmatpush3.bf16.msra.mxu0 %v14122_v18 }
 0x61f   :  { %v14481_v25 = vpop.f32.mrb[120].mxu1  ;;  %v10626_v13 = vpop.f32.mrb[19].mxu0  ;;  %10839 = vmatprep.subr.bf16.mxu0 %v15148_v43 }
 0x620   :  { %v10797_v2 = vpop.f32.mrb[121].mxu1 }
 0x621   :  { %v14484_v60 = vpop.f32.mrb[122].mxu1  ;;  %10784 = vmatmul.mubr.msk.bf16.gmra.mrb[124].mxu0 %vm1349_vm6, %v13969_v45 }
 0x622   :  { %v10798_v50 = vpop.f32.mrb[123].mxu1  ;;  %10787 = vmatprep.mubr.msk.bf16.mxu0 %vm11442_vm3, %v15148_v43 }
 0x624   :  { %11084 = vmatmul.mubr.msk.bf16.vlgmr.msra.gmra.mrb[228].mxu1 %vm1349_vm6, %v14067_v8  ;;  %v5703_v17 = vpop.f32.mrb[20].mxu0 }
 0x625   :  { %v10629_v18 = vpop.f32.mrb[21].mxu0  ;;  %11087 = vmatprep.mubr.msk.bf16.mxu1 %vm11442_vm3, %v15148_v43  ;;  %11112 = vmatpush3.bf16.msra.mxu1 %v13977_v16 }
 0x626   :  { %v5706_v61 = vpop.f32.mrb[22].mxu0  ;;  %11113 = vmatprep.subr.bf16.mxu1 %v15148_v43 }
 0x627   :  { %v14496_v5 = vpop.f32.mrb[124].mxu1  ;;  %v10630_v45 = vpop.f32.mrb[23].mxu0 }
 0x628   :  { %v10801_v12 = vpop.f32.mrb[125].mxu1 }
 0x629   :  { %v14498_v53 = vpop.f32.mrb[126].mxu1  ;;  %10788 = vmatmul.mubr.msk.bf16.gmra.mrb[128].mxu0 %vm1349_vm6, %v13997_v58  ;;  %11114 = vmatpush3.bf16.msra.mxu1 %v13994_v34 }
 0x62a   :  { %v10802_v28 = vpop.f32.mrb[127].mxu1  ;;  %10811 = vmatprep.mubr.msk.bf16.mxu0 %vm11442_vm3, %v15148_v43  ;;  %11143 = vmatprep.subr.bf16.mxu1 %v15148_v43 }
 0x62c   :  { %11088 = vmatmul.mubr.msk.bf16.gmra.mrb[232].mxu1 %vm1349_vm6, %v14062_v27  ;;  %v5780_v16 = vpop.f32.mrb[24].mxu0 }
 0x62d   :  { %v5781_v38 = vadd.f32 %v5780_v16, %v5687_v49  ;;  %v10637_v57 = vpop.f32.mrb[25].mxu0  ;;  %11091 = vmatprep.mubr.msk.bf16.mxu1 %vm11442_vm3, %v15148_v43 }
 0x62e   :  { %v5783_v42 = vpop.f32.mrb[26].mxu0 }
 0x62f   :  { %v5784_v39 = vadd.f32 %v5783_v42, %v5690_v33  ;;  %v14510_v58 = vpop.f32.mrb[128].mxu1  ;;  %v10638_v34 = vpop.f32.mrb[27].mxu0 }
 0x630   :  { %v10805_v13 = vpop.f32.mrb[129].mxu1 }
 0x631   :  { %v14512_v2 = vpop.f32.mrb[130].mxu1  ;;  %10812 = vmatmul.mubr.msk.bf16.vlgmr.msra.gmra.mrb[132].mxu0 %vm1349_vm6, %v14232_v21 }
 0x632   :  { %v10806_v50 = vpop.f32.mrb[131].mxu1  ;;  %10840 = vmatpush3.bf16.msra.mxu0 %v14229_v41  ;;  %10815 = vmatprep.mubr.msk.bf16.mxu0 %vm11442_vm3, %v15148_v43 }
 0x633   :  { %10841 = vmatprep.subr.bf16.mxu0 %v15148_v43 }
 0x634   :  { %11092 = vmatmul.mubr.msk.bf16.gmra.mrb[236].mxu1 %vm1349_vm6, %v14048_v30  ;;  %v5788_v49 = vpop.f32.mrb[28].mxu0 }
 0x635   :  { %v5789_v33 = vadd.f32 %v5788_v49, %v5695_v63  ;;  %v10641_v18 = vpop.f32.mrb[29].mxu0  ;;  %11115 = vmatprep.mubr.msk.bf16.mxu1 %vm11442_vm3, %v15148_v43 }
 0x636   :  { %v5791_v45 = vpop.f32.mrb[30].mxu0  ;;  %10842 = vmatpush3.bf16.msra.mxu0 %v14244_v32 }
 0x637   :  { %v5792_v12 = vadd.f32 %v5791_v45, %v5698_v22  ;;  %v14525_v28 = vpop.f32.mrb[132].mxu1  ;;  %v10642_v41 = vpop.f32.mrb[31].mxu0  ;;  %10871 = vmatprep.subr.bf16.mxu0 %v15148_v43 }
 0x638   :  { %v10829_v16 = vpop.f32.mrb[133].mxu1 }
 0x639   :  { %v14528_v57 = vpop.f32.mrb[134].mxu1  ;;  %10816 = vmatmul.mubr.msk.bf16.gmra.mrb[136].mxu0 %vm1349_vm6, %v14257_v15 }
 0x63a   :  { %v10830_v63 = vpop.f32.mrb[135].mxu1  ;;  %10819 = vmatprep.mubr.msk.bf16.mxu0 %vm11442_vm3, %v15148_v43 }
 0x63c   :  { %11116 = vmatmul.mubr.msk.bf16.vlgmr.msra.gmra.mrb[240].mxu1 %vm1349_vm6, %v14347_v6  ;;  %v5796_v32 = vpop.f32.mrb[32].mxu0 }
 0x63d   :  { %v5797_v22 = vadd.f32 %v5796_v32, %v5703_v17  ;;  %v10645_v42 = vpop.f32.mrb[33].mxu0  ;;  %11119 = vmatprep.mubr.msk.bf16.mxu1 %vm11442_vm3, %v15148_v43  ;;  %11144 = vmatpush3.bf16.msra.mxu1 %v14058_v0 }
 0x63e   :  { %v5799_v34 = vpop.f32.mrb[34].mxu0  ;;  %11145 = vmatprep.subr.bf16.mxu1 %v15148_v43 }
 0x63f   :  { %v5800_v13 = vadd.f32 %v5799_v34, %v5706_v61  ;;  %v14540_v50 = vpop.f32.mrb[136].mxu1  ;;  %v10646_v49 = vpop.f32.mrb[35].mxu0 }
 0x640   :  { %v10833_v18 = vpop.f32.mrb[137].mxu1 }
 0x641   :  { %v14542_v45 = vpop.f32.mrb[138].mxu1  ;;  %10820 = vmatmul.mubr.msk.bf16.gmra.mrb[140].mxu0 %vm1349_vm6, %v14249_v4  ;;  %11146 = vmatpush3.bf16.msra.mxu1 %v14081_v20 }
 0x642   :  { %v10834_v17 = vpop.f32.mrb[139].mxu1  ;;  %10843 = vmatprep.mubr.msk.bf16.mxu0 %vm11442_vm3, %v15148_v43  ;;  %11175 = vmatprep.subr.bf16.mxu1 %v15148_v43 }
 0x644   :  { %11120 = vmatmul.mubr.msk.bf16.gmra.mrb[244].mxu1 %vm1349_vm6, %v14360_v40  ;;  %v5887_v0 = vpop.f32.mrb[36].mxu0 }
 0x645   :  { %v5910_v61 = vadd.f32 %v5887_v0, %v5781_v38  ;;  %v10653_v41 = vpop.f32.mrb[37].mxu0  ;;  %11123 = vmatprep.mubr.msk.bf16.mxu1 %vm11442_vm3, %v15148_v43 }
 0x646   :  { %v5890_v16 = vpop.f32.mrb[38].mxu0 }
 0x647   :  { %v5911_v63 = vadd.f32 %v5890_v16, %v5784_v39  ;;  %v14554_v32 = vpop.f32.mrb[140].mxu1  ;;  %v10654_v20 = vpop.f32.mrb[39].mxu0 }
 0x648   :  { %v10837_v42 = vpop.f32.mrb[141].mxu1 }
 0x649   :  { %v14556_v34 = vpop.f32.mrb[142].mxu1  ;;  %10844 = vmatmul.mubr.msk.bf16.vlgmr.msra.gmra.mrb[144].mxu0 %vm1349_vm6, %v14067_v8 }
 0x64a   :  { %v10838_v49 = vpop.f32.mrb[143].mxu1  ;;  %10872 = vmatpush3.bf16.msra.mxu0 %v14326_v26  ;;  %10847 = vmatprep.mubr.msk.bf16.mxu0 %vm11442_vm3, %v15148_v43 }
 0x64b   :  { %10873 = vmatprep.subr.bf16.mxu0 %v15148_v43 }
 0x64c   :  { %11124 = vmatmul.mubr.msk.bf16.gmra.mrb[248].mxu1 %vm1349_vm6, %v14372_v31  ;;  %v5895_v38 = vpop.f32.mrb[40].mxu0 }
 0x64d   :  { %v5912_v39 = vadd.f32 %v5895_v38, %v5789_v33  ;;  %v10657_v18 = vpop.f32.mrb[41].mxu0  ;;  %11147 = vmatprep.mubr.msk.bf16.mxu1 %vm11442_vm3, %v15148_v43 }
 0x64e   :  { %v5898_v17 = vpop.f32.mrb[42].mxu0  ;;  %10874 = vmatpush3.bf16.msra.mxu0 %v14335_v24 }
 0x64f   :  { %v5913_v8 = vadd.f32 %v5898_v17, %v5792_v12  ;;  %v14569_v0 = vpop.f32.mrb[144].mxu1  ;;  %v10658_v26 = vpop.f32.mrb[43].mxu0  ;;  %10903 = vmatprep.subr.bf16.mxu0 %v15148_v43 }
 0x650   :  { %v10861_v41 = vpop.f32.mrb[145].mxu1 }
 0x651   :  { %v14572_v16 = vpop.f32.mrb[146].mxu1  ;;  %10848 = vmatmul.mubr.msk.bf16.gmra.mrb[148].mxu0 %vm1349_vm6, %v14062_v27 }
 0x652   :  { %v10862_v33 = vpop.f32.mrb[147].mxu1  ;;  %10851 = vmatprep.mubr.msk.bf16.mxu0 %vm11442_vm3, %v15148_v43 }
 0x654   :  { %11148 = vmatmul.mubr.msk.bf16.vlgmr.msra.gmra.mrb[252].mxu1 %vm1349_vm6, %v14391_v29  ;;  %v5903_v24 = vpop.f32.mrb[44].mxu0 }
 0x655   :  { %v5914_v12 = vadd.f32 %v5903_v24, %v5797_v22  ;;  %v10661_v20 = vpop.f32.mrb[45].mxu0  ;;  %11151 = vmatprep.mubr.msk.bf16.mxu1 %vm11442_vm3, %v15148_v43  ;;  %11176 = vmatpush3.bf16.msra.mxu1 %v14136_v7 }
 0x656   :  { %v5906_v42 = vpop.f32.mrb[46].mxu0  ;;  %11177 = vmatprep.subr.bf16.mxu1 %v15148_v43 }
 0x657   :  { %v5915_v49 = vadd.f32 %v5906_v42, %v5800_v13  ;;  %v14584_v27 = vpop.f32.mrb[148].mxu1  ;;  %v10662_v38 = vpop.f32.mrb[47].mxu0 }
 0x658   :  { %v10865_v18 = vpop.f32.mrb[149].mxu1 }
 0x659   :  { %v14586_v17 = vpop.f32.mrb[150].mxu1  ;;  %10852 = vmatmul.mubr.msk.bf16.gmra.mrb[152].mxu0 %vm1349_vm6, %v14048_v30  ;;  %11178 = vmatpush3.bf16.msra.mxu1 %v14150_v55 }
 0x65a   :  { %v10866_v29 = vpop.f32.mrb[151].mxu1  ;;  %10875 = vmatprep.mubr.msk.bf16.mxu0 %vm11442_vm3, %v15148_v43 }
 0x65c   :  { %11152 = vmatmul.mubr.msk.bf16.gmra.mrb[0].mxu1 %vm1349_vm6, %v14420_v1  ;;  %v6001_v7 = vpop.f32.mrb[48].mxu0 }
 0x65d   :  { %v6024_v22 = vadd.f32 %v6001_v7, %v5910_v61  ;;  %v10669_v13 = vpop.f32.mrb[49].mxu0  ;;  %11155 = vmatprep.mubr.msk.bf16.mxu1 %vm11442_vm3, %v15148_v43 }
 0x65e   :  { %v6004_v26 = vpop.f32.mrb[50].mxu0 }
 0x65f   :  { %v6025_v41 = vadd.f32 %v6004_v26, %v5911_v63  ;;  %v14597_v33 = vpop.f32.mrb[152].mxu1  ;;  %v10670_v30 = vpop.f32.mrb[51].mxu0 }
 0x660   :  { %v10869_v24 = vpop.f32.mrb[153].mxu1 }
 0x661   :  { %v14599_v55 = vpop.f32.mrb[154].mxu1  ;;  %10876 = vmatmul.mubr.msk.bf16.vlgmr.msra.gmra.mrb[156].mxu0 %vm1349_vm6, %v14347_v6 }
 0x662   :  { %v10870_v20 = vpop.f32.mrb[155].mxu1  ;;  %10904 = vmatpush3.bf16.msra.mxu0 %v14401_v51  ;;  %10879 = vmatprep.mubr.msk.bf16.mxu0 %vm11442_vm3, %v15148_v43 }
 0x663   :  { %10905 = vmatprep.subr.bf16.mxu0 %v15148_v43 }
 0x664   :  { %11156 = vmatmul.mubr.msk.bf16.gmra.mrb[4].mxu1 %vm1349_vm6, %v14405_v48  ;;  %v6009_v1 = vpop.f32.mrb[52].mxu0 }
 0x665   :  { %v6026_v61 = vadd.f32 %v6009_v1, %v5912_v39  ;;  %v10673_v63 = vpop.f32.mrb[53].mxu0  ;;  %11179 = vmatprep.mubr.msk.bf16.mxu1 %vm11442_vm3, %v15148_v43 }
 0x666   :  { %v6012_v42 = vpop.f32.mrb[54].mxu0  ;;  %10906 = vmatpush3.bf16.msra.mxu0 %v14412_v44 }
 0x667   :  { %v6027_v6 = vadd.f32 %v6012_v42, %v5913_v8  ;;  %v14612_v38 = vpop.f32.mrb[156].mxu1  ;;  %v10674_v51 = vpop.f32.mrb[55].mxu0  ;;  %10935 = vmatprep.subr.bf16.mxu0 %v15148_v43 }
 0x668   :  { %v10893_v18 = vpop.f32.mrb[157].mxu1 }
 0x669   :  { %v14615_v29 = vpop.f32.mrb[158].mxu1  ;;  %10880 = vmatmul.mubr.msk.bf16.gmra.mrb[160].mxu0 %vm1349_vm6, %v14360_v40 }
 0x66a   :  { %v10894_v48 = vpop.f32.mrb[159].mxu1  ;;  %10883 = vmatprep.mubr.msk.bf16.mxu0 %vm11442_vm3, %v15148_v43 }
 0x66c   :  { %11180 = vmatmul.mubr.msk.bf16.vlgmr.msra.gmra.mrb[8].mxu1 %vm1349_vm6, %v14090_v52  ;;  %v6017_v44 = vpop.f32.mrb[56].mxu0 }
 0x66d   :  { %v6028_v39 = vadd.f32 %v6017_v44, %v5914_v12  ;;  %v10677_v8 = vpop.f32.mrb[57].mxu0  ;;  %11183 = vmatprep.mubr.msk.bf16.mxu1 %vm11442_vm3, %v15148_v43 }
 0x66e   :  { %v6020_v7 = vpop.f32.mrb[58].mxu0 }
 0x66f   :  { %v6029_v13 = vadd.f32 %v6020_v7, %v5915_v49  ;;  %v14625_v26 = vpop.f32.mrb[160].mxu1  ;;  %v10678_v30 = vpop.f32.mrb[59].mxu0  ;;  %v11424_v7 = vld [vmem:[%s15137_s3 + $0x28] sm:$0xff]  }
 0x670   :  { %v10897_v24 = vpop.f32.mrb[161].mxu1 }
 0x671   :  { %v14627_v40 = vpop.f32.mrb[162].mxu1  ;;  %10884 = vmatmul.mubr.msk.bf16.gmra.mrb[164].mxu0 %vm1349_vm6, %v14372_v31 }
 0x672   :  { %v10898_v20 = vpop.f32.mrb[163].mxu1  ;;  %10907 = vmatprep.mubr.msk.bf16.mxu0 %vm11442_vm3, %v15148_v43 }
 0x674   :  { %11184 = vmatmul.mubr.msk.bf16.gmra.mrb[12].mxu1 %vm1349_vm6, %v14094_v35  ;;  %v6136_v52 = vpop.f32.mrb[60].mxu0  ;;  %v11423_v35 = vld [vmem:[%s15137_s3 + $0x20] sm:$0xff]  }
 0x675   :  { %v6159_v12 = vadd.f32 %v6136_v52, %v6024_v22  ;;  %v10685_v1 = vpop.f32.mrb[61].mxu0  ;;  %11187 = vmatprep.mubr.msk.bf16.mxu1 %vm11442_vm3, %v15148_v43 }
 0x676   :  { %v6139_v49 = vpop.f32.mrb[62].mxu0 }
 0x677   :  { %v6160_v63 = vadd.f32 %v6139_v49, %v6025_v41  ;;  %v14637_v42 = vpop.f32.mrb[164].mxu1  ;;  %v10686_v51 = vpop.f32.mrb[63].mxu0 }
 0x678   :  { %v10901_v18 = vpop.f32.mrb[165].mxu1 }
 0x679   :  { %v14639_v31 = vpop.f32.mrb[166].mxu1  ;;  %10908 = vmatmul.mubr.msk.bf16.vlgmr.msra.gmra.mrb[168].mxu0 %vm1349_vm6, %v14232_v21 }
 0x67a   :  { %15211 = vst [vmem:[#allocation7_spill] sm:$0xff] %v14639_v31  ;;  %v10902_v48 = vpop.f32.mrb[167].mxu1  ;;  %10936 = vmatpush3.bf16.msra.mxu0 %v11423_v35  ;;  %10911 = vmatprep.mubr.msk.bf16.mxu0 %vm11442_vm3, %v15148_v43 }
 0x67b   :  { %10937 = vmatprep.subr.bf16.mxu0 %v15148_v43 }
 0x67c   :  { %11188 = vmatmul.mubr.msk.bf16.gmra.mrb[16].mxu1 %vm1349_vm6, %v14084_v14  ;;  %v6144_v22 = vpop.f32.mrb[64].mxu0 }
 0x67d   :  { %v6161_v41 = vadd.f32 %v6144_v22, %v6026_v61  ;;  %v10689_v44 = vpop.f32.mrb[65].mxu0 }
 0x67e   :  { %v6147_v8 = vpop.f32.mrb[66].mxu0  ;;  %10938 = vmatpush3.bf16.msra.mxu0 %v11424_v7 }
 0x67f   :  { %v6162_v30 = vadd.f32 %v6147_v8, %v6027_v6  ;;  %v14654_v24 = vpop.f32.mrb[168].mxu1  ;;  %v10690_v20 = vpop.f32.mrb[67].mxu0  ;;  %10967 = vmatprep.subr.bf16.mxu0 %v15148_v43 }
 0x680   :  { %15212 = vst [vmem:[#allocation8_spill] sm:$0xff] %v14654_v24  ;;  %v10925_v52 = vpop.f32.mrb[169].mxu1 }
 0x681   :  { %v14657_v1 = vpop.f32.mrb[170].mxu1  ;;  %10912 = vmatmul.mubr.msk.bf16.gmra.mrb[172].mxu0 %vm1349_vm6, %v14257_v15 }
 0x682   :  { %15213 = vst [vmem:[#allocation9_spill] sm:$0xff] %v14657_v1  ;;  %v10926_v14 = vpop.f32.mrb[171].mxu1  ;;  %10915 = vmatprep.mubr.msk.bf16.mxu0 %vm11442_vm3, %v15148_v43 }
 0x684   :  { %v6152_v61 = vpop.f32.mrb[68].mxu0 }
 0x685   :  { %v6163_v49 = vadd.f32 %v6152_v61, %v6028_v39  ;;  %v10693_v51 = vpop.f32.mrb[69].mxu0 }
 0x686   :  { %v6155_v18 = vpop.f32.mrb[70].mxu0 }
 0x687   :  { %v6164_v6 = vadd.f32 %v6155_v18, %v6029_v13  ;;  %v14663_v48 = vpop.f32.mrb[172].mxu1  ;;  %v10694_v35 = vpop.f32.mrb[71].mxu0 }
 0x688   :  { %15214 = vst [vmem:[#allocation10_spill] sm:$0xff] %v14663_v48  ;;  %v10929_v22 = vpop.f32.mrb[173].mxu1 }
 0x689   :  { %v14665_v44 = vpop.f32.mrb[174].mxu1  ;;  %10916 = vmatmul.mubr.msk.bf16.gmra.mrb[176].mxu0 %vm1349_vm6, %v14249_v4  ;;  %v11425_v22 = vld [vmem:[%s15137_s3 + $0x40] sm:$0xff]  }
 0x68a   :  { %15215 = vst [vmem:[#allocation11_spill] sm:$0xff] %v14665_v44  ;;  %v10930_v8 = vpop.f32.mrb[175].mxu1  ;;  %10939 = vmatprep.mubr.msk.bf16.mxu0 %vm11442_vm3, %v15148_v43 }
 0x68c   :  { %v6254_v7 = vpop.f32.mrb[72].mxu0 }
 0x68d   :  { %v6277_v20 = vadd.f32 %v6254_v7, %v6159_v12  ;;  %v10701_v52 = vpop.f32.mrb[73].mxu0 }
 0x68e   :  { %v6257_v39 = vpop.f32.mrb[74].mxu0  ;;  %v11426_v52 = vld [vmem:[%s15137_s3 + $0x48] sm:$0xff]  }
 0x68f   :  { %v6278_v14 = vadd.f32 %v6257_v39, %v6160_v63  ;;  %v14671_v61 = vpop.f32.mrb[176].mxu1  ;;  %v10702_v13 = vpop.f32.mrb[75].mxu0 }
 0x690   :  { %15216 = vst [vmem:[#allocation12_spill] sm:$0xff] %v14671_v61  ;;  %v10933_v51 = vpop.f32.mrb[177].mxu1 }
 0x691   :  { %v14673_v18 = vpop.f32.mrb[178].mxu1  ;;  %10940 = vmatmul.mubr.msk.bf16.vlgmr.msra.gmra.mrb[180].mxu0 %vm1349_vm6, %v14071_v59 }
 0x692   :  { %15217 = vst [vmem:[#allocation13_spill] sm:$0xff] %v14673_v18  ;;  %v10934_v35 = vpop.f32.mrb[179].mxu1  ;;  %10968 = vmatpush3.bf16.msra.mxu0 %v11425_v22  ;;  %10943 = vmatprep.mubr.msk.bf16.mxu0 %vm11442_vm3, %v15148_v43 }
 0x693   :  { %10969 = vmatprep.subr.bf16.mxu0 %v15148_v43 }
 0x694   :  { %v6262_v12 = vpop.f32.mrb[76].mxu0 }
 0x695   :  { %v6279_v63 = vadd.f32 %v6262_v12, %v6161_v41  ;;  %v10705_v8 = vpop.f32.mrb[77].mxu0 }
 0x696   :  { %v6265_v7 = vpop.f32.mrb[78].mxu0  ;;  %10970 = vmatpush3.bf16.msra.mxu0 %v11426_v52 }
 0x697   :  { %v6280_v59 = vadd.f32 %v6265_v7, %v6162_v30  ;;  %v14686_v39 = vpop.f32.mrb[180].mxu1  ;;  %v10706_v13 = vpop.f32.mrb[79].mxu0  ;;  %10999 = vmatprep.subr.bf16.mxu0 %v15148_v43 }
 0x698   :  { %15218 = vst [vmem:[#allocation14_spill] sm:$0xff] %v14686_v39  ;;  %v10957_v51 = vpop.f32.mrb[181].mxu1 }
 0x699   :  { %v14689_v35 = vpop.f32.mrb[182].mxu1  ;;  %10944 = vmatmul.mubr.msk.bf16.gmra.mrb[184].mxu0 %vm1349_vm6, %v14103_v56 }
 0x69a   :  { %15219 = vst [vmem:[#allocation15_spill] sm:$0xff] %v14689_v35  ;;  %v10958_v41 = vpop.f32.mrb[183].mxu1  ;;  %10947 = vmatprep.mubr.msk.bf16.mxu0 %vm11442_vm3, %v15148_v43 }
 0x69c   :  { %v6270_v22 = vpop.f32.mrb[80].mxu0 }
 0x69d   :  { %v6281_v12 = vadd.f32 %v6270_v22, %v6163_v49  ;;  %v10709_v8 = vpop.f32.mrb[81].mxu0 }
 0x69e   :  { %v6273_v52 = vpop.f32.mrb[82].mxu0 }
 0x69f   :  { %v6282_v30 = vadd.f32 %v6273_v52, %v6164_v6  ;;  %v14695_v7 = vpop.f32.mrb[184].mxu1  ;;  %v10710_v13 = vpop.f32.mrb[83].mxu0 }
 0x6a0   :  { %15220 = vst [vmem:[#allocation16_spill] sm:$0xff] %v14695_v7  ;;  %v10961_v39 = vpop.f32.mrb[185].mxu1 }
 0x6a1   :  { %v14697_v18 = vpop.f32.mrb[186].mxu1  ;;  %10948 = vmatmul.mubr.msk.bf16.gmra.mrb[188].mxu0 %vm1349_vm6, %v14087_v36  ;;  %v11427_v36 = vld [vmem:[%s15137_s3 + $0x60] sm:$0xff]  }
 0x6a2   :  { %15221 = vst [vmem:[#allocation17_spill] sm:$0xff] %v14697_v18  ;;  %v10962_v51 = vpop.f32.mrb[187].mxu1  ;;  %10971 = vmatprep.mubr.msk.bf16.mxu0 %vm11442_vm3, %v15148_v43  ;;  %v14732_v18 = vld [vmem:[#allocation2 + $0x3c] sm:$0xff]  }
 0x6a3   :  { %v14715_v51 = vld [vmem:[#allocation2 + $0x38] sm:$0xf] }
 0x6a4   :  { %v6398_v56 = vpop.f32.mrb[84].mxu0 }
 0x6a5   :  { %v6421_v41 = vadd.f32 %v6398_v56, %v6277_v20  ;;  %v10717_v35 = vpop.f32.mrb[85].mxu0 }
 0x6a6   :  { %v6401_v49 = vpop.f32.mrb[86].mxu0 }
 0x6a7   :  { %v6422_v22 = vadd.f32 %v6401_v49, %v6278_v14  ;;  %v14703_v8 = vpop.f32.mrb[188].mxu1  ;;  %v10718_v6 = vpop.f32.mrb[87].mxu0  ;;  %v11428_v49 = vld [vmem:[%s15137_s3 + $0x68] sm:$0xff]  }
 0x6a8   :  { %15222 = vst [vmem:[#allocation18_spill] sm:$0xff] %v14703_v8  ;;  %v10965_v52 = vpop.f32.mrb[189].mxu1 }
 0x6a9   :  { %v14705_v13 = vpop.f32.mrb[190].mxu1  ;;  %10972 = vmatmul.mubr.msk.bf16.vlgmr.msra.gmra.mrb[192].mxu0 %vm1349_vm6, %v14138_v19 }
 0x6aa   :  { %15223 = vst [vmem:[#allocation19_spill] sm:$0xff] %v14705_v13  ;;  %v10966_v39 = vpop.f32.mrb[191].mxu1  ;;  %11000 = vmatpush3.bf16.msra.mxu0 %v11427_v36  ;;  %10975 = vmatprep.mubr.msk.bf16.mxu0 %vm11442_vm3, %v15148_v43  ;;  %v7655_v36 = vld [vmem:[#allocation2 + $0x34] sm:$0xf] }
 0x6ab   :  { %11001 = vmatprep.subr.bf16.mxu0 %v15148_v43  ;;  %v9255_v8 = vcombine.low %v7655_v36, %v14715_v51 }
 0x6ac   :  { %v6406_v20 = vpop.f32.mrb[88].mxu0 }
 0x6ad   :  { %v6423_v14 = vadd.f32 %v6406_v20, %v6279_v63  ;;  %v10721_v35 = vpop.f32.mrb[89].mxu0  ;;  %v14726_v20 = vld [vmem:[#allocation2 + $0x24] sm:$0xff]  }
 0x6ae   :  { %v6409_v56 = vpop.f32.mrb[90].mxu0  ;;  %11002 = vmatpush3.bf16.msra.mxu0 %v11428_v49 }
 0x6af   :  { %v6424_v6 = vadd.f32 %v6409_v56, %v6280_v59  ;;  %v14720_v52 = vpop.f32.mrb[192].mxu1  ;;  %v10722_v39 = vpop.f32.mrb[91].mxu0  ;;  %11031 = vmatprep.subr.bf16.mxu0 %v15148_v43  ;;  %v7679_v56 = vshll.u32 %v9255_v8, 16 }
 0x6b0   :  { %15224 = vst [vmem:[#allocation20_spill] sm:$0xff] %v14720_v52  ;;  %v10989_v13 = vpop.f32.mrb[193].mxu1 }
 0x6b1   :  { %v14724_v63 = vpop.f32.mrb[194].mxu1  ;;  %10976 = vmatmul.mubr.msk.bf16.gmra.mrb[196].mxu0 %vm1349_vm6, %v14726_v20  ;;  %v7681_v61 = vrot.slane %v7679_v56, 1 }
 0x6b2   :  { %15225 = vst [vmem:[#allocation21_spill] sm:$0xff] %v14724_v63  ;;  %v10990_v35 = vpop.f32.mrb[195].mxu1  ;;  %10979 = vmatprep.mubr.msk.bf16.mxu0 %vm11442_vm3, %v15148_v43 }
 0x6b4   :  { %v6414_v59 = vpop.f32.mrb[92].mxu0 }
 0x6b5   :  { %v6425_v49 = vadd.f32 %v6414_v59, %v6281_v12  ;;  %v10725_v39 = vpop.f32.mrb[93].mxu0  ;;  %v7677_v12 = vshrl.u32 %v9255_v8, 16  ;;  %v7684_v59 = vshll.u32 %v14732_v18, 16 }
 0x6b6   :  { %v6417_v52 = vpop.f32.mrb[94].mxu0 }
 0x6b7   :  { %v6426_v13 = vadd.f32 %v6417_v52, %v6282_v30  ;;  %v14734_v36 = vpop.f32.mrb[196].mxu1  ;;  %v10726_v63 = vpop.f32.mrb[95].mxu0  ;;  %v7682_v48 = vor.u32 %v7681_v61, %v7677_v12  ;;  %v14743_v30 = vld [vmem:[#allocation2 + $0x44] sm:$0x3f]   ;;  %v7686_v56 = vrot.slane %v7684_v59, 1 }
 0x6b8   :  { %15226 = vst [vmem:[#allocation22_spill] sm:$0xff] %v14734_v36  ;;  %v10993_v7 = vpop.f32.mrb[197].mxu1  ;;  %v7692_v31 = vshll.u32 %v14743_v30, 16 }
 0x6b9   :  { %v14736_v44 = vpop.f32.mrb[198].mxu1  ;;  %10980 = vmatmul.mubr.msk.bf16.gmra.mrb[200].mxu0 %vm1349_vm6, %v14175_v37 }
 0x6ba   :  { %15227 = vst [vmem:[#allocation23_spill] sm:$0xff] %v14736_v44  ;;  %v10994_v35 = vpop.f32.mrb[199].mxu1  ;;  %11003 = vmatprep.mubr.msk.bf16.mxu0 %vm11442_vm3, %v15148_v43 }
 0x6bb   :  { %v7687_v35 = vsel %vm1313_vm5, %v7682_v48, %v7686_v56  ;;  %v7694_v48 = vrot.slane %v7692_v31, 1 }
 0x6bc   :  { %v6507_v39 = vpop.f32.mrb[96].mxu0 }
 0x6bd   :  { %v6530_v52 = vadd.f32 %v6507_v39, %v6421_v41  ;;  %v10733_v63 = vpop.f32.mrb[97].mxu0  ;;  %v11430_v41 = vld [vmem:[%s15137_s3 + $0x80] sm:$0xff]  }
 0x6be   :  { %v6510_v7 = vpop.f32.mrb[98].mxu0  ;;  %v11431_v63 = vld [vmem:[%s15137_s3 + $0x88] sm:$0xff]  }
 0x6bf   :  { %v6531_v36 = vadd.f32 %v6510_v7, %v6422_v22  ;;  %v14745_v44 = vpop.f32.mrb[200].mxu1  ;;  %v10734_v1 = vpop.f32.mrb[99].mxu0 }
 0x6c0   :  { %15228 = vst [vmem:[#allocation24_spill] sm:$0xff] %v14745_v44  ;;  %v10997_v24 = vpop.f32.mrb[201].mxu1  ;;  %v7688_v1 = vshrl.u32 %v14732_v18, 16 }
 0x6c1   :  { %v14749_v8 = vpop.f32.mrb[202].mxu1  ;;  %11004 = vmatmul.mubr.msk.bf16.vlgmr.msra.gmra.mrb[204].mxu0 %vm1349_vm6, %v7687_v35 }
 0x6c2   :  { %15229 = vst [vmem:[#allocation25_spill] sm:$0xff] %v14749_v8  ;;  %v10998_v61 = vpop.f32.mrb[203].mxu1  ;;  %11032 = vmatpush3.bf16.msra.mxu0 %v11430_v41  ;;  %11007 = vmatprep.mubr.msk.bf16.mxu0 %vm11442_vm3, %v15148_v43  ;;  %v7690_v39 = vor.u32 %v7688_v1, %v7686_v56  ;;  %v7696_v56 = vshrl.u32 %v14743_v30, 16 }
 0x6c3   :  { %11033 = vmatprep.subr.bf16.mxu0 %v15148_v43 }
 0x6c4   :  { %v6515_v24 = vpop.f32.mrb[100].mxu0  ;;  %v7695_v8 = vsel %vm1313_vm5, %v7690_v39, %v7694_v48  ;;  %v7869_v39 = vld [vmem:[#allocation2 + $0x34] sm:$0xe] }
 0x6c5   :  { %v6532_v22 = vadd.f32 %v6515_v24, %v6423_v14  ;;  %v10737_v12 = vpop.f32.mrb[101].mxu0 }
 0x6c6   :  { %v6518_v59 = vpop.f32.mrb[102].mxu0  ;;  %11034 = vmatpush3.bf16.msra.mxu0 %v11431_v63  ;;  %v7698_v12 = vor.u32 %v7696_v56, %v7694_v48  ;;  %v7874_v56 = vrot.slane %v14732_v18, 1 }
 0x6c7   :  { %v6533_v7 = vadd.f32 %v6518_v59, %v6424_v6  ;;  %v14762_v35 = vpop.f32.mrb[204].mxu1  ;;  %v10738_v61 = vpop.f32.mrb[103].mxu0  ;;  %11063 = vmatprep.subr.bf16.mxu0 %v15148_v43 }
 0x6c8   :  { %v11021_v41 = vpop.f32.mrb[205].mxu1 }
 0x6c9   :  { %v14766_v44 = vpop.f32.mrb[206].mxu1  ;;  %11008 = vmatmul.mubr.msk.bf16.gmra.mrb[208].mxu0 %vm1349_vm6, %v7695_v8 }
 0x6ca   :  { %15230 = vst [vmem:[#allocation26_spill] sm:$0xff] %v14766_v44  ;;  %v11022_v31 = vpop.f32.mrb[207].mxu1  ;;  %11011 = vmatprep.mubr.msk.bf16.mxu0 %vm11442_vm3, %v15148_v43  ;;  %v9267_v44 = vcombine.low %v7869_v39, %v14715_v51 }
 0x6cc   :  { %v6523_v14 = vpop.f32.mrb[104].mxu0 }
 0x6cd   :  { %v6534_v6 = vadd.f32 %v6523_v14, %v6425_v49  ;;  %v10741_v24 = vpop.f32.mrb[105].mxu0  ;;  %v7873_v14 = vrot.slane %v9267_v44, 1 }
 0x6ce   :  { %v6526_v1 = vpop.f32.mrb[106].mxu0 }
 0x6cf   :  { %v6535_v59 = vadd.f32 %v6526_v1, %v6426_v13  ;;  %v14772_v63 = vpop.f32.mrb[208].mxu1  ;;  %v10742_v61 = vpop.f32.mrb[107].mxu0 }
 0x6d0   :  { %v11025_v41 = vpop.f32.mrb[209].mxu1 }
 0x6d1   :  { %v14775_v8 = vpop.f32.mrb[210].mxu1  ;;  %11012 = vmatmul.mubr.msk.bf16.gmra.mrb[212].mxu0 %vm1349_vm6, %v7698_v12  ;;  %v14788_v12 = vsel %vm1647_vm7, %v7873_v14, %v7874_v56 }
 0x6d2   :  { %v11026_v31 = vpop.f32.mrb[211].mxu1  ;;  %11035 = vmatprep.mubr.msk.bf16.mxu0 %vm11442_vm3, %v15148_v43 }
 0x6d4   :  { %v6598_v49 = vpop.f32.mrb[108].mxu0 }
 0x6d5   :  { %v14780_v24 = vadd.f32 %v6598_v49, %v6530_v52  ;;  %v10749_v13 = vpop.f32.mrb[109].mxu0  ;;  %v11432_v52 = vld [vmem:[%s15137_s3] sm:$0xff]  }
 0x6d6   :  { %v6601_v48 = vpop.f32.mrb[110].mxu0  ;;  %v11433_v13 = vld [vmem:[%s15137_s3 + $0x8] sm:$0xff]  }
 0x6d7   :  { %v14783_v1 = vadd.f32 %v6601_v48, %v6531_v36  ;;  %v14785_v61 = vpop.f32.mrb[212].mxu1  ;;  %v10750_v51 = vpop.f32.mrb[111].mxu0  ;;  %v14801_v36 = vrot.slane %v14743_v30, 1 }
 0x6d8   :  { %v11029_v39 = vpop.f32.mrb[213].mxu1 }
 0x6d9   :  { %v14790_v41 = vpop.f32.mrb[214].mxu1  ;;  %11036 = vmatmul.mubr.msk.bf16.vlgmr.msra.gmra.mrb[216].mxu0 %vm1349_vm6, %v14788_v12  ;;  %v14815_v30 = vsel %vm1647_vm7, %v7874_v56, %v14801_v36 }
 0x6da   :  { %15231 = vst [vmem:[#allocation27_spill] sm:$0xff] %v14790_v41  ;;  %v11030_v44 = vpop.f32.mrb[215].mxu1  ;;  %11064 = vmatpush3.bf16.msra.mxu0 %v11432_v52  ;;  %11039 = vmatprep.mubr.msk.bf16.mxu0 %vm11442_vm3, %v15148_v43 }
 0x6db   :  { %11065 = vmatprep.subr.bf16.mxu0 %v15148_v43 }
 0x6dc   :  { %v6606_v18 = vpop.f32.mrb[112].mxu0 }
 0x6dd   :  { %v14803_v31 = vadd.f32 %v6606_v18, %v6532_v22  ;;  %v10753_v49 = vpop.f32.mrb[113].mxu0 }
 0x6de   :  { %v6609_v14 = vpop.f32.mrb[114].mxu0  ;;  %11066 = vmatpush3.bf16.msra.mxu0 %v11433_v13 }
 0x6df   :  { %v14808_v48 = vadd.f32 %v6609_v14, %v6533_v7  ;;  %v14810_v51 = vpop.f32.mrb[216].mxu1  ;;  %v10754_v39 = vpop.f32.mrb[115].mxu0  ;;  %11095 = vmatprep.subr.bf16.mxu0 %v15148_v43 }
 0x6e0   :  { %15232 = vst [vmem:[#allocation28_spill] sm:$0xff] %v14810_v51  ;;  %v11053_v44 = vpop.f32.mrb[217].mxu1 }
 0x6e1   :  { %v14817_v22 = vpop.f32.mrb[218].mxu1  ;;  %11040 = vmatmul.mubr.msk.bf16.gmra.mrb[220].mxu0 %vm1349_vm6, %v14815_v30 }
 0x6e2   :  { %15233 = vst [vmem:[#allocation6_spill] sm:$0xff] %v14817_v22  ;;  %v11054_v52 = vpop.f32.mrb[219].mxu1  ;;  %11043 = vmatprep.mubr.msk.bf16.mxu0 %vm11442_vm3, %v15148_v43 }
 0x6e4   :  { %v6614_v7 = vpop.f32.mrb[116].mxu0 }
 0x6e5   :  { %v14823_v18 = vadd.f32 %v6614_v7, %v6534_v6  ;;  %v10757_v49 = vpop.f32.mrb[117].mxu0 }
 0x6e6   :  { %v6617_v14 = vpop.f32.mrb[118].mxu0 }
 0x6e7   :  { %v14825_v13 = vadd.f32 %v6617_v14, %v6535_v59  ;;  %v14827_v39 = vpop.f32.mrb[220].mxu1  ;;  %v10758_v56 = vpop.f32.mrb[119].mxu0 }
 0x6e8   :  { %15234 = vst [vmem:[#allocation3_spill] sm:$0xff] %v14827_v39  ;;  %v11057_v44 = vpop.f32.mrb[221].mxu1 }
 0x6e9   :  { %v14829_v51 = vpop.f32.mrb[222].mxu1  ;;  %11044 = vmatmul.mubr.msk.bf16.gmra.mrb[224].mxu0 %vm1349_vm6, %v14801_v36 }
 0x6ea   :  { %15235 = vst [vmem:[#allocation5_spill] sm:$0xff] %v14829_v51  ;;  %v11058_v52 = vpop.f32.mrb[223].mxu1  ;;  %11067 = vmatprep.mubr.msk.bf16.mxu0 %vm11442_vm3, %v15148_v43 }
 0x6ec   :  { %v6737_v22 = vpop.f32.mrb[120].mxu0 }
 0x6ed   :  { %v6738_v6 = vadd.f32 %v6737_v22, %v14437_v9  ;;  %v10781_v7 = vpop.f32.mrb[121].mxu0  ;;  %v11434_v9 = vld [vmem:[%s15137_s3 + $0x30] sm:$0xff]  }
 0x6ee   :  { %v6740_v49 = vpop.f32.mrb[122].mxu0 }
 0x6ef   :  { %v6741_v59 = vadd.f32 %v6740_v49, %v14440_v54  ;;  %v14837_v14 = vpop.f32.mrb[224].mxu1  ;;  %v10782_v56 = vpop.f32.mrb[123].mxu0  ;;  %v6835_v44 = vadd.f32 %v14481_v25, %v6738_v6 }
 0x6f0   :  { %v11061_v51 = vpop.f32.mrb[225].mxu1 }
 0x6f1   :  { %v14840_v39 = vpop.f32.mrb[226].mxu1  ;;  %11068 = vmatmul.mubr.msk.bf16.vlgmr.msra.gmra.mrb[228].mxu0 %vm1349_vm6, %v14232_v21  ;;  %v6836_v52 = vadd.f32 %v14484_v60, %v6741_v59  ;;  %v11435_v21 = vld [vmem:[%s15137_s3 + $0x38] sm:$0xff]  }
 0x6f2   :  { %v11062_v41 = vpop.f32.mrb[227].mxu1  ;;  %11096 = vmatpush3.bf16.msra.mxu0 %v11434_v9  ;;  %11071 = vmatprep.mubr.msk.bf16.mxu0 %vm11442_vm3, %v15148_v43 }
 0x6f3   :  { %11097 = vmatprep.subr.bf16.mxu0 %v15148_v43 }
 0x6f4   :  { %v6745_v54 = vpop.f32.mrb[124].mxu0 }
 0x6f5   :  { %v6746_v25 = vadd.f32 %v6745_v54, %v14452_v46  ;;  %v10785_v51 = vpop.f32.mrb[125].mxu0 }
 0x6f6   :  { %v6748_v22 = vpop.f32.mrb[126].mxu0  ;;  %11098 = vmatpush3.bf16.msra.mxu0 %v11435_v21 }
 0x6f7   :  { %v6749_v60 = vadd.f32 %v6748_v22, %v14454_v62  ;;  %v14856_v41 = vpop.f32.mrb[228].mxu1  ;;  %v10786_v6 = vpop.f32.mrb[127].mxu0  ;;  %11127 = vmatprep.subr.bf16.mxu0 %v15148_v43  ;;  %v6837_v7 = vadd.f32 %v14496_v5, %v6746_v25 }
 0x6f8   :  { %v11085_v49 = vpop.f32.mrb[229].mxu1 }
 0x6f9   :  { %v14860_v59 = vpop.f32.mrb[230].mxu1  ;;  %11072 = vmatmul.mubr.msk.bf16.gmra.mrb[232].mxu0 %vm1349_vm6, %v14257_v15  ;;  %v6838_v46 = vadd.f32 %v14498_v53, %v6749_v60 }
 0x6fa   :  { %v11086_v56 = vpop.f32.mrb[231].mxu1  ;;  %11075 = vmatprep.mubr.msk.bf16.mxu0 %vm11442_vm3, %v15148_v43 }
 0x6fc   :  { %v6753_v62 = vpop.f32.mrb[128].mxu0 }
 0x6fd   :  { %v6754_v9 = vadd.f32 %v6753_v62, %v14466_v10  ;;  %v10789_v54 = vpop.f32.mrb[129].mxu0 }
 0x6fe   :  { %v6756_v51 = vpop.f32.mrb[130].mxu0 }
 0x6ff   :  { %v6757_v22 = vadd.f32 %v6756_v51, %v14468_v47  ;;  %v14869_v5 = vpop.f32.mrb[232].mxu1  ;;  %v10790_v25 = vpop.f32.mrb[131].mxu0  ;;  %v6839_v21 = vadd.f32 %v14510_v58, %v6754_v9 }
 0x700   :  { %v11089_v6 = vpop.f32.mrb[233].mxu1 }
 0x701   :  { %v14872_v15 = vpop.f32.mrb[234].mxu1  ;;  %11076 = vmatmul.mubr.msk.bf16.gmra.mrb[236].mxu0 %vm1349_vm6, %v14249_v4  ;;  %v6840_v53 = vadd.f32 %v14512_v2, %v6757_v22 }
 0x702   :  { %v11090_v60 = vpop.f32.mrb[235].mxu1  ;;  %11099 = vmatprep.mubr.msk.bf16.mxu0 %vm11442_vm3, %v15148_v43 }
 0x704   :  { %v6875_v10 = vpop.f32.mrb[132].mxu0 }
 0x705   :  { %v6898_v49 = vadd.f32 %v6875_v10, %v6835_v44  ;;  %v10813_v47 = vpop.f32.mrb[133].mxu0  ;;  %v11436_v44 = vld [vmem:[%s15137_s3 + $0x50] sm:$0xff]  }
 0x706   :  { %v6878_v56 = vpop.f32.mrb[134].mxu0 }
 0x707   :  { %v6899_v62 = vadd.f32 %v6878_v56, %v6836_v52  ;;  %v14879_v54 = vpop.f32.mrb[236].mxu1  ;;  %v10814_v58 = vpop.f32.mrb[135].mxu0  ;;  %v6961_v9 = vadd.f32 %v14525_v28, %v6898_v49 }
 0x708   :  { %v11093_v51 = vpop.f32.mrb[237].mxu1 }
 0x709   :  { %v14882_v25 = vpop.f32.mrb[238].mxu1  ;;  %11100 = vmatmul.mubr.msk.bf16.vlgmr.msra.gmra.mrb[240].mxu0 %vm1349_vm6, %v14138_v19  ;;  %v6962_v4 = vadd.f32 %v14528_v57, %v6899_v62  ;;  %v11437_v19 = vld [vmem:[%s15137_s3 + $0x58] sm:$0xff]  }
 0x70a   :  { %v11094_v2 = vpop.f32.mrb[239].mxu1  ;;  %11128 = vmatpush3.bf16.msra.mxu0 %v11436_v44  ;;  %11103 = vmatprep.mubr.msk.bf16.mxu0 %vm11442_vm3, %v15148_v43 }
 0x70b   :  { %11129 = vmatprep.subr.bf16.mxu0 %v15148_v43 }
 0x70c   :  { %v6883_v28 = vpop.f32.mrb[136].mxu0 }
 0x70d   :  { %v6900_v52 = vadd.f32 %v6883_v28, %v6837_v7  ;;  %v10817_v22 = vpop.f32.mrb[137].mxu0 }
 0x70e   :  { %v6886_v6 = vpop.f32.mrb[138].mxu0  ;;  %11130 = vmatpush3.bf16.msra.mxu0 %v11437_v19 }
 0x70f   :  { %v6901_v57 = vadd.f32 %v6886_v6, %v6838_v46  ;;  %v14896_v60 = vpop.f32.mrb[240].mxu1  ;;  %v10818_v10 = vpop.f32.mrb[139].mxu0  ;;  %11159 = vmatprep.subr.bf16.mxu0 %v15148_v43  ;;  %v6963_v49 = vadd.f32 %v14540_v50, %v6900_v52 }
 0x710   :  { %v11117_v47 = vpop.f32.mrb[241].mxu1 }
 0x711   :  { %v14900_v56 = vpop.f32.mrb[242].mxu1  ;;  %11104 = vmatmul.mubr.msk.bf16.gmra.mrb[244].mxu0 %vm1349_vm6, %v14726_v20  ;;  %v6964_v7 = vadd.f32 %v14542_v45, %v6901_v57 }
 0x712   :  { %v11118_v62 = vpop.f32.mrb[243].mxu1  ;;  %11107 = vmatprep.mubr.msk.bf16.mxu0 %vm11442_vm3, %v15148_v43 }
 0x714   :  { %v6891_v46 = vpop.f32.mrb[140].mxu0 }
 0x715   :  { %v6902_v58 = vadd.f32 %v6891_v46, %v6839_v21  ;;  %v10821_v51 = vpop.f32.mrb[141].mxu0 }
 0x716   :  { %v6894_v2 = vpop.f32.mrb[142].mxu0 }
 0x717   :  { %v6903_v44 = vadd.f32 %v6894_v2, %v6840_v53  ;;  %v14907_v28 = vpop.f32.mrb[244].mxu1  ;;  %v10822_v50 = vpop.f32.mrb[143].mxu0  ;;  %v6965_v52 = vadd.f32 %v14554_v32, %v6902_v58 }
 0x718   :  { %v11121_v22 = vpop.f32.mrb[245].mxu1 }
 0x719   :  { %v14910_v6 = vpop.f32.mrb[246].mxu1  ;;  %11108 = vmatmul.mubr.msk.bf16.gmra.mrb[248].mxu0 %vm1349_vm6, %v14175_v37  ;;  %v6966_v45 = vadd.f32 %v14556_v34, %v6903_v44 }
 0x71a   :  { %v11122_v20 = vpop.f32.mrb[247].mxu1  ;;  %11131 = vmatprep.mubr.msk.bf16.mxu0 %vm11442_vm3, %v15148_v43 }
 0x71c   :  { %v7019_v21 = vpop.f32.mrb[144].mxu0 }
 0x71d   :  { %v7042_v19 = vadd.f32 %v7019_v21, %v6961_v9  ;;  %v10845_v53 = vpop.f32.mrb[145].mxu0  ;;  %v11438_v9 = vld [vmem:[%s15137_s3 + $0x70] sm:$0xff]  }
 0x71e   :  { %v7022_v57 = vpop.f32.mrb[146].mxu0 }
 0x71f   :  { %v7043_v10 = vadd.f32 %v7022_v57, %v6962_v4  ;;  %v14917_v47 = vpop.f32.mrb[248].mxu1  ;;  %v10846_v32 = vpop.f32.mrb[147].mxu0  ;;  %v7105_v62 = vadd.f32 %v14569_v0, %v7042_v19 }
 0x720   :  { %v11125_v46 = vpop.f32.mrb[249].mxu1 }
 0x721   :  { %v14920_v58 = vpop.f32.mrb[250].mxu1  ;;  %11132 = vmatmul.mubr.msk.bf16.vlgmr.msra.gmra.mrb[252].mxu0 %vm1349_vm6, %v14200_v3  ;;  %v7106_v37 = vadd.f32 %v14572_v16, %v7043_v10  ;;  %v11439_v3 = vld [vmem:[%s15137_s3 + $0x78] sm:$0xff]  }
 0x722   :  { %v11126_v34 = vpop.f32.mrb[251].mxu1  ;;  %11160 = vmatpush3.bf16.msra.mxu0 %v11438_v9  ;;  %11135 = vmatprep.mubr.msk.bf16.mxu0 %vm11442_vm3, %v15148_v43 }
 0x723   :  { %11161 = vmatprep.subr.bf16.mxu0 %v15148_v43 }
 0x724   :  { %v7027_v0 = vpop.f32.mrb[148].mxu0 }
 0x725   :  { %v7044_v4 = vadd.f32 %v7027_v0, %v6963_v49  ;;  %v10849_v51 = vpop.f32.mrb[149].mxu0 }
 0x726   :  { %v7030_v2 = vpop.f32.mrb[150].mxu0  ;;  %11162 = vmatpush3.bf16.msra.mxu0 %v11439_v3 }
 0x727   :  { %v7045_v16 = vadd.f32 %v7030_v2, %v6964_v7  ;;  %v14934_v44 = vpop.f32.mrb[252].mxu1  ;;  %v10850_v50 = vpop.f32.mrb[151].mxu0  ;;  %v7107_v22 = vadd.f32 %v14584_v27, %v7044_v4 }
 0x728   :  { %v11149_v20 = vpop.f32.mrb[253].mxu1 }
 0x729   :  { %v14937_v21 = vpop.f32.mrb[254].mxu1  ;;  %11136 = vmatmul.mubr.msk.bf16.gmra.mrb[0].mxu0 %vm1349_vm6, %v14218_v11  ;;  %v7108_v49 = vadd.f32 %v14586_v17, %v7045_v16 }
 0x72a   :  { %v11150_v19 = vpop.f32.mrb[255].mxu1  ;;  %11139 = vmatprep.mubr.msk.bf16.mxu0 %vm11442_vm3, %v15148_v43 }
 0x72c   :  { %v7035_v53 = vpop.f32.mrb[152].mxu0 }
 0x72d   :  { %v7046_v57 = vadd.f32 %v7035_v53, %v6965_v52  ;;  %v10853_v7 = vpop.f32.mrb[153].mxu0  ;;  %v14957_v52 = vld [vmem:[%s15139_s4] ss:$0 sm:$0xff] }
 0x72e   :  { %v7038_v10 = vpop.f32.mrb[154].mxu0  ;;  %v6634_v2 = vadd.f32 %v14957_v52, %v14780_v24  ;;  %v6635_v20 = vadd.f32 %v14957_v52, %v14783_v1 }
 0x72f   :  { %v7047_v32 = vadd.f32 %v7038_v10, %v6966_v45  ;;  %v14944_v46 = vpop.f32.mrb[0].mxu1  ;;  %v10854_v27 = vpop.f32.mrb[155].mxu0  ;;  %v7109_v34 = vadd.f32 %v14597_v33, %v7046_v57 }
 0x730   :  { %v11153_v9 = vpop.f32.mrb[1].mxu1  ;;  %v6641_v10 = vmax.f32 %v6635_v20, 0.0 }
 0x731   :  { %v14947_v0 = vpop.f32.mrb[2].mxu1  ;;  %11140 = vmatmul.mubr.msk.bf16.gmra.mrb[4].mxu0 %vm1349_vm6, %v14236_v23  ;;  %v7110_v11 = vadd.f32 %v14599_v55, %v7047_v32 }
 0x732   :  { %v11154_v17 = vpop.f32.mrb[3].mxu1  ;;  %11163 = vmatprep.mubr.msk.bf16.mxu0 %vm11442_vm3, %v15148_v43 }
 0x733   :  { %v6636_v17 = vadd.f32 %v14957_v52, %v14803_v31 }
 0x734   :  { %v7145_v45 = vpop.f32.mrb[156].mxu0 }
 0x735   :  { %v7168_v4 = vadd.f32 %v7145_v45, %v7105_v62  ;;  %v10877_v33 = vpop.f32.mrb[157].mxu0  ;;  %v6642_v31 = vmax.f32 %v6636_v17, 0.0 }
 0x736   :  { %v7148_v51 = vpop.f32.mrb[158].mxu0 }
 0x737   :  { %v7265_v23 = vadd.f32 %v14612_v38, %v7168_v4  ;;  %v7169_v3 = vadd.f32 %v7148_v51, %v7106_v37  ;;  %v14962_v55 = vpop.f32.mrb[4].mxu1  ;;  %v10878_v16 = vpop.f32.mrb[159].mxu0  ;;  %v6640_v38 = vmax.f32 %v6634_v2, 0.0 }
 0x738   :  { %v11157_v50 = vpop.f32.mrb[5].mxu1 }
 0x739   :  { %v7271_v19 = vadd.f32 %v14957_v52, %v7265_v23  ;;  %v7266_v53 = vadd.f32 %v14615_v29, %v7169_v3  ;;  %v14968_v62 = vpop.f32.mrb[6].mxu1  ;;  %11164 = vmatmul.mubr.msk.bf16.vlgmr.msra.gmra.mrb[8].mxu0 %vm1349_vm6, %v14788_v12  ;;  %v6637_v23 = vadd.f32 %v14957_v52, %v14808_v48 }
 0x73a   :  { %v11158_v24 = vpop.f32.mrb[7].mxu1  ;;  %11167 = vmatprep.mubr.msk.bf16.mxu0 %vm11442_vm3, %v15148_v43 }
 0x73b   :  { %v7277_v37 = vmax.f32 %v7271_v19, 0.0  ;;  %v7272_v57 = vadd.f32 %v14957_v52, %v7266_v53  ;;  %v6643_v19 = vmax.f32 %v6637_v23, 0.0  ;;  %v15237_v23 = vld [vmem:[#allocation8_spill] sm:$0xff] }
 0x73c   :  { %v7153_v7 = vpop.f32.mrb[160].mxu0 }
 0x73d   :  { %v7278_v1 = vmax.f32 %v7272_v57, 0.0  ;;  %v7170_v32 = vadd.f32 %v7153_v7, %v7107_v22  ;;  %v10881_v27 = vpop.f32.mrb[161].mxu0  ;;  %v14975_v9 = vmax.f32 %v6640_v38, %v7277_v37  ;;  %v6638_v37 = vadd.f32 %v14957_v52, %v14823_v18 }
 0x73e   :  { %v7156_v29 = vpop.f32.mrb[162].mxu0  ;;  %v15236_v27 = vld [vmem:[#allocation7_spill] sm:$0xff] }
 0x73f   :  { %v7267_v12 = vadd.f32 %v14625_v26, %v7170_v32  ;;  %v7171_v45 = vadd.f32 %v7156_v29, %v7108_v49  ;;  %v14980_v4 = vpop.f32.mrb[8].mxu1  ;;  %v10882_v33 = vpop.f32.mrb[163].mxu0  ;;  %v14982_v51 = vmax.f32 %v6641_v10, %v7278_v1  ;;  %v6639_v32 = vadd.f32 %v14957_v52, %v14825_v13 }
 0x740   :  { %v11181_v2 = vpop.f32.mrb[9].mxu1  ;;  %v6644_v18 = vmax.f32 %v6638_v37, 0.0 }
 0x741   :  { %v7273_v22 = vadd.f32 %v14957_v52, %v7267_v12  ;;  %v7268_v3 = vadd.f32 %v14627_v40, %v7171_v45  ;;  %v14988_v16 = vpop.f32.mrb[10].mxu1  ;;  %11168 = vmatmul.mubr.msk.bf16.gmra.mrb[12].mxu0 %vm1349_vm6, %v14815_v30  ;;  %v6645_v33 = vmax.f32 %v6639_v32, 0.0 }
 0x742   :  { %v11182_v26 = vpop.f32.mrb[11].mxu1  ;;  %11171 = vmatprep.mubr.msk.bf16.mxu0 %vm11442_vm3, %v15148_v43 }
 0x743   :  { %v7279_v49 = vmax.f32 %v7273_v22, 0.0  ;;  %v7274_v50 = vadd.f32 %v14957_v52, %v7268_v3 }
 0x744   :  { %v7161_v20 = vpop.f32.mrb[164].mxu0 }
 0x745   :  { %v7280_v48 = vmax.f32 %v7274_v50, 0.0  ;;  %v7172_v53 = vadd.f32 %v7161_v20, %v7109_v34  ;;  %v10885_v24 = vpop.f32.mrb[165].mxu0  ;;  %v14995_v38 = vmax.f32 %v6642_v31, %v7279_v49  ;;  %v15238_v31 = vld [vmem:[#allocation9_spill] sm:$0xff] }
 0x746   :  { %v7164_v40 = vpop.f32.mrb[166].mxu0 }
 0x747   :  { %v7269_v30 = vadd.f32 %v14637_v42, %v7172_v53  ;;  %v7173_v57 = vadd.f32 %v7164_v40, %v7110_v11  ;;  %v15000_v7 = vpop.f32.mrb[12].mxu1  ;;  %v10886_v43 = vpop.f32.mrb[167].mxu0  ;;  %v15002_v10 = vmax.f32 %v6643_v19, %v7280_v48  ;;  %v15239_v40 = vld [vmem:[#allocation10_spill] sm:$0xff] }
 0x748   :  { %v11185_v1 = vpop.f32.mrb[13].mxu1  ;;  %v15240_v43 = vld [vmem:[#allocation11_spill] sm:$0xff] }
 0x749   :  { %v7275_v34 = vadd.f32 %v14957_v52, %v7269_v30  ;;  %v7270_v29 = vadd.f32 %v15236_v27, %v7173_v57  ;;  %v15008_v17 = vpop.f32.mrb[14].mxu1  ;;  %11172 = vmatmul.mubr.msk.bf16.gmra.mrb[16].mxu0 %vm1349_vm6, %v14801_v36  ;;  %v15241_v27 = vld [vmem:[#allocation12_spill] sm:$0xff] }
 0x74a   :  { %v11186_v42 = vpop.f32.mrb[15].mxu1 }
 0x74b   :  { %v7281_v11 = vmax.f32 %v7275_v34, 0.0  ;;  %v7276_v12 = vadd.f32 %v14957_v52, %v7270_v29 }
 0x74c   :  { %v7323_v45 = vpop.f32.mrb[168].mxu0 }
 0x74d   :  { %v7282_v2 = vmax.f32 %v7276_v12, 0.0  ;;  %v7381_v22 = vadd.f32 %v15237_v23, %v7323_v45  ;;  %v10909_v13 = vpop.f32.mrb[169].mxu0  ;;  %v15014_v3 = vmax.f32 %v6644_v18, %v7281_v11  ;;  %v15242_v11 = vld [vmem:[#allocation13_spill] sm:$0xff] }
 0x74e   :  { %v7326_v26 = vpop.f32.mrb[170].mxu0 }
 0x74f   :  { %v7384_v49 = vadd.f32 %v15238_v31, %v7326_v26  ;;  %v15017_v50 = vpop.f32.mrb[16].mxu1  ;;  %v10910_v20 = vpop.f32.mrb[171].mxu0  ;;  %v15019_v36 = vmax.f32 %v6645_v33, %v7282_v2 }
 0x750   :  { %v11189_v19 = vpop.f32.mrb[17].mxu1  ;;  %v15243_v20 = vld [vmem:[#allocation14_spill] sm:$0xff] }
 0x751   :  { %v15021_v48 = vpop.f32.mrb[18].mxu1 }
 0x752   :  { %v11190_v53 = vpop.f32.mrb[19].mxu1 }
 0x753   :  { %v15244_v53 = vld [vmem:[#allocation15_spill] sm:$0xff] }
 0x754   :  { %v7331_v24 = vpop.f32.mrb[172].mxu0 }
 0x755   :  { %v7389_v37 = vadd.f32 %v15239_v40, %v7331_v24  ;;  %v10913_v30 = vpop.f32.mrb[173].mxu0 }
 0x756   :  { %v7334_v57 = vpop.f32.mrb[174].mxu0 }
 0x757   :  { %v7392_v1 = vadd.f32 %v15240_v43, %v7334_v57  ;;  %v10914_v32 = vpop.f32.mrb[175].mxu0 }
 0x75c   :  { %v7339_v34 = vpop.f32.mrb[176].mxu0 }
 0x75d   :  { %v7397_v29 = vadd.f32 %v15241_v27, %v7339_v34  ;;  %v10917_v42 = vpop.f32.mrb[177].mxu0  ;;  %v15245_v27 = vld [vmem:[#allocation16_spill] sm:$0xff] }
 0x75e   :  { %v7342_v18 = vpop.f32.mrb[178].mxu0 }
 0x75f   :  { %v7400_v12 = vadd.f32 %v15242_v11, %v7342_v18  ;;  %v10918_v45 = vpop.f32.mrb[179].mxu0  ;;  %v15246_v18 = vld [vmem:[#allocation17_spill] sm:$0xff] }
 0x764   :  { %v7437_v33 = vpop.f32.mrb[180].mxu0 }
 0x765   :  { %v7460_v2 = vadd.f32 %v7437_v33, %v7381_v22  ;;  %v10941_v23 = vpop.f32.mrb[181].mxu0 }
 0x766   :  { %v7440_v13 = vpop.f32.mrb[182].mxu0 }
 0x767   :  { %v7461_v26 = vadd.f32 %v7440_v13, %v7384_v49  ;;  %v10942_v31 = vpop.f32.mrb[183].mxu0  ;;  %v7523_v19 = vadd.f32 %v15243_v20, %v7460_v2  ;;  %v15248_v20 = vld [vmem:[#allocation19_spill] sm:$0xff] }
 0x768   :  { %v15247_v31 = vld [vmem:[#allocation18_spill] sm:$0xff] }
 0x769   :  { %v7524_v24 = vadd.f32 %v15244_v53, %v7461_v26 }
 0x76c   :  { %v7445_v40 = vpop.f32.mrb[184].mxu0 }
 0x76d   :  { %v7462_v30 = vadd.f32 %v7445_v40, %v7389_v37  ;;  %v10945_v57 = vpop.f32.mrb[185].mxu0 }
 0x76e   :  { %v7448_v43 = vpop.f32.mrb[186].mxu0 }
 0x76f   :  { %v7463_v32 = vadd.f32 %v7448_v43, %v7392_v1  ;;  %v10946_v34 = vpop.f32.mrb[187].mxu0  ;;  %v7525_v42 = vadd.f32 %v15245_v27, %v7462_v30  ;;  %v15250_v27 = vld [vmem:[#allocation21_spill] sm:$0xff] }
 0x770   :  { %v15249_v34 = vld [vmem:[#allocation20_spill] sm:$0xff] }
 0x771   :  { %v7526_v11 = vadd.f32 %v15246_v18, %v7463_v32 }
 0x774   :  { %v7453_v45 = vpop.f32.mrb[188].mxu0 }
 0x775   :  { %v7464_v22 = vadd.f32 %v7453_v45, %v7397_v29  ;;  %v10949_v33 = vpop.f32.mrb[189].mxu0 }
 0x776   :  { %v7456_v23 = vpop.f32.mrb[190].mxu0 }
 0x777   :  { %v7465_v49 = vadd.f32 %v7456_v23, %v7400_v12  ;;  %v10950_v13 = vpop.f32.mrb[191].mxu0  ;;  %v7527_v2 = vadd.f32 %v15247_v31, %v7464_v22  ;;  %v15252_v31 = vld [vmem:[#allocation23_spill] sm:$0xff] }
 0x778   :  { %v15251_v13 = vld [vmem:[#allocation22_spill] sm:$0xff] }
 0x779   :  { %v7528_v26 = vadd.f32 %v15248_v20, %v7465_v49 }
 0x77c   :  { %v7563_v53 = vpop.f32.mrb[192].mxu0 }
 0x77d   :  { %v7586_v37 = vadd.f32 %v7563_v53, %v7523_v19  ;;  %v10973_v40 = vpop.f32.mrb[193].mxu0 }
 0x77e   :  { %v7566_v57 = vpop.f32.mrb[194].mxu0 }
 0x77f   :  { %v7587_v1 = vadd.f32 %v7566_v57, %v7524_v24  ;;  %v10974_v43 = vpop.f32.mrb[195].mxu0  ;;  %v7649_v30 = vadd.f32 %v15249_v34, %v7586_v37  ;;  %v15254_v34 = vld [vmem:[#allocation25_spill] sm:$0xff] }
 0x780   :  { %v15253_v43 = vld [vmem:[#allocation24_spill] sm:$0xff] }
 0x781   :  { %v7650_v32 = vadd.f32 %v15250_v27, %v7587_v1 }
 0x784   :  { %v7571_v18 = vpop.f32.mrb[196].mxu0 }
 0x785   :  { %v7588_v29 = vadd.f32 %v7571_v18, %v7525_v42  ;;  %v10977_v45 = vpop.f32.mrb[197].mxu0 }
 0x786   :  { %v7574_v33 = vpop.f32.mrb[198].mxu0 }
 0x787   :  { %v7589_v12 = vadd.f32 %v7574_v33, %v7526_v11  ;;  %v10978_v23 = vpop.f32.mrb[199].mxu0  ;;  %v7651_v22 = vadd.f32 %v15251_v13, %v7588_v29 }
 0x788   :  { %v15255_v23 = vld [vmem:[#allocation26_spill] sm:$0xff] }
 0x789   :  { %v7652_v49 = vadd.f32 %v15252_v31, %v7589_v12 }
 0x78c   :  { %v7579_v20 = vpop.f32.mrb[200].mxu0 }
 0x78d   :  { %v7590_v19 = vadd.f32 %v7579_v20, %v7527_v2  ;;  %v10981_v53 = vpop.f32.mrb[201].mxu0 }
 0x78e   :  { %v7582_v40 = vpop.f32.mrb[202].mxu0 }
 0x78f   :  { %v7591_v24 = vadd.f32 %v7582_v40, %v7528_v26  ;;  %v10982_v57 = vpop.f32.mrb[203].mxu0  ;;  %v7653_v37 = vadd.f32 %v15253_v43, %v7590_v19 }
 0x791   :  { %v7654_v1 = vadd.f32 %v15254_v34, %v7591_v24 }
 0x794   :  { %v7742_v27 = vpop.f32.mrb[204].mxu0 }
 0x795   :  { %v7765_v42 = vadd.f32 %v7742_v27, %v7649_v30  ;;  %v11005_v18 = vpop.f32.mrb[205].mxu0  ;;  %v15256_v27 = vld [vmem:[#allocation27_spill] sm:$0xff] }
 0x796   :  { %v7745_v45 = vpop.f32.mrb[206].mxu0 }
 0x797   :  { %v7766_v11 = vadd.f32 %v7745_v45, %v7650_v32  ;;  %v11006_v33 = vpop.f32.mrb[207].mxu0  ;;  %v7863_v29 = vadd.f32 %v14762_v35, %v7765_v42 }
 0x799   :  { %v7864_v12 = vadd.f32 %v15255_v23, %v7766_v11 }
 0x79c   :  { %v7750_v13 = vpop.f32.mrb[208].mxu0 }
 0x79d   :  { %v7767_v2 = vadd.f32 %v7750_v13, %v7651_v22  ;;  %v11009_v31 = vpop.f32.mrb[209].mxu0 }
 0x79e   :  { %v7753_v20 = vpop.f32.mrb[210].mxu0 }
 0x79f   :  { %v7768_v26 = vadd.f32 %v7753_v20, %v7652_v49  ;;  %v11010_v53 = vpop.f32.mrb[211].mxu0  ;;  %v7865_v19 = vadd.f32 %v14772_v63, %v7767_v2 }
 0x7a1   :  { %v7866_v40 = vadd.f32 %v14775_v8, %v7768_v26 }
 0x7a4   :  { %v7758_v24 = vpop.f32.mrb[212].mxu0 }
 0x7a5   :  { %v7769_v30 = vadd.f32 %v7758_v24, %v7653_v37  ;;  %v11013_v57 = vpop.f32.mrb[213].mxu0 }
 0x7a6   :  { %v7761_v43 = vpop.f32.mrb[214].mxu0 }
 0x7a7   :  { %v7770_v32 = vadd.f32 %v7761_v43, %v7654_v1  ;;  %v11014_v34 = vpop.f32.mrb[215].mxu0  ;;  %v7867_v35 = vadd.f32 %v14785_v61, %v7769_v30 }
 0x7a9   :  { %v7868_v42 = vadd.f32 %v15256_v27, %v7770_v32 }
 0x7ac   :  { %v7921_v18 = vpop.f32.mrb[216].mxu0 }
 0x7ad   :  { %v7944_v22 = vadd.f32 %v7921_v18, %v7863_v29  ;;  %v11037_v45 = vpop.f32.mrb[217].mxu0 }
 0x7ae   :  { %v7924_v11 = vpop.f32.mrb[218].mxu0 }
 0x7af   :  { %v7950_v49 = vadd.f32 %v14957_v52, %v7944_v22  ;;  %v7945_v33 = vadd.f32 %v7924_v11, %v7864_v12  ;;  %v11038_v63 = vpop.f32.mrb[219].mxu0 }
 0x7b1   :  { %v7956_v23 = vmax.f32 %v7950_v49, 0.0  ;;  %v7951_v8 = vadd.f32 %v14957_v52, %v7945_v33 }
 0x7b3   :  { %v15048_v37 = vmax.f32 %v14975_v9, %v7956_v23  ;;  %v7957_v1 = vmax.f32 %v7951_v8, 0.0  ;;  %v15258_v23 = vld [vmem:[#allocation6_spill] sm:$0xff] }
 0x7b4   :  { %v7929_v13 = vpop.f32.mrb[220].mxu0 }
 0x7b5   :  { %v15051_v61 = vmax.f32 %v14982_v51, %v7957_v1  ;;  %v7946_v2 = vadd.f32 %v7929_v13, %v7865_v19  ;;  %v11041_v31 = vpop.f32.mrb[221].mxu0 }
 0x7b6   :  { %v7932_v29 = vpop.f32.mrb[222].mxu0  ;;  %v15259_v31 = vld [vmem:[#allocation3_spill] sm:$0xff] }
 0x7b7   :  { %v7952_v20 = vadd.f32 %v14957_v52, %v7946_v2  ;;  %v7947_v26 = vadd.f32 %v7932_v29, %v7866_v40  ;;  %v11042_v53 = vpop.f32.mrb[223].mxu0 }
 0x7b9   :  { %v7958_v12 = vmax.f32 %v7952_v20, 0.0  ;;  %v7953_v24 = vadd.f32 %v14957_v52, %v7947_v26  ;;  %v15260_v26 = vld [vmem:[#allocation5_spill] sm:$0xff] }
 0x7bb   :  { %v15056_v30 = vmax.f32 %v14995_v38, %v7958_v12  ;;  %v7959_v9 = vmax.f32 %v7953_v24, 0.0 }
 0x7bc   :  { %v7937_v57 = vpop.f32.mrb[224].mxu0 }
 0x7bd   :  { %v15059_v43 = vmax.f32 %v15002_v10, %v7959_v9  ;;  %v7948_v51 = vadd.f32 %v7937_v57, %v7867_v35  ;;  %v11045_v32 = vpop.f32.mrb[225].mxu0  ;;  %v15257_v10 = vld [vmem:[#allocation28_spill] sm:$0xff] }
 0x7be   :  { %v7940_v19 = vpop.f32.mrb[226].mxu0 }
 0x7bf   :  { %v7954_v34 = vadd.f32 %v14957_v52, %v7948_v51  ;;  %v7949_v27 = vadd.f32 %v7940_v19, %v7868_v42  ;;  %v11046_v18 = vpop.f32.mrb[227].mxu0 }
 0x7c1   :  { %v7960_v40 = vmax.f32 %v7954_v34, 0.0  ;;  %v7955_v22 = vadd.f32 %v14957_v52, %v7949_v27 }
 0x7c3   :  { %v15064_v45 = vmax.f32 %v15014_v3, %v7960_v40  ;;  %v7961_v38 = vmax.f32 %v7955_v22, 0.0 }
 0x7c4   :  { %v8059_v11 = vpop.f32.mrb[228].mxu0 }
 0x7c5   :  { %v15067_v49 = vmax.f32 %v15019_v36, %v7961_v38  ;;  %v8060_v33 = vadd.f32 %v8059_v11, %v15257_v10  ;;  %v11069_v35 = vpop.f32.mrb[229].mxu0 }
 0x7c6   :  { %v8062_v63 = vpop.f32.mrb[230].mxu0 }
 0x7c7   :  { %v8063_v8 = vadd.f32 %v8062_v63, %v15258_v23  ;;  %v11070_v1 = vpop.f32.mrb[231].mxu0  ;;  %v8139_v42 = vadd.f32 %v14856_v41, %v8060_v33 }
 0x7c9   :  { %v8140_v13 = vadd.f32 %v14860_v59, %v8063_v8 }
 0x7cc   :  { %v8067_v2 = vpop.f32.mrb[232].mxu0 }
 0x7cd   :  { %v8068_v3 = vadd.f32 %v8067_v2, %v15259_v31  ;;  %v11073_v29 = vpop.f32.mrb[233].mxu0 }
 0x7ce   :  { %v8070_v20 = vpop.f32.mrb[234].mxu0 }
 0x7cf   :  { %v8071_v53 = vadd.f32 %v8070_v20, %v15260_v26  ;;  %v11074_v36 = vpop.f32.mrb[235].mxu0  ;;  %v8141_v12 = vadd.f32 %v14869_v5, %v8068_v3 }
 0x7d1   :  { %v8142_v24 = vadd.f32 %v14872_v15, %v8071_v53 }
 0x7d4   :  { %v8075_v9 = vpop.f32.mrb[236].mxu0 }
 0x7d5   :  { %v8076_v57 = vadd.f32 %v8075_v9, %v14837_v14  ;;  %v11077_v51 = vpop.f32.mrb[237].mxu0 }
 0x7d6   :  { %v8078_v32 = vpop.f32.mrb[238].mxu0 }
 0x7d7   :  { %v8079_v41 = vadd.f32 %v8078_v32, %v14840_v39  ;;  %v11078_v59 = vpop.f32.mrb[239].mxu0  ;;  %v8143_v19 = vadd.f32 %v14879_v54, %v8076_v57 }
 0x7d9   :  { %v8144_v34 = vadd.f32 %v14882_v25, %v8079_v41 }
 0x7dc   :  { %v8179_v27 = vpop.f32.mrb[240].mxu0 }
 0x7dd   :  { %v8202_v18 = vadd.f32 %v8179_v27, %v8139_v42  ;;  %v11101_v40 = vpop.f32.mrb[241].mxu0 }
 0x7de   :  { %v8182_v22 = vpop.f32.mrb[242].mxu0 }
 0x7df   :  { %v8203_v38 = vadd.f32 %v8182_v22, %v8140_v13  ;;  %v11102_v5 = vpop.f32.mrb[243].mxu0  ;;  %v8265_v15 = vadd.f32 %v14896_v60, %v8202_v18 }
 0x7e1   :  { %v8266_v11 = vadd.f32 %v14900_v56, %v8203_v38 }
 0x7e4   :  { %v8187_v14 = vpop.f32.mrb[244].mxu0 }
 0x7e5   :  { %v8204_v10 = vadd.f32 %v8187_v14, %v8141_v12  ;;  %v11105_v33 = vpop.f32.mrb[245].mxu0 }
 0x7e6   :  { %v8190_v35 = vpop.f32.mrb[246].mxu0 }
 0x7e7   :  { %v8205_v39 = vadd.f32 %v8190_v35, %v8142_v24  ;;  %v11106_v63 = vpop.f32.mrb[247].mxu0  ;;  %v8267_v54 = vadd.f32 %v14907_v28, %v8204_v10 }
 0x7e9   :  { %v8268_v25 = vadd.f32 %v14910_v6, %v8205_v39 }
 0x7ec   :  { %v8195_v23 = vpop.f32.mrb[248].mxu0 }
 0x7ed   :  { %v8206_v8 = vadd.f32 %v8195_v23, %v8143_v19  ;;  %v11109_v1 = vpop.f32.mrb[249].mxu0 }
 0x7ee   :  { %v8198_v42 = vpop.f32.mrb[250].mxu0 }
 0x7ef   :  { %v8207_v13 = vadd.f32 %v8198_v42, %v8144_v34  ;;  %v11110_v2 = vpop.f32.mrb[251].mxu0  ;;  %v8269_v60 = vadd.f32 %v14917_v47, %v8206_v8 }
 0x7f1   :  { %v8270_v56 = vadd.f32 %v14920_v58, %v8207_v13 }
 0x7f4   :  { %v8305_v31 = vpop.f32.mrb[252].mxu0 }
 0x7f5   :  { %v8328_v3 = vadd.f32 %v8305_v31, %v8265_v15  ;;  %v11133_v29 = vpop.f32.mrb[253].mxu0 }
 0x7f6   :  { %v8308_v20 = vpop.f32.mrb[254].mxu0 }
 0x7f7   :  { %v8329_v26 = vadd.f32 %v8308_v20, %v8266_v11  ;;  %v11134_v53 = vpop.f32.mrb[255].mxu0  ;;  %v8391_v28 = vadd.f32 %v14934_v44, %v8328_v3 }
 0x7f9   :  { %v8392_v6 = vadd.f32 %v14937_v21, %v8329_v26 }
 0x7fc   :  { %v8313_v36 = vpop.f32.mrb[0].mxu0 }
 0x7fd   :  { %v8330_v12 = vadd.f32 %v8313_v36, %v8267_v54  ;;  %v11137_v24 = vpop.f32.mrb[1].mxu0 }
 0x7fe   :  { %v8316_v9 = vpop.f32.mrb[2].mxu0 }
 0x7ff   :  { %v8331_v57 = vadd.f32 %v8316_v9, %v8268_v25  ;;  %v11138_v51 = vpop.f32.mrb[3].mxu0  ;;  %v8393_v47 = vadd.f32 %v14944_v46, %v8330_v12 }
 0x801   :  { %v8394_v58 = vadd.f32 %v14947_v0, %v8331_v57 }
 0x804   :  { %v8321_v32 = vpop.f32.mrb[4].mxu0 }
 0x805   :  { %v8332_v41 = vadd.f32 %v8321_v32, %v8269_v60  ;;  %v11141_v59 = vpop.f32.mrb[5].mxu0 }
 0x806   :  { %v8324_v19 = vpop.f32.mrb[6].mxu0 }
 0x807   :  { %v8333_v34 = vadd.f32 %v8324_v19, %v8270_v56  ;;  %v11142_v27 = vpop.f32.mrb[7].mxu0  ;;  %v8395_v44 = vadd.f32 %v14962_v55, %v8332_v41 }
 0x809   :  { %v8396_v21 = vadd.f32 %v14968_v62, %v8333_v34 }
 0x80c   :  { %v8431_v18 = vpop.f32.mrb[8].mxu0 }
 0x80d   :  { %v8454_v40 = vadd.f32 %v8431_v18, %v8391_v28  ;;  %v11165_v22 = vpop.f32.mrb[9].mxu0 }
 0x80e   :  { %v8434_v38 = vpop.f32.mrb[10].mxu0 }
 0x80f   :  { %v8556_v5 = vadd.f32 %v14980_v4, %v8454_v40  ;;  %v8455_v15 = vadd.f32 %v8434_v38, %v8392_v6  ;;  %v11166_v46 = vpop.f32.mrb[11].mxu0 }
 0x811   :  { %v8562_v0 = vadd.f32 %v14957_v52, %v8556_v5  ;;  %v8557_v11 = vadd.f32 %v14988_v16, %v8455_v15 }
 0x813   :  { %v8568_v14 = vmax.f32 %v8562_v0, 0.0  ;;  %v8563_v10 = vadd.f32 %v14957_v52, %v8557_v11 }
 0x814   :  { %v8439_v33 = vpop.f32.mrb[12].mxu0 }
 0x815   :  { %v8574_v55 = vmax.f32 %v15048_v37, %v8568_v14  ;;  %v8569_v35 = vmax.f32 %v8563_v10, 0.0  ;;  %v8456_v62 = vadd.f32 %v8439_v33, %v8393_v47  ;;  %v11169_v39 = vpop.f32.mrb[13].mxu0 }
 0x816   :  { %v8442_v63 = vpop.f32.mrb[14].mxu0 }
 0x817   :  { %v9367_v54 = vpack.c.bf16 %v8574_v55, %v8574_v55  ;;  %v8575_v25 = vmax.f32 %v15051_v61, %v8569_v35  ;;  %v8558_v4 = vadd.f32 %v15000_v7, %v8456_v62  ;;  %v8457_v23 = vadd.f32 %v8442_v63, %v8394_v58  ;;  %v11170_v8 = vpop.f32.mrb[15].mxu0 }
 0x819   :  { %9305 = vst.msk [vmem:[%s15140_s5 + $0x18] sm:$0xf] %vm4314_vm11, %v9367_v54  ;;  %v9368_v16 = vpack.c.bf16 %v8575_v25, %v8575_v25  ;;  %v8564_v1 = vadd.f32 %v14957_v52, %v8558_v4  ;;  %v8559_v37 = vadd.f32 %v15008_v17, %v8457_v23 }
 0x81b   :  { %9306 = vst.msk [vmem:[%s15140_s5 + $0x1c] sm:$0xf] %vm4314_vm11, %v9368_v16  ;;  %v8570_v61 = vmax.f32 %v8564_v1, 0.0  ;;  %v8565_v7 = vadd.f32 %v14957_v52, %v8559_v37 }
 0x81c   :  { %v8447_v42 = vpop.f32.mrb[16].mxu0 }
 0x81d   :  { %v8576_v13 = vmax.f32 %v15056_v30, %v8570_v61  ;;  %v8571_v2 = vmax.f32 %v8565_v7, 0.0  ;;  %v8458_v60 = vadd.f32 %v8447_v42, %v8395_v44  ;;  %v11173_v56 = vpop.f32.mrb[17].mxu0 }
 0x81e   :  { %v8450_v31 = vpop.f32.mrb[18].mxu0 }
 0x81f   :  { %v9369_v3 = vpack.c.bf16 %v8576_v13, %v8576_v13  ;;  %v8577_v29 = vmax.f32 %v15059_v43, %v8571_v2  ;;  %v8560_v17 = vadd.f32 %v15017_v50, %v8458_v60  ;;  %v8459_v20 = vadd.f32 %v8450_v31, %v8396_v21  ;;  %v11174_v26 = vpop.f32.mrb[19].mxu0 }
 0x821   :  { %9307 = vst.msk [vmem:[%s15140_s5 + $0x20] sm:$0xf] %vm4314_vm11, %v9369_v3  ;;  %v9370_v53 = vpack.c.bf16 %v8577_v29, %v8577_v29  ;;  %v8566_v28 = vadd.f32 %v14957_v52, %v8560_v17  ;;  %v8561_v30 = vadd.f32 %v15021_v48, %v8459_v20 }
 0x823   :  { %9308 = vst.msk [vmem:[%s15140_s5 + $0x24] sm:$0xf] %vm4314_vm11, %v9370_v53  ;;  %v8572_v43 = vmax.f32 %v8566_v28, 0.0  ;;  %v8567_v50 = vadd.f32 %v14957_v52, %v8561_v30 }
 0x825   :  { %v8578_v6 = vmax.f32 %v15064_v45, %v8572_v43  ;;  %v8573_v36 = vmax.f32 %v8567_v50, 0.0 }
 0x827   :  { %v9371_v12 = vpack.c.bf16 %v8578_v6, %v8578_v6  ;;  %v8579_v24 = vmax.f32 %v15067_v49, %v8573_v36 }
 0x829   :  { %9309 = vst.msk [vmem:[%s15140_s5 + $0x28] sm:$0xf] %vm4314_vm11, %v9371_v12  ;;  %v9372_v48 = vpack.c.bf16 %v8579_v24, %v8579_v24 }
 0x82b   :  { %9310 = vst.msk [vmem:[%s15140_s5 + $0x2c] sm:$0x1] %vm4320_vm12, %v9372_v48 }

// kernel: fashion_cnn_forward.3
= control target key start
LH: loop header
LB: loop body
LE: loop exit
PB: predicated region body
PF: predicated region fallthrough
CT: control target
= control target key end

     0   :  { %v897_v36 = vlaneseq  ;;  %v8695_v37 = vmov 1966171168   ;;  %s11244_s0 = inlined_call_operand.vmem [shape: bf16[2,2304], index: 0, kind: input, shape index: {}]   ;;  %s11245_s1 = inlined_call_operand.vmem [shape: bf16[2304,600], index: 1, kind: input, shape index: {}]   ;;  %s11246_s2 = inlined_call_operand.vmem [shape: f32[1,600], index: 2, kind: input, shape index: {}]   ;;  %s11247_s3 = inlined_call_operand.vmem [shape: bf16[600,120], index: 3, kind: input, shape index: {}]   ;;  %s11248_s4 = inlined_call_operand.vmem [shape: f32[1,120], index: 4, kind: input, shape index: {}]   ;;  %s11249_s5 = inlined_call_operand.vmem [shape: bf16[120,10], index: 5, kind: input, shape index: {}]   ;;  %s11250_s6 = inlined_call_operand.vmem [shape: f32[1,10], index: 6, kind: input, shape index: {}]   ;;  %s11251_s7 = inlined_call_operand.hbm [shape: f32[2,10], index: 7, kind: output, shape index: {}]  }
   0x1   :  { %v7613_v0 = vld [vmem:[%s11245_s1 + $0x4] ss:$20 sps:$4 sm:$0xff]   ;;  %v7615_v1 = vld [vmem:[%s11245_s1 + $0xc] ss:$20 sps:$4 sm:$0xff]   ;;  %v7618_v3 = vld [vmem:[%s11245_s1 + $0x8] ss:$20 sps:$4 sm:$0xff]   ;;  %v927_v38 = vunpack.c.l.s4 %v8695_v37 }
   0x2   :  { %4807 = vmatprep.subr.bf16.mxu0 %v7613_v0  ;;  %v7617_v2 = vld [vmem:[%s11245_s1] ss:$20 sps:$4 sm:$0xff]   ;;  %5176 = vmatprep.subr.bf16.mxu1 %v7615_v1  ;;  %v7623_v6 = vld [vmem:[%s11245_s1 + $0x28] ss:$20 sps:$4 sm:$0xff]   ;;  %v7624_v7 = vld [vmem:[%s11245_s1 + $0x30] ss:$20 sps:$4 sm:$0xff]  }
   0x3   :  { %v7619_v4 = vld [vmem:[%s11245_s1 + $0x2c] ss:$20 sps:$4 sm:$0xff]   ;;  %4808 = vmatpush1.bf16.msra.mxu0 %v7617_v2  ;;  %5177 = vmatpush1.bf16.msra.mxu1 %v7618_v3  ;;  %v7621_v5 = vld [vmem:[%s11245_s1 + $0x34] ss:$20 sps:$4 sm:$0xff]   ;;  %v7627_v9 = vld [vmem:[%s11245_s1 + $0x5c] ss:$20 sps:$4 sm:$0xff]   ;;  %v928_v43 = vunpack.c.0.s8 %v927_v38 }
   0x4   :  { %4809 = vmatprep.subr.bf16.mxu0 %v7619_v4  ;;  %5178 = vmatprep.subr.bf16.mxu1 %v7621_v5  ;;  %v7625_v8 = vld [vmem:[%s11245_s1 + $0x54] ss:$20 sps:$4 sm:$0xff]   ;;  %v7629_v10 = vld [vmem:[%s11245_s1 + $0x50] ss:$20 sps:$4 sm:$0xff]   ;;  %v7630_v11 = vld [vmem:[%s11245_s1 + $0x58] ss:$20 sps:$4 sm:$0xff]  }
   0x5   :  { %v7631_v12 = vld [vmem:[%s11245_s1 + $0x7c] ss:$20 sps:$4 sm:$0xff]   ;;  %v7633_v13 = vld [vmem:[%s11245_s1 + $0x84] ss:$20 sps:$4 sm:$0xff]   ;;  %v7636_v15 = vld [vmem:[%s11245_s1 + $0x80] ss:$20 sps:$4 sm:$0xff]  }
   0x6   :  { %v7635_v14 = vld [vmem:[%s11245_s1 + $0x78] ss:$20 sps:$4 sm:$0xff]   ;;  %v7641_v18 = vld [vmem:[%s11245_s1 + $0xa0] ss:$20 sps:$4 sm:$0xff]   ;;  %v7642_v19 = vld [vmem:[%s11245_s1 + $0xa8] ss:$20 sps:$4 sm:$0xff]  }
   0x7   :  { %4810 = vmatpush1.bf16.msra.mxu0 %v7623_v6  ;;  %5179 = vmatpush1.bf16.msra.mxu1 %v7624_v7  ;;  %v7637_v16 = vld [vmem:[%s11245_s1 + $0xa4] ss:$20 sps:$4 sm:$0xff]   ;;  %v7639_v17 = vld [vmem:[%s11245_s1 + $0xac] ss:$20 sps:$4 sm:$0xff]   ;;  %v7645_v21 = vld [vmem:[%s11245_s1 + $0xd4] ss:$20 sps:$4 sm:$0xff]  }
   0x8   :  { %4811 = vmatprep.subr.bf16.mxu0 %v7625_v8  ;;  %5180 = vmatprep.subr.bf16.mxu1 %v7627_v9  ;;  %v7643_v20 = vld [vmem:[%s11245_s1 + $0xcc] ss:$20 sps:$4 sm:$0xff]   ;;  %v7647_v22 = vld [vmem:[%s11245_s1 + $0xc8] ss:$20 sps:$4 sm:$0xff]   ;;  %v7648_v23 = vld [vmem:[%s11245_s1 + $0xd0] ss:$20 sps:$4 sm:$0xff]  }
   0x9   :  { %v7649_v24 = vld [vmem:[%s11245_s1 + $0xf4] ss:$20 sps:$4 sm:$0xff]   ;;  %v7651_v25 = vld [vmem:[%s11245_s1 + $0xfc] ss:$20 sps:$4 sm:$0xff]   ;;  %v7654_v27 = vld [vmem:[%s11245_s1 + $0xf8] ss:$20 sps:$4 sm:$0xff]  }
   0xa   :  { %v7653_v26 = vld [vmem:[%s11245_s1 + $0xf0] ss:$20 sps:$4 sm:$0xff]   ;;  %v7659_v30 = vld [vmem:[%s11245_s1 + $0x118] ss:$20 sps:$4 sm:$0xff]   ;;  %v7660_v31 = vld [vmem:[%s11245_s1 + $0x120] ss:$20 sps:$4 sm:$0xff]  }
   0xb   :  { %4812 = vmatpush1.bf16.msra.mxu0 %v7629_v10  ;;  %5181 = vmatpush1.bf16.msra.mxu1 %v7630_v11  ;;  %v7655_v28 = vld [vmem:[%s11245_s1 + $0x11c] ss:$20 sps:$4 sm:$0xff]   ;;  %v7657_v29 = vld [vmem:[%s11245_s1 + $0x124] ss:$20 sps:$4 sm:$0xff]   ;;  %v7663_v33 = vld [vmem:[%s11245_s1 + $0x14c] ss:$20 sps:$4 sm:$0xff]  }
   0xc   :  { %4813 = vmatprep.subr.bf16.mxu0 %v7631_v12  ;;  %5182 = vmatprep.subr.bf16.mxu1 %v7633_v13  ;;  %v7661_v32 = vld [vmem:[%s11245_s1 + $0x144] ss:$20 sps:$4 sm:$0xff]   ;;  %v7665_v34 = vld [vmem:[%s11245_s1 + $0x140] ss:$20 sps:$4 sm:$0xff]   ;;  %v7666_v35 = vld [vmem:[%s11245_s1 + $0x148] ss:$20 sps:$4 sm:$0xff]  }
   0xd   :  { %v7667_v39 = vld [vmem:[%s11245_s1 + $0x16c] ss:$20 sps:$4 sm:$0xff]   ;;  %v7669_v40 = vld [vmem:[%s11245_s1 + $0x174] ss:$20 sps:$4 sm:$0xff]   ;;  %v8856_v42 = vshrl.u32 %v897_v36, 7 }
   0xe   :  { %v7671_v41 = vld [vmem:[%s11245_s1 + $0x168] ss:$20 sps:$4 sm:$0xff]   ;;  %v7672_v44 = vld [vmem:[%s11245_s1 + $0x170] ss:$20 sps:$4 sm:$0xff]   ;;  %v7678_v48 = vld [vmem:[%s11245_s1 + $0x198] ss:$20 sps:$4 sm:$0xff]  }
   0xf   :  { %4814 = vmatpush1.bf16.msra.mxu0 %v7635_v14  ;;  %5183 = vmatpush1.bf16.msra.mxu1 %v7636_v15  ;;  %v7673_v45 = vld [vmem:[%s11245_s1 + $0x194] ss:$20 sps:$4 sm:$0xff]   ;;  %v7675_v46 = vld [vmem:[%s11245_s1 + $0x19c] ss:$20 sps:$4 sm:$0xff]   ;;  %v8874_v49 = vsub.s32 %v928_v43, %v8856_v42  ;;  %v7681_v51 = vld [vmem:[%s11245_s1 + $0x1c4] ss:$20 sps:$4 sm:$0xff]  }
  0x10   :  { %4815 = vmatprep.subr.bf16.mxu0 %v7637_v16  ;;  %5184 = vmatprep.subr.bf16.mxu1 %v7639_v17  ;;  %v7677_v47 = vld [vmem:[%s11245_s1 + $0x190] ss:$20 sps:$4 sm:$0xff]   ;;  %v7683_v53 = vld [vmem:[%s11245_s1 + $0x1b8] ss:$20 sps:$4 sm:$0xff]   ;;  %v7684_v55 = vld [vmem:[%s11245_s1 + $0x1c0] ss:$20 sps:$4 sm:$0xff]  }
  0x11   :  { %v7679_v50 = vld [vmem:[%s11245_s1 + $0x1bc] ss:$20 sps:$4 sm:$0xff]   ;;  %v8885_v52 = vld [vmem:[%s11244_s0] sm:$0xff]  ;;  %v7693_v63 = vld [vmem:[%s11245_s1 + $0x214] ss:$20 sps:$4 sm:$0xff]  }
  0x12   :  { %v932_v54 = vrot.slane %v8885_v52, %v8874_v49  ;;  %v7685_v56 = vld [vmem:[%s11245_s1 + $0x1e4] ss:$20 sps:$4 sm:$0xff]   ;;  %v7687_v57 = vld [vmem:[%s11245_s1 + $0x1ec] ss:$20 sps:$4 sm:$0xff]   ;;  %v7690_v61 = vld [vmem:[%s11245_s1 + $0x1e8] ss:$20 sps:$4 sm:$0xff]  }
  0x13   :  { %4816 = vmatpush1.bf16.msra.mxu0 %v7641_v18  ;;  %5185 = vmatpush1.bf16.msra.mxu1 %v7642_v19  ;;  %v7689_v59 = vld [vmem:[%s11245_s1 + $0x1e0] ss:$20 sps:$4 sm:$0xff]   ;;  %v7695_v0 = vld [vmem:[%s11245_s1 + $0x208] ss:$20 sps:$4 sm:$0xff]   ;;  %v7696_v1 = vld [vmem:[%s11245_s1 + $0x210] ss:$20 sps:$4 sm:$0xff]  }
  0x14   :  { %4817 = vmatprep.subr.bf16.mxu0 %v7643_v20  ;;  %5186 = vmatprep.subr.bf16.mxu1 %v7645_v21  ;;  %v940_v58 = vcombine.high %v932_v54, %v932_v54  ;;  %v7691_v62 = vld [vmem:[%s11245_s1 + $0x20c] ss:$20 sps:$4 sm:$0xff]   ;;  %v7697_v2 = vld [vmem:[%s11245_s1 + $0x234] ss:$20 sps:$4 sm:$0xff]   ;;  %v7699_v3 = vld [vmem:[%s11245_s1 + $0x23c] ss:$20 sps:$4 sm:$0xff]   ;;  %v8958_v13 = vrot.slane %v932_v54, %v8874_v49 }
  0x15   :  { %v7701_v4 = vld [vmem:[%s11245_s1 + $0x230] ss:$20 sps:$4 sm:$0xff]   ;;  %v7702_v5 = vld [vmem:[%s11245_s1 + $0x238] ss:$20 sps:$4 sm:$0xff]   ;;  %v7708_v9 = vld [vmem:[%s11245_s1 + $0x260] ss:$20 sps:$4 sm:$0xff]  }
  0x16   :  { %v8905_v60 = vrot.slane %v940_v58, %v8874_v49  ;;  %v7703_v6 = vld [vmem:[%s11245_s1 + $0x25c] ss:$20 sps:$4 sm:$0xff]   ;;  %v7705_v7 = vld [vmem:[%s11245_s1 + $0x264] ss:$20 sps:$4 sm:$0xff]   ;;  %v7714_v11 = vld [vmem:[%s11245_s1 + $0x28c] ss:$20 sps:$4 sm:$0xff]  }
  0x17   :  { %4818 = vmatpush1.bf16.msra.mxu0 %v7647_v22  ;;  %5187 = vmatpush1.bf16.msra.mxu1 %v7648_v23  ;;  %v7707_v8 = vld [vmem:[%s11245_s1 + $0x258] ss:$20 sps:$4 sm:$0xff]   ;;  %v7709_v12 = vld [vmem:[%s11245_s1 + $0x280] ss:$20 sps:$4 sm:$0xff]   ;;  %v7712_v14 = vld [vmem:[%s11245_s1 + $0x288] ss:$20 sps:$4 sm:$0xff]  }
  0x18   :  { %4819 = vmatprep.subr.bf16.mxu0 %v7649_v24  ;;  %5188 = vmatprep.subr.bf16.mxu1 %v7651_v25  ;;  %v7711_v10 = vld [vmem:[%s11245_s1 + $0x284] ss:$20 sps:$4 sm:$0xff]   ;;  %v7717_v15 = vld [vmem:[%s11245_s1 + $0x2ac] ss:$20 sps:$4 sm:$0xff]   ;;  %v7720_v16 = vld [vmem:[%s11245_s1 + $0x2b4] ss:$20 sps:$4 sm:$0xff]   ;;  %v8971_v17 = vcombine.high %v8905_v60, %v8905_v60 }
  0x19   :  { %4839 = vmatprep.mubr.bf16.mxu0 %v8905_v60  ;;  %5208 = vmatprep.mubr.bf16.mxu1 %v8905_v60  ;;  %v7715_v18 = vld [vmem:[%s11245_s1 + $0x2a8] ss:$20 sps:$4 sm:$0xff]   ;;  %v7718_v19 = vld [vmem:[%s11245_s1 + $0x2b0] ss:$20 sps:$4 sm:$0xff]   ;;  %v7724_v23 = vld [vmem:[%s11245_s1 + $0x2d8] ss:$20 sps:$4 sm:$0xff]  }
  0x1a   :  { %v7723_v20 = vld [vmem:[%s11245_s1 + $0x2d4] ss:$20 sps:$4 sm:$0xff]   ;;  %v7726_v21 = vld [vmem:[%s11245_s1 + $0x2dc] ss:$20 sps:$4 sm:$0xff]   ;;  %v7732_v25 = vld [vmem:[%s11245_s1 + $0x304] ss:$20 sps:$4 sm:$0xff]  }
  0x1b   :  { %4820 = vmatpush1.bf16.msra.mxu0 %v7653_v26  ;;  %5189 = vmatpush1.bf16.msra.mxu1 %v7654_v27  ;;  %v7721_v22 = vld [vmem:[%s11245_s1 + $0x2d0] ss:$20 sps:$4 sm:$0xff]   ;;  %v7727_v26 = vld [vmem:[%s11245_s1 + $0x2f8] ss:$20 sps:$4 sm:$0xff]   ;;  %v7730_v27 = vld [vmem:[%s11245_s1 + $0x300] ss:$20 sps:$4 sm:$0xff]  }
  0x1c   :  { %4821 = vmatprep.subr.bf16.mxu0 %v7655_v28  ;;  %5190 = vmatprep.subr.bf16.mxu1 %v7657_v29  ;;  %v7729_v24 = vld [vmem:[%s11245_s1 + $0x2fc] ss:$20 sps:$4 sm:$0xff]   ;;  %v7735_v28 = vld [vmem:[%s11245_s1 + $0x324] ss:$20 sps:$4 sm:$0xff]   ;;  %v7738_v29 = vld [vmem:[%s11245_s1 + $0x32c] ss:$20 sps:$4 sm:$0xff]  }
  0x1d   :  { %v7747_v36 = vld [vmem:[%s11245_s1 + $0x374] ss:$20 sps:$4 sm:$0xff]   ;;  %v7750_v37 = vld [vmem:[%s11245_s1 + $0x37c] ss:$20 sps:$4 sm:$0xff]   ;;  %v7751_v43 = vld [vmem:[%s11245_s1 + $0x398] ss:$20 sps:$4 sm:$0xff]  }
  0x1e   :  { %v7745_v38 = vld [vmem:[%s11245_s1 + $0x370] ss:$20 sps:$4 sm:$0xff]   ;;  %v7772_v58 = vld [vmem:[%s11245_s1 + $0x418] ss:$20 sps:$4 sm:$0xff]  }
  0x1f   :  { %4822 = vmatpush1.bf16.msra.mxu0 %v7659_v30  ;;  %5191 = vmatpush1.bf16.msra.mxu1 %v7660_v31  ;;  %v7733_v30 = vld [vmem:[%s11245_s1 + $0x320] ss:$20 sps:$4 sm:$0xff]   ;;  %v7736_v31 = vld [vmem:[%s11245_s1 + $0x328] ss:$20 sps:$4 sm:$0xff]   ;;  %v7766_v54 = vld [vmem:[%s11245_s1 + $0x3f0] ss:$20 sps:$4 sm:$0xff]  }
  0x20   :  { %4823 = vmatprep.subr.bf16.mxu0 %v7661_v32  ;;  %5192 = vmatprep.subr.bf16.mxu1 %v7663_v33  ;;  %v7741_v32 = vld [vmem:[%s11245_s1 + $0x34c] ss:$20 sps:$4 sm:$0xff]   ;;  %v7744_v33 = vld [vmem:[%s11245_s1 + $0x354] ss:$20 sps:$4 sm:$0xff]  }
  0x23   :  { %4824 = vmatpush1.bf16.msra.mxu0 %v7665_v34  ;;  %5193 = vmatpush1.bf16.msra.mxu1 %v7666_v35  ;;  %v7739_v34 = vld [vmem:[%s11245_s1 + $0x348] ss:$20 sps:$4 sm:$0xff]   ;;  %v7742_v35 = vld [vmem:[%s11245_s1 + $0x350] ss:$20 sps:$4 sm:$0xff]  }
  0x24   :  { %4825 = vmatprep.subr.bf16.mxu0 %v7667_v39  ;;  %5194 = vmatprep.subr.bf16.mxu1 %v7669_v40  ;;  %v7748_v39 = vld [vmem:[%s11245_s1 + $0x378] ss:$20 sps:$4 sm:$0xff]   ;;  %v7753_v40 = vld [vmem:[%s11245_s1 + $0x39c] ss:$20 sps:$4 sm:$0xff]  }
  0x27   :  { %4826 = vmatpush1.bf16.msra.mxu0 %v7671_v41  ;;  %5195 = vmatpush1.bf16.msra.mxu1 %v7672_v44  ;;  %v7756_v41 = vld [vmem:[%s11245_s1 + $0x3a4] ss:$20 sps:$4 sm:$0xff]   ;;  %v7754_v44 = vld [vmem:[%s11245_s1 + $0x3a0] ss:$20 sps:$4 sm:$0xff]  }
  0x28   :  { %4827 = vmatprep.subr.bf16.mxu0 %v7673_v45  ;;  %5196 = vmatprep.subr.bf16.mxu1 %v7675_v46  ;;  %v7759_v45 = vld [vmem:[%s11245_s1 + $0x3c4] ss:$20 sps:$4 sm:$0xff]   ;;  %v7762_v46 = vld [vmem:[%s11245_s1 + $0x3cc] ss:$20 sps:$4 sm:$0xff]  }
  0x2b   :  { %4828 = vmatpush1.bf16.msra.mxu0 %v7677_v47  ;;  %5197 = vmatpush1.bf16.msra.mxu1 %v7678_v48  ;;  %v7757_v47 = vld [vmem:[%s11245_s1 + $0x3c0] ss:$20 sps:$4 sm:$0xff]   ;;  %v7760_v48 = vld [vmem:[%s11245_s1 + $0x3c8] ss:$20 sps:$4 sm:$0xff]  }
  0x2c   :  { %4829 = vmatprep.subr.bf16.mxu0 %v7679_v50  ;;  %5198 = vmatprep.subr.bf16.mxu1 %v7681_v51  ;;  %v7765_v50 = vld [vmem:[%s11245_s1 + $0x3ec] ss:$20 sps:$4 sm:$0xff]   ;;  %v7768_v51 = vld [vmem:[%s11245_s1 + $0x3f4] ss:$20 sps:$4 sm:$0xff]  }
  0x2f   :  { %4830 = vmatpush1.bf16.msra.mxu0 %v7683_v53  ;;  %5199 = vmatpush1.bf16.msra.mxu1 %v7684_v55  ;;  %v7763_v53 = vld [vmem:[%s11245_s1 + $0x3e8] ss:$20 sps:$4 sm:$0xff]  }
  0x30   :  { %4831 = vmatprep.subr.bf16.mxu0 %v7685_v56  ;;  %5200 = vmatprep.subr.bf16.mxu1 %v7687_v57  ;;  %v7771_v55 = vld [vmem:[%s11245_s1 + $0x414] ss:$20 sps:$4 sm:$0xff]   ;;  %v7774_v56 = vld [vmem:[%s11245_s1 + $0x41c] ss:$20 sps:$4 sm:$0xff]  }
  0x31   :  { %v7769_v57 = vld [vmem:[%s11245_s1 + $0x410] ss:$20 sps:$4 sm:$0xff]  }
  0x33   :  { %4832 = vmatpush1.bf16.msra.mxu0 %v7689_v59  ;;  %5201 = vmatpush1.bf16.msra.mxu1 %v7690_v61  ;;  %v7777_v59 = vld [vmem:[%s11245_s1 + $0x43c] ss:$20 sps:$4 sm:$0xff]   ;;  %v7780_v61 = vld [vmem:[%s11245_s1 + $0x444] ss:$20 sps:$4 sm:$0xff]  }
  0x34   :  { %4833 = vmatprep.subr.bf16.mxu0 %v7691_v62  ;;  %5202 = vmatprep.subr.bf16.mxu1 %v7693_v63  ;;  %v7775_v62 = vld [vmem:[%s11245_s1 + $0x438] ss:$20 sps:$4 sm:$0xff]   ;;  %v7778_v63 = vld [vmem:[%s11245_s1 + $0x440] ss:$20 sps:$4 sm:$0xff]  }
  0x37   :  { %4834 = vmatpush1.bf16.msra.mxu0 %v7695_v0  ;;  %5203 = vmatpush1.bf16.msra.mxu1 %v7696_v1  ;;  %v7783_v0 = vld [vmem:[%s11245_s1 + $0x464] ss:$20 sps:$4 sm:$0xff]   ;;  %v7786_v1 = vld [vmem:[%s11245_s1 + $0x46c] ss:$20 sps:$4 sm:$0xff]  }
  0x38   :  { %4835 = vmatprep.subr.bf16.mxu0 %v7697_v2  ;;  %5204 = vmatprep.subr.bf16.mxu1 %v7699_v3  ;;  %v7781_v2 = vld [vmem:[%s11245_s1 + $0x460] ss:$20 sps:$4 sm:$0xff]   ;;  %v7784_v3 = vld [vmem:[%s11245_s1 + $0x468] ss:$20 sps:$4 sm:$0xff]  }
  0x3b   :  { %4836 = vmatpush1.bf16.msra.mxu0 %v7701_v4  ;;  %5205 = vmatpush1.bf16.msra.mxu1 %v7702_v5  ;;  %v7789_v4 = vld [vmem:[%s11245_s1 + $0x48c] ss:$20 sps:$4 sm:$0xff]   ;;  %v7792_v5 = vld [vmem:[%s11245_s1 + $0x494] ss:$20 sps:$4 sm:$0xff]  }
  0x3c   :  { %4837 = vmatprep.subr.bf16.mxu0 %v7703_v6  ;;  %5206 = vmatprep.subr.bf16.mxu1 %v7705_v7  ;;  %v7787_v6 = vld [vmem:[%s11245_s1 + $0x488] ss:$20 sps:$4 sm:$0xff]   ;;  %v7790_v7 = vld [vmem:[%s11245_s1 + $0x490] ss:$20 sps:$4 sm:$0xff]  }
  0x3f   :  { %4838 = vmatpush1.bf16.msra.mxu0 %v7707_v8  ;;  %5207 = vmatpush1.bf16.msra.mxu1 %v7708_v9  ;;  %v7795_v8 = vld [vmem:[%s11245_s1 + $0x4b4] ss:$20 sps:$4 sm:$0xff]   ;;  %v7798_v9 = vld [vmem:[%s11245_s1 + $0x4bc] ss:$20 sps:$4 sm:$0xff]  }
  0x40   :  { %4848 = vmatprep.subr.bf16.mxu0 %v7711_v10  ;;  %5217 = vmatprep.subr.bf16.mxu1 %v7714_v11  ;;  %v925_v10 = vcombine.high %v8885_v52, %v8885_v52  ;;  %v7793_v11 = vld [vmem:[%s11245_s1 + $0x4b0] ss:$20 sps:$4 sm:$0xff]  }
  0x41   :  { %v7804_v52 = vld [vmem:[%s11245_s1 + $0x4e4] ss:$20 sps:$4 sm:$0xff]  }
  0x42   :  { %4840 = vmatmul.mubr.bf16.vlgmr.msra.gmra.mrb[0].mxu0 %v8958_v13  ;;  %5209 = vmatmul.mubr.bf16.vlgmr.msra.gmra.mrb[0].mxu1 %v8958_v13 }
  0x43   :  { %4849 = vmatpush1.bf16.msra.mxu0 %v7709_v12  ;;  %5218 = vmatpush1.bf16.msra.mxu1 %v7712_v14  ;;  %v7796_v12 = vld [vmem:[%s11245_s1 + $0x4b8] ss:$20 sps:$4 sm:$0xff]   ;;  %v7801_v14 = vld [vmem:[%s11245_s1 + $0x4dc] ss:$20 sps:$4 sm:$0xff]  }
  0x44   :  { %4850 = vmatprep.subr.bf16.mxu0 %v7717_v15  ;;  %5219 = vmatprep.subr.bf16.mxu1 %v7720_v16  ;;  %v9148_v15 = vrot.slane %v925_v10, %v8874_v49  ;;  %v7799_v16 = vld [vmem:[%s11245_s1 + $0x4d8] ss:$20 sps:$4 sm:$0xff]  }
  0x45   :  { %4880 = vmatprep.mubr.bf16.mxu0 %v8971_v17  ;;  %5249 = vmatprep.mubr.bf16.mxu1 %v8971_v17  ;;  %v7879_v10 = vld [vmem:[%s11245_s1 + $0x6e4] ss:$20 sps:$4 sm:$0xff]  }
  0x47   :  { %4851 = vmatpush1.bf16.msra.mxu0 %v7715_v18  ;;  %5220 = vmatpush1.bf16.msra.mxu1 %v7718_v19  ;;  %v7802_v18 = vld [vmem:[%s11245_s1 + $0x4e0] ss:$20 sps:$4 sm:$0xff]   ;;  %v7807_v19 = vld [vmem:[%s11245_s1 + $0x504] ss:$20 sps:$4 sm:$0xff]  }
  0x48   :  { %4852 = vmatprep.subr.bf16.mxu0 %v7723_v20  ;;  %5221 = vmatprep.subr.bf16.mxu1 %v7726_v21  ;;  %v7810_v20 = vld [vmem:[%s11245_s1 + $0x50c] ss:$20 sps:$4 sm:$0xff]   ;;  %v941_v21 = vcombine.high %v9148_v15, %v9148_v15 }
  0x4b   :  { %4853 = vmatpush1.bf16.msra.mxu0 %v7721_v22  ;;  %5222 = vmatpush1.bf16.msra.mxu1 %v7724_v23  ;;  %v7805_v22 = vld [vmem:[%s11245_s1 + $0x500] ss:$20 sps:$4 sm:$0xff]   ;;  %v9169_v23 = vcombine.high %v8958_v13, %v8958_v13 }
  0x4c   :  { %4854 = vmatprep.subr.bf16.mxu0 %v7729_v24  ;;  %5223 = vmatprep.subr.bf16.mxu1 %v7732_v25  ;;  %v7808_v24 = vld [vmem:[%s11245_s1 + $0x508] ss:$20 sps:$4 sm:$0xff]   ;;  %v7813_v25 = vld [vmem:[%s11245_s1 + $0x52c] ss:$20 sps:$4 sm:$0xff]  }
  0x4f   :  { %4855 = vmatpush1.bf16.msra.mxu0 %v7727_v26  ;;  %5224 = vmatpush1.bf16.msra.mxu1 %v7730_v27  ;;  %v7816_v26 = vld [vmem:[%s11245_s1 + $0x534] ss:$20 sps:$4 sm:$0xff]   ;;  %v9181_v27 = vrot.slane %v941_v21, %v8874_v49  ;;  %v7894_v21 = vld [vmem:[%s11245_s1 + $0x73c] ss:$20 sps:$4 sm:$0xff]  }
  0x50   :  { %4856 = vmatprep.subr.bf16.mxu0 %v7735_v28  ;;  %5225 = vmatprep.subr.bf16.mxu1 %v7738_v29  ;;  %v7811_v28 = vld [vmem:[%s11245_s1 + $0x528] ss:$20 sps:$4 sm:$0xff]   ;;  %v7814_v29 = vld [vmem:[%s11245_s1 + $0x530] ss:$20 sps:$4 sm:$0xff]  }
  0x53   :  { %4857 = vmatpush1.bf16.msra.mxu0 %v7733_v30  ;;  %5226 = vmatpush1.bf16.msra.mxu1 %v7736_v31  ;;  %v7819_v30 = vld [vmem:[%s11245_s1 + $0x554] ss:$20 sps:$4 sm:$0xff]   ;;  %v7822_v31 = vld [vmem:[%s11245_s1 + $0x55c] ss:$20 sps:$4 sm:$0xff]  }
  0x54   :  { %4858 = vmatprep.subr.bf16.mxu0 %v7741_v32  ;;  %5227 = vmatprep.subr.bf16.mxu1 %v7744_v33  ;;  %v7817_v32 = vld [vmem:[%s11245_s1 + $0x550] ss:$20 sps:$4 sm:$0xff]   ;;  %v7820_v33 = vld [vmem:[%s11245_s1 + $0x558] ss:$20 sps:$4 sm:$0xff]  }
  0x57   :  { %4859 = vmatpush1.bf16.msra.mxu0 %v7739_v34  ;;  %5228 = vmatpush1.bf16.msra.mxu1 %v7742_v35  ;;  %v7825_v34 = vld [vmem:[%s11245_s1 + $0x57c] ss:$20 sps:$4 sm:$0xff]   ;;  %v7828_v35 = vld [vmem:[%s11245_s1 + $0x584] ss:$20 sps:$4 sm:$0xff]  }
  0x58   :  { %4860 = vmatprep.subr.bf16.mxu0 %v7747_v36  ;;  %5229 = vmatprep.subr.bf16.mxu1 %v7750_v37  ;;  %v7823_v36 = vld [vmem:[%s11245_s1 + $0x578] ss:$20 sps:$4 sm:$0xff]   ;;  %v7826_v37 = vld [vmem:[%s11245_s1 + $0x580] ss:$20 sps:$4 sm:$0xff]  }
  0x5b   :  { %4861 = vmatpush1.bf16.msra.mxu0 %v7745_v38  ;;  %5230 = vmatpush1.bf16.msra.mxu1 %v7748_v39  ;;  %v7831_v38 = vld [vmem:[%s11245_s1 + $0x5a4] ss:$20 sps:$4 sm:$0xff]   ;;  %v7834_v39 = vld [vmem:[%s11245_s1 + $0x5ac] ss:$20 sps:$4 sm:$0xff]  }
  0x5c   :  { %4862 = vmatprep.subr.bf16.mxu0 %v7753_v40  ;;  %5231 = vmatprep.subr.bf16.mxu1 %v7756_v41  ;;  %v7829_v40 = vld [vmem:[%s11245_s1 + $0x5a0] ss:$20 sps:$4 sm:$0xff]   ;;  %v7832_v41 = vld [vmem:[%s11245_s1 + $0x5a8] ss:$20 sps:$4 sm:$0xff]  }
  0x5f   :  { %4863 = vmatpush1.bf16.msra.mxu0 %v7751_v43  ;;  %5232 = vmatpush1.bf16.msra.mxu1 %v7754_v44  ;;  %v7837_v43 = vld [vmem:[%s11245_s1 + $0x5cc] ss:$20 sps:$4 sm:$0xff]   ;;  %v7840_v44 = vld [vmem:[%s11245_s1 + $0x5d4] ss:$20 sps:$4 sm:$0xff]  }
  0x60   :  { %4864 = vmatprep.subr.bf16.mxu0 %v7759_v45  ;;  %5233 = vmatprep.subr.bf16.mxu1 %v7762_v46  ;;  %v7835_v45 = vld [vmem:[%s11245_s1 + $0x5c8] ss:$20 sps:$4 sm:$0xff]   ;;  %v7838_v46 = vld [vmem:[%s11245_s1 + $0x5d0] ss:$20 sps:$4 sm:$0xff]  }
  0x63   :  { %4865 = vmatpush1.bf16.msra.mxu0 %v7757_v47  ;;  %5234 = vmatpush1.bf16.msra.mxu1 %v7760_v48  ;;  %v7843_v47 = vld [vmem:[%s11245_s1 + $0x5f4] ss:$20 sps:$4 sm:$0xff]   ;;  %v7846_v48 = vld [vmem:[%s11245_s1 + $0x5fc] ss:$20 sps:$4 sm:$0xff]  }
  0x64   :  { %4866 = vmatprep.subr.bf16.mxu0 %v7765_v50  ;;  %5235 = vmatprep.subr.bf16.mxu1 %v7768_v51  ;;  %v7841_v50 = vld [vmem:[%s11245_s1 + $0x5f0] ss:$20 sps:$4 sm:$0xff]   ;;  %v7844_v51 = vld [vmem:[%s11245_s1 + $0x5f8] ss:$20 sps:$4 sm:$0xff]  }
  0x67   :  { %4867 = vmatpush1.bf16.msra.mxu0 %v7763_v53  ;;  %5236 = vmatpush1.bf16.msra.mxu1 %v7766_v54  ;;  %v7849_v53 = vld [vmem:[%s11245_s1 + $0x61c] ss:$20 sps:$4 sm:$0xff]   ;;  %v7852_v54 = vld [vmem:[%s11245_s1 + $0x624] ss:$20 sps:$4 sm:$0xff]  }
  0x68   :  { %4868 = vmatprep.subr.bf16.mxu0 %v7771_v55  ;;  %5237 = vmatprep.subr.bf16.mxu1 %v7774_v56  ;;  %v7847_v55 = vld [vmem:[%s11245_s1 + $0x618] ss:$20 sps:$4 sm:$0xff]   ;;  %v7850_v56 = vld [vmem:[%s11245_s1 + $0x620] ss:$20 sps:$4 sm:$0xff]  }
  0x6b   :  { %4869 = vmatpush1.bf16.msra.mxu0 %v7769_v57  ;;  %5238 = vmatpush1.bf16.msra.mxu1 %v7772_v58  ;;  %v7855_v57 = vld [vmem:[%s11245_s1 + $0x644] ss:$20 sps:$4 sm:$0xff]   ;;  %v7858_v58 = vld [vmem:[%s11245_s1 + $0x64c] ss:$20 sps:$4 sm:$0xff]  }
  0x6c   :  { %4870 = vmatprep.subr.bf16.mxu0 %v7777_v59  ;;  %5239 = vmatprep.subr.bf16.mxu1 %v7780_v61  ;;  %v7853_v59 = vld [vmem:[%s11245_s1 + $0x640] ss:$20 sps:$4 sm:$0xff]   ;;  %v7856_v61 = vld [vmem:[%s11245_s1 + $0x648] ss:$20 sps:$4 sm:$0xff]  }
  0x6f   :  { %4871 = vmatpush1.bf16.msra.mxu0 %v7775_v62  ;;  %5240 = vmatpush1.bf16.msra.mxu1 %v7778_v63  ;;  %v7861_v62 = vld [vmem:[%s11245_s1 + $0x66c] ss:$20 sps:$4 sm:$0xff]   ;;  %v7864_v63 = vld [vmem:[%s11245_s1 + $0x674] ss:$20 sps:$4 sm:$0xff]  }
  0x70   :  { %4872 = vmatprep.subr.bf16.mxu0 %v7783_v0  ;;  %5241 = vmatprep.subr.bf16.mxu1 %v7786_v1  ;;  %v7859_v0 = vld [vmem:[%s11245_s1 + $0x668] ss:$20 sps:$4 sm:$0xff]   ;;  %v7862_v1 = vld [vmem:[%s11245_s1 + $0x670] ss:$20 sps:$4 sm:$0xff]  }
  0x73   :  { %4873 = vmatpush1.bf16.msra.mxu0 %v7781_v2  ;;  %5242 = vmatpush1.bf16.msra.mxu1 %v7784_v3  ;;  %v7867_v2 = vld [vmem:[%s11245_s1 + $0x694] ss:$20 sps:$4 sm:$0xff]   ;;  %v7870_v3 = vld [vmem:[%s11245_s1 + $0x69c] ss:$20 sps:$4 sm:$0xff]  }
  0x74   :  { %4874 = vmatprep.subr.bf16.mxu0 %v7789_v4  ;;  %5243 = vmatprep.subr.bf16.mxu1 %v7792_v5  ;;  %v7865_v4 = vld [vmem:[%s11245_s1 + $0x690] ss:$20 sps:$4 sm:$0xff]   ;;  %v7868_v5 = vld [vmem:[%s11245_s1 + $0x698] ss:$20 sps:$4 sm:$0xff]  }
  0x77   :  { %4875 = vmatpush1.bf16.msra.mxu0 %v7787_v6  ;;  %5244 = vmatpush1.bf16.msra.mxu1 %v7790_v7  ;;  %v7873_v6 = vld [vmem:[%s11245_s1 + $0x6bc] ss:$20 sps:$4 sm:$0xff]   ;;  %v7876_v7 = vld [vmem:[%s11245_s1 + $0x6c4] ss:$20 sps:$4 sm:$0xff]  }
  0x78   :  { %4876 = vmatprep.subr.bf16.mxu0 %v7795_v8  ;;  %5245 = vmatprep.subr.bf16.mxu1 %v7798_v9  ;;  %v7871_v8 = vld [vmem:[%s11245_s1 + $0x6b8] ss:$20 sps:$4 sm:$0xff]   ;;  %v7874_v9 = vld [vmem:[%s11245_s1 + $0x6c0] ss:$20 sps:$4 sm:$0xff]  }
  0x7b   :  { %4877 = vmatpush1.bf16.msra.mxu0 %v7793_v11  ;;  %5246 = vmatpush1.bf16.msra.mxu1 %v7796_v12  ;;  %v7882_v11 = vld [vmem:[%s11245_s1 + $0x6ec] ss:$20 sps:$4 sm:$0xff]  }
  0x7c   :  { %4878 = vmatprep.subr.bf16.mxu0 %v7801_v14  ;;  %5247 = vmatprep.subr.bf16.mxu1 %v7804_v52  ;;  %v7877_v12 = vld [vmem:[%s11245_s1 + $0x6e0] ss:$20 sps:$4 sm:$0xff]   ;;  %v7880_v14 = vld [vmem:[%s11245_s1 + $0x6e8] ss:$20 sps:$4 sm:$0xff]  }
  0x7d   :  { %v7885_v52 = vld [vmem:[%s11245_s1 + $0x70c] ss:$20 sps:$4 sm:$0xff]  }
  0x7f   :  { %4879 = vmatpush1.bf16.msra.mxu0 %v7799_v16  ;;  %5248 = vmatpush1.bf16.msra.mxu1 %v7802_v18  ;;  %v7888_v16 = vld [vmem:[%s11245_s1 + $0x714] ss:$20 sps:$4 sm:$0xff]  }
  0x80   :  { %4889 = vmatprep.subr.bf16.mxu0 %v7807_v19  ;;  %5258 = vmatprep.subr.bf16.mxu1 %v7810_v20  ;;  %v7883_v18 = vld [vmem:[%s11245_s1 + $0x708] ss:$20 sps:$4 sm:$0xff]   ;;  %v7886_v19 = vld [vmem:[%s11245_s1 + $0x710] ss:$20 sps:$4 sm:$0xff]  }
  0x81   :  { %v7891_v20 = vld [vmem:[%s11245_s1 + $0x734] ss:$20 sps:$4 sm:$0xff]  }
  0x82   :  { %4881 = vmatmul.mubr.bf16.vlgmr.msra.gmra.mrb[0].mxu0 %v9169_v23  ;;  %5250 = vmatmul.mubr.bf16.vlgmr.msra.gmra.mrb[0].mxu1 %v9169_v23 }
  0x83   :  { %4890 = vmatpush1.bf16.msra.mxu0 %v7805_v22  ;;  %5259 = vmatpush1.bf16.msra.mxu1 %v7808_v24  ;;  %v7889_v22 = vld [vmem:[%s11245_s1 + $0x730] ss:$20 sps:$4 sm:$0xff]   ;;  %v7892_v24 = vld [vmem:[%s11245_s1 + $0x738] ss:$20 sps:$4 sm:$0xff]  }
  0x84   :  { %4891 = vmatprep.subr.bf16.mxu0 %v7813_v25  ;;  %5260 = vmatprep.subr.bf16.mxu1 %v7816_v26  ;;  %v7897_v25 = vld [vmem:[%s11245_s1 + $0x75c] ss:$20 sps:$4 sm:$0xff]   ;;  %v7900_v26 = vld [vmem:[%s11245_s1 + $0x764] ss:$20 sps:$4 sm:$0xff]  }
  0x85   :  { %4921 = vmatprep.mubr.bf16.mxu0 %v9181_v27  ;;  %5290 = vmatprep.mubr.bf16.mxu1 %v9181_v27 }
  0x87   :  { %4892 = vmatpush1.bf16.msra.mxu0 %v7811_v28  ;;  %5261 = vmatpush1.bf16.msra.mxu1 %v7814_v29  ;;  %v7895_v28 = vld [vmem:[%s11245_s1 + $0x758] ss:$20 sps:$4 sm:$0xff]   ;;  %v7898_v29 = vld [vmem:[%s11245_s1 + $0x760] ss:$20 sps:$4 sm:$0xff]  }
  0x88   :  { %4893 = vmatprep.subr.bf16.mxu0 %v7819_v30  ;;  %5262 = vmatprep.subr.bf16.mxu1 %v7822_v31  ;;  %v7904_v30 = vld [vmem:[%s11245_s1 + $0x784] ss:$20 sps:$4 sm:$0xff]   ;;  %v7907_v31 = vld [vmem:[%s11245_s1 + $0x78c] ss:$20 sps:$4 sm:$0xff]  }
  0x8b   :  { %4894 = vmatpush1.bf16.msra.mxu0 %v7817_v32  ;;  %5263 = vmatpush1.bf16.msra.mxu1 %v7820_v33  ;;  %v7902_v32 = vld [vmem:[%s11245_s1 + $0x780] ss:$20 sps:$4 sm:$0xff]   ;;  %v9372_v33 = vrot.slane %v9148_v15, %v8874_v49  ;;  %v9385_v15 = vcombine.high %v9181_v27, %v9181_v27 }
  0x8c   :  { %4895 = vmatprep.subr.bf16.mxu0 %v7825_v34  ;;  %5264 = vmatprep.subr.bf16.mxu1 %v7828_v35  ;;  %v7905_v34 = vld [vmem:[%s11245_s1 + $0x788] ss:$20 sps:$4 sm:$0xff]   ;;  %v7910_v35 = vld [vmem:[%s11245_s1 + $0x7ac] ss:$20 sps:$4 sm:$0xff]  }
  0x8f   :  { %4896 = vmatpush1.bf16.msra.mxu0 %v7823_v36  ;;  %5265 = vmatpush1.bf16.msra.mxu1 %v7826_v37  ;;  %v7913_v36 = vld [vmem:[%s11245_s1 + $0x7b4] ss:$20 sps:$4 sm:$0xff]  }
  0x90   :  { %4897 = vmatprep.subr.bf16.mxu0 %v7831_v38  ;;  %5266 = vmatprep.subr.bf16.mxu1 %v7834_v39  ;;  %v7908_v37 = vld [vmem:[%s11245_s1 + $0x7a8] ss:$20 sps:$4 sm:$0xff]   ;;  %v7911_v38 = vld [vmem:[%s11245_s1 + $0x7b0] ss:$20 sps:$4 sm:$0xff]  }
  0x91   :  { %v7916_v39 = vld [vmem:[%s11245_s1 + $0x7d4] ss:$20 sps:$4 sm:$0xff]  }
  0x93   :  { %4898 = vmatpush1.bf16.msra.mxu0 %v7829_v40  ;;  %5267 = vmatpush1.bf16.msra.mxu1 %v7832_v41  ;;  %v7919_v40 = vld [vmem:[%s11245_s1 + $0x7dc] ss:$20 sps:$4 sm:$0xff]  }
  0x94   :  { %4899 = vmatprep.subr.bf16.mxu0 %v7837_v43  ;;  %5268 = vmatprep.subr.bf16.mxu1 %v7840_v44  ;;  %v7914_v41 = vld [vmem:[%s11245_s1 + $0x7d0] ss:$20 sps:$4 sm:$0xff]   ;;  %v7917_v43 = vld [vmem:[%s11245_s1 + $0x7d8] ss:$20 sps:$4 sm:$0xff]  }
  0x95   :  { %v7922_v44 = vld [vmem:[%s11245_s1 + $0x7fc] ss:$20 sps:$4 sm:$0xff]  }
  0x97   :  { %4900 = vmatpush1.bf16.msra.mxu0 %v7835_v45  ;;  %5269 = vmatpush1.bf16.msra.mxu1 %v7838_v46  ;;  %v7925_v45 = vld [vmem:[%s11245_s1 + $0x804] ss:$20 sps:$4 sm:$0xff]  }
  0x98   :  { %4901 = vmatprep.subr.bf16.mxu0 %v7843_v47  ;;  %5270 = vmatprep.subr.bf16.mxu1 %v7846_v48  ;;  %v7920_v46 = vld [vmem:[%s11245_s1 + $0x7f8] ss:$20 sps:$4 sm:$0xff]   ;;  %v7923_v47 = vld [vmem:[%s11245_s1 + $0x800] ss:$20 sps:$4 sm:$0xff]  }
  0x99   :  { %v7928_v48 = vld [vmem:[%s11245_s1 + $0x824] ss:$20 sps:$4 sm:$0xff]  }
  0x9b   :  { %4902 = vmatpush1.bf16.msra.mxu0 %v7841_v50  ;;  %5271 = vmatpush1.bf16.msra.mxu1 %v7844_v51  ;;  %v7931_v50 = vld [vmem:[%s11245_s1 + $0x82c] ss:$20 sps:$4 sm:$0xff]  }
  0x9c   :  { %4903 = vmatprep.subr.bf16.mxu0 %v7849_v53  ;;  %5272 = vmatprep.subr.bf16.mxu1 %v7852_v54  ;;  %v7926_v51 = vld [vmem:[%s11245_s1 + $0x820] ss:$20 sps:$4 sm:$0xff]   ;;  %v7929_v53 = vld [vmem:[%s11245_s1 + $0x828] ss:$20 sps:$4 sm:$0xff]  }
  0x9d   :  { %v7934_v54 = vld [vmem:[%s11245_s1 + $0x84c] ss:$20 sps:$4 sm:$0xff]  }
  0x9f   :  { %4904 = vmatpush1.bf16.msra.mxu0 %v7847_v55  ;;  %5273 = vmatpush1.bf16.msra.mxu1 %v7850_v56  ;;  %v7937_v55 = vld [vmem:[%s11245_s1 + $0x854] ss:$20 sps:$4 sm:$0xff]  }
  0xa0   :  { %4905 = vmatprep.subr.bf16.mxu0 %v7855_v57  ;;  %5274 = vmatprep.subr.bf16.mxu1 %v7858_v58  ;;  %v7932_v56 = vld [vmem:[%s11245_s1 + $0x848] ss:$20 sps:$4 sm:$0xff]   ;;  %v7935_v57 = vld [vmem:[%s11245_s1 + $0x850] ss:$20 sps:$4 sm:$0xff]  }
  0xa1   :  { %v7940_v58 = vld [vmem:[%s11245_s1 + $0x874] ss:$20 sps:$4 sm:$0xff]  }
  0xa3   :  { %4906 = vmatpush1.bf16.msra.mxu0 %v7853_v59  ;;  %5275 = vmatpush1.bf16.msra.mxu1 %v7856_v61  ;;  %v7943_v59 = vld [vmem:[%s11245_s1 + $0x87c] ss:$20 sps:$4 sm:$0xff]  }
  0xa4   :  { %4907 = vmatprep.subr.bf16.mxu0 %v7861_v62  ;;  %5276 = vmatprep.subr.bf16.mxu1 %v7864_v63  ;;  %v7938_v61 = vld [vmem:[%s11245_s1 + $0x870] ss:$20 sps:$4 sm:$0xff]   ;;  %v7941_v62 = vld [vmem:[%s11245_s1 + $0x878] ss:$20 sps:$4 sm:$0xff]  }
  0xa5   :  { %v7946_v63 = vld [vmem:[%s11245_s1 + $0x89c] ss:$20 sps:$4 sm:$0xff]  }
  0xa7   :  { %4908 = vmatpush1.bf16.msra.mxu0 %v7859_v0  ;;  %5277 = vmatpush1.bf16.msra.mxu1 %v7862_v1  ;;  %v7949_v0 = vld [vmem:[%s11245_s1 + $0x8a4] ss:$20 sps:$4 sm:$0xff]  }
  0xa8   :  { %4909 = vmatprep.subr.bf16.mxu0 %v7867_v2  ;;  %5278 = vmatprep.subr.bf16.mxu1 %v7870_v3  ;;  %v7944_v1 = vld [vmem:[%s11245_s1 + $0x898] ss:$20 sps:$4 sm:$0xff]   ;;  %v7947_v2 = vld [vmem:[%s11245_s1 + $0x8a0] ss:$20 sps:$4 sm:$0xff]  }
  0xa9   :  { %v7952_v3 = vld [vmem:[%s11245_s1 + $0x8c4] ss:$20 sps:$4 sm:$0xff]  }
  0xab   :  { %4910 = vmatpush1.bf16.msra.mxu0 %v7865_v4  ;;  %5279 = vmatpush1.bf16.msra.mxu1 %v7868_v5  ;;  %v7955_v4 = vld [vmem:[%s11245_s1 + $0x8cc] ss:$20 sps:$4 sm:$0xff]  }
  0xac   :  { %4911 = vmatprep.subr.bf16.mxu0 %v7873_v6  ;;  %5280 = vmatprep.subr.bf16.mxu1 %v7876_v7  ;;  %v7950_v5 = vld [vmem:[%s11245_s1 + $0x8c0] ss:$20 sps:$4 sm:$0xff]   ;;  %v7953_v6 = vld [vmem:[%s11245_s1 + $0x8c8] ss:$20 sps:$4 sm:$0xff]  }
  0xad   :  { %v7958_v7 = vld [vmem:[%s11245_s1 + $0x8ec] ss:$20 sps:$4 sm:$0xff]  }
  0xaf   :  { %4912 = vmatpush1.bf16.msra.mxu0 %v7871_v8  ;;  %5281 = vmatpush1.bf16.msra.mxu1 %v7874_v9  ;;  %v7961_v8 = vld [vmem:[%s11245_s1 + $0x8f4] ss:$20 sps:$4 sm:$0xff]  }
  0xb0   :  { %4913 = vmatprep.subr.bf16.mxu0 %v7879_v10  ;;  %5282 = vmatprep.subr.bf16.mxu1 %v7882_v11  ;;  %v7956_v9 = vld [vmem:[%s11245_s1 + $0x8e8] ss:$20 sps:$4 sm:$0xff]   ;;  %v7959_v10 = vld [vmem:[%s11245_s1 + $0x8f0] ss:$20 sps:$4 sm:$0xff]  }
  0xb1   :  { %v7964_v11 = vld [vmem:[%s11245_s1 + $0x914] ss:$20 sps:$4 sm:$0xff]  }
  0xb3   :  { %4914 = vmatpush1.bf16.msra.mxu0 %v7877_v12  ;;  %5283 = vmatpush1.bf16.msra.mxu1 %v7880_v14  ;;  %v7967_v12 = vld [vmem:[%s11245_s1 + $0x91c] ss:$20 sps:$4 sm:$0xff]  }
  0xb4   :  { %4915 = vmatprep.subr.bf16.mxu0 %v7885_v52  ;;  %5284 = vmatprep.subr.bf16.mxu1 %v7888_v16  ;;  %v7962_v14 = vld [vmem:[%s11245_s1 + $0x910] ss:$20 sps:$4 sm:$0xff]   ;;  %v7965_v52 = vld [vmem:[%s11245_s1 + $0x918] ss:$20 sps:$4 sm:$0xff]  }
  0xb5   :  { %v7970_v16 = vld [vmem:[%s11245_s1 + $0x93c] ss:$20 sps:$4 sm:$0xff]  }
  0xb7   :  { %4916 = vmatpush1.bf16.msra.mxu0 %v7883_v18  ;;  %5285 = vmatpush1.bf16.msra.mxu1 %v7886_v19  ;;  %v7973_v18 = vld [vmem:[%s11245_s1 + $0x944] ss:$20 sps:$4 sm:$0xff]  }
  0xb8   :  { %4917 = vmatprep.subr.bf16.mxu0 %v7891_v20  ;;  %5286 = vmatprep.subr.bf16.mxu1 %v7894_v21  ;;  %v7968_v19 = vld [vmem:[%s11245_s1 + $0x938] ss:$20 sps:$4 sm:$0xff]   ;;  %v7971_v20 = vld [vmem:[%s11245_s1 + $0x940] ss:$20 sps:$4 sm:$0xff]  }
  0xb9   :  { %v7976_v21 = vld [vmem:[%s11245_s1 + $0x964] ss:$20 sps:$4 sm:$0xff]  }
  0xbb   :  { %4918 = vmatpush1.bf16.msra.mxu0 %v7889_v22  ;;  %5287 = vmatpush1.bf16.msra.mxu1 %v7892_v24  ;;  %v7979_v22 = vld [vmem:[%s11245_s1 + $0x96c] ss:$20 sps:$4 sm:$0xff]  }
  0xbc   :  { %4919 = vmatprep.subr.bf16.mxu0 %v7897_v25  ;;  %5288 = vmatprep.subr.bf16.mxu1 %v7900_v26  ;;  %v7974_v24 = vld [vmem:[%s11245_s1 + $0x960] ss:$20 sps:$4 sm:$0xff]   ;;  %v7977_v25 = vld [vmem:[%s11245_s1 + $0x968] ss:$20 sps:$4 sm:$0xff]  }
  0xbd   :  { %v7982_v26 = vld [vmem:[%s11245_s1 + $0x98c] ss:$20 sps:$4 sm:$0xff]  }
  0xbf   :  { %4920 = vmatpush1.bf16.msra.mxu0 %v7895_v28  ;;  %5289 = vmatpush1.bf16.msra.mxu1 %v7898_v29  ;;  %v7985_v28 = vld [vmem:[%s11245_s1 + $0x994] ss:$20 sps:$4 sm:$0xff]  }
  0xc0   :  { %4930 = vmatprep.subr.bf16.mxu0 %v7904_v30  ;;  %5299 = vmatprep.subr.bf16.mxu1 %v7907_v31  ;;  %v7980_v29 = vld [vmem:[%s11245_s1 + $0x988] ss:$20 sps:$4 sm:$0xff]   ;;  %v7983_v30 = vld [vmem:[%s11245_s1 + $0x990] ss:$20 sps:$4 sm:$0xff]  }
  0xc1   :  { %v7988_v31 = vld [vmem:[%s11245_s1 + $0x9b4] ss:$20 sps:$4 sm:$0xff]  }
  0xc2   :  { %4922 = vmatmul.mubr.bf16.vlgmr.msra.gmra.mrb[0].mxu0 %v9372_v33  ;;  %5291 = vmatmul.mubr.bf16.vlgmr.msra.gmra.mrb[0].mxu1 %v9372_v33 }
  0xc3   :  { %4931 = vmatpush1.bf16.msra.mxu0 %v7902_v32  ;;  %5300 = vmatpush1.bf16.msra.mxu1 %v7905_v34  ;;  %v7991_v32 = vld [vmem:[%s11245_s1 + $0x9bc] ss:$20 sps:$4 sm:$0xff]   ;;  %v9550_v34 = vld.sshfl [vmem:[%s11244_s0 + $0x8] sm:$0xff pattern:$0x75316420] }
  0xc4   :  { %4932 = vmatprep.subr.bf16.mxu0 %v7910_v35  ;;  %5301 = vmatprep.subr.bf16.mxu1 %v7913_v36  ;;  %v7986_v35 = vld [vmem:[%s11245_s1 + $0x9b0] ss:$20 sps:$4 sm:$0xff]   ;;  %v7989_v36 = vld [vmem:[%s11245_s1 + $0x9b8] ss:$20 sps:$4 sm:$0xff]  }
  0xc5   :  { %4962 = vmatprep.mubr.bf16.mxu0 %v9385_v15  ;;  %5331 = vmatprep.mubr.bf16.mxu1 %v9385_v15 }
  0xc7   :  { %4933 = vmatpush1.bf16.msra.mxu0 %v7908_v37  ;;  %5302 = vmatpush1.bf16.msra.mxu1 %v7911_v38  ;;  %v7994_v37 = vld [vmem:[%s11245_s1 + $0x9dc] ss:$20 sps:$4 sm:$0xff]   ;;  %v7997_v38 = vld [vmem:[%s11245_s1 + $0x9e4] ss:$20 sps:$4 sm:$0xff]  }
  0xc8   :  { %4934 = vmatprep.subr.bf16.mxu0 %v7916_v39  ;;  %5303 = vmatprep.subr.bf16.mxu1 %v7919_v40  ;;  %v7992_v39 = vld [vmem:[%s11245_s1 + $0x9d8] ss:$20 sps:$4 sm:$0xff]   ;;  %v7995_v40 = vld [vmem:[%s11245_s1 + $0x9e0] ss:$20 sps:$4 sm:$0xff]  }
  0xcb   :  { %4935 = vmatpush1.bf16.msra.mxu0 %v7914_v41  ;;  %5304 = vmatpush1.bf16.msra.mxu1 %v7917_v43  ;;  %v8000_v41 = vld [vmem:[%s11245_s1 + $0xa04] ss:$20 sps:$4 sm:$0xff]   ;;  %v8003_v43 = vld [vmem:[%s11245_s1 + $0xa0c] ss:$20 sps:$4 sm:$0xff]  }
  0xcc   :  { %4936 = vmatprep.subr.bf16.mxu0 %v7922_v44  ;;  %5305 = vmatprep.subr.bf16.mxu1 %v7925_v45  ;;  %v989_v44 = vcombine.high %v9550_v34, %v9550_v34  ;;  %v9580_v45 = vcombine.high %v9372_v33, %v9372_v33 }
  0xcf   :  { %4937 = vmatpush1.bf16.msra.mxu0 %v7920_v46  ;;  %5306 = vmatpush1.bf16.msra.mxu1 %v7923_v47  ;;  %v7998_v46 = vld [vmem:[%s11245_s1 + $0xa00] ss:$20 sps:$4 sm:$0xff]   ;;  %v8001_v47 = vld [vmem:[%s11245_s1 + $0xa08] ss:$20 sps:$4 sm:$0xff]  }
  0xd0   :  { %4938 = vmatprep.subr.bf16.mxu0 %v7928_v48  ;;  %5307 = vmatprep.subr.bf16.mxu1 %v7931_v50  ;;  %v8006_v48 = vld [vmem:[%s11245_s1 + $0xa2c] ss:$20 sps:$4 sm:$0xff]   ;;  %v8009_v50 = vld [vmem:[%s11245_s1 + $0xa34] ss:$20 sps:$4 sm:$0xff]  }
  0xd3   :  { %4939 = vmatpush1.bf16.msra.mxu0 %v7926_v51  ;;  %5308 = vmatpush1.bf16.msra.mxu1 %v7929_v53  ;;  %v9595_v51 = vrot.slane %v989_v44, %v8874_v49  ;;  %v8004_v53 = vld [vmem:[%s11245_s1 + $0xa28] ss:$20 sps:$4 sm:$0xff]  }
  0xd4   :  { %4940 = vmatprep.subr.bf16.mxu0 %v7934_v54  ;;  %5309 = vmatprep.subr.bf16.mxu1 %v7937_v55  ;;  %v8007_v54 = vld [vmem:[%s11245_s1 + $0xa30] ss:$20 sps:$4 sm:$0xff]   ;;  %v8012_v55 = vld [vmem:[%s11245_s1 + $0xa54] ss:$20 sps:$4 sm:$0xff]  }
  0xd5   :  { %v8081_v44 = vld [vmem:[%s11245_s1 + $0xc14] ss:$20 sps:$4 sm:$0xff]  }
  0xd7   :  { %4941 = vmatpush1.bf16.msra.mxu0 %v7932_v56  ;;  %5310 = vmatpush1.bf16.msra.mxu1 %v7935_v57  ;;  %v8015_v56 = vld [vmem:[%s11245_s1 + $0xa5c] ss:$20 sps:$4 sm:$0xff]  }
  0xd8   :  { %4942 = vmatprep.subr.bf16.mxu0 %v7940_v58  ;;  %5311 = vmatprep.subr.bf16.mxu1 %v7943_v59  ;;  %v8010_v57 = vld [vmem:[%s11245_s1 + $0xa50] ss:$20 sps:$4 sm:$0xff]   ;;  %v8013_v58 = vld [vmem:[%s11245_s1 + $0xa58] ss:$20 sps:$4 sm:$0xff]  }
  0xd9   :  { %v8018_v59 = vld [vmem:[%s11245_s1 + $0xa7c] ss:$20 sps:$4 sm:$0xff]  }
  0xdb   :  { %4943 = vmatpush1.bf16.msra.mxu0 %v7938_v61  ;;  %5312 = vmatpush1.bf16.msra.mxu1 %v7941_v62  ;;  %v8021_v61 = vld [vmem:[%s11245_s1 + $0xa84] ss:$20 sps:$4 sm:$0xff]  }
  0xdc   :  { %4944 = vmatprep.subr.bf16.mxu0 %v7946_v63  ;;  %5313 = vmatprep.subr.bf16.mxu1 %v7949_v0  ;;  %v8016_v62 = vld [vmem:[%s11245_s1 + $0xa78] ss:$20 sps:$4 sm:$0xff]   ;;  %v8019_v63 = vld [vmem:[%s11245_s1 + $0xa80] ss:$20 sps:$4 sm:$0xff]  }
  0xdd   :  { %v8024_v0 = vld [vmem:[%s11245_s1 + $0xaa4] ss:$20 sps:$4 sm:$0xff]  }
  0xdf   :  { %4945 = vmatpush1.bf16.msra.mxu0 %v7944_v1  ;;  %5314 = vmatpush1.bf16.msra.mxu1 %v7947_v2  ;;  %v8027_v1 = vld [vmem:[%s11245_s1 + $0xaac] ss:$20 sps:$4 sm:$0xff]  }
  0xe0   :  { %4946 = vmatprep.subr.bf16.mxu0 %v7952_v3  ;;  %5315 = vmatprep.subr.bf16.mxu1 %v7955_v4  ;;  %v8022_v2 = vld [vmem:[%s11245_s1 + $0xaa0] ss:$20 sps:$4 sm:$0xff]   ;;  %v8025_v3 = vld [vmem:[%s11245_s1 + $0xaa8] ss:$20 sps:$4 sm:$0xff]  }
  0xe1   :  { %v8030_v4 = vld [vmem:[%s11245_s1 + $0xacc] ss:$20 sps:$4 sm:$0xff]  }
  0xe3   :  { %4947 = vmatpush1.bf16.msra.mxu0 %v7950_v5  ;;  %5316 = vmatpush1.bf16.msra.mxu1 %v7953_v6  ;;  %v8033_v5 = vld [vmem:[%s11245_s1 + $0xad4] ss:$20 sps:$4 sm:$0xff]  }
  0xe4   :  { %4948 = vmatprep.subr.bf16.mxu0 %v7958_v7  ;;  %5317 = vmatprep.subr.bf16.mxu1 %v7961_v8  ;;  %v8028_v6 = vld [vmem:[%s11245_s1 + $0xac8] ss:$20 sps:$4 sm:$0xff]   ;;  %v8031_v7 = vld [vmem:[%s11245_s1 + $0xad0] ss:$20 sps:$4 sm:$0xff]  }
  0xe5   :  { %v8036_v8 = vld [vmem:[%s11245_s1 + $0xaf4] ss:$20 sps:$4 sm:$0xff]  }
  0xe7   :  { %4949 = vmatpush1.bf16.msra.mxu0 %v7956_v9  ;;  %5318 = vmatpush1.bf16.msra.mxu1 %v7959_v10  ;;  %v8039_v9 = vld [vmem:[%s11245_s1 + $0xafc] ss:$20 sps:$4 sm:$0xff]  }
  0xe8   :  { %4950 = vmatprep.subr.bf16.mxu0 %v7964_v11  ;;  %5319 = vmatprep.subr.bf16.mxu1 %v7967_v12  ;;  %v8034_v10 = vld [vmem:[%s11245_s1 + $0xaf0] ss:$20 sps:$4 sm:$0xff]   ;;  %v8037_v11 = vld [vmem:[%s11245_s1 + $0xaf8] ss:$20 sps:$4 sm:$0xff]  }
  0xe9   :  { %v8042_v12 = vld [vmem:[%s11245_s1 + $0xb1c] ss:$20 sps:$4 sm:$0xff]  }
  0xeb   :  { %4951 = vmatpush1.bf16.msra.mxu0 %v7962_v14  ;;  %5320 = vmatpush1.bf16.msra.mxu1 %v7965_v52  ;;  %v8045_v14 = vld [vmem:[%s11245_s1 + $0xb24] ss:$20 sps:$4 sm:$0xff]  }
  0xec   :  { %4952 = vmatprep.subr.bf16.mxu0 %v7970_v16  ;;  %5321 = vmatprep.subr.bf16.mxu1 %v7973_v18  ;;  %v8040_v52 = vld [vmem:[%s11245_s1 + $0xb18] ss:$20 sps:$4 sm:$0xff]   ;;  %v8043_v16 = vld [vmem:[%s11245_s1 + $0xb20] ss:$20 sps:$4 sm:$0xff]  }
  0xed   :  { %v8048_v18 = vld [vmem:[%s11245_s1 + $0xb44] ss:$20 sps:$4 sm:$0xff]  }
  0xef   :  { %4953 = vmatpush1.bf16.msra.mxu0 %v7968_v19  ;;  %5322 = vmatpush1.bf16.msra.mxu1 %v7971_v20  ;;  %v8051_v19 = vld [vmem:[%s11245_s1 + $0xb4c] ss:$20 sps:$4 sm:$0xff]  }
  0xf0   :  { %4954 = vmatprep.subr.bf16.mxu0 %v7976_v21  ;;  %5323 = vmatprep.subr.bf16.mxu1 %v7979_v22  ;;  %v8046_v20 = vld [vmem:[%s11245_s1 + $0xb40] ss:$20 sps:$4 sm:$0xff]   ;;  %v8049_v21 = vld [vmem:[%s11245_s1 + $0xb48] ss:$20 sps:$4 sm:$0xff]  }
  0xf1   :  { %v8054_v22 = vld [vmem:[%s11245_s1 + $0xb6c] ss:$20 sps:$4 sm:$0xff]  }
  0xf3   :  { %4955 = vmatpush1.bf16.msra.mxu0 %v7974_v24  ;;  %5324 = vmatpush1.bf16.msra.mxu1 %v7977_v25  ;;  %v8057_v24 = vld [vmem:[%s11245_s1 + $0xb74] ss:$20 sps:$4 sm:$0xff]  }
  0xf4   :  { %4956 = vmatprep.subr.bf16.mxu0 %v7982_v26  ;;  %5325 = vmatprep.subr.bf16.mxu1 %v7985_v28  ;;  %v8052_v25 = vld [vmem:[%s11245_s1 + $0xb68] ss:$20 sps:$4 sm:$0xff]   ;;  %v8055_v26 = vld [vmem:[%s11245_s1 + $0xb70] ss:$20 sps:$4 sm:$0xff]  }
  0xf5   :  { %v8060_v28 = vld [vmem:[%s11245_s1 + $0xb94] ss:$20 sps:$4 sm:$0xff]  }
  0xf7   :  { %4957 = vmatpush1.bf16.msra.mxu0 %v7980_v29  ;;  %5326 = vmatpush1.bf16.msra.mxu1 %v7983_v30  ;;  %v8063_v29 = vld [vmem:[%s11245_s1 + $0xb9c] ss:$20 sps:$4 sm:$0xff]  }
  0xf8   :  { %4958 = vmatprep.subr.bf16.mxu0 %v7988_v31  ;;  %5327 = vmatprep.subr.bf16.mxu1 %v7991_v32  ;;  %v8058_v30 = vld [vmem:[%s11245_s1 + $0xb90] ss:$20 sps:$4 sm:$0xff]   ;;  %v8061_v31 = vld [vmem:[%s11245_s1 + $0xb98] ss:$20 sps:$4 sm:$0xff]  }
  0xf9   :  { %v8066_v32 = vld [vmem:[%s11245_s1 + $0xbbc] ss:$20 sps:$4 sm:$0xff]  }
  0xfb   :  { %4959 = vmatpush1.bf16.msra.mxu0 %v7986_v35  ;;  %5328 = vmatpush1.bf16.msra.mxu1 %v7989_v36  ;;  %v8069_v35 = vld [vmem:[%s11245_s1 + $0xbc4] ss:$20 sps:$4 sm:$0xff]  }
  0xfc   :  { %4960 = vmatprep.subr.bf16.mxu0 %v7994_v37  ;;  %5329 = vmatprep.subr.bf16.mxu1 %v7997_v38  ;;  %v8064_v36 = vld [vmem:[%s11245_s1 + $0xbb8] ss:$20 sps:$4 sm:$0xff]   ;;  %v8067_v37 = vld [vmem:[%s11245_s1 + $0xbc0] ss:$20 sps:$4 sm:$0xff]  }
  0xfd   :  { %v8072_v38 = vld [vmem:[%s11245_s1 + $0xbe4] ss:$20 sps:$4 sm:$0xff]  }
  0xff   :  { %4961 = vmatpush1.bf16.msra.mxu0 %v7992_v39  ;;  %5330 = vmatpush1.bf16.msra.mxu1 %v7995_v40  ;;  %v8075_v39 = vld [vmem:[%s11245_s1 + $0xbec] ss:$20 sps:$4 sm:$0xff]  }
 0x100   :  { %4971 = vmatprep.subr.bf16.mxu0 %v8000_v41  ;;  %5340 = vmatprep.subr.bf16.mxu1 %v8003_v43  ;;  %v8070_v40 = vld [vmem:[%s11245_s1 + $0xbe0] ss:$20 sps:$4 sm:$0xff]   ;;  %v8073_v41 = vld [vmem:[%s11245_s1 + $0xbe8] ss:$20 sps:$4 sm:$0xff]  }
 0x101   :  { %v8078_v43 = vld [vmem:[%s11245_s1 + $0xc0c] ss:$20 sps:$4 sm:$0xff]  }
 0x102   :  { %4963 = vmatmul.mubr.bf16.vlgmr.msra.gmra.mrb[0].mxu0 %v9580_v45  ;;  %5332 = vmatmul.mubr.bf16.vlgmr.msra.gmra.mrb[0].mxu1 %v9580_v45 }
 0x103   :  { %4972 = vmatpush1.bf16.msra.mxu0 %v7998_v46  ;;  %5341 = vmatpush1.bf16.msra.mxu1 %v8001_v47  ;;  %v8076_v46 = vld [vmem:[%s11245_s1 + $0xc08] ss:$20 sps:$4 sm:$0xff]   ;;  %v8079_v47 = vld [vmem:[%s11245_s1 + $0xc10] ss:$20 sps:$4 sm:$0xff]  }
 0x104   :  { %4973 = vmatprep.subr.bf16.mxu0 %v8006_v48  ;;  %5342 = vmatprep.subr.bf16.mxu1 %v8009_v50  ;;  %v8084_v48 = vld [vmem:[%s11245_s1 + $0xc34] ss:$20 sps:$4 sm:$0xff]   ;;  %v8087_v50 = vld [vmem:[%s11245_s1 + $0xc3c] ss:$20 sps:$4 sm:$0xff]  }
 0x105   :  { %5003 = vmatprep.mubr.bf16.mxu0 %v9595_v51  ;;  %5372 = vmatprep.mubr.bf16.mxu1 %v9595_v51 }
 0x107   :  { %4974 = vmatpush1.bf16.msra.mxu0 %v8004_v53  ;;  %5343 = vmatpush1.bf16.msra.mxu1 %v8007_v54  ;;  %v8082_v53 = vld [vmem:[%s11245_s1 + $0xc30] ss:$20 sps:$4 sm:$0xff]   ;;  %v8085_v54 = vld [vmem:[%s11245_s1 + $0xc38] ss:$20 sps:$4 sm:$0xff]  }
 0x108   :  { %4975 = vmatprep.subr.bf16.mxu0 %v8012_v55  ;;  %5344 = vmatprep.subr.bf16.mxu1 %v8015_v56  ;;  %v8090_v55 = vld [vmem:[%s11245_s1 + $0xc5c] ss:$20 sps:$4 sm:$0xff]   ;;  %v8093_v56 = vld [vmem:[%s11245_s1 + $0xc64] ss:$20 sps:$4 sm:$0xff]  }
 0x10b   :  { %4976 = vmatpush1.bf16.msra.mxu0 %v8010_v57  ;;  %5345 = vmatpush1.bf16.msra.mxu1 %v8013_v58  ;;  %v8088_v57 = vld [vmem:[%s11245_s1 + $0xc58] ss:$20 sps:$4 sm:$0xff]   ;;  %v8091_v58 = vld [vmem:[%s11245_s1 + $0xc60] ss:$20 sps:$4 sm:$0xff]  }
 0x10c   :  { %4977 = vmatprep.subr.bf16.mxu0 %v8018_v59  ;;  %5346 = vmatprep.subr.bf16.mxu1 %v8021_v61  ;;  %v8096_v59 = vld [vmem:[%s11245_s1 + $0xc84] ss:$20 sps:$4 sm:$0xff]   ;;  %v8099_v61 = vld [vmem:[%s11245_s1 + $0xc8c] ss:$20 sps:$4 sm:$0xff]  }
 0x10f   :  { %4978 = vmatpush1.bf16.msra.mxu0 %v8016_v62  ;;  %5347 = vmatpush1.bf16.msra.mxu1 %v8019_v63  ;;  %v9783_v62 = vrot.slane %v9550_v34, %v8874_v49  ;;  %v8094_v63 = vld [vmem:[%s11245_s1 + $0xc80] ss:$20 sps:$4 sm:$0xff]  }
 0x110   :  { %4979 = vmatprep.subr.bf16.mxu0 %v8024_v0  ;;  %5348 = vmatprep.subr.bf16.mxu1 %v8027_v1  ;;  %v8097_v0 = vld [vmem:[%s11245_s1 + $0xc88] ss:$20 sps:$4 sm:$0xff]   ;;  %v8102_v1 = vld [vmem:[%s11245_s1 + $0xcac] ss:$20 sps:$4 sm:$0xff]  }
 0x111   :  { %v8105_v34 = vld [vmem:[%s11245_s1 + $0xcb4] ss:$20 sps:$4 sm:$0xff]  }
 0x113   :  { %4980 = vmatpush1.bf16.msra.mxu0 %v8022_v2  ;;  %5349 = vmatpush1.bf16.msra.mxu1 %v8025_v3  ;;  %v9799_v2 = vcombine.high %v9595_v51, %v9595_v51  ;;  %v8100_v3 = vld [vmem:[%s11245_s1 + $0xca8] ss:$20 sps:$4 sm:$0xff]  }
 0x114   :  { %4981 = vmatprep.subr.bf16.mxu0 %v8030_v4  ;;  %5350 = vmatprep.subr.bf16.mxu1 %v8033_v5  ;;  %v8103_v4 = vld [vmem:[%s11245_s1 + $0xcb0] ss:$20 sps:$4 sm:$0xff]   ;;  %v8108_v5 = vld [vmem:[%s11245_s1 + $0xcd4] ss:$20 sps:$4 sm:$0xff]  }
 0x117   :  { %4982 = vmatpush1.bf16.msra.mxu0 %v8028_v6  ;;  %5351 = vmatpush1.bf16.msra.mxu1 %v8031_v7  ;;  %v8111_v6 = vld [vmem:[%s11245_s1 + $0xcdc] ss:$20 sps:$4 sm:$0xff]  }
 0x118   :  { %4983 = vmatprep.subr.bf16.mxu0 %v8036_v8  ;;  %5352 = vmatprep.subr.bf16.mxu1 %v8039_v9  ;;  %v8106_v7 = vld [vmem:[%s11245_s1 + $0xcd0] ss:$20 sps:$4 sm:$0xff]   ;;  %v8109_v8 = vld [vmem:[%s11245_s1 + $0xcd8] ss:$20 sps:$4 sm:$0xff]  }
 0x119   :  { %v8114_v9 = vld [vmem:[%s11245_s1 + $0xcfc] ss:$20 sps:$4 sm:$0xff]  }
 0x11b   :  { %4984 = vmatpush1.bf16.msra.mxu0 %v8034_v10  ;;  %5353 = vmatpush1.bf16.msra.mxu1 %v8037_v11  ;;  %v8117_v10 = vld [vmem:[%s11245_s1 + $0xd04] ss:$20 sps:$4 sm:$0xff]  }
 0x11c   :  { %4985 = vmatprep.subr.bf16.mxu0 %v8042_v12  ;;  %5354 = vmatprep.subr.bf16.mxu1 %v8045_v14  ;;  %v8112_v11 = vld [vmem:[%s11245_s1 + $0xcf8] ss:$20 sps:$4 sm:$0xff]   ;;  %v8115_v12 = vld [vmem:[%s11245_s1 + $0xd00] ss:$20 sps:$4 sm:$0xff]  }
 0x11d   :  { %v8120_v14 = vld [vmem:[%s11245_s1 + $0xd24] ss:$20 sps:$4 sm:$0xff]  }
 0x11f   :  { %4986 = vmatpush1.bf16.msra.mxu0 %v8040_v52  ;;  %5355 = vmatpush1.bf16.msra.mxu1 %v8043_v16  ;;  %v8123_v52 = vld [vmem:[%s11245_s1 + $0xd2c] ss:$20 sps:$4 sm:$0xff]  }
 0x120   :  { %4987 = vmatprep.subr.bf16.mxu0 %v8048_v18  ;;  %5356 = vmatprep.subr.bf16.mxu1 %v8051_v19  ;;  %v8118_v16 = vld [vmem:[%s11245_s1 + $0xd20] ss:$20 sps:$4 sm:$0xff]   ;;  %v8121_v18 = vld [vmem:[%s11245_s1 + $0xd28] ss:$20 sps:$4 sm:$0xff]  }
 0x121   :  { %v8126_v19 = vld [vmem:[%s11245_s1 + $0xd4c] ss:$20 sps:$4 sm:$0xff]  }
 0x123   :  { %4988 = vmatpush1.bf16.msra.mxu0 %v8046_v20  ;;  %5357 = vmatpush1.bf16.msra.mxu1 %v8049_v21  ;;  %v8129_v20 = vld [vmem:[%s11245_s1 + $0xd54] ss:$20 sps:$4 sm:$0xff]  }
 0x124   :  { %4989 = vmatprep.subr.bf16.mxu0 %v8054_v22  ;;  %5358 = vmatprep.subr.bf16.mxu1 %v8057_v24  ;;  %v8124_v21 = vld [vmem:[%s11245_s1 + $0xd48] ss:$20 sps:$4 sm:$0xff]   ;;  %v8127_v22 = vld [vmem:[%s11245_s1 + $0xd50] ss:$20 sps:$4 sm:$0xff]  }
 0x125   :  { %v8132_v24 = vld [vmem:[%s11245_s1 + $0xd74] ss:$20 sps:$4 sm:$0xff]  }
 0x127   :  { %4990 = vmatpush1.bf16.msra.mxu0 %v8052_v25  ;;  %5359 = vmatpush1.bf16.msra.mxu1 %v8055_v26  ;;  %v8135_v25 = vld [vmem:[%s11245_s1 + $0xd7c] ss:$20 sps:$4 sm:$0xff]  }
 0x128   :  { %4991 = vmatprep.subr.bf16.mxu0 %v8060_v28  ;;  %5360 = vmatprep.subr.bf16.mxu1 %v8063_v29  ;;  %v8130_v26 = vld [vmem:[%s11245_s1 + $0xd70] ss:$20 sps:$4 sm:$0xff]   ;;  %v8133_v28 = vld [vmem:[%s11245_s1 + $0xd78] ss:$20 sps:$4 sm:$0xff]  }
 0x129   :  { %v8138_v29 = vld [vmem:[%s11245_s1 + $0xd9c] ss:$20 sps:$4 sm:$0xff]  }
 0x12b   :  { %4992 = vmatpush1.bf16.msra.mxu0 %v8058_v30  ;;  %5361 = vmatpush1.bf16.msra.mxu1 %v8061_v31  ;;  %v8141_v30 = vld [vmem:[%s11245_s1 + $0xda4] ss:$20 sps:$4 sm:$0xff]  }
 0x12c   :  { %4993 = vmatprep.subr.bf16.mxu0 %v8066_v32  ;;  %5362 = vmatprep.subr.bf16.mxu1 %v8069_v35  ;;  %v8136_v31 = vld [vmem:[%s11245_s1 + $0xd98] ss:$20 sps:$4 sm:$0xff]   ;;  %v8139_v32 = vld [vmem:[%s11245_s1 + $0xda0] ss:$20 sps:$4 sm:$0xff]  }
 0x12d   :  { %v8144_v35 = vld [vmem:[%s11245_s1 + $0xdc4] ss:$20 sps:$4 sm:$0xff]  }
 0x12f   :  { %4994 = vmatpush1.bf16.msra.mxu0 %v8064_v36  ;;  %5363 = vmatpush1.bf16.msra.mxu1 %v8067_v37  ;;  %v8147_v36 = vld [vmem:[%s11245_s1 + $0xdcc] ss:$20 sps:$4 sm:$0xff]  }
 0x130   :  { %4995 = vmatprep.subr.bf16.mxu0 %v8072_v38  ;;  %5364 = vmatprep.subr.bf16.mxu1 %v8075_v39  ;;  %v8142_v37 = vld [vmem:[%s11245_s1 + $0xdc0] ss:$20 sps:$4 sm:$0xff]   ;;  %v8145_v38 = vld [vmem:[%s11245_s1 + $0xdc8] ss:$20 sps:$4 sm:$0xff]  }
 0x131   :  { %v8150_v39 = vld [vmem:[%s11245_s1 + $0xdec] ss:$20 sps:$4 sm:$0xff]  }
 0x133   :  { %4996 = vmatpush1.bf16.msra.mxu0 %v8070_v40  ;;  %5365 = vmatpush1.bf16.msra.mxu1 %v8073_v41  ;;  %v8153_v40 = vld [vmem:[%s11245_s1 + $0xdf4] ss:$20 sps:$4 sm:$0xff]  }
 0x134   :  { %4997 = vmatprep.subr.bf16.mxu0 %v8078_v43  ;;  %5366 = vmatprep.subr.bf16.mxu1 %v8081_v44  ;;  %v8148_v41 = vld [vmem:[%s11245_s1 + $0xde8] ss:$20 sps:$4 sm:$0xff]   ;;  %v8151_v43 = vld [vmem:[%s11245_s1 + $0xdf0] ss:$20 sps:$4 sm:$0xff]  }
 0x135   :  { %v8156_v44 = vld [vmem:[%s11245_s1 + $0xe14] ss:$20 sps:$4 sm:$0xff]  }
 0x137   :  { %4998 = vmatpush1.bf16.msra.mxu0 %v8076_v46  ;;  %5367 = vmatpush1.bf16.msra.mxu1 %v8079_v47  ;;  %v8159_v46 = vld [vmem:[%s11245_s1 + $0xe1c] ss:$20 sps:$4 sm:$0xff]  }
 0x138   :  { %4999 = vmatprep.subr.bf16.mxu0 %v8084_v48  ;;  %5368 = vmatprep.subr.bf16.mxu1 %v8087_v50  ;;  %v8154_v47 = vld [vmem:[%s11245_s1 + $0xe10] ss:$20 sps:$4 sm:$0xff]   ;;  %v8157_v48 = vld [vmem:[%s11245_s1 + $0xe18] ss:$20 sps:$4 sm:$0xff]  }
 0x139   :  { %v8162_v50 = vld [vmem:[%s11245_s1 + $0xe3c] ss:$20 sps:$4 sm:$0xff]  }
 0x13b   :  { %5000 = vmatpush1.bf16.msra.mxu0 %v8082_v53  ;;  %5369 = vmatpush1.bf16.msra.mxu1 %v8085_v54  ;;  %v8165_v53 = vld [vmem:[%s11245_s1 + $0xe44] ss:$20 sps:$4 sm:$0xff]  }
 0x13c   :  { %5001 = vmatprep.subr.bf16.mxu0 %v8090_v55  ;;  %5370 = vmatprep.subr.bf16.mxu1 %v8093_v56  ;;  %v8160_v54 = vld [vmem:[%s11245_s1 + $0xe38] ss:$20 sps:$4 sm:$0xff]   ;;  %v8163_v55 = vld [vmem:[%s11245_s1 + $0xe40] ss:$20 sps:$4 sm:$0xff]  }
 0x13d   :  { %v8168_v56 = vld [vmem:[%s11245_s1 + $0xe64] ss:$20 sps:$4 sm:$0xff]  }
 0x13f   :  { %5002 = vmatpush1.bf16.msra.mxu0 %v8088_v57  ;;  %5371 = vmatpush1.bf16.msra.mxu1 %v8091_v58  ;;  %v8171_v57 = vld [vmem:[%s11245_s1 + $0xe6c] ss:$20 sps:$4 sm:$0xff]  }
 0x140   :  { %5012 = vmatprep.subr.bf16.mxu0 %v8096_v59  ;;  %5381 = vmatprep.subr.bf16.mxu1 %v8099_v61  ;;  %v8166_v58 = vld [vmem:[%s11245_s1 + $0xe60] ss:$20 sps:$4 sm:$0xff]   ;;  %v8169_v59 = vld [vmem:[%s11245_s1 + $0xe68] ss:$20 sps:$4 sm:$0xff]  }
 0x141   :  { %v8174_v61 = vld [vmem:[%s11245_s1 + $0xe8c] ss:$20 sps:$4 sm:$0xff]  }
 0x142   :  { %5004 = vmatmul.mubr.bf16.vlgmr.msra.gmra.mrb[0].mxu0 %v9783_v62  ;;  %5373 = vmatmul.mubr.bf16.vlgmr.msra.gmra.mrb[0].mxu1 %v9783_v62 }
 0x143   :  { %5013 = vmatpush1.bf16.msra.mxu0 %v8094_v63  ;;  %5382 = vmatpush1.bf16.msra.mxu1 %v8097_v0  ;;  %v8177_v63 = vld [vmem:[%s11245_s1 + $0xe94] ss:$20 sps:$4 sm:$0xff]  }
 0x144   :  { %5014 = vmatprep.subr.bf16.mxu0 %v8102_v1  ;;  %5383 = vmatprep.subr.bf16.mxu1 %v8105_v34  ;;  %v8172_v0 = vld [vmem:[%s11245_s1 + $0xe88] ss:$20 sps:$4 sm:$0xff]   ;;  %v8175_v1 = vld [vmem:[%s11245_s1 + $0xe90] ss:$20 sps:$4 sm:$0xff]  }
 0x145   :  { %5044 = vmatprep.mubr.bf16.mxu0 %v9799_v2  ;;  %5413 = vmatprep.mubr.bf16.mxu1 %v9799_v2  ;;  %v8180_v34 = vld [vmem:[%s11245_s1 + $0xeb4] ss:$20 sps:$4 sm:$0xff]  }
 0x147   :  { %5015 = vmatpush1.bf16.msra.mxu0 %v8100_v3  ;;  %5384 = vmatpush1.bf16.msra.mxu1 %v8103_v4  ;;  %v8183_v3 = vld [vmem:[%s11245_s1 + $0xebc] ss:$20 sps:$4 sm:$0xff]   ;;  %v8669_v4 = vld [vmem:[%s11244_s0 + $0x8] sm:$0xff] }
 0x148   :  { %5016 = vmatprep.subr.bf16.mxu0 %v8108_v5  ;;  %5385 = vmatprep.subr.bf16.mxu1 %v8111_v6  ;;  %v974_v5 = vcombine.high %v8669_v4, %v8669_v4  ;;  %v8178_v6 = vld [vmem:[%s11245_s1 + $0xeb0] ss:$20 sps:$4 sm:$0xff]  }
 0x149   :  { %v8247_v4 = vld [vmem:[%s11245_s1 + $0x1070] ss:$20 sps:$4 sm:$0xff]  }
 0x14b   :  { %5017 = vmatpush1.bf16.msra.mxu0 %v8106_v7  ;;  %5386 = vmatpush1.bf16.msra.mxu1 %v8109_v8  ;;  %v8181_v7 = vld [vmem:[%s11245_s1 + $0xeb8] ss:$20 sps:$4 sm:$0xff]   ;;  %v8186_v8 = vld [vmem:[%s11245_s1 + $0xedc] ss:$20 sps:$4 sm:$0xff]  }
 0x14c   :  { %5018 = vmatprep.subr.bf16.mxu0 %v8114_v9  ;;  %5387 = vmatprep.subr.bf16.mxu1 %v8117_v10  ;;  %v8189_v9 = vld [vmem:[%s11245_s1 + $0xee4] ss:$20 sps:$4 sm:$0xff]   ;;  %v9977_v10 = vrot.slane %v974_v5, %v8874_v49  ;;  %v8252_v5 = vld [vmem:[%s11245_s1 + $0x1094] ss:$20 sps:$4 sm:$0xff]  }
 0x14f   :  { %5019 = vmatpush1.bf16.msra.mxu0 %v8112_v11  ;;  %5388 = vmatpush1.bf16.msra.mxu1 %v8115_v12  ;;  %v8184_v11 = vld [vmem:[%s11245_s1 + $0xed8] ss:$20 sps:$4 sm:$0xff]   ;;  %v8187_v12 = vld [vmem:[%s11245_s1 + $0xee0] ss:$20 sps:$4 sm:$0xff]  }
 0x150   :  { %5020 = vmatprep.subr.bf16.mxu0 %v8120_v14  ;;  %5389 = vmatprep.subr.bf16.mxu1 %v8123_v52  ;;  %v8192_v14 = vld [vmem:[%s11245_s1 + $0xf04] ss:$20 sps:$4 sm:$0xff]   ;;  %v8195_v52 = vld [vmem:[%s11245_s1 + $0xf0c] ss:$20 sps:$4 sm:$0xff]  }
 0x153   :  { %5021 = vmatpush1.bf16.msra.mxu0 %v8118_v16  ;;  %5390 = vmatpush1.bf16.msra.mxu1 %v8121_v18  ;;  %v990_v16 = vcombine.high %v9977_v10, %v9977_v10  ;;  %v9995_v18 = vcombine.high %v9783_v62, %v9783_v62 }
 0x154   :  { %5022 = vmatprep.subr.bf16.mxu0 %v8126_v19  ;;  %5391 = vmatprep.subr.bf16.mxu1 %v8129_v20  ;;  %v8190_v19 = vld [vmem:[%s11245_s1 + $0xf00] ss:$20 sps:$4 sm:$0xff]   ;;  %v8193_v20 = vld [vmem:[%s11245_s1 + $0xf08] ss:$20 sps:$4 sm:$0xff]  }
 0x157   :  { %5023 = vmatpush1.bf16.msra.mxu0 %v8124_v21  ;;  %5392 = vmatpush1.bf16.msra.mxu1 %v8127_v22  ;;  %v8198_v21 = vld [vmem:[%s11245_s1 + $0xf2c] ss:$20 sps:$4 sm:$0xff]   ;;  %v8201_v22 = vld [vmem:[%s11245_s1 + $0xf34] ss:$20 sps:$4 sm:$0xff]  }
 0x158   :  { %5024 = vmatprep.subr.bf16.mxu0 %v8132_v24  ;;  %5393 = vmatprep.subr.bf16.mxu1 %v8135_v25  ;;  %v10010_v24 = vrot.slane %v990_v16, %v8874_v49  ;;  %v8196_v25 = vld [vmem:[%s11245_s1 + $0xf28] ss:$20 sps:$4 sm:$0xff]   ;;  %v8267_v16 = vld [vmem:[%s11245_s1 + $0x10ec] ss:$20 sps:$4 sm:$0xff]  }
 0x15b   :  { %5025 = vmatpush1.bf16.msra.mxu0 %v8130_v26  ;;  %5394 = vmatpush1.bf16.msra.mxu1 %v8133_v28  ;;  %v8199_v26 = vld [vmem:[%s11245_s1 + $0xf30] ss:$20 sps:$4 sm:$0xff]   ;;  %v8204_v28 = vld [vmem:[%s11245_s1 + $0xf54] ss:$20 sps:$4 sm:$0xff]  }
 0x15c   :  { %5026 = vmatprep.subr.bf16.mxu0 %v8138_v29  ;;  %5395 = vmatprep.subr.bf16.mxu1 %v8141_v30  ;;  %v8207_v29 = vld [vmem:[%s11245_s1 + $0xf5c] ss:$20 sps:$4 sm:$0xff]  }
 0x15d   :  { %v8202_v30 = vld [vmem:[%s11245_s1 + $0xf50] ss:$20 sps:$4 sm:$0xff]  }
 0x15f   :  { %5027 = vmatpush1.bf16.msra.mxu0 %v8136_v31  ;;  %5396 = vmatpush1.bf16.msra.mxu1 %v8139_v32  ;;  %v8205_v31 = vld [vmem:[%s11245_s1 + $0xf58] ss:$20 sps:$4 sm:$0xff]   ;;  %v8210_v32 = vld [vmem:[%s11245_s1 + $0xf7c] ss:$20 sps:$4 sm:$0xff]  }
 0x160   :  { %5028 = vmatprep.subr.bf16.mxu0 %v8144_v35  ;;  %5397 = vmatprep.subr.bf16.mxu1 %v8147_v36  ;;  %v8213_v35 = vld [vmem:[%s11245_s1 + $0xf84] ss:$20 sps:$4 sm:$0xff]  }
 0x161   :  { %v8208_v36 = vld [vmem:[%s11245_s1 + $0xf78] ss:$20 sps:$4 sm:$0xff]  }
 0x163   :  { %5029 = vmatpush1.bf16.msra.mxu0 %v8142_v37  ;;  %5398 = vmatpush1.bf16.msra.mxu1 %v8145_v38  ;;  %v8211_v37 = vld [vmem:[%s11245_s1 + $0xf80] ss:$20 sps:$4 sm:$0xff]   ;;  %v8216_v38 = vld [vmem:[%s11245_s1 + $0xfa4] ss:$20 sps:$4 sm:$0xff]  }
 0x164   :  { %5030 = vmatprep.subr.bf16.mxu0 %v8150_v39  ;;  %5399 = vmatprep.subr.bf16.mxu1 %v8153_v40  ;;  %v8219_v39 = vld [vmem:[%s11245_s1 + $0xfac] ss:$20 sps:$4 sm:$0xff]  }
 0x165   :  { %v8214_v40 = vld [vmem:[%s11245_s1 + $0xfa0] ss:$20 sps:$4 sm:$0xff]  }
 0x167   :  { %5031 = vmatpush1.bf16.msra.mxu0 %v8148_v41  ;;  %5400 = vmatpush1.bf16.msra.mxu1 %v8151_v43  ;;  %v8217_v41 = vld [vmem:[%s11245_s1 + $0xfa8] ss:$20 sps:$4 sm:$0xff]   ;;  %v8222_v43 = vld [vmem:[%s11245_s1 + $0xfcc] ss:$20 sps:$4 sm:$0xff]  }
 0x168   :  { %5032 = vmatprep.subr.bf16.mxu0 %v8156_v44  ;;  %5401 = vmatprep.subr.bf16.mxu1 %v8159_v46  ;;  %v8225_v44 = vld [vmem:[%s11245_s1 + $0xfd4] ss:$20 sps:$4 sm:$0xff]  }
 0x169   :  { %v8220_v46 = vld [vmem:[%s11245_s1 + $0xfc8] ss:$20 sps:$4 sm:$0xff]  }
 0x16b   :  { %5033 = vmatpush1.bf16.msra.mxu0 %v8154_v47  ;;  %5402 = vmatpush1.bf16.msra.mxu1 %v8157_v48  ;;  %v8223_v47 = vld [vmem:[%s11245_s1 + $0xfd0] ss:$20 sps:$4 sm:$0xff]   ;;  %v8228_v48 = vld [vmem:[%s11245_s1 + $0xff4] ss:$20 sps:$4 sm:$0xff]  }
 0x16c   :  { %5034 = vmatprep.subr.bf16.mxu0 %v8162_v50  ;;  %5403 = vmatprep.subr.bf16.mxu1 %v8165_v53  ;;  %v8231_v50 = vld [vmem:[%s11245_s1 + $0xffc] ss:$20 sps:$4 sm:$0xff]  }
 0x16d   :  { %v8226_v53 = vld [vmem:[%s11245_s1 + $0xff0] ss:$20 sps:$4 sm:$0xff]  }
 0x16f   :  { %5035 = vmatpush1.bf16.msra.mxu0 %v8160_v54  ;;  %5404 = vmatpush1.bf16.msra.mxu1 %v8163_v55  ;;  %v8229_v54 = vld [vmem:[%s11245_s1 + $0xff8] ss:$20 sps:$4 sm:$0xff]   ;;  %v8234_v55 = vld [vmem:[%s11245_s1 + $0x101c] ss:$20 sps:$4 sm:$0xff]  }
 0x170   :  { %5036 = vmatprep.subr.bf16.mxu0 %v8168_v56  ;;  %5405 = vmatprep.subr.bf16.mxu1 %v8171_v57  ;;  %v8237_v56 = vld [vmem:[%s11245_s1 + $0x1024] ss:$20 sps:$4 sm:$0xff]  }
 0x171   :  { %v8232_v57 = vld [vmem:[%s11245_s1 + $0x1018] ss:$20 sps:$4 sm:$0xff]  }
 0x173   :  { %5037 = vmatpush1.bf16.msra.mxu0 %v8166_v58  ;;  %5406 = vmatpush1.bf16.msra.mxu1 %v8169_v59  ;;  %v8235_v58 = vld [vmem:[%s11245_s1 + $0x1020] ss:$20 sps:$4 sm:$0xff]   ;;  %v8240_v59 = vld [vmem:[%s11245_s1 + $0x1044] ss:$20 sps:$4 sm:$0xff]  }
 0x174   :  { %5038 = vmatprep.subr.bf16.mxu0 %v8174_v61  ;;  %5407 = vmatprep.subr.bf16.mxu1 %v8177_v63  ;;  %v8243_v61 = vld [vmem:[%s11245_s1 + $0x104c] ss:$20 sps:$4 sm:$0xff]  }
 0x175   :  { %v8238_v63 = vld [vmem:[%s11245_s1 + $0x1040] ss:$20 sps:$4 sm:$0xff]  }
 0x177   :  { %5039 = vmatpush1.bf16.msra.mxu0 %v8172_v0  ;;  %5408 = vmatpush1.bf16.msra.mxu1 %v8175_v1  ;;  %v8241_v0 = vld [vmem:[%s11245_s1 + $0x1048] ss:$20 sps:$4 sm:$0xff]   ;;  %v8246_v1 = vld [vmem:[%s11245_s1 + $0x106c] ss:$20 sps:$4 sm:$0xff]  }
 0x178   :  { %5040 = vmatprep.subr.bf16.mxu0 %v8180_v34  ;;  %5409 = vmatprep.subr.bf16.mxu1 %v8183_v3  ;;  %v8249_v34 = vld [vmem:[%s11245_s1 + $0x1074] ss:$20 sps:$4 sm:$0xff]  }
 0x179   :  { %v8244_v3 = vld [vmem:[%s11245_s1 + $0x1068] ss:$20 sps:$4 sm:$0xff]  }
 0x17b   :  { %5041 = vmatpush1.bf16.msra.mxu0 %v8178_v6  ;;  %5410 = vmatpush1.bf16.msra.mxu1 %v8181_v7  ;;  %v8255_v6 = vld [vmem:[%s11245_s1 + $0x109c] ss:$20 sps:$4 sm:$0xff]  }
 0x17c   :  { %5042 = vmatprep.subr.bf16.mxu0 %v8186_v8  ;;  %5411 = vmatprep.subr.bf16.mxu1 %v8189_v9  ;;  %v8250_v7 = vld [vmem:[%s11245_s1 + $0x1090] ss:$20 sps:$4 sm:$0xff]   ;;  %v8253_v8 = vld [vmem:[%s11245_s1 + $0x1098] ss:$20 sps:$4 sm:$0xff]  }
 0x17d   :  { %v8258_v9 = vld [vmem:[%s11245_s1 + $0x10bc] ss:$20 sps:$4 sm:$0xff]  }
 0x17f   :  { %5043 = vmatpush1.bf16.msra.mxu0 %v8184_v11  ;;  %5412 = vmatpush1.bf16.msra.mxu1 %v8187_v12  ;;  %v8261_v11 = vld [vmem:[%s11245_s1 + $0x10c4] ss:$20 sps:$4 sm:$0xff]  }
 0x180   :  { %5053 = vmatprep.subr.bf16.mxu0 %v8192_v14  ;;  %5422 = vmatprep.subr.bf16.mxu1 %v8195_v52  ;;  %v8256_v12 = vld [vmem:[%s11245_s1 + $0x10b8] ss:$20 sps:$4 sm:$0xff]   ;;  %v8259_v14 = vld [vmem:[%s11245_s1 + $0x10c0] ss:$20 sps:$4 sm:$0xff]  }
 0x181   :  { %v8264_v52 = vld [vmem:[%s11245_s1 + $0x10e4] ss:$20 sps:$4 sm:$0xff]  }
 0x182   :  { %5045 = vmatmul.mubr.bf16.vlgmr.msra.gmra.mrb[0].mxu0 %v9995_v18  ;;  %5414 = vmatmul.mubr.bf16.vlgmr.msra.gmra.mrb[0].mxu1 %v9995_v18 }
 0x183   :  { %5054 = vmatpush1.bf16.msra.mxu0 %v8190_v19  ;;  %5423 = vmatpush1.bf16.msra.mxu1 %v8193_v20  ;;  %v8262_v19 = vld [vmem:[%s11245_s1 + $0x10e0] ss:$20 sps:$4 sm:$0xff]   ;;  %v8265_v20 = vld [vmem:[%s11245_s1 + $0x10e8] ss:$20 sps:$4 sm:$0xff]  }
 0x184   :  { %5055 = vmatprep.subr.bf16.mxu0 %v8198_v21  ;;  %5424 = vmatprep.subr.bf16.mxu1 %v8201_v22  ;;  %v8270_v21 = vld [vmem:[%s11245_s1 + $0x110c] ss:$20 sps:$4 sm:$0xff]   ;;  %v8273_v22 = vld [vmem:[%s11245_s1 + $0x1114] ss:$20 sps:$4 sm:$0xff]  }
 0x185   :  { %5085 = vmatprep.mubr.bf16.mxu0 %v10010_v24  ;;  %5454 = vmatprep.mubr.bf16.mxu1 %v10010_v24 }
 0x187   :  { %5056 = vmatpush1.bf16.msra.mxu0 %v8196_v25  ;;  %5425 = vmatpush1.bf16.msra.mxu1 %v8199_v26  ;;  %v8268_v25 = vld [vmem:[%s11245_s1 + $0x1108] ss:$20 sps:$4 sm:$0xff]   ;;  %v8271_v26 = vld [vmem:[%s11245_s1 + $0x1110] ss:$20 sps:$4 sm:$0xff]  }
 0x188   :  { %5057 = vmatprep.subr.bf16.mxu0 %v8204_v28  ;;  %5426 = vmatprep.subr.bf16.mxu1 %v8207_v29  ;;  %v8276_v28 = vld [vmem:[%s11245_s1 + $0x1134] ss:$20 sps:$4 sm:$0xff]   ;;  %v8279_v29 = vld [vmem:[%s11245_s1 + $0x113c] ss:$20 sps:$4 sm:$0xff]  }
 0x18b   :  { %5058 = vmatpush1.bf16.msra.mxu0 %v8202_v30  ;;  %5427 = vmatpush1.bf16.msra.mxu1 %v8205_v31  ;;  %v8274_v30 = vld [vmem:[%s11245_s1 + $0x1130] ss:$20 sps:$4 sm:$0xff]   ;;  %v8277_v31 = vld [vmem:[%s11245_s1 + $0x1138] ss:$20 sps:$4 sm:$0xff]  }
 0x18c   :  { %5059 = vmatprep.subr.bf16.mxu0 %v8210_v32  ;;  %5428 = vmatprep.subr.bf16.mxu1 %v8213_v35  ;;  %v8282_v32 = vld [vmem:[%s11245_s1 + $0x115c] ss:$20 sps:$4 sm:$0xff]   ;;  %v8285_v35 = vld [vmem:[%s11245_s1 + $0x1164] ss:$20 sps:$4 sm:$0xff]  }
 0x18f   :  { %5060 = vmatpush1.bf16.msra.mxu0 %v8208_v36  ;;  %5429 = vmatpush1.bf16.msra.mxu1 %v8211_v37  ;;  %v8280_v36 = vld [vmem:[%s11245_s1 + $0x1158] ss:$20 sps:$4 sm:$0xff]   ;;  %v8283_v37 = vld [vmem:[%s11245_s1 + $0x1160] ss:$20 sps:$4 sm:$0xff]  }
 0x190   :  { %5061 = vmatprep.subr.bf16.mxu0 %v8216_v38  ;;  %5430 = vmatprep.subr.bf16.mxu1 %v8219_v39  ;;  %v8289_v38 = vld [vmem:[%s11245_s1 + $0x1184] ss:$20 sps:$4 sm:$0xff]   ;;  %v8292_v39 = vld [vmem:[%s11245_s1 + $0x118c] ss:$20 sps:$4 sm:$0xff]  }
 0x193   :  { %5062 = vmatpush1.bf16.msra.mxu0 %v8214_v40  ;;  %5431 = vmatpush1.bf16.msra.mxu1 %v8217_v41  ;;  %v8287_v40 = vld [vmem:[%s11245_s1 + $0x1180] ss:$20 sps:$4 sm:$0xff]   ;;  %v8290_v41 = vld [vmem:[%s11245_s1 + $0x1188] ss:$20 sps:$4 sm:$0xff]  }
 0x194   :  { %5063 = vmatprep.subr.bf16.mxu0 %v8222_v43  ;;  %5432 = vmatprep.subr.bf16.mxu1 %v8225_v44  ;;  %v10204_v43 = vrot.slane %v9977_v10, %v8874_v49  ;;  %v8295_v44 = vld [vmem:[%s11245_s1 + $0x11ac] ss:$20 sps:$4 sm:$0xff]   ;;  %v8293_v10 = vld [vmem:[%s11245_s1 + $0x11a8] ss:$20 sps:$4 sm:$0xff]  }
 0x197   :  { %5064 = vmatpush1.bf16.msra.mxu0 %v8220_v46  ;;  %5433 = vmatpush1.bf16.msra.mxu1 %v8223_v47  ;;  %v8298_v46 = vld [vmem:[%s11245_s1 + $0x11b4] ss:$20 sps:$4 sm:$0xff]   ;;  %v10214_v47 = vcombine.high %v10010_v24, %v10010_v24 }
 0x198   :  { %5065 = vmatprep.subr.bf16.mxu0 %v8228_v48  ;;  %5434 = vmatprep.subr.bf16.mxu1 %v8231_v50  ;;  %v8296_v48 = vld [vmem:[%s11245_s1 + $0x11b0] ss:$20 sps:$4 sm:$0xff]   ;;  %v8301_v50 = vld [vmem:[%s11245_s1 + $0x11d4] ss:$20 sps:$4 sm:$0xff]  }
 0x19b   :  { %5066 = vmatpush1.bf16.msra.mxu0 %v8226_v53  ;;  %5435 = vmatpush1.bf16.msra.mxu1 %v8229_v54  ;;  %v8304_v53 = vld [vmem:[%s11245_s1 + $0x11dc] ss:$20 sps:$4 sm:$0xff]  }
 0x19c   :  { %5067 = vmatprep.subr.bf16.mxu0 %v8234_v55  ;;  %5436 = vmatprep.subr.bf16.mxu1 %v8237_v56  ;;  %v8299_v54 = vld [vmem:[%s11245_s1 + $0x11d0] ss:$20 sps:$4 sm:$0xff]   ;;  %v8302_v55 = vld [vmem:[%s11245_s1 + $0x11d8] ss:$20 sps:$4 sm:$0xff]  }
 0x19d   :  { %v8307_v56 = vld [vmem:[%s11245_s1 + $0x11fc] ss:$20 sps:$4 sm:$0xff]  }
 0x19f   :  { %5068 = vmatpush1.bf16.msra.mxu0 %v8232_v57  ;;  %5437 = vmatpush1.bf16.msra.mxu1 %v8235_v58  ;;  %v8310_v57 = vld [vmem:[%s11245_s1 + $0x1204] ss:$20 sps:$4 sm:$0xff]  }
 0x1a0   :  { %5069 = vmatprep.subr.bf16.mxu0 %v8240_v59  ;;  %5438 = vmatprep.subr.bf16.mxu1 %v8243_v61  ;;  %v8305_v58 = vld [vmem:[%s11245_s1 + $0x11f8] ss:$20 sps:$4 sm:$0xff]   ;;  %v8308_v59 = vld [vmem:[%s11245_s1 + $0x1200] ss:$20 sps:$4 sm:$0xff]  }
 0x1a1   :  { %v8313_v61 = vld [vmem:[%s11245_s1 + $0x1224] ss:$20 sps:$4 sm:$0xff]  }
 0x1a3   :  { %5070 = vmatpush1.bf16.msra.mxu0 %v8238_v63  ;;  %5439 = vmatpush1.bf16.msra.mxu1 %v8241_v0  ;;  %v8316_v63 = vld [vmem:[%s11245_s1 + $0x122c] ss:$20 sps:$4 sm:$0xff]  }
 0x1a4   :  { %5071 = vmatprep.subr.bf16.mxu0 %v8246_v1  ;;  %5440 = vmatprep.subr.bf16.mxu1 %v8249_v34  ;;  %v8311_v0 = vld [vmem:[%s11245_s1 + $0x1220] ss:$20 sps:$4 sm:$0xff]   ;;  %v8314_v1 = vld [vmem:[%s11245_s1 + $0x1228] ss:$20 sps:$4 sm:$0xff]  }
 0x1a5   :  { %v8319_v34 = vld [vmem:[%s11245_s1 + $0x124c] ss:$20 sps:$4 sm:$0xff]  }
 0x1a7   :  { %5072 = vmatpush1.bf16.msra.mxu0 %v8244_v3  ;;  %5441 = vmatpush1.bf16.msra.mxu1 %v8247_v4  ;;  %v8322_v3 = vld [vmem:[%s11245_s1 + $0x1254] ss:$20 sps:$4 sm:$0xff]  }
 0x1a8   :  { %5073 = vmatprep.subr.bf16.mxu0 %v8252_v5  ;;  %5442 = vmatprep.subr.bf16.mxu1 %v8255_v6  ;;  %v8317_v4 = vld [vmem:[%s11245_s1 + $0x1248] ss:$20 sps:$4 sm:$0xff]   ;;  %v8320_v5 = vld [vmem:[%s11245_s1 + $0x1250] ss:$20 sps:$4 sm:$0xff]  }
 0x1a9   :  { %v8325_v6 = vld [vmem:[%s11245_s1 + $0x1274] ss:$20 sps:$4 sm:$0xff]  }
 0x1ab   :  { %5074 = vmatpush1.bf16.msra.mxu0 %v8250_v7  ;;  %5443 = vmatpush1.bf16.msra.mxu1 %v8253_v8  ;;  %v8328_v7 = vld [vmem:[%s11245_s1 + $0x127c] ss:$20 sps:$4 sm:$0xff]  }
 0x1ac   :  { %5075 = vmatprep.subr.bf16.mxu0 %v8258_v9  ;;  %5444 = vmatprep.subr.bf16.mxu1 %v8261_v11  ;;  %v8323_v8 = vld [vmem:[%s11245_s1 + $0x1270] ss:$20 sps:$4 sm:$0xff]   ;;  %v8326_v9 = vld [vmem:[%s11245_s1 + $0x1278] ss:$20 sps:$4 sm:$0xff]  }
 0x1ad   :  { %v8331_v11 = vld [vmem:[%s11245_s1 + $0x129c] ss:$20 sps:$4 sm:$0xff]  }
 0x1af   :  { %5076 = vmatpush1.bf16.msra.mxu0 %v8256_v12  ;;  %5445 = vmatpush1.bf16.msra.mxu1 %v8259_v14  ;;  %v8334_v12 = vld [vmem:[%s11245_s1 + $0x12a4] ss:$20 sps:$4 sm:$0xff]  }
 0x1b0   :  { %5077 = vmatprep.subr.bf16.mxu0 %v8264_v52  ;;  %5446 = vmatprep.subr.bf16.mxu1 %v8267_v16  ;;  %v8329_v14 = vld [vmem:[%s11245_s1 + $0x1298] ss:$20 sps:$4 sm:$0xff]   ;;  %v8332_v52 = vld [vmem:[%s11245_s1 + $0x12a0] ss:$20 sps:$4 sm:$0xff]  }
 0x1b1   :  { %v8337_v16 = vld [vmem:[%s11245_s1 + $0x12c4] ss:$20 sps:$4 sm:$0xff]  }
 0x1b3   :  { %5078 = vmatpush1.bf16.msra.mxu0 %v8262_v19  ;;  %5447 = vmatpush1.bf16.msra.mxu1 %v8265_v20  ;;  %v8340_v19 = vld [vmem:[%s11245_s1 + $0x12cc] ss:$20 sps:$4 sm:$0xff]  }
 0x1b4   :  { %5079 = vmatprep.subr.bf16.mxu0 %v8270_v21  ;;  %5448 = vmatprep.subr.bf16.mxu1 %v8273_v22  ;;  %v8335_v20 = vld [vmem:[%s11245_s1 + $0x12c0] ss:$20 sps:$4 sm:$0xff]   ;;  %v8338_v21 = vld [vmem:[%s11245_s1 + $0x12c8] ss:$20 sps:$4 sm:$0xff]  }
 0x1b5   :  { %v8343_v22 = vld [vmem:[%s11245_s1 + $0x12ec] ss:$20 sps:$4 sm:$0xff]  }
 0x1b7   :  { %5080 = vmatpush1.bf16.msra.mxu0 %v8268_v25  ;;  %5449 = vmatpush1.bf16.msra.mxu1 %v8271_v26  ;;  %v8346_v25 = vld [vmem:[%s11245_s1 + $0x12f4] ss:$20 sps:$4 sm:$0xff]  }
 0x1b8   :  { %5081 = vmatprep.subr.bf16.mxu0 %v8276_v28  ;;  %5450 = vmatprep.subr.bf16.mxu1 %v8279_v29  ;;  %v8341_v26 = vld [vmem:[%s11245_s1 + $0x12e8] ss:$20 sps:$4 sm:$0xff]   ;;  %v8344_v28 = vld [vmem:[%s11245_s1 + $0x12f0] ss:$20 sps:$4 sm:$0xff]  }
 0x1b9   :  { %v8349_v29 = vld [vmem:[%s11245_s1 + $0x1314] ss:$20 sps:$4 sm:$0xff]  }
 0x1bb   :  { %5082 = vmatpush1.bf16.msra.mxu0 %v8274_v30  ;;  %5451 = vmatpush1.bf16.msra.mxu1 %v8277_v31  ;;  %v8352_v30 = vld [vmem:[%s11245_s1 + $0x131c] ss:$20 sps:$4 sm:$0xff]  }
 0x1bc   :  { %5083 = vmatprep.subr.bf16.mxu0 %v8282_v32  ;;  %5452 = vmatprep.subr.bf16.mxu1 %v8285_v35  ;;  %v8347_v31 = vld [vmem:[%s11245_s1 + $0x1310] ss:$20 sps:$4 sm:$0xff]   ;;  %v8350_v32 = vld [vmem:[%s11245_s1 + $0x1318] ss:$20 sps:$4 sm:$0xff]  }
 0x1bd   :  { %v8355_v35 = vld [vmem:[%s11245_s1 + $0x133c] ss:$20 sps:$4 sm:$0xff]  }
 0x1bf   :  { %5084 = vmatpush1.bf16.msra.mxu0 %v8280_v36  ;;  %5453 = vmatpush1.bf16.msra.mxu1 %v8283_v37  ;;  %v8358_v36 = vld [vmem:[%s11245_s1 + $0x1344] ss:$20 sps:$4 sm:$0xff]  }
 0x1c0   :  { %5094 = vmatprep.subr.bf16.mxu0 %v8289_v38  ;;  %5463 = vmatprep.subr.bf16.mxu1 %v8292_v39  ;;  %v8353_v37 = vld [vmem:[%s11245_s1 + $0x1338] ss:$20 sps:$4 sm:$0xff]   ;;  %v8356_v38 = vld [vmem:[%s11245_s1 + $0x1340] ss:$20 sps:$4 sm:$0xff]  }
 0x1c1   :  { %v8361_v39 = vld [vmem:[%s11245_s1 + $0x1364] ss:$20 sps:$4 sm:$0xff]  }
 0x1c2   :  { %5086 = vmatmul.mubr.bf16.vlgmr.msra.gmra.mrb[0].mxu0 %v10204_v43  ;;  %5455 = vmatmul.mubr.bf16.vlgmr.msra.gmra.mrb[0].mxu1 %v10204_v43 }
 0x1c3   :  { %5095 = vmatpush1.bf16.msra.mxu0 %v8287_v40  ;;  %5464 = vmatpush1.bf16.msra.mxu1 %v8290_v41  ;;  %v8364_v40 = vld [vmem:[%s11245_s1 + $0x136c] ss:$20 sps:$4 sm:$0xff]  }
 0x1c4   :  { %5096 = vmatprep.subr.bf16.mxu0 %v8295_v44  ;;  %5465 = vmatprep.subr.bf16.mxu1 %v8298_v46  ;;  %v8359_v41 = vld [vmem:[%s11245_s1 + $0x1360] ss:$20 sps:$4 sm:$0xff]   ;;  %v8362_v44 = vld [vmem:[%s11245_s1 + $0x1368] ss:$20 sps:$4 sm:$0xff]  }
 0x1c5   :  { %5126 = vmatprep.mubr.bf16.mxu0 %v10214_v47  ;;  %5495 = vmatprep.mubr.bf16.mxu1 %v10214_v47  ;;  %v8367_v46 = vld [vmem:[%s11245_s1 + $0x138c] ss:$20 sps:$4 sm:$0xff]  }
 0x1c7   :  { %5097 = vmatpush1.bf16.msra.mxu0 %v8293_v10  ;;  %5466 = vmatpush1.bf16.msra.mxu1 %v8296_v48  ;;  %v8370_v10 = vld [vmem:[%s11245_s1 + $0x1394] ss:$20 sps:$4 sm:$0xff]  }
 0x1c8   :  { %5098 = vmatprep.subr.bf16.mxu0 %v8301_v50  ;;  %5467 = vmatprep.subr.bf16.mxu1 %v8304_v53  ;;  %v8365_v48 = vld [vmem:[%s11245_s1 + $0x1388] ss:$20 sps:$4 sm:$0xff]   ;;  %v8368_v50 = vld [vmem:[%s11245_s1 + $0x1390] ss:$20 sps:$4 sm:$0xff]  }
 0x1c9   :  { %v8373_v53 = vld [vmem:[%s11245_s1 + $0x13b4] ss:$20 sps:$4 sm:$0xff]  }
 0x1cb   :  { %5099 = vmatpush1.bf16.msra.mxu0 %v8299_v54  ;;  %5468 = vmatpush1.bf16.msra.mxu1 %v8302_v55  ;;  %v8376_v54 = vld [vmem:[%s11245_s1 + $0x13bc] ss:$20 sps:$4 sm:$0xff]  }
 0x1cc   :  { %5100 = vmatprep.subr.bf16.mxu0 %v8307_v56  ;;  %5469 = vmatprep.subr.bf16.mxu1 %v8310_v57  ;;  %v8371_v55 = vld [vmem:[%s11245_s1 + $0x13b0] ss:$20 sps:$4 sm:$0xff]   ;;  %v8374_v56 = vld [vmem:[%s11245_s1 + $0x13b8] ss:$20 sps:$4 sm:$0xff]  }
 0x1cd   :  { %v8379_v57 = vld [vmem:[%s11245_s1 + $0x13dc] ss:$20 sps:$4 sm:$0xff]  }
 0x1cf   :  { %5101 = vmatpush1.bf16.msra.mxu0 %v8305_v58  ;;  %5470 = vmatpush1.bf16.msra.mxu1 %v8308_v59  ;;  %v8382_v58 = vld [vmem:[%s11245_s1 + $0x13e4] ss:$20 sps:$4 sm:$0xff]   ;;  %v10391_v59 = vld.sshfl [vmem:[%s11244_s0 + $0x10] sm:$0x11 pattern:$0x75316420] }
 0x1d0   :  { %5102 = vmatprep.subr.bf16.mxu0 %v8313_v61  ;;  %5471 = vmatprep.subr.bf16.mxu1 %v8316_v63  ;;  %v8377_v61 = vld [vmem:[%s11245_s1 + $0x13d8] ss:$20 sps:$4 sm:$0xff]   ;;  %v8380_v63 = vld [vmem:[%s11245_s1 + $0x13e0] ss:$20 sps:$4 sm:$0xff]  }
 0x1d3   :  { %5103 = vmatpush1.bf16.msra.mxu0 %v8311_v0  ;;  %5472 = vmatpush1.bf16.msra.mxu1 %v8314_v1  ;;  %v8385_v0 = vld [vmem:[%s11245_s1 + $0x1404] ss:$20 sps:$4 sm:$0xff]   ;;  %v8388_v1 = vld [vmem:[%s11245_s1 + $0x140c] ss:$20 sps:$4 sm:$0xff]  }
 0x1d4   :  { %5104 = vmatprep.subr.bf16.mxu0 %v8319_v34  ;;  %5473 = vmatprep.subr.bf16.mxu1 %v8322_v3  ;;  %v8383_v34 = vld [vmem:[%s11245_s1 + $0x1400] ss:$20 sps:$4 sm:$0xff]   ;;  %v1030_v3 = vcombine.high %v10391_v59, %v10391_v59 }
 0x1d7   :  { %5105 = vmatpush1.bf16.msra.mxu0 %v8317_v4  ;;  %5474 = vmatpush1.bf16.msra.mxu1 %v8320_v5  ;;  %v8386_v4 = vld [vmem:[%s11245_s1 + $0x1408] ss:$20 sps:$4 sm:$0xff]   ;;  %v10415_v5 = vcombine.high %v10204_v43, %v10204_v43 }
 0x1d8   :  { %5106 = vmatprep.subr.bf16.mxu0 %v8325_v6  ;;  %5475 = vmatprep.subr.bf16.mxu1 %v8328_v7  ;;  %v8391_v6 = vld [vmem:[%s11245_s1 + $0x142c] ss:$20 sps:$4 sm:$0xff]   ;;  %v8394_v7 = vld [vmem:[%s11245_s1 + $0x1434] ss:$20 sps:$4 sm:$0xff]  }
 0x1db   :  { %5107 = vmatpush1.bf16.msra.mxu0 %v8323_v8  ;;  %5476 = vmatpush1.bf16.msra.mxu1 %v8326_v9  ;;  %v10424_v8 = vrot.slane %v1030_v3, %v8874_v49  ;;  %v8389_v9 = vld [vmem:[%s11245_s1 + $0x1428] ss:$20 sps:$4 sm:$0xff]  }
 0x1dc   :  { %5108 = vmatprep.subr.bf16.mxu0 %v8331_v11  ;;  %5477 = vmatprep.subr.bf16.mxu1 %v8334_v12  ;;  %v8392_v11 = vld [vmem:[%s11245_s1 + $0x1430] ss:$20 sps:$4 sm:$0xff]   ;;  %v8397_v12 = vld [vmem:[%s11245_s1 + $0x1454] ss:$20 sps:$4 sm:$0xff]  }
 0x1df   :  { %5109 = vmatpush1.bf16.msra.mxu0 %v8329_v14  ;;  %5478 = vmatpush1.bf16.msra.mxu1 %v8332_v52  ;;  %v8400_v14 = vld [vmem:[%s11245_s1 + $0x145c] ss:$20 sps:$4 sm:$0xff]  }
 0x1e0   :  { %5110 = vmatprep.subr.bf16.mxu0 %v8337_v16  ;;  %5479 = vmatprep.subr.bf16.mxu1 %v8340_v19  ;;  %v8395_v52 = vld [vmem:[%s11245_s1 + $0x1450] ss:$20 sps:$4 sm:$0xff]   ;;  %v8398_v16 = vld [vmem:[%s11245_s1 + $0x1458] ss:$20 sps:$4 sm:$0xff]  }
 0x1e1   :  { %v8403_v19 = vld [vmem:[%s11245_s1 + $0x147c] ss:$20 sps:$4 sm:$0xff]  }
 0x1e3   :  { %5111 = vmatpush1.bf16.msra.mxu0 %v8335_v20  ;;  %5480 = vmatpush1.bf16.msra.mxu1 %v8338_v21  ;;  %v8406_v20 = vld [vmem:[%s11245_s1 + $0x1484] ss:$20 sps:$4 sm:$0xff]  }
 0x1e4   :  { %5112 = vmatprep.subr.bf16.mxu0 %v8343_v22  ;;  %5481 = vmatprep.subr.bf16.mxu1 %v8346_v25  ;;  %v8401_v21 = vld [vmem:[%s11245_s1 + $0x1478] ss:$20 sps:$4 sm:$0xff]   ;;  %v8404_v22 = vld [vmem:[%s11245_s1 + $0x1480] ss:$20 sps:$4 sm:$0xff]  }
 0x1e5   :  { %v8409_v25 = vld [vmem:[%s11245_s1 + $0x14a4] ss:$20 sps:$4 sm:$0xff]  }
 0x1e7   :  { %5113 = vmatpush1.bf16.msra.mxu0 %v8341_v26  ;;  %5482 = vmatpush1.bf16.msra.mxu1 %v8344_v28  ;;  %v8412_v26 = vld [vmem:[%s11245_s1 + $0x14ac] ss:$20 sps:$4 sm:$0xff]  }
 0x1e8   :  { %5114 = vmatprep.subr.bf16.mxu0 %v8349_v29  ;;  %5483 = vmatprep.subr.bf16.mxu1 %v8352_v30  ;;  %v8407_v28 = vld [vmem:[%s11245_s1 + $0x14a0] ss:$20 sps:$4 sm:$0xff]   ;;  %v8410_v29 = vld [vmem:[%s11245_s1 + $0x14a8] ss:$20 sps:$4 sm:$0xff]  }
 0x1e9   :  { %v8415_v30 = vld [vmem:[%s11245_s1 + $0x14cc] ss:$20 sps:$4 sm:$0xff]  }
 0x1eb   :  { %5115 = vmatpush1.bf16.msra.mxu0 %v8347_v31  ;;  %5484 = vmatpush1.bf16.msra.mxu1 %v8350_v32  ;;  %v8418_v31 = vld [vmem:[%s11245_s1 + $0x14d4] ss:$20 sps:$4 sm:$0xff]  }
 0x1ec   :  { %5116 = vmatprep.subr.bf16.mxu0 %v8355_v35  ;;  %5485 = vmatprep.subr.bf16.mxu1 %v8358_v36  ;;  %v8413_v32 = vld [vmem:[%s11245_s1 + $0x14c8] ss:$20 sps:$4 sm:$0xff]   ;;  %v8416_v35 = vld [vmem:[%s11245_s1 + $0x14d0] ss:$20 sps:$4 sm:$0xff]  }
 0x1ed   :  { %v8421_v36 = vld [vmem:[%s11245_s1 + $0x14f4] ss:$20 sps:$4 sm:$0xff]  }
 0x1ef   :  { %5117 = vmatpush1.bf16.msra.mxu0 %v8353_v37  ;;  %5486 = vmatpush1.bf16.msra.mxu1 %v8356_v38  ;;  %v8424_v37 = vld [vmem:[%s11245_s1 + $0x14fc] ss:$20 sps:$4 sm:$0xff]  }
 0x1f0   :  { %5118 = vmatprep.subr.bf16.mxu0 %v8361_v39  ;;  %5487 = vmatprep.subr.bf16.mxu1 %v8364_v40  ;;  %v8419_v38 = vld [vmem:[%s11245_s1 + $0x14f0] ss:$20 sps:$4 sm:$0xff]   ;;  %v8422_v39 = vld [vmem:[%s11245_s1 + $0x14f8] ss:$20 sps:$4 sm:$0xff]  }
 0x1f1   :  { %v8427_v40 = vld [vmem:[%s11245_s1 + $0x151c] ss:$20 sps:$4 sm:$0xff]  }
 0x1f3   :  { %5119 = vmatpush1.bf16.msra.mxu0 %v8359_v41  ;;  %5488 = vmatpush1.bf16.msra.mxu1 %v8362_v44  ;;  %v8430_v41 = vld [vmem:[%s11245_s1 + $0x1524] ss:$20 sps:$4 sm:$0xff]  }
 0x1f4   :  { %5120 = vmatprep.subr.bf16.mxu0 %v8367_v46  ;;  %5489 = vmatprep.subr.bf16.mxu1 %v8370_v10  ;;  %v8425_v44 = vld [vmem:[%s11245_s1 + $0x1518] ss:$20 sps:$4 sm:$0xff]   ;;  %v8428_v46 = vld [vmem:[%s11245_s1 + $0x1520] ss:$20 sps:$4 sm:$0xff]  }
 0x1f5   :  { %v8433_v10 = vld [vmem:[%s11245_s1 + $0x1544] ss:$20 sps:$4 sm:$0xff]  }
 0x1f7   :  { %5121 = vmatpush1.bf16.msra.mxu0 %v8365_v48  ;;  %5490 = vmatpush1.bf16.msra.mxu1 %v8368_v50  ;;  %v8436_v48 = vld [vmem:[%s11245_s1 + $0x154c] ss:$20 sps:$4 sm:$0xff]  }
 0x1f8   :  { %5122 = vmatprep.subr.bf16.mxu0 %v8373_v53  ;;  %5491 = vmatprep.subr.bf16.mxu1 %v8376_v54 }
 0x1fb   :  { %5123 = vmatpush1.bf16.msra.mxu0 %v8371_v55  ;;  %5492 = vmatpush1.bf16.msra.mxu1 %v8374_v56 }
 0x1fc   :  { %5124 = vmatprep.subr.bf16.mxu0 %v8379_v57  ;;  %5493 = vmatprep.subr.bf16.mxu1 %v8382_v58 }
 0x1ff   :  { %5125 = vmatpush1.bf16.msra.mxu0 %v8377_v61  ;;  %5494 = vmatpush1.bf16.msra.mxu1 %v8380_v63 }
 0x200   :  { %5135 = vmatprep.subr.bf16.mxu0 %v8385_v0  ;;  %5504 = vmatprep.subr.bf16.mxu1 %v8388_v1 }
 0x202   :  { %5127 = vmatmul.mubr.bf16.vlgmr.msra.gmra.mrb[0].mxu0 %v10415_v5  ;;  %5496 = vmatmul.mubr.bf16.vlgmr.msra.gmra.mrb[0].mxu1 %v10415_v5 }
 0x203   :  { %5136 = vmatpush1.bf16.msra.mxu0 %v8383_v34  ;;  %5505 = vmatpush1.bf16.msra.mxu1 %v8386_v4 }
 0x204   :  { %5137 = vmatprep.subr.bf16.mxu0 %v8391_v6  ;;  %5506 = vmatprep.subr.bf16.mxu1 %v8394_v7 }
 0x205   :  { %5167 = vmatprep.mubr.bf16.mxu0 %v10424_v8  ;;  %5536 = vmatprep.mubr.bf16.mxu1 %v10424_v8 }
 0x207   :  { %5138 = vmatpush1.bf16.msra.mxu0 %v8389_v9  ;;  %5507 = vmatpush1.bf16.msra.mxu1 %v8392_v11 }
 0x208   :  { %5139 = vmatprep.subr.bf16.mxu0 %v8397_v12  ;;  %5508 = vmatprep.subr.bf16.mxu1 %v8400_v14 }
 0x20b   :  { %5140 = vmatpush1.bf16.msra.mxu0 %v8395_v52  ;;  %5509 = vmatpush1.bf16.msra.mxu1 %v8398_v16 }
 0x20c   :  { %5141 = vmatprep.subr.bf16.mxu0 %v8403_v19  ;;  %5510 = vmatprep.subr.bf16.mxu1 %v8406_v20 }
 0x20f   :  { %5142 = vmatpush1.bf16.msra.mxu0 %v8401_v21  ;;  %5511 = vmatpush1.bf16.msra.mxu1 %v8404_v22 }
 0x210   :  { %5143 = vmatprep.subr.bf16.mxu0 %v8409_v25  ;;  %5512 = vmatprep.subr.bf16.mxu1 %v8412_v26 }
 0x213   :  { %5144 = vmatpush1.bf16.msra.mxu0 %v8407_v28  ;;  %5513 = vmatpush1.bf16.msra.mxu1 %v8410_v29 }
 0x214   :  { %5145 = vmatprep.subr.bf16.mxu0 %v8415_v30  ;;  %5514 = vmatprep.subr.bf16.mxu1 %v8418_v31 }
 0x217   :  { %5146 = vmatpush1.bf16.msra.mxu0 %v8413_v32  ;;  %5515 = vmatpush1.bf16.msra.mxu1 %v8416_v35 }
 0x218   :  { %5147 = vmatprep.subr.bf16.mxu0 %v8421_v36  ;;  %5516 = vmatprep.subr.bf16.mxu1 %v8424_v37 }
 0x21b   :  { %5148 = vmatpush1.bf16.msra.mxu0 %v8419_v38  ;;  %5517 = vmatpush1.bf16.msra.mxu1 %v8422_v39 }
 0x21c   :  { %5149 = vmatprep.subr.bf16.mxu0 %v8427_v40  ;;  %5518 = vmatprep.subr.bf16.mxu1 %v8430_v41 }
 0x21d   :  { %12 = vsyncpa [#allocation3], 0  ;;  %v8431_v50 = vld [vmem:[%s11245_s1 + $0x1540] ss:$20 sps:$4 sm:$0xff]   ;;  %v8434_v53 = vld [vmem:[%s11245_s1 + $0x1548] ss:$20 sps:$4 sm:$0xff]   ;;  %v10612_v32 = vrot.slane %v10391_v59, %v8874_v49 }
 0x21e   :  { %v8439_v54 = vld [vmem:[%s11245_s1 + $0x156c] ss:$20 sps:$4 sm:$0xff]   ;;  %v8442_v55 = vld [vmem:[%s11245_s1 + $0x1574] ss:$20 sps:$4 sm:$0xff]   ;;  %v8440_v57 = vld [vmem:[%s11245_s1 + $0x1570] ss:$20 sps:$4 sm:$0xff]  }
 0x21f   :  { %5150 = vmatpush1.bf16.msra.mxu0 %v8425_v44  ;;  %5519 = vmatpush1.bf16.msra.mxu1 %v8428_v46  ;;  %v8437_v56 = vld [vmem:[%s11245_s1 + $0x1568] ss:$20 sps:$4 sm:$0xff]   ;;  %v8443_v63 = vld [vmem:[%s11245_s1 + $0x1590] ss:$20 sps:$4 sm:$0xff]   ;;  %v8446_v0 = vld [vmem:[%s11245_s1 + $0x1598] ss:$20 sps:$4 sm:$0xff]  }
 0x220   :  { %5151 = vmatprep.subr.bf16.mxu0 %v8433_v10  ;;  %5520 = vmatprep.subr.bf16.mxu1 %v8436_v48  ;;  %v8445_v58 = vld [vmem:[%s11245_s1 + $0x1594] ss:$20 sps:$4 sm:$0xff]   ;;  %v8448_v61 = vld [vmem:[%s11245_s1 + $0x159c] ss:$20 sps:$4 sm:$0xff]   ;;  %v8454_v34 = vld [vmem:[%s11245_s1 + $0x15c4] ss:$20 sps:$4 sm:$0xff]  }
 0x221   :  { %v8451_v1 = vld [vmem:[%s11245_s1 + $0x15bc] ss:$20 sps:$4 sm:$0xff]   ;;  %v8449_v3 = vld [vmem:[%s11245_s1 + $0x15b8] ss:$20 sps:$4 sm:$0xff]   ;;  %v8452_v4 = vld [vmem:[%s11245_s1 + $0x15c0] ss:$20 sps:$4 sm:$0xff]  }
 0x222   :  { %v8457_v6 = vld [vmem:[%s11245_s1 + $0x15e4] ss:$20 sps:$4 sm:$0xff]   ;;  %v8460_v7 = vld [vmem:[%s11245_s1 + $0x15ec] ss:$20 sps:$4 sm:$0xff]   ;;  %v8458_v11 = vld [vmem:[%s11245_s1 + $0x15e8] ss:$20 sps:$4 sm:$0xff]  }
 0x223   :  { %5152 = vmatpush1.bf16.msra.mxu0 %v8431_v50  ;;  %5521 = vmatpush1.bf16.msra.mxu1 %v8434_v53  ;;  %v8455_v9 = vld [vmem:[%s11245_s1 + $0x15e0] ss:$20 sps:$4 sm:$0xff]   ;;  %v8461_v52 = vld [vmem:[%s11245_s1 + $0x1608] ss:$20 sps:$4 sm:$0xff]   ;;  %v8464_v16 = vld [vmem:[%s11245_s1 + $0x1610] ss:$20 sps:$4 sm:$0xff]  }
 0x224   :  { %5153 = vmatprep.subr.bf16.mxu0 %v8439_v54  ;;  %5522 = vmatprep.subr.bf16.mxu1 %v8442_v55  ;;  %v8463_v12 = vld [vmem:[%s11245_s1 + $0x160c] ss:$20 sps:$4 sm:$0xff]   ;;  %v8466_v14 = vld [vmem:[%s11245_s1 + $0x1614] ss:$20 sps:$4 sm:$0xff]   ;;  %v8472_v20 = vld [vmem:[%s11245_s1 + $0x163c] ss:$20 sps:$4 sm:$0xff]  }
 0x225   :  { %v8469_v19 = vld [vmem:[%s11245_s1 + $0x1634] ss:$20 sps:$4 sm:$0xff]   ;;  %v8467_v21 = vld [vmem:[%s11245_s1 + $0x1630] ss:$20 sps:$4 sm:$0xff]   ;;  %v8470_v22 = vld [vmem:[%s11245_s1 + $0x1638] ss:$20 sps:$4 sm:$0xff]  }
 0x226   :  { %v8475_v25 = vld [vmem:[%s11245_s1 + $0x165c] ss:$20 sps:$4 sm:$0xff]   ;;  %v8478_v26 = vld [vmem:[%s11245_s1 + $0x1664] ss:$20 sps:$4 sm:$0xff]   ;;  %v8476_v29 = vld [vmem:[%s11245_s1 + $0x1660] ss:$20 sps:$4 sm:$0xff]  }
 0x227   :  { %5154 = vmatpush1.bf16.msra.mxu0 %v8437_v56  ;;  %5523 = vmatpush1.bf16.msra.mxu1 %v8440_v57  ;;  %v8473_v28 = vld [vmem:[%s11245_s1 + $0x1658] ss:$20 sps:$4 sm:$0xff]   ;;  %v8479_v30 = vld [vmem:[%s11245_s1 + $0x150] ss:$20 sps:$4 sm:$0xff]   ;;  %v8487_v39 = vld [vmem:[%s11245_s1 + $0x1a0] ss:$20 sps:$4 sm:$0xff]  }
 0x228   :  { %5155 = vmatprep.subr.bf16.mxu0 %v8445_v58  ;;  %5524 = vmatprep.subr.bf16.mxu1 %v8448_v61  ;;  %v8481_v31 = vld [vmem:[%s11245_s1 + $0x3d0] ss:$20 sps:$4 sm:$0xff]   ;;  %v8483_v37 = vld [vmem:[%s11245_s1 + $0x178] ss:$20 sps:$4 sm:$0xff]   ;;  %v8489_v40 = vld [vmem:[%s11245_s1 + $0x420] ss:$20 sps:$4 sm:$0xff]  }
 0x229   :  { %v8480_v35 = vld [vmem:[%s11245_s1 + $0x10] ss:$20 sps:$4 sm:$0xff]   ;;  %v8485_v49 = vld [vmem:[%s11245_s1 + $0x3f8] ss:$20 sps:$4 sm:$0xff]   ;;  %v8488_v41 = vld [vmem:[%s11245_s1 + $0x60] ss:$20 sps:$4 sm:$0xff]  }
 0x22a   :  { %v8482_v36 = vld [vmem:[%s11245_s1 + $0x290] ss:$20 sps:$4 sm:$0xff]   ;;  %v8484_v59 = vld [vmem:[%s11245_s1 + $0x38] ss:$20 sps:$4 sm:$0xff]   ;;  %v8490_v44 = vld [vmem:[%s11245_s1 + $0x2e0] ss:$20 sps:$4 sm:$0xff]  }
 0x22b   :  { %5156 = vmatpush1.bf16.msra.mxu0 %v8443_v63  ;;  %5525 = vmatpush1.bf16.msra.mxu1 %v8446_v0  ;;  %v8486_v38 = vld [vmem:[%s11245_s1 + $0x2b8] ss:$20 sps:$4 sm:$0xff]   ;;  %v8491_v46 = vld [vmem:[%s11245_s1 + $0x1c8] ss:$20 sps:$4 sm:$0xff]   ;;  %v8495_v48 = vld [vmem:[%s11245_s1 + $0x1f0] ss:$20 sps:$4 sm:$0xff]  }
 0x22c   :  { %5157 = vmatprep.subr.bf16.mxu0 %v8451_v1  ;;  %5526 = vmatprep.subr.bf16.mxu1 %v8454_v34  ;;  %v8494_v10 = vld [vmem:[%s11245_s1 + $0x308] ss:$20 sps:$4 sm:$0xff]   ;;  %v8497_v50 = vld [vmem:[%s11245_s1 + $0x470] ss:$20 sps:$4 sm:$0xff]   ;;  %v8499_v55 = vld [vmem:[%s11245_s1 + $0x218] ss:$20 sps:$4 sm:$0xff]  }
 0x22d   :  { %v8496_v53 = vld [vmem:[%s11245_s1 + $0xb0] ss:$20 sps:$4 sm:$0xff]   ;;  %v8501_v56 = vld [vmem:[%s11245_s1 + $0x498] ss:$20 sps:$4 sm:$0xff]   ;;  %v8503_v61 = vld [vmem:[%s11245_s1 + $0x240] ss:$20 sps:$4 sm:$0xff]  }
 0x22e   :  { %v8498_v54 = vld [vmem:[%s11245_s1 + $0x330] ss:$20 sps:$4 sm:$0xff]   ;;  %v8500_v57 = vld [vmem:[%s11245_s1 + $0xd8] ss:$20 sps:$4 sm:$0xff]   ;;  %v8505_v63 = vld [vmem:[%s11245_s1 + $0x4c0] ss:$20 sps:$4 sm:$0xff]  }
 0x22f   :  { %5158 = vmatpush1.bf16.msra.mxu0 %v8449_v3  ;;  %5527 = vmatpush1.bf16.msra.mxu1 %v8452_v4  ;;  %v8502_v58 = vld [vmem:[%s11245_s1 + $0x358] ss:$20 sps:$4 sm:$0xff]   ;;  %v8504_v0 = vld [vmem:[%s11245_s1 + $0x100] ss:$20 sps:$4 sm:$0xff]   ;;  %v8507_v34 = vld [vmem:[%s11245_s1 + $0x268] ss:$20 sps:$4 sm:$0xff]  }
 0x230   :  { %5159 = vmatprep.subr.bf16.mxu0 %v8457_v6  ;;  %5528 = vmatprep.subr.bf16.mxu1 %v8460_v7  ;;  %v8506_v1 = vld [vmem:[%s11245_s1 + $0x380] ss:$20 sps:$4 sm:$0xff]   ;;  %v8509_v3 = vld [vmem:[%s11245_s1 + $0x4e8] ss:$20 sps:$4 sm:$0xff]   ;;  %v8511_v7 = vld [vmem:[%s11245_s1 + $0x650] ss:$20 sps:$4 sm:$0xff]  }
 0x231   :  { %v8508_v4 = vld [vmem:[%s11245_s1 + $0x128] ss:$20 sps:$4 sm:$0xff]   ;;  %vm6221_vm0 = vcmask 1043456   ;;  %vm8697_vm1 = vmmov 0   ;;  %vm6217_vm2 = vcmask 719872   ;;  %vm6413_vm3 = vcmask 982016  }
 0x232   :  { %v8510_v6 = vld [vmem:[%s11245_s1 + $0x3a8] ss:$20 sps:$4 sm:$0xff]   ;;  %s8698_s24 = smov [#allocation2]   ;;  %vm6460_vm4 = vcmask 74752  }
 0x233   :  { %5160 = vmatpush1.bf16.msra.mxu0 %v8455_v9  ;;  %5529 = vmatpush1.bf16.msra.mxu1 %v8458_v11  ;;  %v8513_v9 = vld [vmem:[%s11245_s1 + $0x8d0] ss:$20 sps:$4 sm:$0xff]   ;;  %s6468_s0 = sshll.u32 %s8698_s24, 4  ;;  %s6469_s0 = int_to_ptr.vmem [resolvable:$true] %s6468_s0 }
 0x234   :  { %5161 = vmatprep.subr.bf16.mxu0 %v8463_v12  ;;  %5530 = vmatprep.subr.bf16.mxu1 %v8466_v14  ;;  %v8512_v11 = vld [vmem:[%s11245_s1 + $0x510] ss:$20 sps:$4 sm:$0xff]   ;;  %v8515_v14 = vld [vmem:[%s11245_s1 + $0x678] ss:$20 sps:$4 sm:$0xff]   ;;  %p8676_p1 = scmp.lt.s32.totalorder %s6469_s0, %s6469_s0 }
 0x235   :  { %v8514_v12 = vld [vmem:[%s11245_s1 + $0x790] ss:$20 sps:$4 sm:$0xff]  }
 0x237   :  { %5162 = vmatpush1.bf16.msra.mxu0 %v8461_v52  ;;  %5531 = vmatpush1.bf16.msra.mxu1 %v8464_v16  ;;  %v8517_v52 = vld [vmem:[%s11245_s1 + $0x8f8] ss:$20 sps:$4 sm:$0xff]  }
 0x238   :  { %5163 = vmatprep.subr.bf16.mxu0 %v8469_v19  ;;  %5532 = vmatprep.subr.bf16.mxu1 %v8472_v20  ;;  %v8516_v16 = vld [vmem:[%s11245_s1 + $0x538] ss:$20 sps:$4 sm:$0xff]   ;;  %v8519_v20 = vld [vmem:[%s11245_s1 + $0x6a0] ss:$20 sps:$4 sm:$0xff]  }
 0x239   :  { %v8518_v19 = vld [vmem:[%s11245_s1 + $0x7b8] ss:$20 sps:$4 sm:$0xff]  }
 0x23b   :  { %5164 = vmatpush1.bf16.msra.mxu0 %v8467_v21  ;;  %5533 = vmatpush1.bf16.msra.mxu1 %v8470_v22  ;;  %v8522_v21 = vld [vmem:[%s11245_s1 + $0x7e0] ss:$20 sps:$4 sm:$0xff]   ;;  %v8523_v22 = vld [vmem:[%s11245_s1 + $0x6c8] ss:$20 sps:$4 sm:$0xff]  }
 0x23c   :  { %5165 = vmatprep.subr.bf16.mxu0 %v8475_v25  ;;  %5534 = vmatprep.subr.bf16.mxu1 %v8478_v26  ;;  %v8526_v25 = vld [vmem:[%s11245_s1 + $0x808] ss:$20 sps:$4 sm:$0xff]   ;;  %v8527_v26 = vld [vmem:[%s11245_s1 + $0x6f0] ss:$20 sps:$4 sm:$0xff]  }
 0x23f   :  { %5166 = vmatpush1.bf16.msra.mxu0 %v8473_v28  ;;  %5535 = vmatpush1.bf16.msra.mxu1 %v8476_v29  ;;  %v8529_v28 = vld [vmem:[%s11245_s1 + $0x970] ss:$20 sps:$4 sm:$0xff]  }
 0x240   :  { %7247 = vmatprep.subr.bf16.mxu0 %v8479_v30  ;;  %7269 = vmatprep.subr.bf16.mxu1 %v8481_v31  ;;  %v8528_v29 = vld [vmem:[%s11245_s1 + $0x5b0] ss:$20 sps:$4 sm:$0xff]   ;;  %v8531_v31 = vld [vmem:[%s11245_s1 + $0x718] ss:$20 sps:$4 sm:$0xff]  }
 0x241   :  { %v8530_v30 = vld [vmem:[%s11245_s1 + $0x830] ss:$20 sps:$4 sm:$0xff]  }
 0x242   :  { %5168 = vmatmul.mubr.bf16.vlgmr.msra.gmra.mrb[0].mxu0 %v10612_v32  ;;  %5537 = vmatmul.mubr.bf16.vlgmr.msra.gmra.mrb[0].mxu1 %v10612_v32 }
 0x243   :  { %7248 = vmatpush3.bf16.msra.mxu0 %v8480_v35  ;;  %7270 = vmatpush3.bf16.msra.mxu1 %v8482_v36  ;;  %v8533_v35 = vld [vmem:[%s11245_s1 + $0x998] ss:$20 sps:$4 sm:$0xff]  }
 0x244   :  { %7249 = vmatprep.subr.bf16.mxu0 %v8483_v37  ;;  %7271 = vmatprep.subr.bf16.mxu1 %v8485_v49  ;;  %v8532_v36 = vld [vmem:[%s11245_s1 + $0x5d8] ss:$20 sps:$4 sm:$0xff]   ;;  %v8535_v49 = vld [vmem:[%s11245_s1 + $0x740] ss:$20 sps:$4 sm:$0xff]  }
 0x245   :  { %5577 = vmatprep.mubr.bf16.mxu0 %v8905_v60  ;;  %5617 = vmatprep.mubr.bf16.mxu1 %v8971_v17  ;;  %v8493_v60 = vld [vmem:[%s11245_s1 + $0x448] ss:$20 sps:$4 sm:$0xff]   ;;  %v8534_v37 = vld [vmem:[%s11245_s1 + $0x858] ss:$20 sps:$4 sm:$0xff]  }
 0x246   :  { %v8492_v17 = vld [vmem:[%s11245_s1 + $0x88] ss:$20 sps:$4 sm:$0xff]  }
 0x247   :  { %7250 = vmatpush3.bf16.msra.mxu0 %v8484_v59  ;;  %7272 = vmatpush3.bf16.msra.mxu1 %v8486_v38  ;;  %v8537_v59 = vld [vmem:[%s11245_s1 + $0x9c0] ss:$20 sps:$4 sm:$0xff]  }
 0x248   :  { %7251 = vmatprep.subr.bf16.mxu0 %v8487_v39  ;;  %7273 = vmatprep.subr.bf16.mxu1 %v8489_v40  ;;  %v8536_v38 = vld [vmem:[%s11245_s1 + $0x600] ss:$20 sps:$4 sm:$0xff]   ;;  %v8539_v40 = vld [vmem:[%s11245_s1 + $0x768] ss:$20 sps:$4 sm:$0xff]  }
 0x249   :  { %v8538_v39 = vld [vmem:[%s11245_s1 + $0x880] ss:$20 sps:$4 sm:$0xff]  }
 0x24b   :  { %7252 = vmatpush3.bf16.msra.mxu0 %v8488_v41  ;;  %7274 = vmatpush3.bf16.msra.mxu1 %v8490_v44  ;;  %v8541_v41 = vld [vmem:[%s11245_s1 + $0x9e8] ss:$20 sps:$4 sm:$0xff]  }
 0x24c   :  { %7253 = vmatprep.subr.bf16.mxu0 %v8491_v46  ;;  %7275 = vmatprep.subr.bf16.mxu1 %v8493_v60  ;;  %v8540_v44 = vld [vmem:[%s11245_s1 + $0x628] ss:$20 sps:$4 sm:$0xff]   ;;  %v8543_v60 = vld [vmem:[%s11245_s1 + $0xb50] ss:$20 sps:$4 sm:$0xff]  }
 0x24d   :  { %v8542_v46 = vld [vmem:[%s11245_s1 + $0x8a8] ss:$20 sps:$4 sm:$0xff]  }
 0x24f   :  { %7254 = vmatpush3.bf16.msra.mxu0 %v8492_v17  ;;  %7276 = vmatpush3.bf16.msra.mxu1 %v8494_v10  ;;  %v8545_v17 = vld [vmem:[%s11245_s1 + $0xdd0] ss:$20 sps:$4 sm:$0xff]  }
 0x250   :  { %7255 = vmatprep.subr.bf16.mxu0 %v8495_v48  ;;  %7277 = vmatprep.subr.bf16.mxu1 %v8497_v50  ;;  %v8544_v10 = vld [vmem:[%s11245_s1 + $0xa10] ss:$20 sps:$4 sm:$0xff]   ;;  %v8547_v50 = vld [vmem:[%s11245_s1 + $0xb78] ss:$20 sps:$4 sm:$0xff]  }
 0x251   :  { %v8546_v48 = vld [vmem:[%s11245_s1 + $0xc90] ss:$20 sps:$4 sm:$0xff]  }
 0x253   :  { %7256 = vmatpush3.bf16.msra.mxu0 %v8496_v53  ;;  %7278 = vmatpush3.bf16.msra.mxu1 %v8498_v54  ;;  %v8549_v53 = vld [vmem:[%s11245_s1 + $0xdf8] ss:$20 sps:$4 sm:$0xff]  }
 0x254   :  { %7257 = vmatprep.subr.bf16.mxu0 %v8499_v55  ;;  %7279 = vmatprep.subr.bf16.mxu1 %v8501_v56  ;;  %v8548_v54 = vld [vmem:[%s11245_s1 + $0xa38] ss:$20 sps:$4 sm:$0xff]   ;;  %v8551_v56 = vld [vmem:[%s11245_s1 + $0xba0] ss:$20 sps:$4 sm:$0xff]  }
 0x255   :  { %v8550_v55 = vld [vmem:[%s11245_s1 + $0xcb8] ss:$20 sps:$4 sm:$0xff]  }
 0x257   :  { %7258 = vmatpush3.bf16.msra.mxu0 %v8500_v57  ;;  %7280 = vmatpush3.bf16.msra.mxu1 %v8502_v58  ;;  %v8554_v57 = vld [vmem:[%s11245_s1 + $0xce0] ss:$20 sps:$4 sm:$0xff]   ;;  %v8555_v58 = vld [vmem:[%s11245_s1 + $0xbc8] ss:$20 sps:$4 sm:$0xff]  }
 0x258   :  { %7259 = vmatprep.subr.bf16.mxu0 %v8503_v61  ;;  %7281 = vmatprep.subr.bf16.mxu1 %v8505_v63  ;;  %v8558_v61 = vld [vmem:[%s11245_s1 + $0xd08] ss:$20 sps:$4 sm:$0xff]   ;;  %v8559_v63 = vld [vmem:[%s11245_s1 + $0xbf0] ss:$20 sps:$4 sm:$0xff]  }
 0x25b   :  { %7260 = vmatpush3.bf16.msra.mxu0 %v8504_v0  ;;  %7282 = vmatpush3.bf16.msra.mxu1 %v8506_v1  ;;  %v8561_v0 = vld [vmem:[%s11245_s1 + $0xe70] ss:$20 sps:$4 sm:$0xff]  }
 0x25c   :  { %7261 = vmatprep.subr.bf16.mxu0 %v8507_v34  ;;  %7283 = vmatprep.subr.bf16.mxu1 %v8509_v3  ;;  %v8560_v1 = vld [vmem:[%s11245_s1 + $0xab0] ss:$20 sps:$4 sm:$0xff]   ;;  %v8563_v3 = vld [vmem:[%s11245_s1 + $0xc18] ss:$20 sps:$4 sm:$0xff]  }
 0x25d   :  { %v8562_v34 = vld [vmem:[%s11245_s1 + $0xd30] ss:$20 sps:$4 sm:$0xff]  }
 0x25f   :  { %7262 = vmatpush3.bf16.msra.mxu0 %v8508_v4  ;;  %7284 = vmatpush3.bf16.msra.mxu1 %v8510_v6  ;;  %v8565_v4 = vld [vmem:[%s11245_s1 + $0xe98] ss:$20 sps:$4 sm:$0xff]  }
 0x260   :  { %7291 = vmatprep.subr.bf16.mxu0 %v8511_v7  ;;  %7313 = vmatprep.subr.bf16.mxu1 %v8513_v9  ;;  %v8564_v6 = vld [vmem:[%s11245_s1 + $0xad8] ss:$20 sps:$4 sm:$0xff]   ;;  %v8567_v9 = vld [vmem:[%s11245_s1 + $0xc40] ss:$20 sps:$4 sm:$0xff]  }
 0x261   :  { %v8566_v7 = vld [vmem:[%s11245_s1 + $0xd58] ss:$20 sps:$4 sm:$0xff]  }
 0x262   :  { %5578 = vmatmul.mubr.bf16.vlgmr.msra.gmra.mrb[4].mxu0 %v8958_v13  ;;  %5618 = vmatmul.mubr.bf16.vlgmr.msra.gmra.mrb[4].mxu1 %v9169_v23  ;;  %v8521_v13 = vld [vmem:[%s11245_s1 + $0x920] ss:$20 sps:$4 sm:$0xff]  }
 0x263   :  { %7292 = vmatpush3.bf16.msra.mxu0 %v8512_v11  ;;  %7314 = vmatpush3.bf16.msra.mxu1 %v8514_v12  ;;  %v8520_v23 = vld [vmem:[%s11245_s1 + $0x560] ss:$20 sps:$4 sm:$0xff]  }
 0x264   :  { %7293 = vmatprep.subr.bf16.mxu0 %v8515_v14  ;;  %7315 = vmatprep.subr.bf16.mxu1 %v8517_v52  ;;  %v8569_v11 = vld [vmem:[%s11245_s1 + $0xec0] ss:$20 sps:$4 sm:$0xff]   ;;  %v8571_v52 = vld [vmem:[%s11245_s1 + $0xc68] ss:$20 sps:$4 sm:$0xff]  }
 0x265   :  { %5657 = vmatprep.mubr.bf16.mxu0 %v9181_v27  ;;  %5697 = vmatprep.mubr.bf16.mxu1 %v9385_v15  ;;  %v8525_v27 = vld [vmem:[%s11245_s1 + $0x948] ss:$20 sps:$4 sm:$0xff]   ;;  %v8568_v12 = vld [vmem:[%s11245_s1 + $0xb00] ss:$20 sps:$4 sm:$0xff]  }
 0x266   :  { %v8524_v15 = vld [vmem:[%s11245_s1 + $0x588] ss:$20 sps:$4 sm:$0xff]   ;;  %v8570_v14 = vld [vmem:[%s11245_s1 + $0xd80] ss:$20 sps:$4 sm:$0xff]  }
 0x267   :  { %7294 = vmatpush3.bf16.msra.mxu0 %v8516_v16  ;;  %7316 = vmatpush3.bf16.msra.mxu1 %v8518_v19  ;;  %v8573_v16 = vld [vmem:[%s11245_s1 + $0xee8] ss:$20 sps:$4 sm:$0xff]  }
 0x268   :  { %7295 = vmatprep.subr.bf16.mxu0 %v8519_v20  ;;  %7317 = vmatprep.subr.bf16.mxu1 %v8521_v13  ;;  %v8572_v19 = vld [vmem:[%s11245_s1 + $0xb28] ss:$20 sps:$4 sm:$0xff]   ;;  %v8575_v13 = vld [vmem:[%s11245_s1 + $0x1050] ss:$20 sps:$4 sm:$0xff]  }
 0x269   :  { %v8574_v20 = vld [vmem:[%s11245_s1 + $0xda8] ss:$20 sps:$4 sm:$0xff]  }
 0x26b   :  { %7296 = vmatpush3.bf16.msra.mxu0 %v8520_v23  ;;  %7318 = vmatpush3.bf16.msra.mxu1 %v8522_v21  ;;  %v8577_v23 = vld [vmem:[%s11245_s1 + $0x12d0] ss:$20 sps:$4 sm:$0xff]  }
 0x26c   :  { %7297 = vmatprep.subr.bf16.mxu0 %v8523_v22  ;;  %7319 = vmatprep.subr.bf16.mxu1 %v8525_v27  ;;  %v8576_v21 = vld [vmem:[%s11245_s1 + $0xf10] ss:$20 sps:$4 sm:$0xff]   ;;  %v8579_v27 = vld [vmem:[%s11245_s1 + $0x1078] ss:$20 sps:$4 sm:$0xff]  }
 0x26d   :  { %v8578_v22 = vld [vmem:[%s11245_s1 + $0x1190] ss:$20 sps:$4 sm:$0xff]  }
 0x26f   :  { %7298 = vmatpush3.bf16.msra.mxu0 %v8524_v15  ;;  %7320 = vmatpush3.bf16.msra.mxu1 %v8526_v25  ;;  %v8581_v15 = vld [vmem:[%s11245_s1 + $0x12f8] ss:$20 sps:$4 sm:$0xff]  }
 0x270   :  { %7299 = vmatprep.subr.bf16.mxu0 %v8527_v26  ;;  %7321 = vmatprep.subr.bf16.mxu1 %v8529_v28  ;;  %v8580_v25 = vld [vmem:[%s11245_s1 + $0xf38] ss:$20 sps:$4 sm:$0xff]   ;;  %v8583_v28 = vld [vmem:[%s11245_s1 + $0x10a0] ss:$20 sps:$4 sm:$0xff]  }
 0x271   :  { %v8582_v26 = vld [vmem:[%s11245_s1 + $0x11b8] ss:$20 sps:$4 sm:$0xff]  }
 0x273   :  { %7300 = vmatpush3.bf16.msra.mxu0 %v8528_v29  ;;  %7322 = vmatpush3.bf16.msra.mxu1 %v8530_v30  ;;  %v8586_v29 = vld [vmem:[%s11245_s1 + $0x11e0] ss:$20 sps:$4 sm:$0xff]   ;;  %v8587_v30 = vld [vmem:[%s11245_s1 + $0x10c8] ss:$20 sps:$4 sm:$0xff]  }
 0x274   :  { %7301 = vmatprep.subr.bf16.mxu0 %v8531_v31  ;;  %7323 = vmatprep.subr.bf16.mxu1 %v8533_v35  ;;  %v8590_v31 = vld [vmem:[%s11245_s1 + $0x1208] ss:$20 sps:$4 sm:$0xff]   ;;  %v8591_v35 = vld [vmem:[%s11245_s1 + $0x10f0] ss:$20 sps:$4 sm:$0xff]  }
 0x277   :  { %7302 = vmatpush3.bf16.msra.mxu0 %v8532_v36  ;;  %7324 = vmatpush3.bf16.msra.mxu1 %v8534_v37  ;;  %v8593_v36 = vld [vmem:[%s11245_s1 + $0x1370] ss:$20 sps:$4 sm:$0xff]  }
 0x278   :  { %7303 = vmatprep.subr.bf16.mxu0 %v8535_v49  ;;  %7325 = vmatprep.subr.bf16.mxu1 %v8537_v59  ;;  %v8592_v37 = vld [vmem:[%s11245_s1 + $0xfb0] ss:$20 sps:$4 sm:$0xff]   ;;  %v8595_v59 = vld [vmem:[%s11245_s1 + $0x1118] ss:$20 sps:$4 sm:$0xff]  }
 0x279   :  { %v8594_v49 = vld [vmem:[%s11245_s1 + $0x1230] ss:$20 sps:$4 sm:$0xff]  }
 0x27b   :  { %7304 = vmatpush3.bf16.msra.mxu0 %v8536_v38  ;;  %7326 = vmatpush3.bf16.msra.mxu1 %v8538_v39  ;;  %v8597_v38 = vld [vmem:[%s11245_s1 + $0x1398] ss:$20 sps:$4 sm:$0xff]  }
 0x27c   :  { %7305 = vmatprep.subr.bf16.mxu0 %v8539_v40  ;;  %7327 = vmatprep.subr.bf16.mxu1 %v8541_v41  ;;  %v8596_v39 = vld [vmem:[%s11245_s1 + $0xfd8] ss:$20 sps:$4 sm:$0xff]   ;;  %v8599_v41 = vld [vmem:[%s11245_s1 + $0x1140] ss:$20 sps:$4 sm:$0xff]  }
 0x27d   :  { %v8598_v40 = vld [vmem:[%s11245_s1 + $0x1258] ss:$20 sps:$4 sm:$0xff]  }
 0x27f   :  { %7306 = vmatpush3.bf16.msra.mxu0 %v8540_v44  ;;  %7328 = vmatpush3.bf16.msra.mxu1 %v8542_v46  ;;  %v8601_v44 = vld [vmem:[%s11245_s1 + $0x13c0] ss:$20 sps:$4 sm:$0xff]  }
 0x280   :  { %7335 = vmatprep.subr.bf16.mxu0 %v8543_v60  ;;  %7357 = vmatprep.subr.bf16.mxu1 %v8545_v17  ;;  %v8600_v46 = vld [vmem:[%s11245_s1 + $0x1000] ss:$20 sps:$4 sm:$0xff]   ;;  %v8603_v17 = vld [vmem:[%s11245_s1 + $0x1168] ss:$20 sps:$4 sm:$0xff]  }
 0x281   :  { %v8602_v60 = vld [vmem:[%s11245_s1 + $0x1280] ss:$20 sps:$4 sm:$0xff]  }
 0x282   :  { %5658 = vmatmul.mubr.bf16.vlgmr.msra.gmra.mrb[8].mxu0 %v9372_v33  ;;  %5698 = vmatmul.mubr.bf16.vlgmr.msra.gmra.mrb[8].mxu1 %v9580_v45  ;;  %v8553_v33 = vld [vmem:[%s11245_s1 + $0xe20] ss:$20 sps:$4 sm:$0xff]  }
 0x283   :  { %7336 = vmatpush3.bf16.msra.mxu0 %v8544_v10  ;;  %7358 = vmatpush3.bf16.msra.mxu1 %v8546_v48  ;;  %v8552_v45 = vld [vmem:[%s11245_s1 + $0xa60] ss:$20 sps:$4 sm:$0xff]   ;;  %v8605_v10 = vld [vmem:[%s11245_s1 + $0x13e8] ss:$20 sps:$4 sm:$0xff]  }
 0x284   :  { %7337 = vmatprep.subr.bf16.mxu0 %v8547_v50  ;;  %7359 = vmatprep.subr.bf16.mxu1 %v8549_v53  ;;  %v8604_v48 = vld [vmem:[%s11245_s1 + $0x1028] ss:$20 sps:$4 sm:$0xff]   ;;  %v8607_v53 = vld [vmem:[%s11245_s1 + $0x1550] ss:$20 sps:$4 sm:$0xff]  }
 0x285   :  { %5737 = vmatprep.mubr.bf16.mxu0 %v9595_v51  ;;  %5777 = vmatprep.mubr.bf16.mxu1 %v9799_v2  ;;  %v8557_v51 = vld [vmem:[%s11245_s1 + $0xe48] ss:$20 sps:$4 sm:$0xff]  }
 0x286   :  { %v8556_v2 = vld [vmem:[%s11245_s1 + $0xa88] ss:$20 sps:$4 sm:$0xff]  }
 0x287   :  { %7338 = vmatpush3.bf16.msra.mxu0 %v8548_v54  ;;  %7360 = vmatpush3.bf16.msra.mxu1 %v8550_v55  ;;  %v8606_v50 = vld [vmem:[%s11245_s1 + $0x12a8] ss:$20 sps:$4 sm:$0xff]   ;;  %v8623_v54 = vld [vmem:[%s11247_s3 + $0x40] sm:$0xff]  }
 0x288   :  { %7339 = vmatprep.subr.bf16.mxu0 %v8551_v56  ;;  %7361 = vmatprep.subr.bf16.mxu1 %v8553_v33  ;;  %v8608_v55 = vld [vmem:[%s11245_s1 + $0x1410] ss:$20 sps:$4 sm:$0xff]   ;;  %v8609_v56 = vld [vmem:[%s11245_s1 + $0x1578] ss:$20 sps:$4 sm:$0xff]  }
 0x289   :  { %v8625_v33 = vld [vmem:[%s11247_s3] sm:$0xff]  }
 0x28b   :  { %7340 = vmatpush3.bf16.msra.mxu0 %v8552_v45  ;;  %7362 = vmatpush3.bf16.msra.mxu1 %v8554_v57  ;;  %v8627_v45 = vld [vmem:[%s11247_s3 + $0x48] sm:$0xff]  }
 0x28c   :  { %7341 = vmatprep.subr.bf16.mxu0 %v8555_v58  ;;  %7363 = vmatprep.subr.bf16.mxu1 %v8557_v51  ;;  %v8610_v57 = vld [vmem:[%s11245_s1 + $0x1438] ss:$20 sps:$4 sm:$0xff]   ;;  %v8611_v58 = vld [vmem:[%s11245_s1 + $0x15a0] ss:$20 sps:$4 sm:$0xff]  }
 0x28d   :  { %v8629_v51 = vld [vmem:[%s11247_s3 + $0x8] sm:$0xff]  }
 0x28f   :  { %7342 = vmatpush3.bf16.msra.mxu0 %v8556_v2  ;;  %7364 = vmatpush3.bf16.msra.mxu1 %v8558_v61  ;;  %v8633_v2 = vld [vmem:[%s11247_s3 + $0x10] sm:$0xff]   ;;  %v8635_v61 = vld [vmem:[%s11247_s3 + $0x58] sm:$0xff]  }
 0x290   :  { %7343 = vmatprep.subr.bf16.mxu0 %v8559_v63  ;;  %7365 = vmatprep.subr.bf16.mxu1 %v8561_v0  ;;  %v8614_v63 = vld [vmem:[%s11245_s1 + $0x1488] ss:$20 sps:$4 sm:$0xff]   ;;  %v8615_v0 = vld [vmem:[%s11245_s1 + $0x15f0] ss:$20 sps:$4 sm:$0xff]  }
 0x293   :  { %7344 = vmatpush3.bf16.msra.mxu0 %v8560_v1  ;;  %7366 = vmatpush3.bf16.msra.mxu1 %v8562_v34  ;;  %v8637_v1 = vld [vmem:[%s11247_s3 + $0x18] sm:$0xff]   ;;  %v8639_v34 = vld [vmem:[%s11247_s3 + $0x60] sm:$0xff]  }
 0x294   :  { %7345 = vmatprep.subr.bf16.mxu0 %v8563_v3  ;;  %7367 = vmatprep.subr.bf16.mxu1 %v8565_v4  ;;  %v8616_v3 = vld [vmem:[%s11245_s1 + $0x14b0] ss:$20 sps:$4 sm:$0xff]   ;;  %v8617_v4 = vld [vmem:[%s11245_s1 + $0x1618] ss:$20 sps:$4 sm:$0xff]  }
 0x297   :  { %7346 = vmatpush3.bf16.msra.mxu0 %v8564_v6  ;;  %7368 = vmatpush3.bf16.msra.mxu1 %v8566_v7  ;;  %v8641_v6 = vld [vmem:[%s11247_s3 + $0x20] sm:$0xff]   ;;  %v8643_v7 = vld [vmem:[%s11247_s3 + $0x68] sm:$0xff]  }
 0x298   :  { %7347 = vmatprep.subr.bf16.mxu0 %v8567_v9  ;;  %7369 = vmatprep.subr.bf16.mxu1 %v8569_v11  ;;  %v8618_v9 = vld [vmem:[%s11245_s1 + $0x14d8] ss:$20 sps:$4 sm:$0xff]   ;;  %v8619_v11 = vld [vmem:[%s11245_s1 + $0x1640] ss:$20 sps:$4 sm:$0xff]  }
 0x29b   :  { %7348 = vmatpush3.bf16.msra.mxu0 %v8568_v12  ;;  %7370 = vmatpush3.bf16.msra.mxu1 %v8570_v14  ;;  %v8645_v12 = vld [vmem:[%s11247_s3 + $0x28] sm:$0xff]   ;;  %v8647_v14 = vld [vmem:[%s11247_s3 + $0x70] sm:$0xff]  }
 0x29c   :  { %7349 = vmatprep.subr.bf16.mxu0 %v8571_v52  ;;  %7371 = vmatprep.subr.bf16.mxu1 %v8573_v16  ;;  %v8620_v52 = vld [vmem:[%s11245_s1 + $0x1500] ss:$20 sps:$4 sm:$0xff]   ;;  %v8621_v16 = vld [vmem:[%s11245_s1 + $0x1668] ss:$20 sps:$4 sm:$0xff]  }
 0x29f   :  { %7350 = vmatpush3.bf16.msra.mxu0 %v8572_v19  ;;  %7372 = vmatpush3.bf16.msra.mxu1 %v8574_v20  ;;  %v8649_v19 = vld [vmem:[%s11247_s3 + $0x30] sm:$0xff]   ;;  %v8651_v20 = vld [vmem:[%s11247_s3 + $0x78] sm:$0xff]  }
 0x2a0   :  { %7379 = vmatprep.subr.bf16.mxu0 %v8575_v13  ;;  %7401 = vmatprep.subr.bf16.mxu1 %v8577_v23  ;;  %v8622_v13 = vld [vmem:[%s11245_s1 + $0x1528] ss:$20 sps:$4 sm:$0xff]   ;;  %v8624_v23 = vld [vmem:[%s11247_s3 + $0xc0] sm:$0xff]  }
 0x2a2   :  { %5738 = vmatmul.mubr.bf16.vlgmr.msra.gmra.mrb[12].mxu0 %v9783_v62  ;;  %5778 = vmatmul.mubr.bf16.vlgmr.msra.gmra.mrb[12].mxu1 %v9995_v18  ;;  %v8585_v62 = vld [vmem:[%s11245_s1 + $0x1320] ss:$20 sps:$4 sm:$0xff]  }
 0x2a3   :  { %7380 = vmatpush3.bf16.msra.mxu0 %v8576_v21  ;;  %7402 = vmatpush3.bf16.msra.mxu1 %v8578_v22  ;;  %v8584_v18 = vld [vmem:[%s11245_s1 + $0xf60] ss:$20 sps:$4 sm:$0xff]   ;;  %v8653_v21 = vld [vmem:[%s11247_s3 + $0x38] sm:$0xff]  }
 0x2a4   :  { %7381 = vmatprep.subr.bf16.mxu0 %v8579_v27  ;;  %7403 = vmatprep.subr.bf16.mxu1 %v8581_v15  ;;  %v8626_v22 = vld [vmem:[%s11247_s3 + $0x80] sm:$0xff]   ;;  %v8628_v27 = vld [vmem:[%s11247_s3 + $0xc8] sm:$0xff]  }
 0x2a5   :  { %5817 = vmatprep.mubr.bf16.mxu0 %v10010_v24  ;;  %5857 = vmatprep.mubr.bf16.mxu1 %v10214_v47  ;;  %v8589_v24 = vld [vmem:[%s11245_s1 + $0x1348] ss:$20 sps:$4 sm:$0xff]  }
 0x2a6   :  { %v8588_v47 = vld [vmem:[%s11245_s1 + $0xf88] ss:$20 sps:$4 sm:$0xff]  }
 0x2a7   :  { %7382 = vmatpush3.bf16.msra.mxu0 %v8580_v25  ;;  %7404 = vmatpush3.bf16.msra.mxu1 %v8582_v26  ;;  %v8630_v15 = vld [vmem:[%s11247_s3 + $0x88] sm:$0xff]   ;;  %v8632_v25 = vld [vmem:[%s11247_s3 + $0xd0] sm:$0xff]  }
 0x2a8   :  { %7383 = vmatprep.subr.bf16.mxu0 %v8583_v28  ;;  %7405 = vmatprep.subr.bf16.mxu1 %v8585_v62  ;;  %v8634_v26 = vld [vmem:[%s11247_s3 + $0x90] sm:$0xff]   ;;  %v8638_v28 = vld [vmem:[%s11247_s3 + $0x98] sm:$0xff]   ;;  %v8640_v62 = vld [vmem:[%s11247_s3 + $0xe0] sm:$0xff]  }
 0x2ab   :  { %7384 = vmatpush3.bf16.msra.mxu0 %v8584_v18  ;;  %7406 = vmatpush3.bf16.msra.mxu1 %v8586_v29  ;;  %v8642_v18 = vld [vmem:[%s11247_s3 + $0xa0] sm:$0xff]   ;;  %v8644_v29 = vld [vmem:[%s11247_s3 + $0xe8] sm:$0xff]  }
 0x2ac   :  { %7385 = vmatprep.subr.bf16.mxu0 %v8587_v30  ;;  %7407 = vmatprep.subr.bf16.mxu1 %v8589_v24  ;;  %v8646_v30 = vld [vmem:[%s11247_s3 + $0xa8] sm:$0xff]   ;;  %v8648_v24 = vld [vmem:[%s11247_s3 + $0xf0] sm:$0xff]  }
 0x2af   :  { %7386 = vmatpush3.bf16.msra.mxu0 %v8588_v47  ;;  %7408 = vmatpush3.bf16.msra.mxu1 %v8590_v31  ;;  %v8650_v47 = vld [vmem:[%s11247_s3 + $0xb0] sm:$0xff]   ;;  %v8652_v31 = vld [vmem:[%s11247_s3 + $0xf8] sm:$0xff]  }
 0x2b0   :  { %7387 = vmatprep.subr.bf16.mxu0 %v8591_v35  ;;  %7409 = vmatprep.subr.bf16.mxu1 %v8593_v36  ;;  %v8654_v35 = vld [vmem:[%s11247_s3 + $0xb8] sm:$0xff]   ;;  %v899_v36 = vsub.s32 0, %v8856_v42 }
 0x2b3   :  { %7388 = vmatpush3.bf16.msra.mxu0 %v8592_v37  ;;  %7410 = vmatpush3.bf16.msra.mxu1 %v8594_v49  ;;  %v907_v37 = vsub.s32 2, %v8856_v42  ;;  %v895_v49 = vld [vmem:[%s11246_s2] sm:$0x1f] }
 0x2b4   :  { %7389 = vmatprep.subr.bf16.mxu0 %v8595_v59  ;;  %7411 = vmatprep.subr.bf16.mxu1 %v8597_v38  ;;  %v903_v59 = vsub.s32 1, %v8856_v42  ;;  %v911_v38 = vsub.s32 3, %v8856_v42 }
 0x2b7   :  { %7390 = vmatpush3.bf16.msra.mxu0 %v8596_v39  ;;  %7412 = vmatpush3.bf16.msra.mxu1 %v8598_v40  ;;  %v900_v39 = vrot.slane %v895_v49, %v899_v36  ;;  %v908_v40 = vrot.slane %v895_v49, %v907_v37 }
 0x2b8   :  { %7391 = vmatprep.subr.bf16.mxu0 %v8599_v41  ;;  %7413 = vmatprep.subr.bf16.mxu1 %v8601_v44  ;;  %v904_v41 = vrot.slane %v895_v49, %v903_v59  ;;  %v912_v44 = vrot.slane %v895_v49, %v911_v38 }
 0x2bb   :  { %7392 = vmatpush3.bf16.msra.mxu0 %v8600_v46  ;;  %7414 = vmatpush3.bf16.msra.mxu1 %v8602_v60 }
 0x2bc   :  { %7393 = vmatprep.subr.bf16.mxu0 %v8603_v17  ;;  %7415 = vmatprep.subr.bf16.mxu1 %v8605_v10 }
 0x2bf   :  { %7394 = vmatpush3.bf16.msra.mxu0 %v8604_v48  ;;  %7416 = vmatpush3.bf16.msra.mxu1 %v8606_v50 }
 0x2c0   :  { %7423 = vmatprep.subr.bf16.mxu0 %v8607_v53  ;;  %7445 = vmatprep.subr.bf16.mxu1 %v8623_v54 }
 0x2c2   :  { %5818 = vmatmul.mubr.bf16.vlgmr.msra.gmra.mrb[16].mxu0 %v10204_v43  ;;  %5858 = vmatmul.mubr.bf16.vlgmr.msra.gmra.mrb[16].mxu1 %v10415_v5  ;;  %v8631_v43 = vld [vmem:[%s11247_s3 + $0x50] sm:$0xff]  }
 0x2c3   :  { %7424 = vmatpush3.bf16.msra.mxu0 %v8608_v55  ;;  %5897 = vmatprep.mubr.bf16.mxu0 %v10424_v8  ;;  %v8612_v5 = vld [vmem:[%s11245_s1 + $0x1460] ss:$20 sps:$4 sm:$0xff]   ;;  %v8613_v8 = vld [vmem:[%s11245_s1 + $0x15c8] ss:$20 sps:$4 sm:$0xff]  }
 0x2c4   :  { %7425 = vmatprep.subr.bf16.mxu0 %v8609_v56  ;;  %7446 = vmatpush3.bf16.msra.mxu1 %v8625_v33 }
 0x2c5   :  { %7447 = vmatprep.subr.bf16.mxu1 %v8627_v45 }
 0x2c7   :  { %7426 = vmatpush3.bf16.msra.mxu0 %v8610_v57 }
 0x2c8   :  { %7427 = vmatprep.subr.bf16.mxu0 %v8611_v58  ;;  %7448 = vmatpush3.bf16.msra.mxu1 %v8629_v51 }
 0x2c9   :  { %7449 = vmatprep.subr.bf16.mxu1 %v8631_v43 }
 0x2cb   :  { %7428 = vmatpush3.bf16.msra.mxu0 %v8612_v5  ;;  %v8655_v5 = vld [vmem:[%s11247_s3 + $0x100] sm:$0xff]  }
 0x2cc   :  { %7429 = vmatprep.subr.bf16.mxu0 %v8613_v8  ;;  %7450 = vmatpush3.bf16.msra.mxu1 %v8633_v2  ;;  %v8696_v8 = vmov 0.0   ;;  %v8656_v2 = vld [vmem:[%s11247_s3 + $0x108] sm:$0xff]  }
 0x2cd   :  { %7451 = vmatprep.subr.bf16.mxu1 %v8635_v61  ;;  %v8657_v61 = vld [vmem:[%s11247_s3 + $0x110] sm:$0xff]  }
 0x2cf   :  { %7430 = vmatpush3.bf16.msra.mxu0 %v8614_v63  ;;  %v8658_v63 = vld [vmem:[%s11247_s3 + $0x118] sm:$0xff]  }
 0x2d0   :  { %7431 = vmatprep.subr.bf16.mxu0 %v8615_v0  ;;  %7452 = vmatpush3.bf16.msra.mxu1 %v8637_v1  ;;  %v915_v0 = vsub.s32 4, %v8856_v42  ;;  %v8659_v1 = vld [vmem:[%s11247_s3 + $0x120] sm:$0xff]   ;;  %v8660_v42 = vld [vmem:[%s11247_s3 + $0x128] ss:$0 sps:$4 sm:$0xff]  }
 0x2d1   :  { %7453 = vmatprep.subr.bf16.mxu1 %v8639_v34 }
 0x2d3   :  { %7432 = vmatpush3.bf16.msra.mxu0 %v8616_v3  ;;  %v916_v3 = vrot.slane %v895_v49, %v915_v0  ;;  %v8664_v0 = vld [vmem:[%s11249_s5 + $0x18] sm:$0xff]  }
 0x2d4   :  { %7433 = vmatprep.subr.bf16.mxu0 %v8617_v4  ;;  %7454 = vmatpush3.bf16.msra.mxu1 %v8641_v6 }
 0x2d5   :  { %7455 = vmatprep.subr.bf16.mxu1 %v8643_v7 }
 0x2d7   :  { %7434 = vmatpush3.bf16.msra.mxu0 %v8618_v9 }
 0x2d8   :  { %7435 = vmatprep.subr.bf16.mxu0 %v8619_v11  ;;  %7456 = vmatpush3.bf16.msra.mxu1 %v8645_v12 }
 0x2d9   :  { %7457 = vmatprep.subr.bf16.mxu1 %v8647_v14 }
 0x2db   :  { %7436 = vmatpush3.bf16.msra.mxu0 %v8620_v52 }
 0x2dc   :  { %7437 = vmatprep.subr.bf16.mxu0 %v8621_v16  ;;  %7458 = vmatpush3.bf16.msra.mxu1 %v8649_v19 }
 0x2dd   :  { %7459 = vmatprep.subr.bf16.mxu1 %v8651_v20  ;;  %v6223_v20 = vsel %vm6221_vm0, %v8660_v42, 0 }
 0x2df   :  { %7438 = vmatpush3.bf16.msra.mxu0 %v8622_v13 }
 0x2e0   :  { %7467 = vmatprep.subr.bf16.mxu0 %v8624_v23  ;;  %7460 = vmatpush3.bf16.msra.mxu1 %v8653_v21 }
 0x2e1   :  { %7505 = vmatprep.subr.bf16.mxu1 %v8696_v8 }
 0x2e2   :  { %5898 = vmatmul.mubr.bf16.vlgmr.msra.gmra.mrb[20].mxu0 %v10612_v32  ;;  %v8636_v32 = vld [vmem:[%s11247_s3 + $0xd8] sm:$0xff]  }
 0x2e3   :  { %7468 = vmatpush3.bf16.msra.mxu0 %v8626_v22 }
 0x2e4   :  { %7469 = vmatprep.subr.bf16.mxu0 %v8628_v27 }
 0x2e7   :  { %7470 = vmatpush3.bf16.msra.mxu0 %v8630_v15 }
 0x2e8   :  { %7471 = vmatprep.subr.bf16.mxu0 %v8632_v25 }
 0x2eb   :  { %7472 = vmatpush3.bf16.msra.mxu0 %v8634_v26 }
 0x2ec   :  { %7473 = vmatprep.subr.bf16.mxu0 %v8636_v32 }
 0x2ef   :  { %7474 = vmatpush3.bf16.msra.mxu0 %v8638_v28 }
 0x2f0   :  { %7475 = vmatprep.subr.bf16.mxu0 %v8640_v62 }
 0x2f3   :  { %7476 = vmatpush3.bf16.msra.mxu0 %v8642_v18 }
 0x2f4   :  { %7477 = vmatprep.subr.bf16.mxu0 %v8644_v29 }
 0x2f7   :  { %7478 = vmatpush3.bf16.msra.mxu0 %v8646_v30 }
 0x2f8   :  { %7479 = vmatprep.subr.bf16.mxu0 %v8648_v24 }
 0x2fb   :  { %7480 = vmatpush3.bf16.msra.mxu0 %v8650_v47 }
 0x2fc   :  { %7481 = vmatprep.subr.bf16.mxu0 %v8652_v31 }
 0x2ff   :  { %7482 = vmatpush3.bf16.msra.mxu0 %v8654_v35 }
 0x315   :  { %v5169_v46 = vpop.f32.mrb[0].mxu0  ;;  %v5538_v60 = vpop.f32.mrb[0].mxu1 }
 0x316   :  { %v7541_v17 = vadd.f32 %v5169_v46, %v900_v39  ;;  %v7543_v10 = vadd.f32 %v5538_v60, %v908_v40  ;;  %v5171_v48 = vpop.f32.mrb[1].mxu0  ;;  %v5540_v50 = vpop.f32.mrb[1].mxu1 }
 0x317   :  { %v7542_v53 = vadd.f32 %v5171_v48, %v904_v41  ;;  %v7544_v54 = vadd.f32 %v5540_v50, %v912_v44  ;;  %v5173_v55 = vpop.f32.mrb[2].mxu0  ;;  %v5542_v56 = vpop.f32.mrb[2].mxu1 }
 0x318   :  { %v5174_v33 = vpop.f32.mrb[3].mxu0  ;;  %v5543_v45 = vpop.f32.mrb[3].mxu1  ;;  %v5905_v51 = vpack.c.bf16 %v7541_v17, %v7541_v17  ;;  %v5907_v43 = vpack.c.bf16 %v7543_v10, %v7543_v10 }
 0x319   :  { %v5906_v57 = vpack.c.bf16 %v7542_v53, %v7542_v53  ;;  %v5908_v58 = vpack.c.bf16 %v7544_v54, %v7544_v54 }
 0x31b   :  { %6257 = vmatprep.mubr.bf16.mxu1 %v5906_v57  ;;  %6297 = vmatprep.mubr.bf16.mxu0 %v5908_v58 }
 0x31c   :  { %6258 = vmatmul.mubr.bf16.vlgmr.msra.gmra.mrb[20].mxu1 %v5905_v51  ;;  %6298 = vmatmul.mubr.bf16.vlgmr.msra.gmra.mrb[24].mxu0 %v5907_v43 }
 0x31d   :  { %7506 = vmatpush3.bf16.msra.mxu1 %v8655_v5  ;;  %7517 = vmatprep.mubr.msk.bf16.mxu1 %vm8697_vm1, %v8696_v8  ;;  %v8661_v5 = vld [vmem:[%s11249_s5] sm:$0xff]  }
 0x31e   :  { %7507 = vmatprep.subr.bf16.mxu1 %v8696_v8 }
 0x321   :  { %7508 = vmatpush3.bf16.msra.mxu1 %v8656_v2 }
 0x322   :  { %7509 = vmatprep.subr.bf16.mxu1 %v8696_v8 }
 0x325   :  { %7510 = vmatpush3.bf16.msra.mxu1 %v8657_v61  ;;  %v8662_v61 = vld [vmem:[%s11249_s5 + $0x8] sm:$0xff]  }
 0x326   :  { %7511 = vmatprep.subr.bf16.mxu1 %v8696_v8 }
 0x329   :  { %7512 = vmatpush3.bf16.msra.mxu1 %v8658_v63  ;;  %v8663_v63 = vld [vmem:[%s11249_s5 + $0x10] sm:$0xff]  }
 0x32a   :  { %7513 = vmatprep.subr.bf16.mxu1 %v8696_v8 }
 0x32d   :  { %7514 = vmatpush3.bf16.msra.mxu1 %v8659_v1  ;;  %v8665_v1 = vld [vmem:[%s11249_s5 + $0x20] sm:$0xff]  }
 0x32e   :  { %7515 = vmatprep.subr.bf16.mxu1 %v8696_v8 }
 0x331   :  { %7516 = vmatpush3.bf16.msra.mxu1 %v6223_v20 }
 0x332   :  { %7521 = vmatprep.subr.bf16.mxu1 %v8696_v8 }
 0x335   :  { %v7263_v34 = vpop.f32.mrb[4].mxu0  ;;  %v7285_v4 = vpop.f32.mrb[4].mxu1 }
 0x336   :  { %v7264_v6 = vpop.f32.mrb[5].mxu0  ;;  %v7286_v7 = vpop.f32.mrb[5].mxu1 }
 0x337   :  { %v7265_v9 = vadd.f32 %v7264_v6, %v7263_v34  ;;  %v7266_v11 = vpop.f32.mrb[6].mxu0  ;;  %v7287_v12 = vadd.f32 %v7286_v7, %v7285_v4  ;;  %v7288_v14 = vpop.f32.mrb[6].mxu1  ;;  %v8666_v34 = vld [vmem:[%s11249_s5 + $0x28] sm:$0xff]   ;;  %v7197_v7 = vld [vmem:[%s11248_s4] ss:$0 sm:$0xff] }
 0x338   :  { %v7267_v52 = vpop.f32.mrb[7].mxu0  ;;  %v7289_v16 = vpop.f32.mrb[7].mxu1 }
 0x339   :  { %v5580_v19 = vadd.f32 %v7265_v9, %v916_v3  ;;  %v8667_v3 = vld [vmem:[%s11249_s5 + $0x30] sm:$0xff]  }
 0x33b   :  { %v5620_v13 = vadd.f32 %v7287_v12, %v5580_v19 }
 0x355   :  { %v7307_v23 = vpop.f32.mrb[8].mxu0  ;;  %v7329_v21 = vpop.f32.mrb[8].mxu1 }
 0x356   :  { %v7308_v22 = vpop.f32.mrb[9].mxu0  ;;  %v7330_v27 = vpop.f32.mrb[9].mxu1 }
 0x357   :  { %v7309_v15 = vadd.f32 %v7308_v22, %v7307_v23  ;;  %v7310_v25 = vpop.f32.mrb[10].mxu0  ;;  %v7331_v26 = vadd.f32 %v7330_v27, %v7329_v21  ;;  %v7332_v32 = vpop.f32.mrb[10].mxu1 }
 0x358   :  { %v7311_v28 = vpop.f32.mrb[11].mxu0  ;;  %v7333_v62 = vpop.f32.mrb[11].mxu1  ;;  %v7237_v32 = vld [vmem:[%s11250_s6] ss:$0 sm:$0xff] }
 0x359   :  { %v5660_v18 = vadd.f32 %v7309_v15, %v5620_v13 }
 0x35b   :  { %v5700_v29 = vadd.f32 %v7331_v26, %v5660_v18 }
 0x375   :  { %v7351_v30 = vpop.f32.mrb[12].mxu0  ;;  %v7373_v24 = vpop.f32.mrb[12].mxu1 }
 0x376   :  { %v7352_v47 = vpop.f32.mrb[13].mxu0  ;;  %v7374_v31 = vpop.f32.mrb[13].mxu1 }
 0x377   :  { %v7353_v35 = vadd.f32 %v7352_v47, %v7351_v30  ;;  %v7354_v36 = vpop.f32.mrb[14].mxu0  ;;  %v7375_v37 = vadd.f32 %v7374_v31, %v7373_v24  ;;  %v7376_v49 = vpop.f32.mrb[14].mxu1 }
 0x378   :  { %v7355_v59 = vpop.f32.mrb[15].mxu0  ;;  %v7377_v38 = vpop.f32.mrb[15].mxu1 }
 0x379   :  { %v5740_v39 = vadd.f32 %v7353_v35, %v5700_v29 }
 0x37b   :  { %v5780_v40 = vadd.f32 %v7375_v37, %v5740_v39 }
 0x395   :  { %v7395_v41 = vpop.f32.mrb[16].mxu0  ;;  %v7417_v44 = vpop.f32.mrb[16].mxu1 }
 0x396   :  { %v7396_v46 = vpop.f32.mrb[17].mxu0  ;;  %v7418_v60 = vpop.f32.mrb[17].mxu1 }
 0x397   :  { %v7397_v17 = vadd.f32 %v7396_v46, %v7395_v41  ;;  %v7398_v10 = vpop.f32.mrb[18].mxu0  ;;  %v7419_v48 = vadd.f32 %v7418_v60, %v7417_v44  ;;  %v7420_v50 = vpop.f32.mrb[18].mxu1 }
 0x398   :  { %v7399_v53 = vpop.f32.mrb[19].mxu0  ;;  %v7421_v54 = vpop.f32.mrb[19].mxu1 }
 0x399   :  { %v5820_v55 = vadd.f32 %v7397_v17, %v5780_v40 }
 0x39b   :  { %v5860_v56 = vadd.f32 %v7419_v48, %v5820_v55 }
 0x3b5   :  { %v7439_v33 = vpop.f32.mrb[20].mxu0 }
 0x3b6   :  { %v7440_v45 = vpop.f32.mrb[21].mxu0 }
 0x3b7   :  { %v7441_v57 = vadd.f32 %v7440_v45, %v7439_v33  ;;  %v7442_v58 = vpop.f32.mrb[22].mxu0 }
 0x3b8   :  { %v7443_v51 = vpop.f32.mrb[23].mxu0 }
 0x3b9   :  { %v5900_v43 = vadd.f32 %v7441_v57, %v5860_v56 }
 0x3bb   :  { %v5909_v2 = vpack.c.bf16 %v5900_v43, %v5900_v43 }
 0x3bd   :  { %7518 = vmatmul.mubr.msk.bf16.vlgmr.msra.gmra.mrb[24].mxu1 %vm6217_vm2, %v5909_v2 }
 0x3be   :  { %7522 = vmatpush3.bf16.msra.mxu1 %v8661_v5  ;;  %7537 = vmatprep.mubr.msk.bf16.mxu1 %vm8697_vm1, %v8696_v8 }
 0x3bf   :  { %7523 = vmatprep.subr.bf16.mxu1 %v8696_v8 }
 0x3c2   :  { %7524 = vmatpush3.bf16.msra.mxu1 %v8662_v61 }
 0x3c3   :  { %7525 = vmatprep.subr.bf16.mxu1 %v8696_v8 }
 0x3c6   :  { %7526 = vmatpush3.bf16.msra.mxu1 %v8663_v63 }
 0x3c7   :  { %7527 = vmatprep.subr.bf16.mxu1 %v8696_v8 }
 0x3ca   :  { %7528 = vmatpush3.bf16.msra.mxu1 %v8664_v0 }
 0x3cb   :  { %7529 = vmatprep.subr.bf16.mxu1 %v8696_v8 }
 0x3ce   :  { %7530 = vmatpush3.bf16.msra.mxu1 %v8665_v1 }
 0x3cf   :  { %7531 = vmatprep.subr.bf16.mxu1 %v8696_v8 }
 0x3d2   :  { %7532 = vmatpush3.bf16.msra.mxu1 %v8666_v34 }
 0x3d3   :  { %7533 = vmatprep.subr.bf16.mxu1 %v8696_v8 }
 0x3d6   :  { %7534 = vmatpush3.bf16.msra.mxu1 %v8667_v3 }
 0x3d7   :  { %7535 = vmatprep.subr.bf16.mxu1 %v8696_v8  ;;  %v8668_v8 = vld [vmem:[%s11249_s5 + $0x38] ss:$0 sps:$4 sm:$0xff]   ;;  %s8671_s5 = scalar_lea.vmem %s6469_s0, 32 }
 0x3d8   :  { %v6418_v23 = vsel %vm6221_vm0, %v8668_v8, 0  ;;  %p8672_p0 = scmp.ne.s32.totalorder %s6469_s0, %s8671_s5  ;;  %p8677_p2 = scmp.lt.s32.totalorder %s8671_s5, %s8671_s5 }
 0x3da   :  { %7536 = vmatpush3.bf16.msra.mxu1 %v6418_v23  ;;  %p8678_p3 = por %p8677_p2, %p8676_p1 }
 0x3dc   :  { %p8679_p4 = pnand %p8678_p3, %p8672_p0 }
 0x3ef   :  { %v7461_v4 = vpop.f32.mrb[20].mxu1  ;;  %v7483_v6 = vpop.f32.mrb[24].mxu0 }
 0x3f0   :  { %v7462_v9 = vpop.f32.mrb[21].mxu1  ;;  %v7484_v11 = vpop.f32.mrb[25].mxu0 }
 0x3f1   :  { %v7463_v12 = vadd.f32 %v7462_v9, %v7461_v4  ;;  %v7485_v14 = vadd.f32 %v7484_v11, %v7483_v6  ;;  %v7464_v42 = vpop.f32.mrb[22].mxu1  ;;  %v7486_v52 = vpop.f32.mrb[26].mxu0 }
 0x3f2   :  { %v7465_v16 = vpop.f32.mrb[23].mxu1  ;;  %v7487_v19 = vpop.f32.mrb[27].mxu0 }
 0x3f3   :  { %v6260_v20 = vadd.f32 %v7463_v12, %v7197_v7 }
 0x3f5   :  { %v6300_v13 = vadd.f32 %v7485_v14, %v6260_v20 }
 0x490   :  { %v6339_v21 = vpop.f32.mrb[24].mxu1 }
 0x491   :  { %v6340_v22 = vadd.f32 %v6339_v21, %v6300_v13  ;;  %v7519_v27 = vpop.f32.mrb[25].mxu1 }
 0x492   :  { %v6342_v15 = vpop.f32.mrb[26].mxu1 }
 0x493   :  { %v6345_v25 = vpack.c.bf16 %v6340_v22, %v6340_v22  ;;  %v7520_v26 = vpop.f32.mrb[27].mxu1 }
 0x495   :  { %7538 = vmatmul.mubr.msk.bf16.vlgmr.msra.gmra.mrb[28].mxu1 %vm6413_vm3, %v6345_v25 }
 0x568   :  { %v6454_v28 = vpop.f32.mrb[28].mxu1 }
 0x569   :  { %v6455_v62 = vadd.f32 %v7237_v32, %v6454_v28  ;;  %v7539_v18 = vpop.f32.mrb[29].mxu1 }
 0x56a   :  { %v6457_v29 = vpop.f32.mrb[30].mxu1 }
 0x56b   :  { %v7540_v30 = vpop.f32.mrb[31].mxu1  ;;  %6461 = vst.msk [vmem:[#allocation2] sm:$0x3] %vm6460_vm4, %v6455_v62 }
 0x56c   :  { %8682 = shalt.err (!%p8679_p4)
}
 0x56d   :  { %s8683_s6 = scalar_lea.hbm %s11251_s7, 32 }
 0x56e   :  { %p8684_p5 = scmp.ne.s32.totalorder %s11251_s7, %s8683_s6  ;;  %p8687_p6 = scmp.lt.u32.totalorder %s8683_s6, %s11251_s7 }
 0x570   :  { %p8689_p7 = pnand %p8687_p6, %p8684_p5 }
 0x572   :  { %8692 = shalt.err (!%p8689_p7)
}
 0x573   :  { %6471 = dma.vmem_to_hbm [thread:$0]  %s6469_s0, 32, %s11251_s7, [#allocation3]  }
 0x574   :  { %8693 = dma.done.wait [#allocation3], 32  }
 0x575   :  { %8694 = vsyncadd [#allocation3], 4294967264 }
 0x576   :  { %6475 = vsyncpa [#allocation3], 1 }

</bundles_post_ra>
